<compile_context>
chip_gen: v7x
topology: tpu7x:2x2x1
jax: 0.10.0
libtpu: 0.0.40
codegen_flags: <defaults>
</compile_context>

<pallas_src>
import functools

import jax
import jax.numpy as jnp
from jax.experimental import pallas as pl
from jax.experimental.pallas import tpu as pltpu


# ---------------- packed-parameter layout (static indices) ----------------
NMAT = 6
W1, W2, W3, WA1, WA2, WQB = range(NMAT)

NVEC = 18
(B1, B2, B3, BA1, BA2, BQB,
 G1, BE1, G2, BE2, G3, BE3, G4, BE4, G5, BE5,
 WQ, BQ) = range(NVEC)
NVEC_PAD = 24          # pad row count to a multiple of 8 (sublane tile)

TILE_B = 128           # batch tile (MXU-filling M dimension, f32 aligned)


def _round_up(x, m):
    return ((x + m - 1) // m) * m


# ------------------------------- kernel -----------------------------------
def critic_kernel(state_ref, action_ref, wm_ref, vec_ref, out_ref, *, d1, d2, d3):
    f32 = jnp.float32
    hi = jax.lax.Precision.HIGHEST

    def row(i):                       # (DP,) view of one packed parameter row
        return vec_ref[i, :]

    def dense(x, wi, bi):             # x @ W + b on the MXU
        return jnp.dot(x, wm_ref[wi], preferred_element_type=f32,
                       precision=hi) + row(bi)

    def layernorm(x, gi, bei, d_real, eps=1e-5):
        # One-pass stats.  Padding lanes of x are exactly zero, so the raw sums
        # already equal the sums over the real `d_real` features.
        inv_d = 1.0 / d_real
        s = jnp.sum(x, axis=-1, keepdims=True)
        s2 = jnp.sum(x * x, axis=-1, keepdims=True)
        mu = s * inv_d
        var = s2 * inv_d - mu * mu
        # gamma/beta are zero-padded -> padding lanes come out exactly zero again.
        return (x - mu) * jax.lax.rsqrt(var + eps) * row(gi) + row(bei)

    state = state_ref[...]
    action = action_ref[...]

    # ---- state branch ----
    sv = jnp.maximum(layernorm(dense(state, W1, B1), G1, BE1, d1), 0.0)
    sv = jnp.maximum(layernorm(dense(sv, W2, B2), G2, BE2, d2), 0.0)
    sv = layernorm(dense(sv, W3, B3), G3, BE3, d3)

    # ---- action branch ----
    av = jnp.maximum(layernorm(dense(action, WA1, BA1), G4, BE4, d2), 0.0)
    av = layernorm(dense(av, WA2, BA2), G5, BE5, d3)

    # ---- merge ----
    sa = jnp.maximum(sv + av, 0.0)
    sa = jnp.tanh(dense(sa, WQB, BQB))

    # Final N=1 linear as VPU multiply + XLU lane reduction (no wasted MXU pass,
    # no 1-lane masked store).  bq is stored lane-replicated, so adding it
    # broadcasts the per-row scalar across all 128 lanes -> lane-dense store.
    q = jnp.sum(sa * row(WQ), axis=-1, keepdims=True)           # [TILE_B, 1]
    out_ref[...] = (q + row(BQ)).astype(out_ref.dtype)          # [TILE_B, DP]


# ------------------------------ wrapper ------------------------------------
def pack_params(p, dp):
    """Pack all weights/biases/LN params into 2 zero-padded f32 buffers."""
    def pad_mat(w):
        return jnp.zeros((dp, dp), jnp.float32).at[:w.shape[0], :w.shape[1]].set(w)

    def pad_vec(v):
        return jnp.zeros((dp,), jnp.float32).at[:v.shape[0]].set(v)

    wmats = jnp.stack([pad_mat(p[k]) for k in ("w1", "w2", "w3", "wa1", "wa2", "wqb")])

    rows = [pad_vec(p[k]) for k in ("b1", "b2", "b3", "ba1", "ba2", "bqb",
                                    "g1", "be1", "g2", "be2", "g3", "be3",
                                    "g4", "be4", "g5", "be5")]
    rows.append(pad_vec(p["wq"]))                                # WQ row
    rows.append(jnp.full((dp,), p["bq"], jnp.float32))           # BQ lane-replicated
    while len(rows) < NVEC_PAD:
        rows.append(jnp.zeros((dp,), jnp.float32))
    vecs = jnp.stack(rows)
    return wmats, vecs


def critic_forward(state, action, wmats, vecs, *, fc1, fc2, fc3, tile_b=TILE_B):
    batch, in_dim = state.shape
    n_act = action.shape[1]
    dp = wmats.shape[-1]
    pb = _round_up(batch, tile_b)

    # Zero-pad activations to (pb, dp): rows to a full batch tile, features to 128.
    state_p = jnp.zeros((pb, dp), jnp.float32).at[:batch, :in_dim].set(
        state.astype(jnp.float32))
    action_p = jnp.zeros((pb, dp), jnp.float32).at[:batch, :n_act].set(
        action.astype(jnp.float32))

    kernel = functools.partial(critic_kernel,
                               d1=float(fc1), d2=float(fc2), d3=float(fc3))

    out = pl.pallas_call(
        kernel,
        out_shape=jax.ShapeDtypeStruct((pb, dp), jnp.float32),
        grid=(pb // tile_b,),
        in_specs=[
            pl.BlockSpec((tile_b, dp), lambda i: (i, 0)),          # state tile
            pl.BlockSpec((tile_b, dp), lambda i: (i, 0)),          # action tile
            pl.BlockSpec((NMAT, dp, dp), lambda i: (0, 0, 0)),     # weights: VMEM-resident
            pl.BlockSpec((NVEC_PAD, dp), lambda i: (0, 0)),        # vectors: VMEM-resident
        ],
        out_specs=pl.BlockSpec((tile_b, dp), lambda i: (i, 0)),
        compiler_params=pltpu.CompilerParams(
            dimension_semantics=("parallel",)),                    # 2 TCs on v7x
    )(state_p, action_p, wmats, vecs)

    return out[:batch, :1]


# --------------------------- init & reference ------------------------------
def init_params(key, input_dim, fc1, fc2, fc3, n_actions):
    """Deterministic init mirroring CriticNetwork.__init__ (uniform ranges)."""
    ks = jax.random.split(key, 16)
    u = lambda k, shape, lim: jax.random.uniform(
        k, shape, jnp.float32, minval=-lim, maxval=lim)

    f1 = 1.0 / (fc1 ** 0.5)       # torch uses weight.size()[0] = out_features
    f2 = 1.0 / (fc2 ** 0.5)
    f3 = 1.0 / (fc3 ** 0.5)
    f4 = 0.003
    f5 = 1.0 / (fc2 ** 0.5)
    f6 = 1.0 / (fc3 ** 0.5)
    fqb = 1.0 / (fc3 ** 0.5)      # q_bef keeps a default-Linear-like range here

    ones = lambda n: jnp.ones((n,), jnp.float32)
    zeros = lambda n: jnp.zeros((n,), jnp.float32)

    return {
        # Linear weights stored pre-transposed as [in, out]; biases as 1-D.
        "w1": u(ks[0], (input_dim, fc1), f1), "b1": u(ks[1], (fc1,), f1),
        "w2": u(ks[2], (fc1, fc2), f2),       "b2": u(ks[3], (fc2,), f2),
        "w3": u(ks[4], (fc2, fc3), f3),       "b3": u(ks[5], (fc3,), f3),
        "wa1": u(ks[6], (n_actions, fc2), f5), "ba1": u(ks[7], (fc2,), f5),
        "wa2": u(ks[8], (fc2, fc3), f6),       "ba2": u(ks[9], (fc3,), f6),
        "wqb": u(ks[10], (fc3, fc3), fqb),     "bqb": u(ks[11], (fc3,), fqb),
        "wq": u(ks[12], (fc3,), f4),           "bq": u(ks[13], (), f4),
        # LayerNorm affine params: torch default init (ones / zeros).
        "g1": ones(fc1), "be1": zeros(fc1),
        "g2": ones(fc2), "be2": zeros(fc2),
        "g3": ones(fc3), "be3": zeros(fc3),
        "g4": ones(fc2), "be4": zeros(fc2),
        "g5": ones(fc3), "be5": zeros(fc3),
    }


def reference_forward(state, action, p):
    """Pure-JAX reference (PyTorch-faithful two-pass LayerNorm) for sanity check."""
    hi = jax.lax.Precision.HIGHEST
    lin = lambda x, w, b: jnp.dot(x, w, precision=hi) + b

    def ln(x, g, b, eps=1e-5):
        mu = jnp.mean(x, axis=-1, keepdims=True)
        var = jnp.mean((x - mu) ** 2, axis=-1, keepdims=True)
        return (x - mu) * jax.lax.rsqrt(var + eps) * g + b

    sv = jnp.maximum(ln(lin(state, p["w1"], p["b1"]), p["g1"], p["be1"]), 0.0)
    sv = jnp.maximum(ln(lin(sv, p["w2"], p["b2"]), p["g2"], p["be2"]), 0.0)
    sv = ln(lin(sv, p["w3"], p["b3"]), p["g3"], p["be3"])
    av = jnp.maximum(ln(lin(action, p["wa1"], p["ba1"]), p["g4"], p["be4"]), 0.0)
    av = ln(lin(av, p["wa2"], p["ba2"]), p["g5"], p["be5"])
    sa = jnp.maximum(sv + av, 0.0)
    sa = jnp.tanh(lin(sa, p["wqb"], p["bqb"]))
    return jnp.dot(sa, p["wq"][:, None], precision=hi) + p["bq"]


if __name__ == "__main__":
    # Small shapes consistent with the module's forward:
    # state [B, input_dim], action [B, n_actions], output [B, 1].
    BATCH, INPUT_DIM, FC1, FC2, FC3, N_ACTIONS = 8, 32, 64, 64, 64, 8

    key = jax.random.PRNGKey(0)
    k_state, k_action, k_params = jax.random.split(key, 3)
    state = jax.random.normal(k_state, (BATCH, INPUT_DIM), jnp.float32)
    action = jax.random.normal(k_action, (BATCH, N_ACTIONS), jnp.float32)
    params = init_params(k_params, INPUT_DIM, FC1, FC2, FC3, N_ACTIONS)

    # Pack parameters once (re-used across forward calls, e.g. a DDPG inner loop).
    dp = _round_up(max(INPUT_DIM, N_ACTIONS, FC1, FC2, FC3), 128)
    wmats, vecs = pack_params(params, dp)

    q = critic_forward(state, action, wmats, vecs, fc1=FC1, fc2=FC2, fc3=FC3)
    q = jax.block_until_ready(q)

    q_ref = reference_forward(state, action, params)
    assert q.shape == (BATCH, 1)
    max_err = float(jnp.max(jnp.abs(q - q_ref)))
    assert max_err < 1e-4, (max_err, q, q_ref)

    print("KERNEL_OK")
</pallas_src>

<mosaic_0001>
module attributes {stable_mosaic.version = 11 : i64} {
  func.func @critic_kernel(%arg0: i32, %arg1: memref<128x128xf32, #tpu.memory_space<vmem>>, %arg2: memref<128x128xf32, #tpu.memory_space<vmem>>, %arg3: memref<6x128x128xf32, #tpu.memory_space<vmem>>, %arg4: memref<24x128xf32, #tpu.memory_space<vmem>>, %arg5: memref<128x128xf32, #tpu.memory_space<vmem>>) attributes {dimension_semantics = [#tpu.dimension_semantics<parallel>], iteration_bounds = array<i64: 1>, scalar_prefetch = 0 : i64, scratch_operands = 0 : i64, tpu.core_type = #tpu.core_type<tc>, window_params = [{transform_indices = @transform_0, window_bounds = array<i64: 128, 128>}, {transform_indices = @transform_1, window_bounds = array<i64: 128, 128>}, {pipeline_mode = #tpu.pipeline_mode<synchronous>, transform_indices = @transform_2, window_bounds = array<i64: 6, 128, 128>}, {pipeline_mode = #tpu.pipeline_mode<synchronous>, transform_indices = @transform_3, window_bounds = array<i64: 24, 128>}, {transform_indices = @transform_4, window_bounds = array<i64: 128, 128>}]} {
    %c0 = arith.constant 0 : index
    %c0_0 = arith.constant 0 : index
    %0 = vector.load %arg1[%c0, %c0_0] : memref<128x128xf32, #tpu.memory_space<vmem>>, vector<128x128xf32>
    %c0_1 = arith.constant 0 : index
    %c0_2 = arith.constant 0 : index
    %1 = vector.load %arg2[%c0_1, %c0_2] : memref<128x128xf32, #tpu.memory_space<vmem>>, vector<128x128xf32>
    %c0_3 = arith.constant 0 : index
    %c0_4 = arith.constant 0 : index
    %c0_5 = arith.constant 0 : index
    %2 = vector.load %arg3[%c0_3, %c0_4, %c0_5] : memref<6x128x128xf32, #tpu.memory_space<vmem>>, vector<1x128x128xf32>
    %3 = vector.shape_cast %2 : vector<1x128x128xf32> to vector<128x128xf32>
    %cst = arith.constant dense<0.000000e+00> : vector<128x128xf32>
    %4 = tpu.matmul %0, %3, %cst {dimension_numbers = #tpu.dot_dimension_numbers<[1], [0], [0], [1], [0, 0, 1, 1], [], []>, precision = #tpu.contract_precision<fp32>} : vector<128x128xf32>, vector<128x128xf32>, vector<128x128xf32> -> vector<128x128xf32>
    %c0_6 = arith.constant 0 : index
    %c0_7 = arith.constant 0 : index
    %5 = vector.load %arg4[%c0_6, %c0_7] : memref<24x128xf32, #tpu.memory_space<vmem>>, vector<1x128xf32>
    %6 = vector.shape_cast %5 : vector<1x128xf32> to vector<128xf32>
    %7 = vector.shape_cast %6 : vector<128xf32> to vector<1x128xf32>
    %8 = vector.broadcast %7 : vector<1x128xf32> to vector<128x128xf32>
    %9 = arith.addf %4, %8 : vector<128x128xf32>
    %cst_8 = arith.constant dense<0.000000e+00> : vector<128xf32>
    %10 = vector.multi_reduction <add>, %9, %cst_8 [1] : vector<128x128xf32> to vector<128xf32>
    %11 = vector.shape_cast %10 : vector<128xf32> to vector<128x1xf32>
    %12 = arith.mulf %9, %9 : vector<128x128xf32>
    %cst_9 = arith.constant dense<0.000000e+00> : vector<128xf32>
    %13 = vector.multi_reduction <add>, %12, %cst_9 [1] : vector<128x128xf32> to vector<128xf32>
    %14 = vector.shape_cast %13 : vector<128xf32> to vector<128x1xf32>
    %cst_10 = arith.constant 1.562500e-02 : f32
    %15 = vector.broadcast %cst_10 : f32 to vector<128x1xf32>
    %16 = arith.mulf %11, %15 : vector<128x1xf32>
    %cst_11 = arith.constant 1.562500e-02 : f32
    %17 = vector.broadcast %cst_11 : f32 to vector<128x1xf32>
    %18 = arith.mulf %14, %17 : vector<128x1xf32>
    %19 = arith.mulf %16, %16 : vector<128x1xf32>
    %20 = arith.subf %18, %19 : vector<128x1xf32>
    %21 = vector.broadcast %16 : vector<128x1xf32> to vector<128x128xf32>
    %22 = arith.subf %9, %21 : vector<128x128xf32>
    %cst_12 = arith.constant 9.99999974E-6 : f32
    %23 = vector.broadcast %cst_12 : f32 to vector<128x1xf32>
    %24 = arith.addf %20, %23 : vector<128x1xf32>
    %25 = math.rsqrt %24 : vector<128x1xf32>
    %26 = vector.broadcast %25 : vector<128x1xf32> to vector<128x128xf32>
    %27 = arith.mulf %22, %26 : vector<128x128xf32>
    %c6 = arith.constant 6 : index
    %c0_13 = arith.constant 0 : index
    %28 = vector.load %arg4[%c6, %c0_13] : memref<24x128xf32, #tpu.memory_space<vmem>>, vector<1x128xf32>
    %29 = vector.shape_cast %28 : vector<1x128xf32> to vector<128xf32>
    %30 = vector.shape_cast %29 : vector<128xf32> to vector<1x128xf32>
    %31 = vector.broadcast %30 : vector<1x128xf32> to vector<128x128xf32>
    %32 = arith.mulf %27, %31 : vector<128x128xf32>
    %c7 = arith.constant 7 : index
    %c0_14 = arith.constant 0 : index
    %33 = vector.load %arg4[%c7, %c0_14] : memref<24x128xf32, #tpu.memory_space<vmem>>, vector<1x128xf32>
    %34 = vector.shape_cast %33 : vector<1x128xf32> to vector<128xf32>
    %35 = vector.shape_cast %34 : vector<128xf32> to vector<1x128xf32>
    %36 = vector.broadcast %35 : vector<1x128xf32> to vector<128x128xf32>
    %37 = arith.addf %32, %36 : vector<128x128xf32>
    %cst_15 = arith.constant 0.000000e+00 : f32
    %38 = vector.broadcast %cst_15 : f32 to vector<128x128xf32>
    %39 = arith.maximumf %37, %38 : vector<128x128xf32>
    %c1 = arith.constant 1 : index
    %c0_16 = arith.constant 0 : index
    %c0_17 = arith.constant 0 : index
    %40 = vector.load %arg3[%c1, %c0_16, %c0_17] : memref<6x128x128xf32, #tpu.memory_space<vmem>>, vector<1x128x128xf32>
    %41 = vector.shape_cast %40 : vector<1x128x128xf32> to vector<128x128xf32>
    %cst_18 = arith.constant dense<0.000000e+00> : vector<128x128xf32>
    %42 = tpu.matmul %39, %41, %cst_18 {dimension_numbers = #tpu.dot_dimension_numbers<[1], [0], [0], [1], [0, 0, 1, 1], [], []>, precision = #tpu.contract_precision<fp32>} : vector<128x128xf32>, vector<128x128xf32>, vector<128x128xf32> -> vector<128x128xf32>
    %c1_19 = arith.constant 1 : index
    %c0_20 = arith.constant 0 : index
    %43 = vector.load %arg4[%c1_19, %c0_20] : memref<24x128xf32, #tpu.memory_space<vmem>>, vector<1x128xf32>
    %44 = vector.shape_cast %43 : vector<1x128xf32> to vector<128xf32>
    %45 = vector.shape_cast %44 : vector<128xf32> to vector<1x128xf32>
    %46 = vector.broadcast %45 : vector<1x128xf32> to vector<128x128xf32>
    %47 = arith.addf %42, %46 : vector<128x128xf32>
    %cst_21 = arith.constant dense<0.000000e+00> : vector<128xf32>
    %48 = vector.multi_reduction <add>, %47, %cst_21 [1] : vector<128x128xf32> to vector<128xf32>
    %49 = vector.shape_cast %48 : vector<128xf32> to vector<128x1xf32>
    %50 = arith.mulf %47, %47 : vector<128x128xf32>
    %cst_22 = arith.constant dense<0.000000e+00> : vector<128xf32>
    %51 = vector.multi_reduction <add>, %50, %cst_22 [1] : vector<128x128xf32> to vector<128xf32>
    %52 = vector.shape_cast %51 : vector<128xf32> to vector<128x1xf32>
    %cst_23 = arith.constant 1.562500e-02 : f32
    %53 = vector.broadcast %cst_23 : f32 to vector<128x1xf32>
    %54 = arith.mulf %49, %53 : vector<128x1xf32>
    %cst_24 = arith.constant 1.562500e-02 : f32
    %55 = vector.broadcast %cst_24 : f32 to vector<128x1xf32>
    %56 = arith.mulf %52, %55 : vector<128x1xf32>
    %57 = arith.mulf %54, %54 : vector<128x1xf32>
    %58 = arith.subf %56, %57 : vector<128x1xf32>
    %59 = vector.broadcast %54 : vector<128x1xf32> to vector<128x128xf32>
    %60 = arith.subf %47, %59 : vector<128x128xf32>
    %cst_25 = arith.constant 9.99999974E-6 : f32
    %61 = vector.broadcast %cst_25 : f32 to vector<128x1xf32>
    %62 = arith.addf %58, %61 : vector<128x1xf32>
    %63 = math.rsqrt %62 : vector<128x1xf32>
    %64 = vector.broadcast %63 : vector<128x1xf32> to vector<128x128xf32>
    %65 = arith.mulf %60, %64 : vector<128x128xf32>
    %c8 = arith.constant 8 : index
    %c0_26 = arith.constant 0 : index
    %66 = vector.load %arg4[%c8, %c0_26] : memref<24x128xf32, #tpu.memory_space<vmem>>, vector<1x128xf32>
    %67 = vector.shape_cast %66 : vector<1x128xf32> to vector<128xf32>
    %68 = vector.shape_cast %67 : vector<128xf32> to vector<1x128xf32>
    %69 = vector.broadcast %68 : vector<1x128xf32> to vector<128x128xf32>
    %70 = arith.mulf %65, %69 : vector<128x128xf32>
    %c9 = arith.constant 9 : index
    %c0_27 = arith.constant 0 : index
    %71 = vector.load %arg4[%c9, %c0_27] : memref<24x128xf32, #tpu.memory_space<vmem>>, vector<1x128xf32>
    %72 = vector.shape_cast %71 : vector<1x128xf32> to vector<128xf32>
    %73 = vector.shape_cast %72 : vector<128xf32> to vector<1x128xf32>
    %74 = vector.broadcast %73 : vector<1x128xf32> to vector<128x128xf32>
    %75 = arith.addf %70, %74 : vector<128x128xf32>
    %cst_28 = arith.constant 0.000000e+00 : f32
    %76 = vector.broadcast %cst_28 : f32 to vector<128x128xf32>
    %77 = arith.maximumf %75, %76 : vector<128x128xf32>
    %c2 = arith.constant 2 : index
    %c0_29 = arith.constant 0 : index
    %c0_30 = arith.constant 0 : index
    %78 = vector.load %arg3[%c2, %c0_29, %c0_30] : memref<6x128x128xf32, #tpu.memory_space<vmem>>, vector<1x128x128xf32>
    %79 = vector.shape_cast %78 : vector<1x128x128xf32> to vector<128x128xf32>
    %cst_31 = arith.constant dense<0.000000e+00> : vector<128x128xf32>
    %80 = tpu.matmul %77, %79, %cst_31 {dimension_numbers = #tpu.dot_dimension_numbers<[1], [0], [0], [1], [0, 0, 1, 1], [], []>, precision = #tpu.contract_precision<fp32>} : vector<128x128xf32>, vector<128x128xf32>, vector<128x128xf32> -> vector<128x128xf32>
    %c2_32 = arith.constant 2 : index
    %c0_33 = arith.constant 0 : index
    %81 = vector.load %arg4[%c2_32, %c0_33] : memref<24x128xf32, #tpu.memory_space<vmem>>, vector<1x128xf32>
    %82 = vector.shape_cast %81 : vector<1x128xf32> to vector<128xf32>
    %83 = vector.shape_cast %82 : vector<128xf32> to vector<1x128xf32>
    %84 = vector.broadcast %83 : vector<1x128xf32> to vector<128x128xf32>
    %85 = arith.addf %80, %84 : vector<128x128xf32>
    %cst_34 = arith.constant dense<0.000000e+00> : vector<128xf32>
    %86 = vector.multi_reduction <add>, %85, %cst_34 [1] : vector<128x128xf32> to vector<128xf32>
    %87 = vector.shape_cast %86 : vector<128xf32> to vector<128x1xf32>
    %88 = arith.mulf %85, %85 : vector<128x128xf32>
    %cst_35 = arith.constant dense<0.000000e+00> : vector<128xf32>
    %89 = vector.multi_reduction <add>, %88, %cst_35 [1] : vector<128x128xf32> to vector<128xf32>
    %90 = vector.shape_cast %89 : vector<128xf32> to vector<128x1xf32>
    %cst_36 = arith.constant 1.562500e-02 : f32
    %91 = vector.broadcast %cst_36 : f32 to vector<128x1xf32>
    %92 = arith.mulf %87, %91 : vector<128x1xf32>
    %cst_37 = arith.constant 1.562500e-02 : f32
    %93 = vector.broadcast %cst_37 : f32 to vector<128x1xf32>
    %94 = arith.mulf %90, %93 : vector<128x1xf32>
    %95 = arith.mulf %92, %92 : vector<128x1xf32>
    %96 = arith.subf %94, %95 : vector<128x1xf32>
    %97 = vector.broadcast %92 : vector<128x1xf32> to vector<128x128xf32>
    %98 = arith.subf %85, %97 : vector<128x128xf32>
    %cst_38 = arith.constant 9.99999974E-6 : f32
    %99 = vector.broadcast %cst_38 : f32 to vector<128x1xf32>
    %100 = arith.addf %96, %99 : vector<128x1xf32>
    %101 = math.rsqrt %100 : vector<128x1xf32>
    %102 = vector.broadcast %101 : vector<128x1xf32> to vector<128x128xf32>
    %103 = arith.mulf %98, %102 : vector<128x128xf32>
    %c10 = arith.constant 10 : index
    %c0_39 = arith.constant 0 : index
    %104 = vector.load %arg4[%c10, %c0_39] : memref<24x128xf32, #tpu.memory_space<vmem>>, vector<1x128xf32>
    %105 = vector.shape_cast %104 : vector<1x128xf32> to vector<128xf32>
    %106 = vector.shape_cast %105 : vector<128xf32> to vector<1x128xf32>
    %107 = vector.broadcast %106 : vector<1x128xf32> to vector<128x128xf32>
    %108 = arith.mulf %103, %107 : vector<128x128xf32>
    %c11 = arith.constant 11 : index
    %c0_40 = arith.constant 0 : index
    %109 = vector.load %arg4[%c11, %c0_40] : memref<24x128xf32, #tpu.memory_space<vmem>>, vector<1x128xf32>
    %110 = vector.shape_cast %109 : vector<1x128xf32> to vector<128xf32>
    %111 = vector.shape_cast %110 : vector<128xf32> to vector<1x128xf32>
    %112 = vector.broadcast %111 : vector<1x128xf32> to vector<128x128xf32>
    %113 = arith.addf %108, %112 : vector<128x128xf32>
    %c3 = arith.constant 3 : index
    %c0_41 = arith.constant 0 : index
    %c0_42 = arith.constant 0 : index
    %114 = vector.load %arg3[%c3, %c0_41, %c0_42] : memref<6x128x128xf32, #tpu.memory_space<vmem>>, vector<1x128x128xf32>
    %115 = vector.shape_cast %114 : vector<1x128x128xf32> to vector<128x128xf32>
    %cst_43 = arith.constant dense<0.000000e+00> : vector<128x128xf32>
    %116 = tpu.matmul %1, %115, %cst_43 {dimension_numbers = #tpu.dot_dimension_numbers<[1], [0], [0], [1], [0, 0, 1, 1], [], []>, precision = #tpu.contract_precision<fp32>} : vector<128x128xf32>, vector<128x128xf32>, vector<128x128xf32> -> vector<128x128xf32>
    %c3_44 = arith.constant 3 : index
    %c0_45 = arith.constant 0 : index
    %117 = vector.load %arg4[%c3_44, %c0_45] : memref<24x128xf32, #tpu.memory_space<vmem>>, vector<1x128xf32>
    %118 = vector.shape_cast %117 : vector<1x128xf32> to vector<128xf32>
    %119 = vector.shape_cast %118 : vector<128xf32> to vector<1x128xf32>
    %120 = vector.broadcast %119 : vector<1x128xf32> to vector<128x128xf32>
    %121 = arith.addf %116, %120 : vector<128x128xf32>
    %cst_46 = arith.constant dense<0.000000e+00> : vector<128xf32>
    %122 = vector.multi_reduction <add>, %121, %cst_46 [1] : vector<128x128xf32> to vector<128xf32>
    %123 = vector.shape_cast %122 : vector<128xf32> to vector<128x1xf32>
    %124 = arith.mulf %121, %121 : vector<128x128xf32>
    %cst_47 = arith.constant dense<0.000000e+00> : vector<128xf32>
    %125 = vector.multi_reduction <add>, %124, %cst_47 [1] : vector<128x128xf32> to vector<128xf32>
    %126 = vector.shape_cast %125 : vector<128xf32> to vector<128x1xf32>
    %cst_48 = arith.constant 1.562500e-02 : f32
    %127 = vector.broadcast %cst_48 : f32 to vector<128x1xf32>
    %128 = arith.mulf %123, %127 : vector<128x1xf32>
    %cst_49 = arith.constant 1.562500e-02 : f32
    %129 = vector.broadcast %cst_49 : f32 to vector<128x1xf32>
    %130 = arith.mulf %126, %129 : vector<128x1xf32>
    %131 = arith.mulf %128, %128 : vector<128x1xf32>
    %132 = arith.subf %130, %131 : vector<128x1xf32>
    %133 = vector.broadcast %128 : vector<128x1xf32> to vector<128x128xf32>
    %134 = arith.subf %121, %133 : vector<128x128xf32>
    %cst_50 = arith.constant 9.99999974E-6 : f32
    %135 = vector.broadcast %cst_50 : f32 to vector<128x1xf32>
    %136 = arith.addf %132, %135 : vector<128x1xf32>
    %137 = math.rsqrt %136 : vector<128x1xf32>
    %138 = vector.broadcast %137 : vector<128x1xf32> to vector<128x128xf32>
    %139 = arith.mulf %134, %138 : vector<128x128xf32>
    %c12 = arith.constant 12 : index
    %c0_51 = arith.constant 0 : index
    %140 = vector.load %arg4[%c12, %c0_51] : memref<24x128xf32, #tpu.memory_space<vmem>>, vector<1x128xf32>
    %141 = vector.shape_cast %140 : vector<1x128xf32> to vector<128xf32>
    %142 = vector.shape_cast %141 : vector<128xf32> to vector<1x128xf32>
    %143 = vector.broadcast %142 : vector<1x128xf32> to vector<128x128xf32>
    %144 = arith.mulf %139, %143 : vector<128x128xf32>
    %c13 = arith.constant 13 : index
    %c0_52 = arith.constant 0 : index
    %145 = vector.load %arg4[%c13, %c0_52] : memref<24x128xf32, #tpu.memory_space<vmem>>, vector<1x128xf32>
    %146 = vector.shape_cast %145 : vector<1x128xf32> to vector<128xf32>
    %147 = vector.shape_cast %146 : vector<128xf32> to vector<1x128xf32>
    %148 = vector.broadcast %147 : vector<1x128xf32> to vector<128x128xf32>
    %149 = arith.addf %144, %148 : vector<128x128xf32>
    %cst_53 = arith.constant 0.000000e+00 : f32
    %150 = vector.broadcast %cst_53 : f32 to vector<128x128xf32>
    %151 = arith.maximumf %149, %150 : vector<128x128xf32>
    %c4 = arith.constant 4 : index
    %c0_54 = arith.constant 0 : index
    %c0_55 = arith.constant 0 : index
    %152 = vector.load %arg3[%c4, %c0_54, %c0_55] : memref<6x128x128xf32, #tpu.memory_space<vmem>>, vector<1x128x128xf32>
    %153 = vector.shape_cast %152 : vector<1x128x128xf32> to vector<128x128xf32>
    %cst_56 = arith.constant dense<0.000000e+00> : vector<128x128xf32>
    %154 = tpu.matmul %151, %153, %cst_56 {dimension_numbers = #tpu.dot_dimension_numbers<[1], [0], [0], [1], [0, 0, 1, 1], [], []>, precision = #tpu.contract_precision<fp32>} : vector<128x128xf32>, vector<128x128xf32>, vector<128x128xf32> -> vector<128x128xf32>
    %c4_57 = arith.constant 4 : index
    %c0_58 = arith.constant 0 : index
    %155 = vector.load %arg4[%c4_57, %c0_58] : memref<24x128xf32, #tpu.memory_space<vmem>>, vector<1x128xf32>
    %156 = vector.shape_cast %155 : vector<1x128xf32> to vector<128xf32>
    %157 = vector.shape_cast %156 : vector<128xf32> to vector<1x128xf32>
    %158 = vector.broadcast %157 : vector<1x128xf32> to vector<128x128xf32>
    %159 = arith.addf %154, %158 : vector<128x128xf32>
    %cst_59 = arith.constant dense<0.000000e+00> : vector<128xf32>
    %160 = vector.multi_reduction <add>, %159, %cst_59 [1] : vector<128x128xf32> to vector<128xf32>
    %161 = vector.shape_cast %160 : vector<128xf32> to vector<128x1xf32>
    %162 = arith.mulf %159, %159 : vector<128x128xf32>
    %cst_60 = arith.constant dense<0.000000e+00> : vector<128xf32>
    %163 = vector.multi_reduction <add>, %162, %cst_60 [1] : vector<128x128xf32> to vector<128xf32>
    %164 = vector.shape_cast %163 : vector<128xf32> to vector<128x1xf32>
    %cst_61 = arith.constant 1.562500e-02 : f32
    %165 = vector.broadcast %cst_61 : f32 to vector<128x1xf32>
    %166 = arith.mulf %161, %165 : vector<128x1xf32>
    %cst_62 = arith.constant 1.562500e-02 : f32
    %167 = vector.broadcast %cst_62 : f32 to vector<128x1xf32>
    %168 = arith.mulf %164, %167 : vector<128x1xf32>
    %169 = arith.mulf %166, %166 : vector<128x1xf32>
    %170 = arith.subf %168, %169 : vector<128x1xf32>
    %171 = vector.broadcast %166 : vector<128x1xf32> to vector<128x128xf32>
    %172 = arith.subf %159, %171 : vector<128x128xf32>
    %cst_63 = arith.constant 9.99999974E-6 : f32
    %173 = vector.broadcast %cst_63 : f32 to vector<128x1xf32>
    %174 = arith.addf %170, %173 : vector<128x1xf32>
    %175 = math.rsqrt %174 : vector<128x1xf32>
    %176 = vector.broadcast %175 : vector<128x1xf32> to vector<128x128xf32>
    %177 = arith.mulf %172, %176 : vector<128x128xf32>
    %c14 = arith.constant 14 : index
    %c0_64 = arith.constant 0 : index
    %178 = vector.load %arg4[%c14, %c0_64] : memref<24x128xf32, #tpu.memory_space<vmem>>, vector<1x128xf32>
    %179 = vector.shape_cast %178 : vector<1x128xf32> to vector<128xf32>
    %180 = vector.shape_cast %179 : vector<128xf32> to vector<1x128xf32>
    %181 = vector.broadcast %180 : vector<1x128xf32> to vector<128x128xf32>
    %182 = arith.mulf %177, %181 : vector<128x128xf32>
    %c15 = arith.constant 15 : index
    %c0_65 = arith.constant 0 : index
    %183 = vector.load %arg4[%c15, %c0_65] : memref<24x128xf32, #tpu.memory_space<vmem>>, vector<1x128xf32>
    %184 = vector.shape_cast %183 : vector<1x128xf32> to vector<128xf32>
    %185 = vector.shape_cast %184 : vector<128xf32> to vector<1x128xf32>
    %186 = vector.broadcast %185 : vector<1x128xf32> to vector<128x128xf32>
    %187 = arith.addf %182, %186 : vector<128x128xf32>
    %188 = arith.addf %113, %187 : vector<128x128xf32>
    %cst_66 = arith.constant 0.000000e+00 : f32
    %189 = vector.broadcast %cst_66 : f32 to vector<128x128xf32>
    %190 = arith.maximumf %188, %189 : vector<128x128xf32>
    %c5 = arith.constant 5 : index
    %c0_67 = arith.constant 0 : index
    %c0_68 = arith.constant 0 : index
    %191 = vector.load %arg3[%c5, %c0_67, %c0_68] : memref<6x128x128xf32, #tpu.memory_space<vmem>>, vector<1x128x128xf32>
    %192 = vector.shape_cast %191 : vector<1x128x128xf32> to vector<128x128xf32>
    %cst_69 = arith.constant dense<0.000000e+00> : vector<128x128xf32>
    %193 = tpu.matmul %190, %192, %cst_69 {dimension_numbers = #tpu.dot_dimension_numbers<[1], [0], [0], [1], [0, 0, 1, 1], [], []>, precision = #tpu.contract_precision<fp32>} : vector<128x128xf32>, vector<128x128xf32>, vector<128x128xf32> -> vector<128x128xf32>
    %c5_70 = arith.constant 5 : index
    %c0_71 = arith.constant 0 : index
    %194 = vector.load %arg4[%c5_70, %c0_71] : memref<24x128xf32, #tpu.memory_space<vmem>>, vector<1x128xf32>
    %195 = vector.shape_cast %194 : vector<1x128xf32> to vector<128xf32>
    %196 = vector.shape_cast %195 : vector<128xf32> to vector<1x128xf32>
    %197 = vector.broadcast %196 : vector<1x128xf32> to vector<128x128xf32>
    %198 = arith.addf %193, %197 : vector<128x128xf32>
    %199 = math.tanh %198 : vector<128x128xf32>
    %c16 = arith.constant 16 : index
    %c0_72 = arith.constant 0 : index
    %200 = vector.load %arg4[%c16, %c0_72] : memref<24x128xf32, #tpu.memory_space<vmem>>, vector<1x128xf32>
    %201 = vector.shape_cast %200 : vector<1x128xf32> to vector<128xf32>
    %202 = vector.shape_cast %201 : vector<128xf32> to vector<1x128xf32>
    %203 = vector.broadcast %202 : vector<1x128xf32> to vector<128x128xf32>
    %204 = arith.mulf %199, %203 : vector<128x128xf32>
    %cst_73 = arith.constant dense<0.000000e+00> : vector<128xf32>
    %205 = vector.multi_reduction <add>, %204, %cst_73 [1] : vector<128x128xf32> to vector<128xf32>
    %206 = vector.shape_cast %205 : vector<128xf32> to vector<128x1xf32>
    %c17 = arith.constant 17 : index
    %c0_74 = arith.constant 0 : index
    %207 = vector.load %arg4[%c17, %c0_74] : memref<24x128xf32, #tpu.memory_space<vmem>>, vector<1x128xf32>
    %208 = vector.shape_cast %207 : vector<1x128xf32> to vector<128xf32>
    %209 = vector.shape_cast %208 : vector<128xf32> to vector<1x128xf32>
    %210 = vector.broadcast %206 : vector<128x1xf32> to vector<128x128xf32>
    %211 = vector.broadcast %209 : vector<1x128xf32> to vector<128x128xf32>
    %212 = arith.addf %210, %211 : vector<128x128xf32>
    %c0_75 = arith.constant 0 : index
    %c0_76 = arith.constant 0 : index
    %213 = vector.load %arg5[%c0_75, %c0_76] : memref<128x128xf32, #tpu.memory_space<vmem>>, vector<128x128xf32>
    tpu.vector_store %arg5[%c0_75, %c0_76], %212 {strides = array<i32>} : memref<128x128xf32, #tpu.memory_space<vmem>>, vector<128x128xf32>,
    return
  }
  func.func @transform_0(%arg0: i32) -> (i32, i32) {
    %c0_i32 = arith.constant 0 : i32
    %c0_i32_0 = arith.constant 0 : i32
    return %arg0, %c0_i32 : i32, i32
  }
  func.func @transform_1(%arg0: i32) -> (i32, i32) {
    %c0_i32 = arith.constant 0 : i32
    %c0_i32_0 = arith.constant 0 : i32
    return %arg0, %c0_i32 : i32, i32
  }
  func.func @transform_2(%arg0: i32) -> (i32, i32, i32) {
    %c0_i32 = arith.constant 0 : i32
    %c0_i32_0 = arith.constant 0 : i32
    %c0_i32_1 = arith.constant 0 : i32
    %c0_i32_2 = arith.constant 0 : i32
    return %c0_i32, %c0_i32_0, %c0_i32_1 : i32, i32, i32
  }
  func.func @transform_3(%arg0: i32) -> (i32, i32) {
    %c0_i32 = arith.constant 0 : i32
    %c0_i32_0 = arith.constant 0 : i32
    %c0_i32_1 = arith.constant 0 : i32
    return %c0_i32, %c0_i32_0 : i32, i32
  }
  func.func @transform_4(%arg0: i32) -> (i32, i32) {
    %c0_i32 = arith.constant 0 : i32
    %c0_i32_0 = arith.constant 0 : i32
    return %arg0, %c0_i32 : i32, i32
  }
}

</mosaic_0001>

<bundles_post_ra>
// kernel: tpu_custom_call.1
= control target key start
LH: loop header
LB: loop body
LE: loop exit
PB: predicated region body
PF: predicated region fallthrough
CT: control target
= control target key end

     0   :  { %9 = vsyncpa [#allocation3], 0  ;;  %s19679_s0 = inlined_call_operand.hbm [shape: f32[128,128], index: 0, kind: input, shape index: {}]   ;;  %s19680_s1 = inlined_call_operand.hbm [shape: f32[128,128], index: 1, kind: input, shape index: {}]   ;;  %s19681_s2 = inlined_call_operand.hbm [shape: f32[6,128,128], index: 2, kind: input, shape index: {}]   ;;  %s19682_s3 = inlined_call_operand.hbm [shape: f32[24,128], index: 3, kind: input, shape index: {}]   ;;  %s19683_s4 = inlined_call_operand.hbm [shape: f32[128,128], index: 4, kind: output, shape index: {}]  }
   0x1   :  { %10 = vsyncpa [#allocation6], 0 }
   0x2   :  { %11 = vsyncpa [#allocation9], 0 }
   0x3   :  { %12 = vsyncpa [#allocation4], 0  ;;  %s14640_s15 = smov [#allocation5]   ;;  %s14641_s17 = smov [#allocation2]  }
   0x4   :  { %s30_s16 = sshll.u32 %s14640_s15, 4  ;;  %s18_s18 = sshll.u32 %s14641_s17, 4  ;;  %s31_s16 = int_to_ptr.vmem [resolvable:$true] %s30_s16  ;;  %s14672_s18 = int_to_ptr.vmem [resolvable:$true] %s18_s18 }
   0x5   :  { %s14522_s21 = scalar_lea.hbm %s19680_s1, 2048 }
   0x6   :  { %p14523_p0 = scmp.ne.s32.totalorder %s19680_s1, %s14522_s21  ;;  %p14526_p1 = scmp.lt.u32.totalorder %s14522_s21, %s19680_s1 }
   0x8   :  { %p14528_p2 = pnand %p14526_p1, %p14523_p0 }
   0xa   :  { %14531 = shalt.err (!%p14528_p2)
}
   0xb   :  { %s14532_s26 = scalar_lea.vmem %s31_s16, 2048  ;;  %p14537_p4 = scmp.lt.s32.totalorder %s31_s16, %s31_s16 }
   0xc   :  { %p14533_p3 = scmp.ne.s32.totalorder %s31_s16, %s14532_s26  ;;  %p14538_p5 = scmp.lt.s32.totalorder %s14532_s26, %s14532_s26 }
   0xe   :  { %p14539_p6 = por %p14538_p5, %p14537_p4 }
  0x10   :  { %p14540_p7 = pnand %p14539_p6, %p14533_p3 }
  0x12   :  { %14543 = shalt.err (!%p14540_p7)
}
  0x13   :  { %s14642_s27 = smov 128   ;;  %s14643_s28 = smov 8  }
  0x14   :  { %36 = dma.hbm_to_vmem [thread:$0]  %s19680_s1, 2048, %s31_s16, [#allocation6], %s14642_s27, %s14642_s27, %s14643_s28  }
  0x15   :  { %s14544_s7 = scalar_lea.hbm %s19679_s0, 2048 }
  0x16   :  { %p14545_p8 = scmp.ne.s32.totalorder %s19679_s0, %s14544_s7  ;;  %p14548_p9 = scmp.lt.u32.totalorder %s14544_s7, %s19679_s0 }
  0x18   :  { %p14550_p10 = pnand %p14548_p9, %p14545_p8 }
  0x1a   :  { %14553 = shalt.err (!%p14550_p10)
}
  0x1b   :  { %s14554_s12 = scalar_lea.vmem %s14672_s18, 2048  ;;  %p14559_p12 = scmp.lt.s32.totalorder %s14672_s18, %s14672_s18 }
  0x1c   :  { %p14555_p11 = scmp.ne.s32.totalorder %s14672_s18, %s14554_s12  ;;  %p14560_p13 = scmp.lt.s32.totalorder %s14554_s12, %s14554_s12 }
  0x1e   :  { %p14561_p0 = por %p14560_p13, %p14559_p12 }
  0x20   :  { %p14562_p1 = pnand %p14561_p0, %p14555_p11 }
  0x22   :  { %14565 = shalt.err (!%p14562_p1)
}
  0x23   :  { %24 = dma.hbm_to_vmem [thread:$0]  %s19679_s0, 2048, %s14672_s18, [#allocation3], %s14642_s27, %s14642_s27, %s14643_s28  }
  0x24   :  { %s14644_s14 = smov [#allocation7]   ;;  %s14645_s16 = smov [#allocation8]  }
  0x25   :  { %s42_s15 = sshll.u32 %s14644_s14, 4  ;;  %s54_s17 = sshll.u32 %s14645_s16, 4  ;;  %s43_s15 = int_to_ptr.vmem [resolvable:$true] %s42_s15  ;;  %s14709_s17 = int_to_ptr.vmem [resolvable:$true] %s54_s17 }
  0x26   :  { %s14566_s21 = scalar_lea.hbm %s19681_s2, 12288 }
  0x27   :  { %p14567_p2 = scmp.ne.s32.totalorder %s19681_s2, %s14566_s21  ;;  %p14570_p3 = scmp.lt.u32.totalorder %s14566_s21, %s19681_s2 }
  0x29   :  { %p14572_p4 = pnand %p14570_p3, %p14567_p2 }
  0x2b   :  { %14575 = shalt.err (!%p14572_p4)
}
  0x2c   :  { %s14576_s0 = scalar_lea.vmem %s43_s15, 12288  ;;  %p14581_p6 = scmp.lt.s32.totalorder %s43_s15, %s43_s15 }
  0x2d   :  { %p14577_p5 = scmp.ne.s32.totalorder %s43_s15, %s14576_s0  ;;  %p14582_p7 = scmp.lt.s32.totalorder %s14576_s0, %s14576_s0 }
  0x2f   :  { %p14583_p8 = por %p14582_p7, %p14581_p6 }
  0x31   :  { %p14584_p9 = pnand %p14583_p8, %p14577_p5 }
  0x33   :  { %14587 = shalt.err (!%p14584_p9)
}
  0x34   :  { %48 = dma.hbm_to_vmem [thread:$0]  %s19681_s2, 12288, %s43_s15, [#allocation6], %s14642_s27, %s14642_s27, %s14643_s28  }
  0x35   :  { %s14588_s5 = scalar_lea.hbm %s19682_s3, 384 }
  0x36   :  { %p14589_p10 = scmp.ne.s32.totalorder %s19682_s3, %s14588_s5  ;;  %p14592_p11 = scmp.lt.u32.totalorder %s14588_s5, %s19682_s3 }
  0x38   :  { %p14594_p12 = pnand %p14592_p11, %p14589_p10 }
  0x3a   :  { %14597 = shalt.err (!%p14594_p12)
}
  0x3b   :  { %s14598_s10 = scalar_lea.vmem %s14709_s17, 384  ;;  %p14603_p0 = scmp.lt.s32.totalorder %s14709_s17, %s14709_s17 }
  0x3c   :  { %p14599_p13 = scmp.ne.s32.totalorder %s14709_s17, %s14598_s10  ;;  %p14604_p1 = scmp.lt.s32.totalorder %s14598_s10, %s14598_s10 }
  0x3e   :  { %p14605_p2 = por %p14604_p1, %p14603_p0 }
  0x40   :  { %p14606_p3 = pnand %p14605_p2, %p14599_p13 }
  0x42   :  { %14609 = shalt.err (!%p14606_p3)
}
  0x43   :  { %60 = dma.hbm_to_vmem [thread:$0]  %s19682_s3, 384, %s14709_s17, [#allocation9], %s14642_s27, %s14642_s27, %s14643_s28  }
  0x44   :  { %14632 = dma.done.wait [#allocation3], 2048  }
  0x45   :  { %14633 = vsyncadd [#allocation3], 4294965248 }
  0x46   :  { %14634 = dma.done.wait [#allocation6], 14336  }
  0x47   :  { %14635 = vsyncadd [#allocation6], 4294952960 }
  0x48   :  { %14636 = dma.done.wait [#allocation9], 384  }
  0x49   :  { %14637 = vsyncadd [#allocation9], 4294966912  ;;  %v105_v0 = vld [vmem:[#allocation7] sm:$0xff]  ;;  %v106_v1 = vld [vmem:[#allocation7 + $0x8] sm:$0xff]  ;;  %s14646_s3 = smov [#allocation10]  }
  0x4a   :  { %v107_v2 = vld [vmem:[#allocation7 + $0x10] sm:$0xff]  ;;  %v127_v3 = vand.u32 4294901760, %v105_v0  ;;  %v130_v4 = vand.u32 4294901760, %v106_v1  ;;  %v108_v5 = vld [vmem:[#allocation7 + $0x18] sm:$0xff]  ;;  %v14746_v7 = vld [vmem:[#allocation7 + $0x20] sm:$0xff]  ;;  %s9393_s12 = sshll.u32 %s14646_s3, 4  ;;  %s9394_s12 = int_to_ptr.vmem [resolvable:$true] %s9393_s12 }
  0x4b   :  { %v133_v6 = vand.u32 4294901760, %v107_v2  ;;  %v14748_v8 = vld [vmem:[#allocation7 + $0x28] sm:$0xff]  ;;  %v136_v9 = vand.u32 4294901760, %v108_v5  ;;  %v139_v11 = vand.u32 4294901760, %v14746_v7  ;;  %v14756_v14 = vld [vmem:[#allocation7 + $0x30] sm:$0xff]  ;;  %v14758_v15 = vld [vmem:[#allocation7 + $0x38] sm:$0xff]  ;;  %p14615_p5 = scmp.lt.s32.totalorder %s9394_s12, %s9394_s12 }
  0x4c   :  { %v14750_v10 = vpack.c.bf16 %v130_v4, %v127_v3  ;;  %v142_v12 = vand.u32 4294901760, %v14748_v8  ;;  %v73_v16 = vld [vmem:[#allocation2] sm:$0xff]  ;;  %v74_v17 = vld [vmem:[#allocation2 + $0x8] sm:$0xff]  ;;  %v145_v20 = vand.u32 4294901760, %v14756_v14  ;;  %v148_v21 = vand.u32 4294901760, %v14758_v15  ;;  %v75_v26 = vld [vmem:[#allocation2 + $0x10] sm:$0xff] }
  0x4d   :  { %v14754_v13 = vpack.c.bf16 %v136_v9, %v133_v6  ;;  %v14762_v18 = vand.u32 4294901760, %v73_v16  ;;  %v14773_v22 = vld [vmem:[#allocation7 + $0x40] sm:$0xff]  ;;  %v14775_v23 = vld [vmem:[#allocation7 + $0x48] sm:$0xff]  ;;  %v14780_v25 = vand.u32 4294901760, %v74_v17  ;;  %v76_v27 = vld [vmem:[#allocation2 + $0x18] sm:$0xff]  ;;  %v14795_v33 = vsub.f32 %v105_v0, %v127_v3  ;;  %s14610_s1 = scalar_lea.vmem %s9394_s12, 2048 }
  0x4e   :  { %20046 = vst [vmem:[#allocation15_spill] sm:$0xff] %v14750_v10  ;;  %12594 = vmatprep.subr.bf16.mxu0 %v14750_v10  ;;  %v14769_v19 = vpack.c.bf16 %v142_v12, %v139_v11  ;;  %v151_v28 = vand.u32 4294901760, %v14773_v22  ;;  %v14790_v30 = vpack.c.bf16 %v148_v21, %v145_v20  ;;  %v154_v31 = vand.u32 4294901760, %v14775_v23  ;;  %v14793_v32 = vld [vmem:[#allocation7 + $0x50] sm:$0xff]  ;;  %v14799_v35 = vld [vmem:[#allocation7 + $0x58] sm:$0xff]  ;;  %v14815_v42 = vld [vmem:[#allocation7 + $0x60] sm:$0xff]  ;;  %p14611_p4 = scmp.ne.s32.totalorder %s9394_s12, %s14610_s1  ;;  %p14616_p6 = scmp.lt.s32.totalorder %s14610_s1, %s14610_s1 }
  0x4f   :  { %20047 = vst [vmem:[#allocation16_spill] sm:$0xff] %v14754_v13  ;;  %12596 = vmatpush3.bf16.msra.mxu0 %v14750_v10  ;;  %v14778_v24 = vsub.f32 %v73_v16, %v14762_v18  ;;  %v14797_v34 = vsub.f32 %v106_v1, %v130_v4  ;;  %v14805_v37 = vsub.f32 %v74_v17, %v14780_v25  ;;  %v14807_v38 = vand.u32 4294901760, %v75_v26  ;;  %v14817_v43 = vld [vmem:[#allocation7 + $0x68] sm:$0xff]  ;;  %v14827_v47 = vld [vmem:[#allocation7 + $0x70] sm:$0xff]  ;;  %v77_v50 = vld [vmem:[#allocation2 + $0x20] sm:$0xff] }
  0x50   :  { %12598 = vmatprep.subr.bf16.mxu0 %v14754_v13  ;;  %20048 = vst [vmem:[#allocation17_spill] sm:$0xff] %v14769_v19  ;;  %20050 = vst [vmem:[#allocation19_spill] sm:$0xff] %v14790_v30  ;;  %v14809_v39 = vand.u32 4294901760, %v76_v27  ;;  %v14811_v40 = vsub.f32 %v107_v2, %v133_v6  ;;  %v19697_v41 = vand.u32 4294901760, %v14793_v32  ;;  %v14824_v45 = vpack.c.bf16 %v154_v31, %v151_v28  ;;  %v78_v51 = vld [vmem:[#allocation2 + $0x28] sm:$0xff]  ;;  %v14832_v52 = vld [vmem:[#allocation7 + $0x78] sm:$0xff]  ;;  %p14617_p7 = por %p14616_p6, %p14615_p5 }
  0x51   :  { %20049 = vst [vmem:[#allocation18_spill] sm:$0xff] %v14778_v24  ;;  %v19685_v29 = vand.u32 4294901760, %v14778_v24  ;;  %20051 = vst [vmem:[#allocation20_spill] sm:$0xff] %v14805_v37  ;;  %v19696_v46 = vand.u32 4294901760, %v14799_v35  ;;  %v19688_v48 = vand.u32 4294901760, %v14795_v33  ;;  %v14830_v49 = vsub.f32 %v108_v5, %v136_v9  ;;  %v79_v3 = vld [vmem:[#allocation2 + $0x30] sm:$0xff] }
  0x52   :  { %20052 = vst [vmem:[#allocation21_spill] sm:$0xff] %v14824_v45  ;;  %v19684_v53 = vand.u32 4294901760, %v14805_v37  ;;  %v19687_v54 = vand.u32 4294901760, %v14797_v34  ;;  %v14837_v55 = vsub.f32 %v75_v26, %v14807_v38  ;;  %v14840_v56 = vsub.f32 %v76_v27, %v14809_v39  ;;  %p14618_p8 = pnand %p14617_p7, %p14611_p4 }
  0x53   :  { %12600 = vmatpush3.bf16.msra.mxu0 %v14754_v13  ;;  %v210_v36 = vsub.f32 %v14778_v24, %v19685_v29  ;;  %v19695_v57 = vand.u32 4294901760, %v14815_v42  ;;  %v19686_v58 = vand.u32 4294901760, %v14811_v40  ;;  %v19694_v59 = vand.u32 4294901760, %v14817_v43 }
  0x54   :  { %12602 = vmatprep.subr.bf16.mxu0 %v14769_v19  ;;  %20053 = vst [vmem:[#allocation22_spill] sm:$0xff] %v14837_v55  ;;  %20054 = vst [vmem:[#allocation23_spill] sm:$0xff] %v14840_v56  ;;  %v19691_v60 = vand.u32 4294901760, %v14827_v47  ;;  %v14847_v61 = vand.u32 4294901760, %v77_v50  ;;  %v14849_v62 = vand.u32 4294901760, %v78_v51  ;;  %v14856_v63 = vpack.c.bf16 %v19696_v46, %v19697_v41 }
  0x55   :  { %v211_v44 = vand.u32 4294901760, %v210_v36  ;;  %v19689_v0 = vand.u32 4294901760, %v14832_v52  ;;  %v371_v1 = vsub.f32 %v14795_v33, %v19688_v48  ;;  %v19690_v2 = vand.u32 4294901760, %v14830_v49  ;;  %v82_v48 = vld [vmem:[#allocation2 + $0x48] sm:$0xff] }
  0x56   :  { %20055 = vst [vmem:[#allocation24_spill] sm:$0xff] %v14856_v63  ;;  %v14866_v4 = vsub.f32 %v14805_v37, %v19684_v53  ;;  %v378_v5 = vsub.f32 %v14797_v34, %v19687_v54  ;;  %v19692_v6 = vand.u32 4294901760, %v14837_v55  ;;  %v19693_v9 = vand.u32 4294901760, %v14840_v56  ;;  %v80_v53 = vld [vmem:[#allocation2 + $0x38] sm:$0xff]  ;;  %v81_v54 = vld [vmem:[#allocation2 + $0x40] sm:$0xff] }
  0x57   :  { %12604 = vmatpush3.bf16.msra.mxu0 %v14769_v19  ;;  %10609 = vmatprep.mubr.f32.mxu0 %v211_v44  ;;  %v385_v16 = vsub.f32 %v14811_v40, %v19686_v58  ;;  %v14879_v17 = vsub.f32 %v14746_v7, %v139_v11  ;;  %v14884_v26 = vsub.f32 %v14748_v8, %v142_v12  ;;  %v14893_v44 = vand.u32 4294901760, %v79_v3 }
  0x58   :  { %12606 = vmatprep.subr.bf16.mxu0 %v14790_v30  ;;  %v14888_v27 = vsub.f32 %v77_v50, %v14847_v61  ;;  %v14891_v36 = vsub.f32 %v78_v51, %v14849_v62  ;;  %v14900_v7 = vpack.c.bf16 %v19694_v59, %v19695_v57  ;;  %v14906_v8 = vpack.c.bf16 %v19689_v0, %v19691_v60 }
  0x59   :  { %v372_v11 = vand.u32 4294901760, %v371_v1  ;;  %v392_v12 = vsub.f32 %v14830_v49, %v19690_v2  ;;  %v221_v50 = vand.u32 4294901760, %v14866_v4  ;;  %v379_v51 = vand.u32 4294901760, %v378_v5 }
  0x5a   :  { %20056 = vst [vmem:[#allocation25_spill] sm:$0xff] %v14888_v27  ;;  %20057 = vst [vmem:[#allocation26_spill] sm:$0xff] %v14891_v36  ;;  %v14915_v29 = vsub.f32 %v14837_v55, %v19692_v6  ;;  %v14920_v58 = vsub.f32 %v14840_v56, %v19693_v9  ;;  %v386_v1 = vand.u32 4294901760, %v385_v16  ;;  %v19701_v0 = vand.u32 4294901760, %v14879_v17 }
  0x5b   :  { %12608 = vmatpush3.bf16.msra.mxu0 %v14790_v30  ;;  %20058 = vst [vmem:[#allocation27_spill] sm:$0xff] %v14900_v7  ;;  %20059 = vst [vmem:[#allocation28_spill] sm:$0xff] %v14906_v8  ;;  %v19698_v2 = vand.u32 4294901760, %v14884_v26  ;;  %v14924_v60 = vand.u32 4294901760, %v80_v53  ;;  %v19699_v4 = vand.u32 4294901760, %v14888_v27  ;;  %v19700_v5 = vand.u32 4294901760, %v14891_v36 }
  0x5c   :  { %12610 = vmatprep.subr.bf16.mxu0 %v14824_v45  ;;  %v14930_v6 = vsub.f32 %v79_v3, %v14893_v44  ;;  %v14935_v9 = vsub.f32 %v14756_v14, %v145_v20  ;;  %v393_v16 = vand.u32 4294901760, %v392_v12  ;;  %v14941_v59 = vsub.f32 %v14758_v15, %v148_v21 }
  0x5d   :  { %v14943_v57 = vand.u32 4294901760, %v81_v54  ;;  %v14945_v46 = vand.u32 4294901760, %v82_v48  ;;  %v12625_v41 = vpack.c.bf16 %v379_v51, %v372_v11  ;;  %v231_v3 = vand.u32 4294901760, %v14915_v29 }
  0x5e   :  { %20060 = vst [vmem:[#allocation29_spill] sm:$0xff] %v14930_v6  ;;  %v14951_v14 = vsub.f32 %v14773_v22, %v151_v28  ;;  %v14956_v20 = vsub.f32 %v14775_v23, %v154_v31  ;;  %v241_v15 = vand.u32 4294901760, %v14920_v58  ;;  %v399_v21 = vsub.f32 %v14879_v17, %v19701_v0  ;;  %v83_v22 = vld [vmem:[#allocation2 + $0x50] sm:$0xff]  ;;  %v84_v31 = vld [vmem:[#allocation2 + $0x58] sm:$0xff] }
  0x5f   :  { %12612 = vmatpush3.bf16.msra.mxu0 %v14824_v45  ;;  %v406_v29 = vsub.f32 %v14884_v26, %v19698_v2  ;;  %v14966_v11 = vsub.f32 %v80_v53, %v14924_v60  ;;  %v250_v23 = vsub.f32 %v14888_v27, %v19699_v4  ;;  %v14975_v28 = vsub.f32 %v14891_v36, %v19700_v5 }
  0x60   :  { %12614 = vmatprep.subr.bf16.mxu0 %v14856_v63  ;;  %v12629_v53 = vpack.c.bf16 %v393_v16, %v386_v1  ;;  %v14982_v51 = vsub.f32 %v81_v54, %v14943_v57  ;;  %v14985_v2 = vsub.f32 %v82_v48, %v14945_v46  ;;  %v14989_v0 = vand.u32 4294901760, %v83_v22 }
  0x61   :  { %20061 = vst [vmem:[#allocation30_spill] sm:$0xff] %v14966_v11  ;;  %v20064_v58 = vand.u32 4294901760, %v14793_v32  ;;  %v400_v1 = vand.u32 4294901760, %v399_v21  ;;  %v407_v16 = vand.u32 4294901760, %v406_v29  ;;  %v20065_v12 = vand.u32 4294901760, %v14799_v35  ;;  %v85_v29 = vld [vmem:[#allocation2 + $0x60] sm:$0xff] }
  0x62   :  { %20062 = vst [vmem:[#allocation31_spill] sm:$0xff] %v14982_v51  ;;  %20063 = vst [vmem:[#allocation32_spill] sm:$0xff] %v14985_v2  ;;  %v251_v5 = vand.u32 4294901760, %v250_v23  ;;  %v261_v4 = vand.u32 4294901760, %v14975_v28  ;;  %v15015_v54 = vand.u32 4294901760, %v84_v31  ;;  %v20069_v28 = vand.u32 4294901760, %v14951_v14 }
  0x63   :  { %12616 = vmatpush3.bf16.msra.mxu0 %v14856_v63  ;;  %v15000_v48 = vsub.f32 %v14799_v35, %v20065_v12  ;;  %v20066_v63 = vand.u32 4294901760, %v14930_v6  ;;  %v15024_v30 = vsub.f32 %v83_v22, %v14989_v0  ;;  %v20072_v12 = vand.u32 4294901760, %v14966_v11 }
  0x64   :  { %12618 = vmatprep.subr.bf16.mxu0 %v14900_v7  ;;  %v15031_v19 = vand.u32 4294901760, %v85_v29  ;;  %v20073_v22 = vand.u32 4294901760, %v14815_v42 }
  0x65   :  { %v270_v45 = vsub.f32 %v14930_v6, %v20066_v63  ;;  %v427_v63 = vsub.f32 %v14951_v14, %v20069_v28  ;;  %20071 = vst [vmem:[#allocation33_spill] sm:$0xff] %v15024_v30  ;;  %v280_v23 = vsub.f32 %v14966_v11, %v20072_v12  ;;  %v447_v36 = vand.u32 4294901760, %v15000_v48 }
  0x66   :  { %v15036_v56 = vsub.f32 %v14815_v42, %v20073_v22  ;;  %v20075_v12 = vand.u32 4294901760, %v14982_v51  ;;  %v87_v42 = vld [vmem:[#allocation2 + $0x70] sm:$0xff]  ;;  %v20080_v37 = vand.u32 4294901760, %v15024_v30 }
  0x67   :  { %12620 = vmatpush3.bf16.msra.mxu0 %v14900_v7  ;;  %v14994_v7 = vsub.f32 %v14793_v32, %v20064_v58  ;;  %v20067_v32 = vand.u32 4294901760, %v14935_v9  ;;  %v20068_v58 = vand.u32 4294901760, %v14941_v59  ;;  %v271_v28 = vand.u32 4294901760, %v270_v45 }
  0x68   :  { %12622 = vmatprep.subr.bf16.mxu0 %v14906_v8  ;;  %v20076_v45 = vand.u32 4294901760, %v14985_v2  ;;  %v428_v22 = vand.u32 4294901760, %v427_v63  ;;  %v281_v11 = vand.u32 4294901760, %v280_v23  ;;  %v310_v10 = vsub.f32 %v15024_v30, %v20080_v37 }
  0x69   :  { %v413_v21 = vsub.f32 %v14935_v9, %v20067_v32  ;;  %v420_v35 = vsub.f32 %v14941_v59, %v20068_v58  ;;  %v12633_v58 = vpack.c.bf16 %v407_v16, %v400_v1  ;;  %v20090_v30 = vand.u32 4294901760, %v14935_v9 }
  0x6b   :  { %12624 = vmatpush3.bf16.msra.mxu0 %v14906_v8  ;;  %v20070_v8 = vand.u32 4294901760, %v14956_v20  ;;  %v414_v27 = vand.u32 4294901760, %v413_v21  ;;  %v421_v16 = vand.u32 4294901760, %v420_v35  ;;  %v15052_v21 = vsub.f32 %v84_v31, %v15015_v54 }
  0x6c   :  { %12626 = vmatprep.subr.bf16.mxu0 %v12625_v41  ;;  %v454_v31 = vand.u32 4294901760, %v15036_v56 }
  0x6d   :  { %v434_v32 = vsub.f32 %v14956_v20, %v20070_v8  ;;  %v86_v8 = vld [vmem:[#allocation2 + $0x68] sm:$0xff]  ;;  %v12637_v23 = vpack.c.bf16 %v421_v16, %v414_v27 }
  0x6e   :  { %10610 = vmatmul.mubr.f32.vlgmr.msra.gmra.mrb[0].mxu0 %v221_v50  ;;  %v20074_v50 = vand.u32 4294901760, %v14817_v43 }
  0x6f   :  { %12628 = vmatpush3.bf16.msra.mxu0 %v12625_v41  ;;  %10612 = vmatprep.mubr.f32.mxu0 %v231_v3  ;;  %v290_v41 = vsub.f32 %v14982_v51, %v20075_v12  ;;  %v15049_v3 = vsub.f32 %v14985_v2, %v20076_v45  ;;  %v435_v6 = vand.u32 4294901760, %v434_v32  ;;  %v448_v12 = vsub.f32 %v15000_v48, %v447_v36 }
  0x70   :  { %v15041_v1 = vsub.f32 %v14817_v43, %v20074_v50  ;;  %12630 = vmatprep.subr.bf16.mxu0 %v12629_v53  ;;  %v20077_v50 = vand.u32 4294901760, %v14994_v7  ;;  %v15060_v51 = vsub.f32 %v85_v29, %v15031_v19  ;;  %v15062_v45 = vand.u32 4294901760, %v86_v8  ;;  %v88_v43 = vld [vmem:[#allocation2 + $0x78] sm:$0xff] }
  0x71   :  { %v15066_v32 = vand.u32 4294901760, %v87_v42  ;;  %v291_v29 = vand.u32 4294901760, %v290_v41  ;;  %v19742_v2 = vand.u32 4294901760, %v15052_v21  ;;  %v301_v13 = vand.u32 4294901760, %v15049_v3 }
  0x72   :  { %v441_v35 = vsub.f32 %v14994_v7, %v20077_v50  ;;  %10613 = vmatmul.mubr.f32.gmra.mrb[2].mxu0 %v241_v15  ;;  %v461_v63 = vand.u32 4294901760, %v15041_v1  ;;  %v20078_v50 = vand.u32 4294901760, %v14827_v47  ;;  %v12641_v55 = vpack.c.bf16 %v435_v6, %v428_v22 }
  0x73   :  { %12632 = vmatpush3.bf16.msra.mxu0 %v12629_v53  ;;  %10615 = vmatprep.mubr.f32.mxu0 %v251_v5  ;;  %v20079_v53 = vand.u32 4294901760, %v14832_v52  ;;  %v15085_v16 = vsub.f32 %v86_v8, %v15062_v45  ;;  %v15087_v41 = vand.u32 4294901760, %v88_v43  ;;  %v15092_v3 = vsub.f32 %v87_v42, %v15066_v32 }
  0x74   :  { %v15071_v15 = vsub.f32 %v14827_v47, %v20078_v50  ;;  %12634 = vmatprep.subr.bf16.mxu0 %v12633_v58  ;;  %v442_v24 = vand.u32 4294901760, %v441_v35  ;;  %v449_v47 = vand.u32 4294901760, %v448_v12  ;;  %v462_v6 = vsub.f32 %v15041_v1, %v461_v63 }
  0x75   :  { %v15077_v5 = vsub.f32 %v14832_v52, %v20079_v53  ;;  %v455_v52 = vsub.f32 %v15036_v56, %v454_v31  ;;  %v20081_v22 = vand.u32 4294901760, %v14795_v33  ;;  %v20082_v8 = vand.u32 4294901760, %v14797_v34 }
  0x76   :  { %10616 = vmatmul.mubr.f32.gmra.mrb[4].mxu0 %v261_v4  ;;  %v468_v37 = vand.u32 4294901760, %v15071_v15  ;;  %v20087_v42 = vand.u32 4294901760, %v14879_v17  ;;  %v20088_v50 = vand.u32 4294901760, %v14884_v26  ;;  %v320_v27 = vsub.f32 %v15052_v21, %v19742_v2 }
  0x77   :  { %12636 = vmatpush3.bf16.msra.mxu0 %v12633_v58  ;;  %10618 = vmatprep.mubr.f32.mxu0 %v271_v28  ;;  %v475_v4 = vand.u32 4294901760, %v15077_v5  ;;  %v15100_v35 = vpack.c.bf16 %v20082_v8, %v20081_v22  ;;  %v20084_v58 = vand.u32 4294901760, %v14811_v40  ;;  %v20085_v28 = vand.u32 4294901760, %v14830_v49 }
  0x78   :  { %12638 = vmatprep.subr.bf16.mxu0 %v12637_v23  ;;  %v15112_v53 = vpack.c.bf16 %v20088_v50, %v20087_v42  ;;  %v20091_v22 = vand.u32 4294901760, %v14941_v59  ;;  %v339_v50 = vand.u32 4294901760, %v15085_v16  ;;  %v15135_v2 = vsub.f32 %v88_v43, %v15087_v41 }
  0x79   :  { %20083 = vst [vmem:[#allocation34_spill] sm:$0xff] %v15100_v35  ;;  %v15106_v12 = vpack.c.bf16 %v20085_v28, %v20084_v58  ;;  %v20093_v35 = vand.u32 4294901760, %v14951_v14  ;;  %v20094_v58 = vand.u32 4294901760, %v14956_v20  ;;  %v469_v43 = vsub.f32 %v15071_v15, %v468_v37 }
  0x7a   :  { %20089 = vst [vmem:[#allocation36_spill] sm:$0xff] %v15112_v53  ;;  %v15121_v8 = vpack.c.bf16 %v20091_v22, %v20090_v30  ;;  %10619 = vmatmul.mubr.f32.gmra.mrb[6].mxu0 %v281_v11  ;;  %v15137_v53 = vpack.c.bf16 %v461_v63, %v454_v31  ;;  %v15139_v30 = vpack.c.bf16 %v475_v4, %v468_v37  ;;  %v311_v22 = vand.u32 4294901760, %v310_v10 }
  0x7b   :  { %20086 = vst [vmem:[#allocation35_spill] sm:$0xff] %v15106_v12  ;;  %v15127_v28 = vpack.c.bf16 %v20094_v58, %v20093_v35  ;;  %v20095_v12 = vand.u32 4294901760, %v14994_v7  ;;  %12640 = vmatpush3.bf16.msra.mxu0 %v12637_v23  ;;  %10621 = vmatprep.mubr.f32.mxu0 %v291_v29  ;;  %v20096_v35 = vand.u32 4294901760, %v15060_v51  ;;  %v456_v11 = vand.u32 4294901760, %v455_v52 }
  0x7c   :  { %20092 = vst [vmem:[#allocation37_spill] sm:$0xff] %v15121_v8  ;;  %v12645_v8 = vpack.c.bf16 %v449_v47, %v442_v24  ;;  %12642 = vmatprep.subr.bf16.mxu0 %v12641_v55  ;;  %v476_v31 = vsub.f32 %v15077_v5, %v475_v4  ;;  %v321_v63 = vand.u32 4294901760, %v320_v27  ;;  %v340_v10 = vsub.f32 %v15085_v16, %v339_v50 }
  0x7d   :  { %v15131_v42 = vpack.c.bf16 %v447_v36, %v20095_v12  ;;  %v330_v58 = vsub.f32 %v15060_v51, %v20096_v35  ;;  %v349_v36 = vand.u32 4294901760, %v15092_v3  ;;  %v463_v12 = vand.u32 4294901760, %v462_v6 }
  0x7e   :  { %10622 = vmatmul.mubr.f32.gmra.mrb[8].mxu0 %v301_v13  ;;  %v359_v24 = vand.u32 4294901760, %v15135_v2  ;;  %v470_v52 = vand.u32 4294901760, %v469_v43  ;;  %v477_v6 = vand.u32 4294901760, %v476_v31  ;;  %v341_v13 = vand.u32 4294901760, %v340_v10  ;;  %v20111_v43 = vld [vmem:[#allocation32_spill] sm:$0xff]  ;;  %v20112_v31 = vld [vmem:[#allocation33_spill] sm:$0xff] }
  0x7f   :  { %12644 = vmatpush3.bf16.msra.mxu0 %v12641_v55  ;;  %10624 = vmatprep.mubr.f32.mxu0 %v311_v22  ;;  %v331_v23 = vand.u32 4294901760, %v330_v58  ;;  %v350_v29 = vsub.f32 %v15092_v3, %v349_v36  ;;  %v12649_v47 = vpack.c.bf16 %v463_v12, %v456_v11  ;;  %v12657_v22 = vpack.c.bf16 %v14797_v34, %v14795_v33  ;;  %v20108_v58 = vld [vmem:[#allocation30_spill] sm:$0xff]  ;;  %v20109_v11 = vld [vmem:[#allocation31_spill] sm:$0xff]  ;;  %v20110_v12 = vld [vmem:[#allocation21_spill] sm:$0xff] }
  0x80   :  { %12646 = vmatprep.subr.bf16.mxu0 %v12645_v8  ;;  %v360_v27 = vsub.f32 %v15135_v2, %v359_v24  ;;  %v12653_v55 = vpack.c.bf16 %v477_v6, %v470_v52  ;;  %v12665_v35 = vpack.c.bf16 %v14884_v26, %v14879_v17  ;;  %v12669_v33 = vpack.c.bf16 %v14941_v59, %v14935_v9  ;;  %v20097_v9 = vld [vmem:[#allocation18_spill] sm:$0xff]  ;;  %v20099_v17 = vld [vmem:[#allocation20_spill] sm:$0xff]  ;;  %v20114_v10 = vld [vmem:[#allocation27_spill] sm:$0xff] }
  0x81   :  { %v351_v37 = vand.u32 4294901760, %v350_v29  ;;  %v12673_v34 = vpack.c.bf16 %v14956_v20, %v14951_v14  ;;  %v12685_v59 = vpack.c.bf16 %v15077_v5, %v15071_v15  ;;  %v20100_v26 = vld [vmem:[#allocation22_spill] sm:$0xff]  ;;  %v20102_v14 = vld [vmem:[#allocation23_spill] sm:$0xff]  ;;  %v20103_v20 = vld [vmem:[#allocation25_spill] sm:$0xff]  ;;  %v20116_v29 = vand.u32 4294901760, %v20097_v9 }
  0x82   :  { %10625 = vmatmul.mubr.f32.gmra.mrb[10].mxu0 %v321_v63  ;;  %v361_v4 = vand.u32 4294901760, %v360_v27  ;;  %v20106_v15 = vld [vmem:[#allocation29_spill] sm:$0xff]  ;;  %v20107_v5 = vld [vmem:[#allocation19_spill] sm:$0xff]  ;;  %v20113_v63 = vld [vmem:[#allocation24_spill] sm:$0xff]  ;;  %v20118_v52 = vand.u32 4294901760, %v20099_v17  ;;  %v20119_v6 = vand.u32 4294901760, %v20100_v26 }
  0x83   :  { %12648 = vmatpush3.bf16.msra.mxu0 %v12645_v8  ;;  %10627 = vmatprep.mubr.f32.mxu0 %v331_v23  ;;  %v12661_v8 = vpack.c.bf16 %v14830_v49, %v14811_v40  ;;  %v12677_v40 = vpack.c.bf16 %v15000_v48, %v14994_v7  ;;  %v12681_v49 = vpack.c.bf16 %v15041_v1, %v15036_v56  ;;  %v20098_v56 = vld [vmem:[#allocation15_spill] sm:$0xff]  ;;  %v20101_v7 = vld [vmem:[#allocation16_spill] sm:$0xff]  ;;  %v20104_v48 = vld [vmem:[#allocation17_spill] sm:$0xff]  ;;  %v20121_v27 = vand.u32 4294901760, %v20102_v14 }
  0x84   :  { %12650 = vmatprep.subr.bf16.mxu0 %v12649_v47  ;;  %v20105_v1 = vld [vmem:[#allocation26_spill] sm:$0xff]  ;;  %v20115_v23 = vld [vmem:[#allocation28_spill] sm:$0xff] }
  0x86   :  { %10628 = vmatmul.mubr.f32.gmra.mrb[12].mxu0 %v341_v13  ;;  %v20120_v13 = vld [vmem:[#allocation35_spill] sm:$0xff] }
  0x87   :  { %12652 = vmatpush3.bf16.msra.mxu0 %v12649_v47  ;;  %10630 = vmatprep.mubr.f32.mxu0 %v351_v37  ;;  %v20117_v47 = vld [vmem:[#allocation34_spill] sm:$0xff]  ;;  %v20122_v37 = vand.u32 4294901760, %v20103_v20 }
  0x88   :  { %12654 = vmatprep.subr.bf16.mxu0 %v12653_v55 }
  0x8a   :  { %10631 = vmatmul.mubr.f32.gmra.mrb[14].mxu0 %v361_v4  ;;  %v20124_v4 = vand.u32 4294901760, %v20105_v1 }
  0x8b   :  { %12656 = vmatpush3.bf16.msra.mxu0 %v12653_v55  ;;  %10665 = vmatprep.mubr.f32.mxu0 %v14762_v18  ;;  %v20123_v55 = vld [vmem:[#allocation36_spill] sm:$0xff] }
  0x8c   :  { %12658 = vmatprep.subr.bf16.mxu0 %v12657_v22 }
  0x8e   :  { %10666 = vmatmul.mubr.f32.vlgmr.msra.gmra.mrb[0].mxu0 %v14780_v25 }
  0x8f   :  { %12660 = vmatpush3.bf16.msra.mxu0 %v12657_v22  ;;  %10668 = vmatprep.mubr.f32.mxu0 %v14807_v38  ;;  %v20125_v22 = vand.u32 4294901760, %v20106_v15 }
  0x90   :  { %12662 = vmatprep.subr.bf16.mxu0 %v12661_v8 }
  0x92   :  { %10669 = vmatmul.mubr.f32.gmra.mrb[2].mxu0 %v14809_v39 }
  0x93   :  { %12664 = vmatpush3.bf16.msra.mxu0 %v12661_v8  ;;  %10671 = vmatprep.mubr.f32.mxu0 %v14847_v61  ;;  %v20126_v8 = vld [vmem:[#allocation37_spill] sm:$0xff] }
  0x94   :  { %12666 = vmatprep.subr.bf16.mxu0 %v12665_v35 }
  0x96   :  { %10672 = vmatmul.mubr.f32.gmra.mrb[4].mxu0 %v14849_v62 }
  0x97   :  { %12668 = vmatpush3.bf16.msra.mxu0 %v12665_v35  ;;  %10674 = vmatprep.mubr.f32.mxu0 %v14893_v44  ;;  %v20127_v35 = vand.u32 4294901760, %v20108_v58 }
  0x98   :  { %12670 = vmatprep.subr.bf16.mxu0 %v12669_v33 }
  0x9a   :  { %10675 = vmatmul.mubr.f32.gmra.mrb[6].mxu0 %v14924_v60 }
  0x9b   :  { %12672 = vmatpush3.bf16.msra.mxu0 %v12669_v33  ;;  %10677 = vmatprep.mubr.f32.mxu0 %v14943_v57  ;;  %v20128_v33 = vand.u32 4294901760, %v20109_v11 }
  0x9c   :  { %12674 = vmatprep.subr.bf16.mxu0 %v12673_v34 }
  0x9e   :  { %10678 = vmatmul.mubr.f32.gmra.mrb[8].mxu0 %v14945_v46 }
  0x9f   :  { %12676 = vmatpush3.bf16.msra.mxu0 %v12673_v34  ;;  %10680 = vmatprep.mubr.f32.mxu0 %v14989_v0  ;;  %v20129_v34 = vand.u32 4294901760, %v20111_v43 }
  0xa0   :  { %12678 = vmatprep.subr.bf16.mxu0 %v12677_v40 }
  0xa2   :  { %10681 = vmatmul.mubr.f32.gmra.mrb[10].mxu0 %v15015_v54 }
  0xa3   :  { %12680 = vmatpush3.bf16.msra.mxu0 %v12677_v40  ;;  %10683 = vmatprep.mubr.f32.mxu0 %v15031_v19  ;;  %v20130_v40 = vand.u32 4294901760, %v20112_v31 }
  0xa4   :  { %12682 = vmatprep.subr.bf16.mxu0 %v12681_v49 }
  0xa6   :  { %10684 = vmatmul.mubr.f32.gmra.mrb[12].mxu0 %v15062_v45 }
  0xa7   :  { %12684 = vmatpush3.bf16.msra.mxu0 %v12681_v49  ;;  %10686 = vmatprep.mubr.f32.mxu0 %v15066_v32  ;;  %v20131_v49 = vand.u32 4294901760, %v15052_v21 }
  0xa8   :  { %12686 = vmatprep.subr.bf16.mxu0 %v12685_v59 }
  0xaa   :  { %10687 = vmatmul.mubr.f32.gmra.mrb[14].mxu0 %v15087_v41 }
  0xab   :  { %12688 = vmatpush3.bf16.msra.mxu0 %v12685_v59  ;;  %10721 = vmatprep.mubr.f32.mxu0 %v20097_v9  ;;  %v20132_v59 = vand.u32 4294901760, %v15060_v51 }
  0xac   :  { %12690 = vmatprep.subr.bf16.mxu0 %v20098_v56 }
  0xae   :  { %10722 = vmatmul.mubr.f32.vlgmr.msra.gmra.mrb[0].mxu0 %v20099_v17 }
  0xaf   :  { %12692 = vmatpush3.bf16.msra.mxu0 %v20098_v56  ;;  %10724 = vmatprep.mubr.f32.mxu0 %v20100_v26 }
  0xb0   :  { %12694 = vmatprep.subr.bf16.mxu0 %v20101_v7 }
  0xb2   :  { %10725 = vmatmul.mubr.f32.gmra.mrb[2].mxu0 %v20102_v14  ;;  %v15374_v14 = vld [vmem:[#allocation7 + $0x90] sm:$0xff] }
  0xb3   :  { %12696 = vmatpush3.bf16.msra.mxu0 %v20101_v7  ;;  %10727 = vmatprep.mubr.f32.mxu0 %v20103_v20  ;;  %v15376_v20 = vld [vmem:[#allocation7 + $0x98] sm:$0xff] }
  0xb4   :  { %12698 = vmatprep.subr.bf16.mxu0 %v20104_v48 }
  0xb6   :  { %10728 = vmatmul.mubr.f32.gmra.mrb[4].mxu0 %v20105_v1  ;;  %v1707_v1 = vand.u32 4294901760, %v15374_v14 }
  0xb7   :  { %12700 = vmatpush3.bf16.msra.mxu0 %v20104_v48  ;;  %10730 = vmatprep.mubr.f32.mxu0 %v20106_v15  ;;  %v1710_v15 = vand.u32 4294901760, %v15376_v20 }
  0xb8   :  { %12702 = vmatprep.subr.bf16.mxu0 %v20107_v5 }
  0xba   :  { %10731 = vmatmul.mubr.f32.gmra.mrb[6].mxu0 %v20108_v58 }
  0xbb   :  { %12704 = vmatpush3.bf16.msra.mxu0 %v20107_v5  ;;  %10733 = vmatprep.mubr.f32.mxu0 %v20109_v11 }
  0xbc   :  { %12706 = vmatprep.subr.bf16.mxu0 %v20110_v12 }
  0xbe   :  { %10734 = vmatmul.mubr.f32.gmra.mrb[8].mxu0 %v20111_v43 }
  0xbf   :  { %12708 = vmatpush3.bf16.msra.mxu0 %v20110_v12  ;;  %10736 = vmatprep.mubr.f32.mxu0 %v20112_v31  ;;  %v15402_v31 = vld [vmem:[#allocation7 + $0xa0] sm:$0xff] }
  0xc0   :  { %12710 = vmatprep.subr.bf16.mxu0 %v20113_v63 }
  0xc2   :  { %10737 = vmatmul.mubr.f32.gmra.mrb[10].mxu0 %v15052_v21 }
  0xc3   :  { %12712 = vmatpush3.bf16.msra.mxu0 %v20113_v63  ;;  %10739 = vmatprep.mubr.f32.mxu0 %v15060_v51 }
  0xc4   :  { %12714 = vmatprep.subr.bf16.mxu0 %v20114_v10 }
  0xc6   :  { %10740 = vmatmul.mubr.f32.gmra.mrb[12].mxu0 %v15085_v16 }
  0xc7   :  { %12716 = vmatpush3.bf16.msra.mxu0 %v20114_v10  ;;  %10742 = vmatprep.mubr.f32.mxu0 %v15092_v3 }
  0xc8   :  { %12718 = vmatprep.subr.bf16.mxu0 %v20115_v23 }
  0xca   :  { %10743 = vmatmul.mubr.f32.gmra.mrb[14].mxu0 %v15135_v2 }
  0xcb   :  { %12720 = vmatpush3.bf16.msra.mxu0 %v20115_v23  ;;  %10777 = vmatprep.mubr.f32.mxu0 %v20116_v29 }
  0xcc   :  { %12722 = vmatprep.subr.bf16.mxu0 %v20117_v47 }
  0xce   :  { %10778 = vmatmul.mubr.f32.vlgmr.msra.gmra.mrb[0].mxu0 %v20118_v52 }
  0xcf   :  { %12724 = vmatpush3.bf16.msra.mxu0 %v20117_v47  ;;  %10780 = vmatprep.mubr.f32.mxu0 %v20119_v6  ;;  %v15422_v6 = vld [vmem:[#allocation7 + $0xb0] sm:$0xff] }
  0xd0   :  { %12726 = vmatprep.subr.bf16.mxu0 %v20120_v13 }
  0xd2   :  { %10781 = vmatmul.mubr.f32.gmra.mrb[2].mxu0 %v20121_v27  ;;  %v1719_v27 = vand.u32 4294901760, %v15422_v6 }
  0xd3   :  { %12728 = vmatpush3.bf16.msra.mxu0 %v20120_v13  ;;  %10783 = vmatprep.mubr.f32.mxu0 %v20122_v37  ;;  %v15424_v13 = vld [vmem:[#allocation7 + $0xb8] sm:$0xff] }
  0xd4   :  { %12730 = vmatprep.subr.bf16.mxu0 %v20123_v55  ;;  %v1722_v37 = vand.u32 4294901760, %v15424_v13 }
  0xd6   :  { %10784 = vmatmul.mubr.f32.gmra.mrb[4].mxu0 %v20124_v4  ;;  %v15437_v4 = vpack.c.bf16 %v1722_v37, %v1719_v27 }
  0xd7   :  { %12732 = vmatpush3.bf16.msra.mxu0 %v20123_v55  ;;  %10786 = vmatprep.mubr.f32.mxu0 %v20125_v22 }
  0xd8   :  { %12734 = vmatprep.subr.bf16.mxu0 %v20126_v8  ;;  %20135 = vst [vmem:[#allocation20_spill] sm:$0xff] %v15437_v4 }
  0xda   :  { %10787 = vmatmul.mubr.f32.gmra.mrb[6].mxu0 %v20127_v35  ;;  %v15443_v35 = vld [vmem:[#allocation7 + $0xc8] sm:$0xff] }
  0xdb   :  { %12736 = vmatpush3.bf16.msra.mxu0 %v20126_v8  ;;  %10789 = vmatprep.mubr.f32.mxu0 %v20128_v33  ;;  %v15441_v8 = vld [vmem:[#allocation7 + $0xc0] sm:$0xff] }
  0xdc   :  { %12738 = vmatprep.subr.bf16.mxu0 %v15127_v28  ;;  %v1725_v33 = vand.u32 4294901760, %v15441_v8 }
  0xde   :  { %10790 = vmatmul.mubr.f32.gmra.mrb[8].mxu0 %v20129_v34  ;;  %v1728_v34 = vand.u32 4294901760, %v15443_v35 }
  0xdf   :  { %12740 = vmatpush3.bf16.msra.mxu0 %v15127_v28  ;;  %10792 = vmatprep.mubr.f32.mxu0 %v20130_v40 }
  0xe0   :  { %12742 = vmatprep.subr.bf16.mxu0 %v15131_v42 }
  0xe2   :  { %10793 = vmatmul.mubr.f32.gmra.mrb[10].mxu0 %v20131_v49  ;;  %v15456_v49 = vpack.c.bf16 %v1728_v34, %v1725_v33 }
  0xe3   :  { %12744 = vmatpush3.bf16.msra.mxu0 %v15131_v42  ;;  %10795 = vmatprep.mubr.f32.mxu0 %v20132_v59 }
  0xe4   :  { %12746 = vmatprep.subr.bf16.mxu0 %v15137_v53  ;;  %20136 = vst [vmem:[#allocation22_spill] sm:$0xff] %v15456_v49 }
  0xe6   :  { %10796 = vmatmul.mubr.f32.gmra.mrb[12].mxu0 %v339_v50  ;;  %v15353_v50 = vld [vmem:[#allocation7 + $0x80] sm:$0xff] }
  0xe7   :  { %12748 = vmatpush3.bf16.msra.mxu0 %v15137_v53  ;;  %10798 = vmatprep.mubr.f32.mxu0 %v349_v36 }
  0xe8   :  { %12750 = vmatprep.subr.bf16.mxu0 %v15139_v30 }
  0xea   :  { %10799 = vmatmul.mubr.f32.gmra.mrb[14].mxu0 %v359_v24  ;;  %v1701_v24 = vand.u32 4294901760, %v15353_v50 }
  0xeb   :  { %12752 = vmatpush3.bf16.msra.mxu0 %v15139_v30  ;;  %10833 = vmatprep.mubr.f32.mxu0 %v14762_v18  ;;  %v15355_v30 = vld [vmem:[#allocation7 + $0x88] sm:$0xff] }
  0xec   :  { %12754 = vmatprep.subr.bf16.mxu0 %v20098_v56  ;;  %v1704_v9 = vand.u32 4294901760, %v15355_v30 }
  0xee   :  { %10834 = vmatmul.mubr.f32.vlgmr.msra.gmra.mrb[0].mxu0 %v14780_v25 }
  0xef   :  { %12756 = vmatpush3.bf16.msra.mxu0 %v20098_v56  ;;  %10836 = vmatprep.mubr.f32.mxu0 %v14807_v38 }
  0xf0   :  { %12758 = vmatprep.subr.bf16.mxu0 %v20101_v7 }
  0xf2   :  { %10837 = vmatmul.mubr.f32.gmra.mrb[2].mxu0 %v14809_v39 }
  0xf3   :  { %12760 = vmatpush3.bf16.msra.mxu0 %v20101_v7  ;;  %10839 = vmatprep.mubr.f32.mxu0 %v14847_v61  ;;  %v15372_v7 = vpack.c.bf16 %v1704_v9, %v1701_v24 }
  0xf4   :  { %12762 = vmatprep.subr.bf16.mxu0 %v20104_v48 }
  0xf5   :  { %12786 = vmatprep.subr.bf16.mxu1 %v15372_v7 }
  0xf6   :  { %10840 = vmatmul.mubr.f32.gmra.mrb[4].mxu0 %v14849_v62  ;;  %12788 = vmatpush3.bf16.msra.mxu1 %v15372_v7 }
  0xf7   :  { %12764 = vmatpush3.bf16.msra.mxu0 %v20104_v48  ;;  %10842 = vmatprep.mubr.f32.mxu0 %v14893_v44 }
  0xf8   :  { %12766 = vmatprep.subr.bf16.mxu0 %v20107_v5 }
  0xfa   :  { %10843 = vmatmul.mubr.f32.gmra.mrb[6].mxu0 %v14924_v60 }
  0xfb   :  { %12768 = vmatpush3.bf16.msra.mxu0 %v20107_v5  ;;  %10845 = vmatprep.mubr.f32.mxu0 %v14943_v57 }
  0xfc   :  { %12770 = vmatprep.subr.bf16.mxu0 %v20110_v12 }
  0xfe   :  { %10846 = vmatmul.mubr.f32.gmra.mrb[8].mxu0 %v14945_v46 }
  0xff   :  { %12772 = vmatpush3.bf16.msra.mxu0 %v20110_v12  ;;  %10848 = vmatprep.mubr.f32.mxu0 %v14989_v0  ;;  %v15397_v12 = vpack.c.bf16 %v1710_v15, %v1707_v1 }
 0x100   :  { %12774 = vmatprep.subr.bf16.mxu0 %v20113_v63 }
 0x101   :  { %20133 = vst [vmem:[#allocation18_spill] sm:$0xff] %v15397_v12  ;;  %12790 = vmatprep.subr.bf16.mxu1 %v15397_v12 }
 0x102   :  { %10849 = vmatmul.mubr.f32.gmra.mrb[10].mxu0 %v15015_v54  ;;  %12792 = vmatpush3.bf16.msra.mxu1 %v15397_v12 }
 0x103   :  { %12776 = vmatpush3.bf16.msra.mxu0 %v20113_v63  ;;  %10851 = vmatprep.mubr.f32.mxu0 %v15031_v19  ;;  %v15404_v63 = vld [vmem:[#allocation7 + $0xa8] sm:$0xff] }
 0x104   :  { %12778 = vmatprep.subr.bf16.mxu0 %v20114_v10 }
 0x106   :  { %10852 = vmatmul.mubr.f32.gmra.mrb[12].mxu0 %v15062_v45 }
 0x107   :  { %12780 = vmatpush3.bf16.msra.mxu0 %v20114_v10  ;;  %10854 = vmatprep.mubr.f32.mxu0 %v15066_v32  ;;  %v1713_v10 = vand.u32 4294901760, %v15402_v31 }
 0x108   :  { %12782 = vmatprep.subr.bf16.mxu0 %v20115_v23 }
 0x10a   :  { %10855 = vmatmul.mubr.f32.gmra.mrb[14].mxu0 %v15087_v41 }
 0x10b   :  { %12784 = vmatpush3.bf16.msra.mxu0 %v20115_v23  ;;  %10889 = vmatprep.mubr.f32.mxu0 %v14762_v18  ;;  %v15317_v18 = vld [vmem:[#allocation8] ss:$0 sm:$0xff]  ;;  %v1716_v23 = vand.u32 4294901760, %v15404_v63 }
 0x10d   :  { %v15416_v47 = vpack.c.bf16 %v1716_v23, %v1713_v10 }
 0x10e   :  { %10890 = vmatmul.mubr.f32.vlgmr.msra.gmra.mrb[0].mxu0 %v14780_v25 }
 0x10f   :  { %10892 = vmatprep.mubr.f32.mxu0 %v14807_v38  ;;  %20134 = vst [vmem:[#allocation15_spill] sm:$0xff] %v15416_v47  ;;  %12794 = vmatprep.subr.bf16.mxu1 %v15416_v47 }
 0x110   :  { %12796 = vmatpush3.bf16.msra.mxu1 %v15416_v47 }
 0x111   :  { %12798 = vmatprep.subr.bf16.mxu1 %v15437_v4 }
 0x112   :  { %10893 = vmatmul.mubr.f32.gmra.mrb[2].mxu0 %v14809_v39 }
 0x113   :  { %10895 = vmatprep.mubr.f32.mxu0 %v14847_v61 }
 0x114   :  { %12800 = vmatpush3.bf16.msra.mxu1 %v15437_v4 }
 0x115   :  { %12802 = vmatprep.subr.bf16.mxu1 %v15456_v49 }
 0x116   :  { %10896 = vmatmul.mubr.f32.gmra.mrb[4].mxu0 %v14849_v62 }
 0x117   :  { %10898 = vmatprep.mubr.f32.mxu0 %v14893_v44 }
 0x118   :  { %12804 = vmatpush3.bf16.msra.mxu1 %v15456_v49 }
 0x11a   :  { %10899 = vmatmul.mubr.f32.gmra.mrb[6].mxu0 %v14924_v60 }
 0x11b   :  { %10901 = vmatprep.mubr.f32.mxu0 %v14943_v57 }
 0x11e   :  { %10902 = vmatmul.mubr.f32.gmra.mrb[8].mxu0 %v14945_v46 }
 0x11f   :  { %10904 = vmatprep.mubr.f32.mxu0 %v14989_v0 }
 0x122   :  { %10905 = vmatmul.mubr.f32.gmra.mrb[10].mxu0 %v15015_v54 }
 0x123   :  { %10907 = vmatprep.mubr.f32.mxu0 %v15031_v19 }
 0x126   :  { %10908 = vmatmul.mubr.f32.gmra.mrb[12].mxu0 %v15062_v45 }
 0x127   :  { %10910 = vmatprep.mubr.f32.mxu0 %v15066_v32 }
 0x12a   :  { %10911 = vmatmul.mubr.f32.gmra.mrb[14].mxu0 %v15087_v41 }
 0x1e1   :  { %v10891_v25 = vpop.f32.mrb[0].mxu0 }
 0x1e2   :  { %v15320_v38 = vadd.f32 %v10891_v25, %v15317_v18  ;;  %v1318_v39 = vpop.f32.mrb[1].mxu0  ;;  %v15462_v25 = vld [vmem:[#allocation7 + $0xd0] sm:$0xff] }
 0x1e3   :  { %v15323_v46 = vadd.f32 %v15317_v18, %v1318_v39  ;;  %v15464_v39 = vld [vmem:[#allocation7 + $0xd8] sm:$0xff] }
 0x1e4   :  { %1414 = vadd.xlane.f32.xlu0 %v15320_v38  ;;  %v1445_v19 = vmul.f32 %v15320_v38, %v15320_v38 }
 0x1e5   :  { %v10894_v57 = vpop.f32.mrb[2].mxu0  ;;  %v1444_v61 = vmul.f32 %v15323_v46, %v15323_v46 }
 0x1e6   :  { %1462 = vadd.xlane.f32.xlu1 %v1445_v19  ;;  %v1330_v60 = vpop.f32.mrb[3].mxu0  ;;  %v15335_v44 = vadd.f32 %v10894_v57, %v15317_v18  ;;  %v1731_v19 = vand.u32 4294901760, %v15462_v25  ;;  %v1734_v57 = vand.u32 4294901760, %v15464_v39 }
 0x1e7   :  { %v15332_v0 = vadd.f32 %v15317_v18, %v1330_v60 }
 0x1e8   :  { %1412 = vadd.xlane.f32.xlu0 %v15323_v46  ;;  %v1447_v45 = vmul.f32 %v15335_v44, %v15335_v44 }
 0x1e9   :  { %v10897_v62 = vpop.f32.mrb[4].mxu0  ;;  %v1446_v21 = vmul.f32 %v15332_v0, %v15332_v0 }
 0x1ea   :  { %v1342_v2 = vpop.f32.mrb[5].mxu0  ;;  %1460 = vadd.xlane.f32.xlu1 %v1444_v61  ;;  %v15347_v3 = vadd.f32 %v10897_v62, %v15317_v18  ;;  %v15477_v61 = vpack.c.bf16 %v1734_v57, %v1731_v19 }
 0x1eb   :  { %v15344_v16 = vadd.f32 %v15317_v18, %v1342_v2  ;;  %v15481_v2 = vld [vmem:[#allocation7 + $0xe0] sm:$0xff] }
 0x1ec   :  { %1416 = vadd.xlane.f32.xlu0 %v15332_v0  ;;  %v1449_v36 = vmul.f32 %v15347_v3, %v15347_v3  ;;  %20137 = vst [vmem:[#allocation16_spill] sm:$0xff] %v15477_v61  ;;  %12806 = vmatprep.subr.bf16.mxu1 %v15477_v61 }
 0x1ed   :  { %v10900_v51 = vpop.f32.mrb[6].mxu0  ;;  %v1448_v42 = vmul.f32 %v15344_v16, %v15344_v16  ;;  %12808 = vmatpush3.bf16.msra.mxu1 %v15477_v61 }
 0x1ee   :  { %v1354_v54 = vpop.f32.mrb[7].mxu0  ;;  %1418 = vadd.xlane.f32.xlu1 %v15335_v44  ;;  %v15379_v48 = vadd.f32 %v10900_v51, %v15317_v18  ;;  %v15483_v51 = vld [vmem:[#allocation7 + $0xe8] sm:$0xff] }
 0x1ef   :  { %v15364_v17 = vadd.f32 %v15317_v18, %v1354_v54  ;;  %v1737_v54 = vand.u32 4294901760, %v15481_v2 }
 0x1f0   :  { %1464 = vadd.xlane.f32.xlu0 %v1446_v21  ;;  %v1451_v43 = vmul.f32 %v15379_v48, %v15379_v48  ;;  %v1740_v21 = vand.u32 4294901760, %v15483_v51 }
 0x1f1   :  { %v10903_v32 = vpop.f32.mrb[8].mxu0  ;;  %v1450_v11 = vmul.f32 %v15364_v17, %v15364_v17 }
 0x1f2   :  { %v1366_v41 = vpop.f32.mrb[9].mxu0  ;;  %1466 = vadd.xlane.f32.xlu1 %v1447_v45  ;;  %v15419_v52 = vadd.f32 %v10903_v32, %v15317_v18  ;;  %v15497_v32 = vpack.c.bf16 %v1740_v21, %v1737_v54 }
 0x1f3   :  { %v15410_v29 = vadd.f32 %v15317_v18, %v1366_v41 }
 0x1f4   :  { %1420 = vadd.xlane.f32.xlu0 %v15344_v16  ;;  %v1453_v22 = vmul.f32 %v15419_v52, %v15419_v52  ;;  %20138 = vst [vmem:[#allocation23_spill] sm:$0xff] %v15497_v32  ;;  %12810 = vmatprep.subr.bf16.mxu1 %v15497_v32 }
 0x1f5   :  { %v10906_v53 = vpop.f32.mrb[10].mxu0  ;;  %v1452_v55 = vmul.f32 %v15410_v29, %v15410_v29  ;;  %12812 = vmatpush3.bf16.msra.mxu1 %v15497_v32 }
 0x1f6   :  { %v1378_v28 = vpop.f32.mrb[11].mxu0  ;;  %1422 = vadd.xlane.f32.xlu1 %v15347_v3  ;;  %v15459_v59 = vadd.f32 %v10906_v53, %v15317_v18  ;;  %v15504_v53 = vld [vmem:[#allocation7 + $0xf0] sm:$0xff] }
 0x1f7   :  { %v15449_v40 = vadd.f32 %v15317_v18, %v1378_v28  ;;  %v15506_v28 = vld [vmem:[#allocation7 + $0xf8] sm:$0xff] }
 0x1f8   :  { %1468 = vadd.xlane.f32.xlu0 %v1448_v42  ;;  %v1455_v62 = vmul.f32 %v15459_v59, %v15459_v59  ;;  %v1743_v42 = vand.u32 4294901760, %v15504_v53 }
 0x1f9   :  { %v15361_v56 = vpop.f32.mrb[12].mxu0  ;;  %v1454_v60 = vmul.f32 %v15449_v40, %v15449_v40 }
 0x1fa   :  { %v15366_v26 = vpop.f32.mrb[13].mxu0  ;;  %1470 = vadd.xlane.f32.xlu1 %v1449_v36  ;;  %v15501_v41 = vadd.f32 %v15361_v56, %v15317_v18  ;;  %v1746_v36 = vand.u32 4294901760, %v15506_v28 }
 0x1fb   :  { %v15490_v45 = vadd.f32 %v15317_v18, %v15366_v26 }
 0x1fc   :  { %1424 = vadd.xlane.f32.xlu0 %v15364_v17  ;;  %v15519_v56 = vpack.c.bf16 %v1746_v36, %v1743_v42 }
 0x1fd   :  { %v15385_v5 = vpop.f32.mrb[14].mxu0  ;;  %v1456_v26 = vmul.f32 %v15490_v45, %v15490_v45 }
 0x1fe   :  { %v15388_v58 = vpop.f32.mrb[15].mxu0  ;;  %1426 = vadd.xlane.f32.xlu1 %v15379_v48  ;;  %20139 = vst [vmem:[#allocation25_spill] sm:$0xff] %v15519_v56  ;;  %12814 = vmatprep.subr.bf16.mxu1 %v15519_v56 }
 0x1ff   :  { %12816 = vmatpush3.bf16.msra.mxu1 %v15519_v56 }
 0x200   :  { %1472 = vadd.xlane.f32.xlu0 %v1450_v11  ;;  %v1457_v11 = vmul.f32 %v15501_v41, %v15501_v41 }
 0x202   :  { %1474 = vadd.xlane.f32.xlu1 %v1451_v43  ;;  %v15526_v43 = vadd.f32 %v15317_v18, %v15388_v58  ;;  %v15542_v58 = vsub.f32 %v15353_v50, %v1701_v24  ;;  %v15560_v50 = vsub.f32 %v15374_v14, %v1707_v1  ;;  %v15585_v1 = vsub.f32 %v15404_v63, %v1716_v23 }
 0x203   :  { %v15603_v63 = vsub.f32 %v15424_v13, %v1722_v37  ;;  %v15619_v13 = vsub.f32 %v15441_v8, %v1725_v33  ;;  %v15624_v37 = vsub.f32 %v15443_v35, %v1728_v34  ;;  %v15641_v35 = vsub.f32 %v15462_v25, %v1731_v19 }
 0x204   :  { %1428 = vadd.xlane.f32.xlu0 %v15410_v29  ;;  %20140 = vst [vmem:[#allocation17_spill] sm:$0xff] %v15542_v58  ;;  %20142 = vst [vmem:[#allocation29_spill] sm:$0xff] %v15560_v50  ;;  %v15646_v34 = vsub.f32 %v15464_v39, %v1734_v57  ;;  %v15658_v25 = vsub.f32 %v15481_v2, %v1737_v54  ;;  %v15663_v39 = vsub.f32 %v15483_v51, %v1740_v21 }
 0x205   :  { %20145 = vst [vmem:[#allocation31_spill] sm:$0xff] %v15585_v1  ;;  %20147 = vst [vmem:[#allocation32_spill] sm:$0xff] %v15603_v63  ;;  %v15679_v51 = vsub.f32 %v15504_v53, %v1743_v42  ;;  %v15684_v21 = vsub.f32 %v15506_v28, %v1746_v36 }
 0x206   :  { %1430 = vadd.xlane.f32.xlu1 %v15419_v52  ;;  %20148 = vst [vmem:[#allocation33_spill] sm:$0xff] %v15619_v13  ;;  %20149 = vst [vmem:[#allocation24_spill] sm:$0xff] %v15624_v37 }
 0x207   :  { %20150 = vst [vmem:[#allocation27_spill] sm:$0xff] %v15641_v35  ;;  %20151 = vst [vmem:[#allocation28_spill] sm:$0xff] %v15646_v34 }
 0x208   :  { %1476 = vadd.xlane.f32.xlu0 %v1452_v55  ;;  %v15531_v55 = vadd.f32 %v15385_v5, %v15317_v18  ;;  %v15547_v18 = vsub.f32 %v15355_v30, %v1704_v9  ;;  %v19745_v5 = vand.u32 4294901760, %v15542_v58  ;;  %v15565_v30 = vsub.f32 %v15376_v20, %v1710_v15  ;;  %20152 = vst [vmem:[#allocation34_spill] sm:$0xff] %v15658_v25 }
 0x209   :  { %v15580_v20 = vsub.f32 %v15402_v31, %v1713_v10  ;;  %v15598_v10 = vsub.f32 %v15422_v6, %v1719_v27  ;;  %20153 = vst [vmem:[#allocation35_spill] sm:$0xff] %v15663_v39  ;;  %20154 = vst [vmem:[#allocation36_spill] sm:$0xff] %v15679_v51 }
 0x20a   :  { %1478 = vadd.xlane.f32.xlu1 %v1453_v22  ;;  %v1458_v22 = vmul.f32 %v15526_v43, %v15526_v43  ;;  %20141 = vst [vmem:[#allocation26_spill] sm:$0xff] %v15547_v18  ;;  %20143 = vst [vmem:[#allocation19_spill] sm:$0xff] %v15565_v30 }
 0x20b   :  { %20144 = vst [vmem:[#allocation30_spill] sm:$0xff] %v15580_v20  ;;  %20146 = vst [vmem:[#allocation21_spill] sm:$0xff] %v15598_v10 }
 0x20c   :  { %1432 = vadd.xlane.f32.xlu0 %v15449_v40  ;;  %20155 = vst [vmem:[#allocation37_spill] sm:$0xff] %v15684_v21 }
 0x20e   :  { %1434 = vadd.xlane.f32.xlu1 %v15459_v59 }
 0x210   :  { %1480 = vadd.xlane.f32.xlu0 %v1454_v60  ;;  %v1459_v60 = vmul.f32 %v15531_v55, %v15531_v55 }
 0x212   :  { %1482 = vadd.xlane.f32.xlu1 %v1455_v62  ;;  %v19746_v62 = vand.u32 4294901760, %v15547_v18 }
 0x214   :  { %1436 = vadd.xlane.f32.xlu0 %v15490_v45 }
 0x216   :  { %1438 = vadd.xlane.f32.xlu1 %v15501_v41 }
 0x218   :  { %1484 = vadd.xlane.f32.xlu0 %v1456_v26  ;;  %v1945_v26 = vsub.f32 %v15542_v58, %v19745_v5 }
 0x21a   :  { %1486 = vadd.xlane.f32.xlu1 %v1457_v11  ;;  %v1952_v11 = vsub.f32 %v15547_v18, %v19746_v62  ;;  %v1946_v24 = vand.u32 4294901760, %v1945_v26 }
 0x21c   :  { %1440 = vadd.xlane.f32.xlu0 %v15526_v43  ;;  %v1953_v9 = vand.u32 4294901760, %v1952_v11  ;;  %v19749_v11 = vand.u32 4294901760, %v15580_v20 }
 0x21e   :  { %1442 = vadd.xlane.f32.xlu1 %v15531_v55  ;;  %v15569_v5 = vpack.c.bf16 %v1953_v9, %v1946_v24  ;;  %v19747_v24 = vand.u32 4294901760, %v15585_v1  ;;  %v1973_v31 = vsub.f32 %v15580_v20, %v19749_v11  ;;  %v19757_v11 = vand.u32 4294901760, %v15624_v37 }
 0x220   :  { %1488 = vadd.xlane.f32.xlu0 %v1458_v22  ;;  %v19760_v22 = vand.u32 4294901760, %v15560_v50  ;;  %12818 = vmatprep.subr.bf16.mxu1 %v15569_v5  ;;  %v1980_v23 = vsub.f32 %v15585_v1, %v19747_v24  ;;  %v2008_v33 = vsub.f32 %v15624_v37, %v19757_v11  ;;  %v15730_v11 = vpack.c.bf16 %v15684_v21, %v15679_v51 }
 0x222   :  { %1490 = vadd.xlane.f32.xlu1 %v1459_v60  ;;  %v19750_v60 = vand.u32 4294901760, %v15565_v30  ;;  %v1959_v62 = vsub.f32 %v15560_v50, %v19760_v22 }
 0x224   :  { %v1966_v14 = vsub.f32 %v15565_v30, %v19750_v60  ;;  %v1960_v15 = vand.u32 4294901760, %v1959_v62  ;;  %v1974_v62 = vand.u32 4294901760, %v1973_v31 }
 0x226   :  { %v1967_v26 = vand.u32 4294901760, %v1966_v14  ;;  %v19748_v14 = vand.u32 4294901760, %v15598_v10 }
 0x228   :  { %v15590_v9 = vpack.c.bf16 %v1967_v26, %v1960_v15  ;;  %v19759_v15 = vand.u32 4294901760, %v15603_v63  ;;  %v1981_v26 = vand.u32 4294901760, %v1980_v23  ;;  %v1987_v6 = vsub.f32 %v15598_v10, %v19748_v14 }
 0x229   :  { %v19758_v14 = vand.u32 4294901760, %v15619_v13 }
 0x22a   :  { %v1994_v27 = vsub.f32 %v15603_v63, %v19759_v15  ;;  %v15626_v31 = vpack.c.bf16 %v1981_v26, %v1974_v62  ;;  %v1988_v23 = vand.u32 4294901760, %v1987_v6  ;;  %v2009_v62 = vand.u32 4294901760, %v2008_v33 }
 0x22b   :  { %v2001_v8 = vsub.f32 %v15619_v13, %v19758_v14  ;;  %v19753_v26 = vand.u32 4294901760, %v15641_v35  ;;  %v19752_v6 = vand.u32 4294901760, %v15646_v34  ;;  %v19756_v33 = vand.u32 4294901760, %v15663_v39 }
 0x22c   :  { %v1995_v24 = vand.u32 4294901760, %v1994_v27 }
 0x22d   :  { %v2022_v19 = vsub.f32 %v15646_v34, %v19752_v6  ;;  %v2036_v54 = vsub.f32 %v15663_v39, %v19756_v33  ;;  %v19754_v6 = vand.u32 4294901760, %v15684_v21 }
 0x22e   :  { %v15630_v60 = vpack.c.bf16 %v1995_v24, %v1988_v23  ;;  %v2002_v24 = vand.u32 4294901760, %v2001_v8  ;;  %v2015_v23 = vsub.f32 %v15641_v35, %v19753_v26  ;;  %v19751_v8 = vand.u32 4294901760, %v15658_v25 }
 0x22f   :  { %v2050_v42 = vsub.f32 %v15684_v21, %v19754_v6 }
 0x230   :  { %v15650_v27 = vpack.c.bf16 %v2009_v62, %v2002_v24  ;;  %v2016_v57 = vand.u32 4294901760, %v2015_v23  ;;  %v2023_v24 = vand.u32 4294901760, %v2022_v19  ;;  %v2029_v2 = vsub.f32 %v15658_v25, %v19751_v8 }
 0x231   :  { %v2037_v19 = vand.u32 4294901760, %v2036_v54  ;;  %v19755_v8 = vand.u32 4294901760, %v15679_v51  ;;  %v2051_v36 = vand.u32 4294901760, %v2050_v42  ;;  %v15710_v54 = vpack.c.bf16 %v15585_v1, %v15580_v20  ;;  %v15743_v20 = vld [vmem:[#allocation8 + $0x6] ss:$0 sm:$0xff] }
 0x232   :  { %v15686_v62 = vpack.c.bf16 %v2023_v24, %v2016_v57  ;;  %v2030_v23 = vand.u32 4294901760, %v2029_v2  ;;  %v15702_v24 = vpack.c.bf16 %v15547_v18, %v15542_v58  ;;  %v15706_v2 = vpack.c.bf16 %v15565_v30, %v15560_v50 }
 0x233   :  { %v2043_v53 = vsub.f32 %v15679_v51, %v19755_v8  ;;  %v15726_v42 = vpack.c.bf16 %v15663_v39, %v15658_v25 }
 0x234   :  { %v15690_v26 = vpack.c.bf16 %v2037_v19, %v2030_v23  ;;  %v15714_v23 = vpack.c.bf16 %v15603_v63, %v15598_v10  ;;  %v15718_v19 = vpack.c.bf16 %v15624_v37, %v15619_v13 }
 0x235   :  { %v2044_v28 = vand.u32 4294901760, %v2043_v53  ;;  %v15722_v53 = vpack.c.bf16 %v15646_v34, %v15641_v35 }
 0x237   :  { %v15698_v57 = vpack.c.bf16 %v2051_v36, %v2044_v28 }
 0x271   :  { %v1415_v28 = vpop.xlane.xlu0 %1414 }
 0x272   :  { %v1493_v36 = vmul.f32 0.015625, %v1415_v28 }
 0x273   :  { %v1463_v6 = vpop.xlane.xlu1 %1462 }
 0x274   :  { %v1525_v8 = vmul.f32 %v1493_v36, %v1493_v36  ;;  %v1509_v33 = vmul.f32 0.015625, %v1463_v6 }
 0x275   :  { %v1413_v14 = vpop.xlane.xlu0 %1412 }
 0x276   :  { %v1541_v15 = vsub.f32 %v1509_v33, %v1525_v8  ;;  %v1492_v22 = vmul.f32 0.015625, %v1413_v14 }
 0x277   :  { %v1461_v37 = vpop.xlane.xlu1 %1460 }
 0x278   :  { %v1573_v13 = vadd.f32 1e-05, %v1541_v15  ;;  %v1524_v34 = vmul.f32 %v1492_v22, %v1492_v22  ;;  %v1508_v35 = vmul.f32 0.015625, %v1461_v37 }
 0x279   :  { %v1417_v63 = vpop.xlane.xlu0 %1416 }
 0x27a   :  { %14328 = vrsqrt.f32 %v1573_v13  ;;  %v1540_v39 = vsub.f32 %v1508_v35, %v1524_v34  ;;  %v15732_v25 = vmul.f32 0.015625, %v1417_v63 }
 0x27b   :  { %v1419_v28 = vpop.xlane.xlu1 %1418 }
 0x27c   :  { %v1572_v10 = vadd.f32 1e-05, %v1540_v39  ;;  %v15734_v1 = vmul.f32 0.015625, %v1419_v28  ;;  %v1526_v21 = vmul.f32 %v15732_v25, %v15732_v25  ;;  %v1557_v39 = vsub.f32 %v15320_v38, %v1493_v36 }
 0x27d   :  { %v1465_v6 = vpop.xlane.xlu0 %1464 }
 0x27e   :  { %14330 = vrsqrt.f32 %v1572_v10  ;;  %v1510_v8 = vmul.f32 0.015625, %v1465_v6  ;;  %v1527_v15 = vmul.f32 %v15734_v1, %v15734_v1 }
 0x27f   :  { %v1467_v14 = vpop.xlane.xlu1 %1466 }
 0x280   :  { %v1542_v37 = vsub.f32 %v1510_v8, %v1526_v21  ;;  %v1511_v33 = vmul.f32 0.015625, %v1467_v14  ;;  %v15749_v14 = vld [vmem:[#allocation8 + $0x7] ss:$0 sm:$0xff] }
 0x281   :  { %v1421_v13 = vpop.xlane.xlu0 %1420 }
 0x282   :  { %v1574_v35 = vadd.f32 1e-05, %v1542_v37  ;;  %v1543_v63 = vsub.f32 %v1511_v33, %v1527_v15  ;;  %v15740_v34 = vmul.f32 0.015625, %v1421_v13  ;;  %v1556_v15 = vsub.f32 %v15323_v46, %v1492_v22 }
 0x283   :  { %v1423_v28 = vpop.xlane.xlu1 %1422 }
 0x284   :  { %v14329_v51 = vpop.eup %14328  ;;  %14332 = vrsqrt.f32 %v1574_v35  ;;  %v1575_v10 = vadd.f32 1e-05, %v1543_v63  ;;  %v15745_v6 = vmul.f32 0.015625, %v1423_v28  ;;  %v1528_v21 = vmul.f32 %v15740_v34, %v15740_v34 }
 0x285   :  { %v1469_v30 = vpop.xlane.xlu0 %1468  ;;  %v1605_v50 = vmul.f32 %v14329_v51, %v1557_v39 }
 0x286   :  { %14334 = vrsqrt.f32 %v1575_v10  ;;  %v1512_v8 = vmul.f32 0.015625, %v1469_v30  ;;  %v1529_v33 = vmul.f32 %v15745_v6, %v15745_v6 }
 0x287   :  { %v1471_v38 = vpop.xlane.xlu1 %1470  ;;  %v1626_v36 = vmul.f32 %v15743_v20, %v1605_v50 }
 0x288   :  { %v14331_v37 = vpop.eup %14330  ;;  %v1544_v13 = vsub.f32 %v1512_v8, %v1528_v21  ;;  %v1513_v35 = vmul.f32 0.015625, %v1471_v38  ;;  %v1558_v38 = vsub.f32 %v15332_v0, %v15732_v25 }
 0x289   :  { %v1425_v63 = vpop.xlane.xlu0 %1424  ;;  %v1604_v51 = vmul.f32 %v14331_v37, %v1556_v15  ;;  %v1647_v39 = vadd.f32 %v15749_v14, %v1626_v36 }
 0x28a   :  { %v1576_v28 = vadd.f32 1e-05, %v1544_v13  ;;  %v1545_v10 = vsub.f32 %v1513_v35, %v1529_v33  ;;  %v15756_v30 = vmul.f32 0.015625, %v1425_v63  ;;  %v1559_v33 = vsub.f32 %v15335_v44, %v15734_v1 }
 0x28b   :  { %v1427_v18 = vpop.xlane.xlu1 %1426  ;;  %v1625_v46 = vmul.f32 %v15743_v20, %v1604_v51  ;;  %v1663_v22 = vmax.f32 %v1647_v39, 0.0 }
 0x28c   :  { %14336 = vrsqrt.f32 %v1576_v28  ;;  %v1577_v50 = vadd.f32 1e-05, %v1545_v10  ;;  %v15759_v58 = vmul.f32 0.015625, %v1427_v18  ;;  %v1530_v36 = vmul.f32 %v15756_v30, %v15756_v30 }
 0x28d   :  { %v1473_v56 = vpop.xlane.xlu0 %1472  ;;  %v1646_v21 = vadd.f32 %v15749_v14, %v1625_v46  ;;  %v15762_v8 = vand.u32 4294901760, %v1663_v22 }
 0x28e   :  { %v14333_v15 = vpop.eup %14332  ;;  %14338 = vrsqrt.f32 %v1577_v50  ;;  %v1514_v37 = vmul.f32 0.015625, %v1473_v56  ;;  %v1531_v51 = vmul.f32 %v15759_v58, %v15759_v58 }
 0x28f   :  { %v1475_v13 = vpop.xlane.xlu1 %1474  ;;  %v1662_v18 = vmax.f32 %v1646_v21, 0.0  ;;  %v15771_v35 = vsub.f32 %v1663_v22, %v15762_v8  ;;  %v1606_v0 = vmul.f32 %v14333_v15, %v1558_v38  ;;  %v1560_v15 = vsub.f32 %v15344_v16, %v15740_v34 }
 0x290   :  { %v14335_v63 = vpop.eup %14334  ;;  %v1546_v39 = vsub.f32 %v1514_v37, %v1530_v36  ;;  %v1515_v28 = vmul.f32 0.015625, %v1475_v13  ;;  %v1561_v34 = vsub.f32 %v15347_v3, %v15745_v6 }
 0x291   :  { %v1429_v25 = vpop.xlane.xlu0 %1428  ;;  %v15775_v10 = vand.u32 4294901760, %v1662_v18  ;;  %v19781_v56 = vand.u32 4294901760, %v15771_v35  ;;  %v1607_v46 = vmul.f32 %v14335_v63, %v1559_v33  ;;  %v1627_v22 = vmul.f32 %v15743_v20, %v1606_v0 }
 0x292   :  { %v1578_v50 = vadd.f32 1e-05, %v1546_v39  ;;  %v1547_v44 = vsub.f32 %v1515_v28, %v1531_v51  ;;  %v15778_v1 = vmul.f32 0.015625, %v1429_v25 }
 0x293   :  { %v1431_v21 = vpop.xlane.xlu1 %1430  ;;  %v15782_v32 = vsub.f32 %v1662_v18, %v15775_v10  ;;  %v1628_v36 = vmul.f32 %v15743_v20, %v1607_v46  ;;  %v1794_v63 = vsub.f32 %v15771_v35, %v19781_v56  ;;  %v1648_v51 = vadd.f32 %v15749_v14, %v1627_v22 }
 0x294   :  { %14340 = vrsqrt.f32 %v1578_v50  ;;  %v1579_v38 = vadd.f32 1e-05, %v1547_v44  ;;  %v15787_v37 = vmul.f32 0.015625, %v1431_v21  ;;  %v1532_v39 = vmul.f32 %v15778_v1, %v15778_v1 }
 0x295   :  { %v1477_v33 = vpop.xlane.xlu0 %1476  ;;  %v19792_v13 = vand.u32 4294901760, %v15782_v32  ;;  %v1649_v16 = vadd.f32 %v15749_v14, %v1628_v36  ;;  %v1664_v50 = vmax.f32 %v1648_v51, 0.0  ;;  %v1795_v36 = vand.u32 4294901760, %v1794_v63 }
 0x296   :  { %v14337_v18 = vpop.eup %14336  ;;  %14342 = vrsqrt.f32 %v1579_v38  ;;  %v1516_v28 = vmul.f32 0.015625, %v1477_v33  ;;  %v1533_v0 = vmul.f32 %v15787_v37, %v15787_v37  ;;  %v1562_v63 = vsub.f32 %v15364_v17, %v15756_v30 }
 0x297   :  { %v1479_v25 = vpop.xlane.xlu1 %1478  ;;  %v1784_v46 = vsub.f32 %v15782_v32, %v19792_v13  ;;  %v1665_v38 = vmax.f32 %v1649_v16, 0.0  ;;  %v1608_v56 = vmul.f32 %v14337_v18, %v1560_v15  ;;  %v15804_v49 = vand.u32 4294901760, %v1664_v50 }
 0x298   :  { %v14339_v44 = vpop.eup %14338  ;;  %v1548_v22 = vsub.f32 %v1516_v28, %v1532_v39  ;;  %v1517_v21 = vmul.f32 0.015625, %v1479_v25 }
 0x299   :  { %v1433_v33 = vpop.xlane.xlu0 %1432  ;;  %v1785_v61 = vand.u32 4294901760, %v1784_v46  ;;  %v1609_v3 = vmul.f32 %v14339_v44, %v1561_v34  ;;  %v15808_v12 = vand.u32 4294901760, %v1665_v38  ;;  %v15811_v51 = vsub.f32 %v1664_v50, %v15804_v49 }
 0x29a   :  { %v1580_v6 = vadd.f32 1e-05, %v1548_v22  ;;  %v1549_v4 = vsub.f32 %v1517_v21, %v1533_v0  ;;  %v15806_v47 = vmul.f32 0.015625, %v1433_v33  ;;  %v1629_v39 = vmul.f32 %v15743_v20, %v1608_v56 }
 0x29b   :  { %10945 = vmatprep.mubr.f32.mxu1 %v1785_v61  ;;  %v1435_v13 = vpop.xlane.xlu1 %1434  ;;  %v1630_v15 = vmul.f32 %v15743_v20, %v1609_v3  ;;  %v1803_v34 = vand.u32 4294901760, %v15811_v51  ;;  %v15821_v61 = vsub.f32 %v1665_v38, %v15808_v12 }
 0x29c   :  { %14344 = vrsqrt.f32 %v1580_v6  ;;  %v1581_v18 = vadd.f32 1e-05, %v1549_v4  ;;  %10946 = vmatmul.mubr.f32.vlgmr.msra.gmra.mrb[0].mxu1 %v1795_v36  ;;  %v15817_v28 = vmul.f32 0.015625, %v1435_v13  ;;  %v1650_v0 = vadd.f32 %v15749_v14, %v1629_v39 }
 0x29d   :  { %v1481_v16 = vpop.xlane.xlu0 %1480  ;;  %12820 = vmatpush3.bf16.msra.mxu1 %v15569_v5  ;;  %v1534_v17 = vmul.f32 %v15806_v47, %v15806_v47  ;;  %v1651_v4 = vadd.f32 %v15749_v14, %v1630_v15  ;;  %v1563_v13 = vsub.f32 %v15379_v48, %v15759_v58  ;;  %v1804_v5 = vsub.f32 %v15811_v51, %v1803_v34 }
 0x29e   :  { %v14341_v56 = vpop.eup %14340  ;;  %14346 = vrsqrt.f32 %v1581_v18  ;;  %v1518_v30 = vmul.f32 0.015625, %v1481_v16  ;;  %12822 = vmatprep.subr.bf16.mxu1 %v15590_v9  ;;  %v1535_v25 = vmul.f32 %v15817_v28, %v15817_v28  ;;  %v19793_v50 = vand.u32 4294901760, %v15821_v61 }
 0x29f   :  { %v1483_v46 = vpop.xlane.xlu1 %1482  ;;  %v1666_v38 = vmax.f32 %v1650_v0, 0.0  ;;  %v1667_v33 = vmax.f32 %v1651_v4, 0.0  ;;  %v1805_v3 = vand.u32 4294901760, %v1804_v5  ;;  %v1610_v58 = vmul.f32 %v14341_v56, %v1562_v63 }
 0x2a0   :  { %v14343_v44 = vpop.eup %14342  ;;  %v1550_v22 = vsub.f32 %v1518_v30, %v1534_v17  ;;  %v1519_v21 = vmul.f32 0.015625, %v1483_v46  ;;  %v1814_v48 = vsub.f32 %v15821_v61, %v19793_v50 }
 0x2a1   :  { %v1437_v36 = vpop.xlane.xlu0 %1436  ;;  %v1611_v6 = vmul.f32 %v14343_v44, %v1563_v13  ;;  %12824 = vmatpush3.bf16.msra.mxu1 %v15590_v9  ;;  %v15843_v16 = vand.u32 4294901760, %v1666_v38  ;;  %10948 = vmatprep.mubr.f32.mxu1 %v1805_v3  ;;  %v15846_v30 = vand.u32 4294901760, %v1667_v33  ;;  %v1631_v4 = vmul.f32 %v15743_v20, %v1610_v58 }
 0x2a2   :  { %v1582_v39 = vadd.f32 1e-05, %v1550_v22  ;;  %v1551_v15 = vsub.f32 %v1519_v21, %v1535_v25  ;;  %v15841_v18 = vmul.f32 0.015625, %v1437_v36  ;;  %12826 = vmatprep.subr.bf16.mxu1 %v15626_v31  ;;  %v1815_v0 = vand.u32 4294901760, %v1814_v48 }
 0x2a3   :  { %v1439_v17 = vpop.xlane.xlu1 %1438  ;;  %v1632_v63 = vmul.f32 %v15743_v20, %v1611_v6  ;;  %v1564_v9 = vsub.f32 %v15410_v29, %v15778_v1  ;;  %v15855_v46 = vsub.f32 %v1666_v38, %v15843_v16  ;;  %v15858_v5 = vsub.f32 %v1667_v33, %v15846_v30 }
 0x2a4   :  { %14348 = vrsqrt.f32 %v1582_v39  ;;  %v1583_v56 = vadd.f32 1e-05, %v1551_v15  ;;  %10949 = vmatmul.mubr.f32.gmra.mrb[2].mxu1 %v1815_v0  ;;  %v15852_v13 = vmul.f32 0.015625, %v1439_v17  ;;  %v1652_v44 = vadd.f32 %v15749_v14, %v1631_v4 }
 0x2a5   :  { %v1485_v25 = vpop.xlane.xlu0 %1484  ;;  %v1536_v21 = vmul.f32 %v15841_v18, %v15841_v18  ;;  %v1653_v1 = vadd.f32 %v15749_v14, %v1632_v63  ;;  %12828 = vmatpush3.bf16.msra.mxu1 %v15626_v31  ;;  %v1565_v36 = vsub.f32 %v15419_v52, %v15787_v37  ;;  %v1823_v3 = vand.u32 4294901760, %v15855_v46 }
 0x2a6   :  { %v14345_v22 = vpop.eup %14344  ;;  %14350 = vrsqrt.f32 %v1583_v56  ;;  %v1520_v29 = vmul.f32 0.015625, %v1485_v25  ;;  %v1537_v38 = vmul.f32 %v15852_v13, %v15852_v13  ;;  %v19795_v48 = vand.u32 4294901760, %v15858_v5  ;;  %12830 = vmatprep.subr.bf16.mxu1 %v15630_v60 }
 0x2a7   :  { %v1487_v33 = vpop.xlane.xlu1 %1486  ;;  %v1668_v15 = vmax.f32 %v1652_v44, 0.0  ;;  %v1669_v0 = vmax.f32 %v1653_v1, 0.0  ;;  %v1824_v52 = vsub.f32 %v15855_v46, %v1823_v3  ;;  %v1612_v37 = vmul.f32 %v14345_v22, %v1564_v9 }
 0x2a8   :  { %v14347_v58 = vpop.eup %14346  ;;  %v1552_v6 = vsub.f32 %v1520_v29, %v1536_v21  ;;  %v1521_v39 = vmul.f32 0.015625, %v1487_v33  ;;  %v1834_v31 = vsub.f32 %v15858_v5, %v19795_v48  ;;  %v1566_v9 = vsub.f32 %v15449_v40, %v15806_v47 }
 0x2a9   :  { %v1441_v17 = vpop.xlane.xlu0 %1440  ;;  %v1613_v4 = vmul.f32 %v14347_v58, %v1565_v36  ;;  %v15880_v50 = vand.u32 4294901760, %v1668_v15  ;;  %12832 = vmatpush3.bf16.msra.mxu1 %v15630_v60  ;;  %v1825_v44 = vand.u32 4294901760, %v1824_v52  ;;  %v15883_v1 = vand.u32 4294901760, %v1669_v0 }
 0x2aa   :  { %v1584_v63 = vadd.f32 1e-05, %v1552_v6  ;;  %v1553_v56 = vsub.f32 %v1521_v39, %v1537_v38  ;;  %v15878_v25 = vmul.f32 0.015625, %v1441_v17  ;;  %v1835_v21 = vand.u32 4294901760, %v1834_v31  ;;  %12834 = vmatprep.subr.bf16.mxu1 %v15650_v27 }
 0x2ab   :  { %v1443_v29 = vpop.xlane.xlu1 %1442  ;;  %v1633_v33 = vmul.f32 %v15743_v20, %v1612_v37  ;;  %10951 = vmatprep.mubr.f32.mxu1 %v1825_v44  ;;  %v15892_v60 = vsub.f32 %v1668_v15, %v15880_v50  ;;  %v15895_v58 = vsub.f32 %v1669_v0, %v15883_v1  ;;  %v1634_v40 = vmul.f32 %v15743_v20, %v1613_v4 }
 0x2ac   :  { %14352 = vrsqrt.f32 %v1584_v63  ;;  %v1585_v22 = vadd.f32 1e-05, %v1553_v56  ;;  %v15889_v36 = vmul.f32 0.015625, %v1443_v29  ;;  %v1538_v17 = vmul.f32 %v15878_v25, %v15878_v25  ;;  %10952 = vmatmul.mubr.f32.gmra.mrb[4].mxu1 %v1835_v21 }
 0x2ad   :  { %v1489_v38 = vpop.xlane.xlu0 %1488  ;;  %v1654_v6 = vadd.f32 %v15749_v14, %v1633_v33  ;;  %v1567_v52 = vsub.f32 %v15459_v59, %v15817_v28  ;;  %v19794_v0 = vand.u32 4294901760, %v15892_v60  ;;  %v1853_v37 = vand.u32 4294901760, %v15895_v58  ;;  %12836 = vmatpush3.bf16.msra.mxu1 %v15650_v27 }
 0x2ae   :  { %v14349_v39 = vpop.eup %14348  ;;  %14354 = vrsqrt.f32 %v1585_v22  ;;  %v1522_v47 = vmul.f32 0.015625, %v1489_v38  ;;  %v1539_v15 = vmul.f32 %v15889_v36, %v15889_v36  ;;  %v1655_v29 = vadd.f32 %v15749_v14, %v1634_v40  ;;  %12838 = vmatprep.subr.bf16.mxu1 %v15686_v62 }
 0x2af   :  { %v1491_v31 = vpop.xlane.xlu1 %1490  ;;  %v1670_v21 = vmax.f32 %v1654_v6, 0.0  ;;  %v1844_v59 = vsub.f32 %v15892_v60, %v19794_v0  ;;  %v1854_v28 = vsub.f32 %v15895_v58, %v1853_v37  ;;  %v1614_v4 = vmul.f32 %v14349_v39, %v1566_v9 }
 0x2b0   :  { %v14351_v63 = vpop.eup %14350  ;;  %v1554_v56 = vsub.f32 %v1522_v47, %v1538_v17  ;;  %v1523_v44 = vmul.f32 0.015625, %v1491_v31  ;;  %v1671_v17 = vmax.f32 %v1655_v29, 0.0  ;;  %v1568_v39 = vsub.f32 %v15490_v45, %v15841_v18 }
 0x2b1   :  { %v1615_v33 = vmul.f32 %v14351_v63, %v1567_v52  ;;  %v15916_v38 = vand.u32 4294901760, %v1670_v21  ;;  %v1845_v6 = vand.u32 4294901760, %v1844_v59  ;;  %v1855_v47 = vand.u32 4294901760, %v1854_v28  ;;  %12840 = vmatpush3.bf16.msra.mxu1 %v15686_v62 }
 0x2b2   :  { %v1586_v22 = vadd.f32 1e-05, %v1554_v56  ;;  %v1555_v27 = vsub.f32 %v1523_v44, %v1539_v15  ;;  %v1635_v40 = vmul.f32 %v15743_v20, %v1614_v4  ;;  %v15924_v9 = vand.u32 4294901760, %v1671_v17  ;;  %12842 = vmatprep.subr.bf16.mxu1 %v15690_v26 }
 0x2b3   :  { %v1636_v31 = vmul.f32 %v15743_v20, %v1615_v33  ;;  %v15922_v48 = vsub.f32 %v1670_v21, %v15916_v38  ;;  %10954 = vmatprep.mubr.f32.mxu1 %v1845_v6  ;;  %v1569_v44 = vsub.f32 %v15501_v41, %v15852_v13 }
 0x2b4   :  { %14356 = vrsqrt.f32 %v1586_v22  ;;  %v1587_v0 = vadd.f32 1e-05, %v1555_v27  ;;  %v1656_v52 = vadd.f32 %v15749_v14, %v1635_v40  ;;  %10955 = vmatmul.mubr.f32.gmra.mrb[6].mxu1 %v1855_v47  ;;  %v15933_v56 = vsub.f32 %v1671_v17, %v15924_v9 }
 0x2b5   :  { %v1657_v15 = vadd.f32 %v15749_v14, %v1636_v31  ;;  %v1863_v62 = vand.u32 4294901760, %v15922_v48  ;;  %12844 = vmatpush3.bf16.msra.mxu1 %v15690_v26 }
 0x2b6   :  { %v14353_v63 = vpop.eup %14352  ;;  %14358 = vrsqrt.f32 %v1587_v0  ;;  %v1672_v21 = vmax.f32 %v1656_v52, 0.0  ;;  %v1873_v0 = vand.u32 4294901760, %v15933_v56  ;;  %12846 = vmatprep.subr.bf16.mxu1 %v15698_v57 }
 0x2b7   :  { %v1673_v29 = vmax.f32 %v1657_v15, 0.0  ;;  %v1616_v59 = vmul.f32 %v14353_v63, %v1568_v39  ;;  %v1864_v18 = vsub.f32 %v15922_v48, %v1863_v62  ;;  %v1570_v63 = vsub.f32 %v15526_v43, %v15878_v25 }
 0x2b8   :  { %v14355_v45 = vpop.eup %14354  ;;  %v15943_v28 = vand.u32 4294901760, %v1672_v21  ;;  %v1874_v26 = vsub.f32 %v15933_v56, %v1873_v0 }
 0x2b9   :  { %v15945_v4 = vand.u32 4294901760, %v1673_v29  ;;  %v1637_v41 = vmul.f32 %v15743_v20, %v1616_v59  ;;  %v1617_v13 = vmul.f32 %v14355_v45, %v1569_v44  ;;  %v1865_v33 = vand.u32 4294901760, %v1864_v18  ;;  %12848 = vmatpush3.bf16.msra.mxu1 %v15698_v57 }
 0x2ba   :  { %v15952_v22 = vsub.f32 %v1672_v21, %v15943_v28  ;;  %v1875_v47 = vand.u32 4294901760, %v1874_v26  ;;  %12850 = vmatprep.subr.bf16.mxu1 %v15702_v24  ;;  %v1571_v45 = vsub.f32 %v15531_v55, %v15889_v36 }
 0x2bb   :  { %v15955_v27 = vsub.f32 %v1673_v29, %v15945_v4  ;;  %v1658_v17 = vadd.f32 %v15749_v14, %v1637_v41  ;;  %v1638_v6 = vmul.f32 %v15743_v20, %v1617_v13  ;;  %10957 = vmatprep.mubr.f32.mxu1 %v1865_v33 }
 0x2bc   :  { %v1883_v40 = vand.u32 4294901760, %v15952_v22  ;;  %10958 = vmatmul.mubr.f32.gmra.mrb[8].mxu1 %v1875_v47 }
 0x2bd   :  { %v1893_v31 = vand.u32 4294901760, %v15955_v27  ;;  %v1674_v39 = vmax.f32 %v1658_v17, 0.0  ;;  %v1659_v52 = vadd.f32 %v15749_v14, %v1638_v6 }
 0x2be   :  { %v14357_v15 = vpop.eup %14356  ;;  %v1884_v57 = vsub.f32 %v15952_v22, %v1883_v40 }
 0x2bf   :  { %v1894_v44 = vsub.f32 %v15955_v27, %v1893_v31  ;;  %v15972_v21 = vand.u32 4294901760, %v1674_v39  ;;  %v1675_v29 = vmax.f32 %v1659_v52, 0.0  ;;  %v1618_v18 = vmul.f32 %v14357_v15, %v1570_v63 }
 0x2c0   :  { %v14359_v59 = vpop.eup %14358  ;;  %v1885_v41 = vand.u32 4294901760, %v1884_v57 }
 0x2c1   :  { %v1895_v13 = vand.u32 4294901760, %v1894_v44  ;;  %v15977_v43 = vsub.f32 %v1674_v39, %v15972_v21  ;;  %v15979_v25 = vand.u32 4294901760, %v1675_v29  ;;  %v1639_v33 = vmul.f32 %v15743_v20, %v1618_v18 }
 0x2c2   :  { %v1619_v26 = vmul.f32 %v14359_v59, %v1571_v45  ;;  %10960 = vmatprep.mubr.f32.mxu1 %v1885_v41 }
 0x2c3   :  { %v1903_v17 = vand.u32 4294901760, %v15977_v43  ;;  %v15984_v6 = vsub.f32 %v1675_v29, %v15979_v25  ;;  %10961 = vmatmul.mubr.f32.gmra.mrb[10].mxu1 %v1895_v13  ;;  %v1660_v55 = vadd.f32 %v15749_v14, %v1639_v33 }
 0x2c4   :  { %v1640_v36 = vmul.f32 %v15743_v20, %v1619_v26 }
 0x2c5   :  { %v1904_v47 = vsub.f32 %v15977_v43, %v1903_v17  ;;  %v1913_v39 = vand.u32 4294901760, %v15984_v6  ;;  %v1676_v52 = vmax.f32 %v1660_v55, 0.0 }
 0x2c6   :  { %v1661_v15 = vadd.f32 %v15749_v14, %v1640_v36 }
 0x2c7   :  { %v1905_v63 = vand.u32 4294901760, %v1904_v47  ;;  %v1914_v57 = vsub.f32 %v15984_v6, %v1913_v39  ;;  %v15996_v44 = vand.u32 4294901760, %v1676_v52  ;;  %v20165_v47 = vld [vmem:[#allocation26_spill] sm:$0xff] }
 0x2c8   :  { %v1677_v29 = vmax.f32 %v1661_v15, 0.0 }
 0x2c9   :  { %10963 = vmatprep.mubr.f32.mxu1 %v1905_v63  ;;  %v1915_v59 = vand.u32 4294901760, %v1914_v57  ;;  %v15999_v20 = vsub.f32 %v1676_v52, %v15996_v44  ;;  %v20166_v52 = vand.u32 4294901760, %v20165_v47  ;;  %v20167_v63 = vand.u32 4294901760, %v15782_v32  ;;  %v20168_v57 = vld [vmem:[#allocation29_spill] sm:$0xff] }
 0x2ca   :  { %v16001_v45 = vand.u32 4294901760, %v1677_v29 }
 0x2cb   :  { %10964 = vmatmul.mubr.f32.gmra.mrb[12].mxu1 %v1915_v59  ;;  %v1923_v18 = vand.u32 4294901760, %v15999_v20  ;;  %v20170_v59 = vld [vmem:[#allocation19_spill] sm:$0xff] }
 0x2cc   :  { %v16005_v14 = vsub.f32 %v1677_v29, %v16001_v45  ;;  %v20169_v29 = vand.u32 4294901760, %v20168_v57  ;;  %v20180_v57 = vld [vmem:[#allocation32_spill] sm:$0xff] }
 0x2cd   :  { %v1924_v41 = vsub.f32 %v15999_v20, %v1923_v18 }
 0x2ce   :  { %v1933_v13 = vand.u32 4294901760, %v16005_v14 }
 0x2cf   :  { %v1925_v33 = vand.u32 4294901760, %v1924_v41  ;;  %v20171_v41 = vand.u32 4294901760, %v20170_v59 }
 0x2d0   :  { %v1934_v26 = vsub.f32 %v16005_v14, %v1933_v13 }
 0x2d1   :  { %10966 = vmatprep.mubr.f32.mxu1 %v1925_v33  ;;  %v12917_v33 = vpack.c.bf16 %v20171_v41, %v20169_v29  ;;  %v20183_v29 = vand.u32 4294901760, %v15892_v60  ;;  %v20186_v41 = vld [vmem:[#allocation24_spill] sm:$0xff] }
 0x2d2   :  { %v1935_v55 = vand.u32 4294901760, %v1934_v26  ;;  %v20172_v26 = vand.u32 4294901760, %v15771_v35 }
 0x2d4   :  { %10967 = vmatmul.mubr.f32.gmra.mrb[14].mxu1 %v1935_v55  ;;  %v20173_v55 = vld [vmem:[#allocation30_spill] sm:$0xff] }
 0x2d5   :  { %11001 = vmatprep.mubr.f32.mxu1 %v15775_v10 }
 0x2d8   :  { %11002 = vmatmul.mubr.f32.vlgmr.msra.gmra.mrb[0].mxu1 %v15762_v8 }
 0x2d9   :  { %11004 = vmatprep.mubr.f32.mxu1 %v15804_v49  ;;  %12852 = vmatpush3.bf16.msra.mxu1 %v15702_v24  ;;  %v20156_v24 = vld [vmem:[#allocation18_spill] sm:$0xff] }
 0x2da   :  { %12854 = vmatprep.subr.bf16.mxu1 %v15706_v2 }
 0x2dc   :  { %11005 = vmatmul.mubr.f32.gmra.mrb[2].mxu1 %v15808_v12 }
 0x2dd   :  { %11007 = vmatprep.mubr.f32.mxu1 %v15843_v16  ;;  %12856 = vmatpush3.bf16.msra.mxu1 %v15706_v2  ;;  %v20157_v2 = vld [vmem:[#allocation15_spill] sm:$0xff] }
 0x2de   :  { %12858 = vmatprep.subr.bf16.mxu1 %v15710_v54 }
 0x2e0   :  { %11008 = vmatmul.mubr.f32.gmra.mrb[4].mxu1 %v15846_v30 }
 0x2e1   :  { %11010 = vmatprep.mubr.f32.mxu1 %v15880_v50  ;;  %12860 = vmatpush3.bf16.msra.mxu1 %v15710_v54  ;;  %v20159_v54 = vld [vmem:[#allocation22_spill] sm:$0xff] }
 0x2e2   :  { %12862 = vmatprep.subr.bf16.mxu1 %v15714_v23 }
 0x2e4   :  { %11011 = vmatmul.mubr.f32.gmra.mrb[6].mxu1 %v15883_v1 }
 0x2e5   :  { %11013 = vmatprep.mubr.f32.mxu1 %v15916_v38  ;;  %12864 = vmatpush3.bf16.msra.mxu1 %v15714_v23  ;;  %v20160_v23 = vld [vmem:[#allocation16_spill] sm:$0xff] }
 0x2e6   :  { %12866 = vmatprep.subr.bf16.mxu1 %v15718_v19 }
 0x2e8   :  { %11014 = vmatmul.mubr.f32.gmra.mrb[8].mxu1 %v15924_v9 }
 0x2e9   :  { %11016 = vmatprep.mubr.f32.mxu1 %v15943_v28  ;;  %12868 = vmatpush3.bf16.msra.mxu1 %v15718_v19  ;;  %v20161_v19 = vld [vmem:[#allocation23_spill] sm:$0xff] }
 0x2ea   :  { %12870 = vmatprep.subr.bf16.mxu1 %v15722_v53 }
 0x2ec   :  { %11017 = vmatmul.mubr.f32.gmra.mrb[10].mxu1 %v15945_v4 }
 0x2ed   :  { %11019 = vmatprep.mubr.f32.mxu1 %v15972_v21  ;;  %12872 = vmatpush3.bf16.msra.mxu1 %v15722_v53  ;;  %v20162_v53 = vld [vmem:[#allocation25_spill] sm:$0xff] }
 0x2ee   :  { %12874 = vmatprep.subr.bf16.mxu1 %v15726_v42 }
 0x2f0   :  { %11020 = vmatmul.mubr.f32.gmra.mrb[12].mxu1 %v15979_v25 }
 0x2f1   :  { %11022 = vmatprep.mubr.f32.mxu1 %v15996_v44  ;;  %12876 = vmatpush3.bf16.msra.mxu1 %v15726_v42  ;;  %v20163_v42 = vld [vmem:[#allocation17_spill] sm:$0xff] }
 0x2f2   :  { %12878 = vmatprep.subr.bf16.mxu1 %v15730_v11  ;;  %v20164_v36 = vand.u32 4294901760, %v20163_v42  ;;  %v20174_v42 = vand.u32 4294901760, %v20173_v55 }
 0x2f4   :  { %11023 = vmatmul.mubr.f32.gmra.mrb[14].mxu1 %v16001_v45  ;;  %v12913_v15 = vpack.c.bf16 %v20166_v52, %v20164_v36  ;;  %v20175_v36 = vld [vmem:[#allocation31_spill] sm:$0xff]  ;;  %v20177_v52 = vand.u32 4294901760, %v15821_v61 }
 0x2f5   :  { %12880 = vmatpush3.bf16.msra.mxu1 %v15730_v11  ;;  %11057 = vmatprep.mubr.f32.mxu1 %v15782_v32  ;;  %v20158_v11 = vld [vmem:[#allocation20_spill] sm:$0xff]  ;;  %v20176_v47 = vand.u32 4294901760, %v20175_v36  ;;  %v20198_v36 = vld [vmem:[#allocation37_spill] sm:$0xff] }
 0x2f6   :  { %12882 = vmatprep.subr.bf16.mxu1 %v15372_v7 }
 0x2f7   :  { %v12921_v32 = vpack.c.bf16 %v20176_v47, %v20174_v42  ;;  %v20194_v42 = vld [vmem:[#allocation35_spill] sm:$0xff] }
 0x2f8   :  { %11058 = vmatmul.mubr.f32.vlgmr.msra.gmra.mrb[0].mxu1 %v15771_v35  ;;  %v20178_v35 = vld [vmem:[#allocation21_spill] sm:$0xff] }
 0x2f9   :  { %11060 = vmatprep.mubr.f32.mxu1 %v15811_v51  ;;  %12884 = vmatpush3.bf16.msra.mxu1 %v15372_v7  ;;  %v20181_v51 = vand.u32 4294901760, %v20180_v57 }
 0x2fa   :  { %12886 = vmatprep.subr.bf16.mxu1 %v20156_v24 }
 0x2fc   :  { %11061 = vmatmul.mubr.f32.gmra.mrb[2].mxu1 %v15821_v61  ;;  %v20184_v61 = vld [vmem:[#allocation33_spill] sm:$0xff] }
 0x2fd   :  { %11063 = vmatprep.mubr.f32.mxu1 %v15855_v46  ;;  %12888 = vmatpush3.bf16.msra.mxu1 %v20156_v24  ;;  %v20185_v59 = vand.u32 4294901760, %v20184_v61  ;;  %v20187_v46 = vand.u32 4294901760, %v20186_v41 }
 0x2fe   :  { %12890 = vmatprep.subr.bf16.mxu1 %v20157_v2 }
 0x300   :  { %11064 = vmatmul.mubr.f32.gmra.mrb[4].mxu1 %v15858_v5 }
 0x301   :  { %11066 = vmatprep.mubr.f32.mxu1 %v15892_v60  ;;  %12892 = vmatpush3.bf16.msra.mxu1 %v20157_v2 }
 0x302   :  { %12894 = vmatprep.subr.bf16.mxu1 %v20158_v11 }
 0x304   :  { %11067 = vmatmul.mubr.f32.gmra.mrb[6].mxu1 %v15895_v58  ;;  %v20192_v58 = vld [vmem:[#allocation34_spill] sm:$0xff] }
 0x305   :  { %11069 = vmatprep.mubr.f32.mxu1 %v15922_v48  ;;  %12896 = vmatpush3.bf16.msra.mxu1 %v20158_v11  ;;  %v20195_v48 = vand.u32 4294901760, %v20194_v42 }
 0x306   :  { %12898 = vmatprep.subr.bf16.mxu1 %v20159_v54 }
 0x308   :  { %11070 = vmatmul.mubr.f32.gmra.mrb[8].mxu1 %v15933_v56  ;;  %v20196_v56 = vld [vmem:[#allocation36_spill] sm:$0xff] }
 0x309   :  { %11072 = vmatprep.mubr.f32.mxu1 %v15952_v22  ;;  %12900 = vmatpush3.bf16.msra.mxu1 %v20159_v54  ;;  %v20199_v22 = vand.u32 4294901760, %v20198_v36 }
 0x30a   :  { %12902 = vmatprep.subr.bf16.mxu1 %v20160_v23 }
 0x30c   :  { %11073 = vmatmul.mubr.f32.gmra.mrb[10].mxu1 %v15955_v27  ;;  %v4812_v27 = vld [vmem:[#allocation7 + $0x188] sm:$0xff] }
 0x30d   :  { %11075 = vmatprep.mubr.f32.mxu1 %v15977_v43  ;;  %12904 = vmatpush3.bf16.msra.mxu1 %v20160_v23  ;;  %v4836_v43 = vand.u32 4294901760, %v4812_v27 }
 0x30e   :  { %12906 = vmatprep.subr.bf16.mxu1 %v20161_v19 }
 0x310   :  { %11076 = vmatmul.mubr.f32.gmra.mrb[12].mxu1 %v15984_v6  ;;  %v16169_v6 = vld [vmem:[#allocation7 + $0x198] sm:$0xff] }
 0x311   :  { %11078 = vmatprep.mubr.f32.mxu1 %v15999_v20  ;;  %12908 = vmatpush3.bf16.msra.mxu1 %v20161_v19 }
 0x312   :  { %12910 = vmatprep.subr.bf16.mxu1 %v20162_v53 }
 0x314   :  { %11079 = vmatmul.mubr.f32.gmra.mrb[14].mxu1 %v16005_v14  ;;  %v16179_v14 = vld [vmem:[#allocation7 + $0x1a0] sm:$0xff] }
 0x315   :  { %12912 = vmatpush3.bf16.msra.mxu1 %v20162_v53  ;;  %11113 = vmatprep.mubr.f32.mxu1 %v20167_v63  ;;  %v20179_v63 = vand.u32 4294901760, %v20178_v35 }
 0x316   :  { %12914 = vmatprep.subr.bf16.mxu1 %v12913_v15 }
 0x318   :  { %11114 = vmatmul.mubr.f32.vlgmr.msra.gmra.mrb[0].mxu1 %v20172_v26  ;;  %v20190_v26 = vld [vmem:[#allocation28_spill] sm:$0xff] }
 0x319   :  { %11116 = vmatprep.mubr.f32.mxu1 %v1803_v34  ;;  %12916 = vmatpush3.bf16.msra.mxu1 %v12913_v15  ;;  %v12925_v34 = vpack.c.bf16 %v20181_v51, %v20179_v63  ;;  %v20182_v15 = vand.u32 4294901760, %v15858_v5  ;;  %v20188_v5 = vld [vmem:[#allocation27_spill] sm:$0xff]  ;;  %v20191_v60 = vand.u32 4294901760, %v20190_v26  ;;  %v91_v51 = vld [vmem:[#allocation5 + $0x10] sm:$0xff] }
 0x31a   :  { %12918 = vmatprep.subr.bf16.mxu1 %v12917_v33 }
 0x31c   :  { %11117 = vmatmul.mubr.f32.gmra.mrb[2].mxu1 %v20177_v52  ;;  %v16207_v52 = vld [vmem:[#allocation7 + $0x1c0] sm:$0xff] }
 0x31d   :  { %11119 = vmatprep.mubr.f32.mxu1 %v1823_v3  ;;  %12920 = vmatpush3.bf16.msra.mxu1 %v12917_v33  ;;  %v12929_v3 = vpack.c.bf16 %v20187_v46, %v20185_v59  ;;  %v20189_v33 = vand.u32 4294901760, %v20188_v5  ;;  %v4857_v57 = vand.u32 4294901760, %v16207_v52  ;;  %v16236_v59 = vld [vmem:[#allocation7 + $0x1e8] sm:$0xff]  ;;  %v16248_v5 = vand.u32 4294901760, %v91_v51 }
 0x31e   :  { %12922 = vmatprep.subr.bf16.mxu1 %v12921_v32 }
 0x31f   :  { %v12933_v55 = vpack.c.bf16 %v20191_v60, %v20189_v33 }
 0x320   :  { %11120 = vmatmul.mubr.f32.gmra.mrb[4].mxu1 %v20182_v15  ;;  %v16227_v15 = vld [vmem:[#allocation7 + $0x1d0] sm:$0xff] }
 0x321   :  { %11122 = vmatprep.mubr.f32.mxu1 %v20183_v29  ;;  %12924 = vmatpush3.bf16.msra.mxu1 %v12921_v32  ;;  %v16229_v29 = vld [vmem:[#allocation7 + $0x1d8] sm:$0xff]  ;;  %v19809_v26 = vand.u32 4294901760, %v16227_v15 }
 0x322   :  { %12926 = vmatprep.subr.bf16.mxu1 %v12925_v34  ;;  %v19808_v60 = vand.u32 4294901760, %v16229_v29 }
 0x324   :  { %11123 = vmatmul.mubr.f32.gmra.mrb[6].mxu1 %v1853_v37  ;;  %v20193_v37 = vand.u32 4294901760, %v20192_v58  ;;  %v16263_v58 = vld [vmem:[#allocation7 + $0x1f0] sm:$0xff] }
 0x325   :  { %11125 = vmatprep.mubr.f32.mxu1 %v1863_v62  ;;  %12928 = vmatpush3.bf16.msra.mxu1 %v12925_v34  ;;  %v92_v34 = vld [vmem:[#allocation5 + $0x18] sm:$0xff] }
 0x326   :  { %12930 = vmatprep.subr.bf16.mxu1 %v12929_v3  ;;  %v12937_v62 = vpack.c.bf16 %v20195_v48, %v20193_v37  ;;  %v16250_v33 = vand.u32 4294901760, %v92_v34  ;;  %v16265_v37 = vld [vmem:[#allocation7 + $0x1f8] sm:$0xff] }
 0x328   :  { %11126 = vmatmul.mubr.f32.gmra.mrb[8].mxu1 %v1873_v0  ;;  %v20197_v0 = vand.u32 4294901760, %v20196_v56  ;;  %v93_v56 = vld [vmem:[#allocation5 + $0x20] sm:$0xff] }
 0x329   :  { %11128 = vmatprep.mubr.f32.mxu1 %v1883_v40  ;;  %12932 = vmatpush3.bf16.msra.mxu1 %v12929_v3  ;;  %v16244_v3 = vsub.f32 %v4812_v27, %v4836_v43  ;;  %v94_v27 = vld [vmem:[#allocation5 + $0x28] sm:$0xff] }
 0x32a   :  { %12934 = vmatprep.subr.bf16.mxu1 %v12933_v55  ;;  %v12941_v40 = vpack.c.bf16 %v20199_v22, %v20197_v0 }
 0x32b   :  { %v19800_v22 = vand.u32 4294901760, %v16244_v3 }
 0x32c   :  { %11129 = vmatmul.mubr.f32.gmra.mrb[10].mxu1 %v1893_v31 }
 0x32d   :  { %11131 = vmatprep.mubr.f32.mxu1 %v1903_v17  ;;  %12936 = vmatpush3.bf16.msra.mxu1 %v12933_v55  ;;  %v16167_v17 = vld [vmem:[#allocation7 + $0x190] sm:$0xff]  ;;  %v19798_v55 = vand.u32 4294901760, %v16236_v59 }
 0x32e   :  { %12938 = vmatprep.subr.bf16.mxu1 %v12937_v62  ;;  %v4839_v20 = vand.u32 4294901760, %v16167_v17 }
 0x330   :  { %11132 = vmatmul.mubr.f32.gmra.mrb[12].mxu1 %v1913_v39  ;;  %v16269_v48 = vsub.f32 %v16167_v17, %v4839_v20 }
 0x331   :  { %11134 = vmatprep.mubr.f32.mxu1 %v1923_v18  ;;  %12940 = vmatpush3.bf16.msra.mxu1 %v12937_v62  ;;  %v4842_v18 = vand.u32 4294901760, %v16169_v6 }
 0x332   :  { %12942 = vmatprep.subr.bf16.mxu1 %v12941_v40 }
 0x333   :  { %v16272_v62 = vsub.f32 %v16169_v6, %v4842_v18 }
 0x334   :  { %11135 = vmatmul.mubr.f32.gmra.mrb[14].mxu1 %v1933_v13  ;;  %v16181_v13 = vld [vmem:[#allocation7 + $0x1a8] sm:$0xff] }
 0x335   :  { %12944 = vmatpush3.bf16.msra.mxu1 %v12941_v40  ;;  %11169 = vmatprep.mubr.f32.mxu1 %v15775_v10  ;;  %v16281_v40 = vsub.f32 %v91_v51, %v16248_v5 }
 0x336   :  { %12946 = vmatprep.subr.bf16.mxu1 %v15372_v7 }
 0x338   :  { %11170 = vmatmul.mubr.f32.vlgmr.msra.gmra.mrb[0].mxu1 %v15762_v8 }
 0x339   :  { %11172 = vmatprep.mubr.f32.mxu1 %v15804_v49  ;;  %12948 = vmatpush3.bf16.msra.mxu1 %v15372_v7  ;;  %v4811_v7 = vld [vmem:[#allocation7 + $0x180] sm:$0xff] }
 0x33a   :  { %12950 = vmatprep.subr.bf16.mxu1 %v20156_v24  ;;  %v4833_v31 = vand.u32 4294901760, %v4811_v7 }
 0x33c   :  { %11173 = vmatmul.mubr.f32.gmra.mrb[2].mxu1 %v15808_v12  ;;  %v16175_v39 = vpack.c.bf16 %v4836_v43, %v4833_v31  ;;  %v16233_v61 = vsub.f32 %v4811_v7, %v4833_v31  ;;  %v16284_v7 = vsub.f32 %v92_v34, %v16250_v33  ;;  %v19803_v31 = vand.u32 4294901760, %v16263_v58 }
 0x33d   :  { %11175 = vmatprep.mubr.f32.mxu1 %v15843_v16  ;;  %12952 = vmatpush3.bf16.msra.mxu1 %v20156_v24  ;;  %v16187_v24 = vpack.c.bf16 %v4842_v18, %v4839_v20  ;;  %v16295_v43 = vand.u32 4294901760, %v93_v56  ;;  %v19804_v20 = vand.u32 4294901760, %v16269_v48  ;;  %v19806_v18 = vand.u32 4294901760, %v16272_v62 }
 0x33e   :  { %12954 = vmatprep.subr.bf16.mxu1 %v20157_v2  ;;  %v19796_v42 = vand.u32 4294901760, %v16233_v61  ;;  %20204 = vst [vmem:[#allocation16_spill] sm:$0xff] %v16284_v7  ;;  %v5084_v34 = vsub.f32 %v16244_v3, %v19800_v22 }
 0x33f   :  { %20200 = vst [vmem:[#allocation18_spill] sm:$0xff] %v16187_v24  ;;  %v16346_v22 = vsub.f32 %v93_v56, %v16295_v43 }
 0x340   :  { %11176 = vmatmul.mubr.f32.gmra.mrb[4].mxu1 %v15846_v30  ;;  %v5077_v6 = vsub.f32 %v16233_v61, %v19796_v42  ;;  %v16322_v42 = vand.u32 4294901760, %v94_v27 }
 0x341   :  { %11178 = vmatprep.mubr.f32.mxu1 %v15880_v50  ;;  %12956 = vmatpush3.bf16.msra.mxu1 %v20157_v2  ;;  %v4845_v2 = vand.u32 4294901760, %v16179_v14  ;;  %20208 = vst [vmem:[#allocation26_spill] sm:$0xff] %v16346_v22 }
 0x342   :  { %12958 = vmatprep.subr.bf16.mxu1 %v20158_v11 }
 0x344   :  { %11179 = vmatmul.mubr.f32.gmra.mrb[6].mxu1 %v15883_v1 }
 0x345   :  { %11181 = vmatprep.mubr.f32.mxu1 %v15916_v38  ;;  %12960 = vmatpush3.bf16.msra.mxu1 %v20158_v11  ;;  %v4848_v11 = vand.u32 4294901760, %v16181_v13 }
 0x346   :  { %12962 = vmatprep.subr.bf16.mxu1 %v20159_v54 }
 0x348   :  { %11182 = vmatmul.mubr.f32.gmra.mrb[8].mxu1 %v15924_v9 }
 0x349   :  { %11184 = vmatprep.mubr.f32.mxu1 %v15943_v28  ;;  %12964 = vmatpush3.bf16.msra.mxu1 %v20159_v54  ;;  %v16191_v54 = vld [vmem:[#allocation7 + $0x1b0] sm:$0xff] }
 0x34a   :  { %12966 = vmatprep.subr.bf16.mxu1 %v20160_v23  ;;  %v4851_v47 = vand.u32 4294901760, %v16191_v54 }
 0x34c   :  { %11185 = vmatmul.mubr.f32.gmra.mrb[10].mxu1 %v15945_v4 }
 0x34d   :  { %11187 = vmatprep.mubr.f32.mxu1 %v15972_v21  ;;  %12968 = vmatpush3.bf16.msra.mxu1 %v20160_v23  ;;  %v16193_v23 = vld [vmem:[#allocation7 + $0x1b8] sm:$0xff] }
 0x34e   :  { %12970 = vmatprep.subr.bf16.mxu1 %v20161_v19  ;;  %v4854_v32 = vand.u32 4294901760, %v16193_v23 }
 0x350   :  { %11188 = vmatmul.mubr.f32.gmra.mrb[12].mxu1 %v15979_v25  ;;  %v16223_v63 = vpack.c.bf16 %v4854_v32, %v4851_v47  ;;  %v16364_v56 = vsub.f32 %v16193_v23, %v4854_v32  ;;  %v98_v32 = vld [vmem:[#allocation5 + $0x48] sm:$0xff] }
 0x351   :  { %11190 = vmatprep.mubr.f32.mxu1 %v15996_v44  ;;  %12972 = vmatpush3.bf16.msra.mxu1 %v20161_v19  ;;  %v89_v19 = vld [vmem:[#allocation5] sm:$0xff] }
 0x352   :  { %12974 = vmatprep.subr.bf16.mxu1 %v20162_v53  ;;  %20202 = vst [vmem:[#allocation20_spill] sm:$0xff] %v16223_v63 }
 0x354   :  { %11191 = vmatmul.mubr.f32.gmra.mrb[14].mxu1 %v16001_v45 }
 0x355   :  { %12976 = vmatpush3.bf16.msra.mxu1 %v20162_v53  ;;  %11225 = vmatprep.mubr.f32.mxu1 %v15775_v10  ;;  %v90_v10 = vld [vmem:[#allocation5 + $0x8] sm:$0xff]  ;;  %v16203_v53 = vpack.c.bf16 %v4848_v11, %v4845_v2 }
 0x356   :  { %13170 = vmatprep.subr.bf16.mxu1 %v16175_v39  ;;  %v16214_v35 = vand.u32 4294901760, %v90_v10 }
 0x357   :  { %20201 = vst [vmem:[#allocation15_spill] sm:$0xff] %v16203_v53 }
 0x358   :  { %11226 = vmatmul.mubr.f32.vlgmr.msra.gmra.mrb[0].mxu1 %v15762_v8  ;;  %v16209_v8 = vld [vmem:[#allocation7 + $0x1c8] sm:$0xff]  ;;  %v16242_v46 = vsub.f32 %v90_v10, %v16214_v35 }
 0x359   :  { %11228 = vmatprep.mubr.f32.mxu1 %v15804_v49  ;;  %13172 = vmatpush3.bf16.msra.mxu1 %v16175_v39  ;;  %v16212_v49 = vand.u32 4294901760, %v89_v19 }
 0x35a   :  { %13174 = vmatprep.subr.bf16.mxu1 %v16187_v24  ;;  %v19799_v36 = vand.u32 4294901760, %v16242_v46 }
 0x35b   :  { %v16239_v41 = vsub.f32 %v89_v19, %v16212_v49  ;;  %v95_v19 = vld [vmem:[#allocation5 + $0x30] sm:$0xff] }
 0x35c   :  { %11229 = vmatmul.mubr.f32.gmra.mrb[2].mxu1 %v15808_v12  ;;  %v4860_v12 = vand.u32 4294901760, %v16209_v8  ;;  %v16317_v51 = vsub.f32 %v16242_v46, %v19799_v36  ;;  %v16336_v36 = vsub.f32 %v16181_v13, %v4848_v11  ;;  %v5078_v13 = vand.u32 4294901760, %v5077_v6 }
 0x35d   :  { %11231 = vmatprep.mubr.f32.mxu1 %v15843_v16  ;;  %13176 = vmatpush3.bf16.msra.mxu1 %v16187_v24  ;;  %v16231_v16 = vld [vmem:[#allocation7 + $0x1e0] sm:$0xff]  ;;  %v19797_v0 = vand.u32 4294901760, %v16239_v41  ;;  %v5098_v11 = vsub.f32 %v16272_v62, %v19806_v18  ;;  %v5085_v6 = vand.u32 4294901760, %v5084_v34 }
 0x35e   :  { %13178 = vmatprep.subr.bf16.mxu1 %v16203_v53 }
 0x35f   :  { %v16312_v10 = vsub.f32 %v16239_v41, %v19797_v0  ;;  %v19807_v0 = vand.u32 4294901760, %v16284_v7  ;;  %v5099_v18 = vand.u32 4294901760, %v5098_v11 }
 0x360   :  { %11232 = vmatmul.mubr.f32.gmra.mrb[4].mxu1 %v15846_v30  ;;  %v16257_v30 = vpack.c.bf16 %v4860_v12, %v4857_v57 }
 0x361   :  { %11234 = vmatprep.mubr.f32.mxu1 %v15880_v50  ;;  %13180 = vmatpush3.bf16.msra.mxu1 %v16203_v53  ;;  %v19801_v50 = vand.u32 4294901760, %v16231_v16 }
 0x362   :  { %13182 = vmatprep.subr.bf16.mxu1 %v16223_v63  ;;  %20203 = vst [vmem:[#allocation22_spill] sm:$0xff] %v16257_v30 }
 0x363   :  { %v16301_v17 = vpack.c.bf16 %v19798_v55, %v19801_v50  ;;  %v16331_v55 = vsub.f32 %v16179_v14, %v4845_v2  ;;  %v16348_v50 = vand.u32 4294901760, %v95_v19  ;;  %v16353_v14 = vsub.f32 %v16191_v54, %v4851_v47 }
 0x364   :  { %11235 = vmatmul.mubr.f32.gmra.mrb[6].mxu1 %v15883_v1  ;;  %v16291_v1 = vpack.c.bf16 %v19808_v60, %v19809_v26  ;;  %v5091_v2 = vsub.f32 %v16269_v48, %v19804_v20  ;;  %v4917_v54 = vand.u32 4294901760, %v16312_v10  ;;  %v4927_v47 = vand.u32 4294901760, %v16317_v51  ;;  %v97_v20 = vld [vmem:[#allocation5 + $0x40] sm:$0xff] }
 0x365   :  { %11237 = vmatprep.mubr.f32.mxu1 %v15916_v38  ;;  %13184 = vmatpush3.bf16.msra.mxu1 %v16223_v63  ;;  %v19802_v38 = vand.u32 4294901760, %v16265_v37  ;;  %20206 = vst [vmem:[#allocation25_spill] sm:$0xff] %v16301_v17  ;;  %v16389_v10 = vsub.f32 %v95_v19, %v16348_v50  ;;  %v19813_v34 = vand.u32 4294901760, %v16353_v14  ;;  %v16395_v60 = vand.u32 4294901760, %v97_v20 }
 0x366   :  { %13186 = vmatprep.subr.bf16.mxu1 %v16257_v30  ;;  %20205 = vst [vmem:[#allocation23_spill] sm:$0xff] %v16291_v1  ;;  %v13201_v26 = vpack.c.bf16 %v5085_v6, %v5078_v13  ;;  %v16402_v19 = vsub.f32 %v16207_v52, %v4857_v57  ;;  %v20211_v11 = vand.u32 4294901760, %v16331_v55  ;;  %v20212_v52 = vand.u32 4294901760, %v16336_v36 }
 0x367   :  { %20210 = vst [vmem:[#allocation19_spill] sm:$0xff] %v16389_v10 }
 0x368   :  { %11238 = vmatmul.mubr.f32.gmra.mrb[8].mxu1 %v15924_v9  ;;  %v19805_v9 = vand.u32 4294901760, %v16281_v40  ;;  %v5105_v6 = vsub.f32 %v16331_v55, %v20211_v11  ;;  %v5112_v57 = vsub.f32 %v16336_v36, %v20212_v52  ;;  %v16434_v52 = vsub.f32 %v97_v20, %v16395_v60 }
 0x369   :  { %11240 = vmatprep.mubr.f32.mxu1 %v15943_v28  ;;  %13188 = vmatpush3.bf16.msra.mxu1 %v16257_v30  ;;  %v16343_v28 = vpack.c.bf16 %v19802_v38, %v19803_v31  ;;  %v96_v38 = vld [vmem:[#allocation5 + $0x38] sm:$0xff]  ;;  %v16370_v31 = vsub.f32 %v94_v27, %v16322_v42  ;;  %v99_v27 = vld [vmem:[#allocation5 + $0x50] sm:$0xff] }
 0x36a   :  { %13190 = vmatprep.subr.bf16.mxu1 %v16291_v1  ;;  %v16377_v23 = vsub.f32 %v16281_v40, %v19805_v9  ;;  %v16391_v51 = vand.u32 4294901760, %v96_v38  ;;  %v5092_v9 = vand.u32 4294901760, %v5091_v2  ;;  %v16407_v2 = vsub.f32 %v16209_v8, %v4860_v12  ;;  %20214 = vst [vmem:[#allocation31_spill] sm:$0xff] %v16434_v52 }
 0x36b   :  { %20207 = vst [vmem:[#allocation17_spill] sm:$0xff] %v16343_v28  ;;  %20209 = vst [vmem:[#allocation29_spill] sm:$0xff] %v16370_v31  ;;  %v5106_v20 = vand.u32 4294901760, %v5105_v6  ;;  %v20218_v8 = vand.u32 4294901760, %v16389_v10 }
 0x36c   :  { %11241 = vmatmul.mubr.f32.gmra.mrb[10].mxu1 %v15945_v4  ;;  %v16382_v4 = vsub.f32 %v16284_v7, %v19807_v0  ;;  %v19814_v0 = vand.u32 4294901760, %v16364_v56  ;;  %v16425_v12 = vsub.f32 %v96_v38, %v16391_v51 }
 0x36d   :  { %11243 = vmatprep.mubr.f32.mxu1 %v15972_v21  ;;  %13192 = vmatpush3.bf16.msra.mxu1 %v16291_v1  ;;  %v19812_v21 = vand.u32 4294901760, %v16346_v22  ;;  %v20216_v1 = vand.u32 4294901760, %v16227_v15  ;;  %v4976_v63 = vsub.f32 %v16389_v10, %v20218_v8  ;;  %v20220_v8 = vand.u32 4294901760, %v16407_v2 }
 0x36e   :  { %13194 = vmatprep.subr.bf16.mxu1 %v16301_v17  ;;  %v4947_v13 = vand.u32 4294901760, %v16382_v4  ;;  %20213 = vst [vmem:[#allocation30_spill] sm:$0xff] %v16425_v12  ;;  %v13205_v4 = vpack.c.bf16 %v5099_v18, %v5092_v9  ;;  %v5126_v11 = vsub.f32 %v16364_v56, %v19814_v0  ;;  %v16446_v9 = vand.u32 4294901760, %v99_v27 }
 0x36f   :  { %v5113_v0 = vand.u32 4294901760, %v5112_v57  ;;  %v101_v57 = vld [vmem:[#allocation5 + $0x60] sm:$0xff]  ;;  %v4977_v10 = vand.u32 4294901760, %v4976_v63 }
 0x370   :  { %11244 = vmatmul.mubr.f32.gmra.mrb[12].mxu1 %v15979_v25  ;;  %v4937_v25 = vand.u32 4294901760, %v16377_v23  ;;  %v5119_v23 = vsub.f32 %v16353_v14, %v19813_v34  ;;  %v100_v34 = vld [vmem:[#allocation5 + $0x58] sm:$0xff] }
 0x371   :  { %11246 = vmatprep.mubr.f32.mxu1 %v15996_v44  ;;  %13196 = vmatpush3.bf16.msra.mxu1 %v16301_v17  ;;  %v4956_v44 = vsub.f32 %v16346_v22, %v19812_v21  ;;  %v16436_v17 = vand.u32 4294901760, %v98_v32  ;;  %v20215_v21 = vand.u32 4294901760, %v16370_v31 }
 0x372   :  { %13198 = vmatprep.subr.bf16.mxu1 %v16343_v28  ;;  %v5120_v6 = vand.u32 4294901760, %v5119_v23  ;;  %v5140_v23 = vsub.f32 %v16407_v2, %v20220_v8  ;;  %v20222_v8 = vand.u32 4294901760, %v16231_v16 }
 0x373   :  { %v16442_v38 = vsub.f32 %v16370_v31, %v20215_v21  ;;  %v20217_v21 = vand.u32 4294901760, %v16229_v29  ;;  %v4957_v18 = vand.u32 4294901760, %v4956_v44  ;;  %v20219_v44 = vand.u32 4294901760, %v16402_v19 }
 0x374   :  { %11247 = vmatmul.mubr.f32.gmra.mrb[14].mxu1 %v16001_v45  ;;  %v16452_v45 = vsub.f32 %v16227_v15, %v20216_v1  ;;  %v16465_v15 = vsub.f32 %v98_v32, %v16436_v17  ;;  %v16467_v1 = vand.u32 4294901760, %v100_v34  ;;  %v13209_v32 = vpack.c.bf16 %v5113_v0, %v5106_v20 }
 0x375   :  { %13200 = vmatpush3.bf16.msra.mxu1 %v16343_v28  ;;  %11617 = vmatprep.mubr.f32.mxu1 %v4917_v54  ;;  %v16457_v30 = vsub.f32 %v16229_v29, %v20217_v21  ;;  %v5127_v28 = vand.u32 4294901760, %v5126_v11  ;;  %v4967_v29 = vand.u32 4294901760, %v16442_v38  ;;  %v5133_v21 = vsub.f32 %v16402_v19, %v20219_v44  ;;  %v102_v38 = vld [vmem:[#allocation5 + $0x68] sm:$0xff] }
 0x376   :  { %13202 = vmatprep.subr.bf16.mxu1 %v13201_v26  ;;  %v16477_v11 = vsub.f32 %v99_v27, %v16446_v9  ;;  %v16481_v54 = vand.u32 4294901760, %v101_v57  ;;  %v20221_v44 = vand.u32 4294901760, %v16425_v12  ;;  %v16489_v27 = vsub.f32 %v16231_v16, %v20222_v8 }
 0x377   :  { %v13213_v20 = vpack.c.bf16 %v5127_v28, %v5120_v6  ;;  %v19839_v31 = vand.u32 4294901760, %v16465_v15  ;;  %v5141_v16 = vand.u32 4294901760, %v5140_v23  ;;  %v16504_v22 = vand.u32 4294901760, %v102_v38 }
 0x378   :  { %11618 = vmatmul.mubr.f32.vlgmr.msra.gmra.mrb[16].mxu1 %v4927_v47  ;;  %v4986_v53 = vsub.f32 %v16425_v12, %v20221_v44  ;;  %v20224_v47 = vand.u32 4294901760, %v16434_v52  ;;  %v16501_v44 = vsub.f32 %v100_v34, %v16467_v1  ;;  %v5134_v12 = vand.u32 4294901760, %v5133_v21  ;;  %v104_v21 = vld [vmem:[#allocation5 + $0x78] sm:$0xff] }
 0x379   :  { %13204 = vmatpush3.bf16.msra.mxu1 %v13201_v26  ;;  %11620 = vmatprep.mubr.f32.mxu1 %v4937_v25  ;;  %v20223_v26 = vand.u32 4294901760, %v16236_v59  ;;  %v103_v25 = vld [vmem:[#allocation5 + $0x70] sm:$0xff]  ;;  %v20226_v6 = vand.u32 4294901760, %v16457_v30  ;;  %v16513_v34 = vsub.f32 %v101_v57, %v16481_v54  ;;  %v20229_v7 = vand.u32 4294901760, %v16477_v11 }
 0x37a   :  { %13206 = vmatprep.subr.bf16.mxu1 %v13205_v4  ;;  %v4996_v63 = vsub.f32 %v16434_v52, %v20224_v47  ;;  %v4987_v57 = vand.u32 4294901760, %v4986_v53  ;;  %v5006_v52 = vsub.f32 %v16465_v15, %v19839_v31  ;;  %v19840_v23 = vand.u32 4294901760, %v16501_v44 }
 0x37b   :  { %v16494_v0 = vsub.f32 %v16236_v59, %v20223_v26  ;;  %v20225_v59 = vand.u32 4294901760, %v16452_v45  ;;  %v5154_v47 = vsub.f32 %v16457_v30, %v20226_v6  ;;  %v16539_v24 = vand.u32 4294901760, %v104_v21 }
 0x37c   :  { %11621 = vmatmul.mubr.f32.gmra.mrb[18].mxu1 %v4947_v13  ;;  %v16515_v13 = vand.u32 4294901760, %v103_v25  ;;  %v4997_v8 = vand.u32 4294901760, %v4996_v63  ;;  %v19842_v63 = vand.u32 4294901760, %v16513_v34 }
 0x37d   :  { %13208 = vmatpush3.bf16.msra.mxu1 %v13205_v4  ;;  %11623 = vmatprep.mubr.f32.mxu1 %v4957_v18  ;;  %v5147_v28 = vsub.f32 %v16452_v45, %v20225_v59  ;;  %v20227_v18 = vand.u32 4294901760, %v16263_v58  ;;  %v20228_v59 = vand.u32 4294901760, %v16265_v37  ;;  %v13217_v4 = vpack.c.bf16 %v5141_v16, %v5134_v12 }
 0x37e   :  { %13210 = vmatprep.subr.bf16.mxu1 %v13209_v32  ;;  %v20230_v12 = vand.u32 4294901760, %v16489_v27 }
 0x37f   :  { %v16522_v26 = vsub.f32 %v16263_v58, %v20227_v18  ;;  %v16527_v6 = vsub.f32 %v16265_v37, %v20228_v59  ;;  %v5016_v58 = vsub.f32 %v16477_v11, %v20229_v7  ;;  %v16537_v18 = vsub.f32 %v102_v38, %v16504_v22 }
 0x380   :  { %11624 = vmatmul.mubr.f32.gmra.mrb[20].mxu1 %v4967_v29  ;;  %v5148_v53 = vand.u32 4294901760, %v5147_v28  ;;  %v5155_v37 = vand.u32 4294901760, %v5154_v47  ;;  %v16543_v59 = vsub.f32 %v103_v25, %v16515_v13  ;;  %v5161_v29 = vsub.f32 %v16489_v27, %v20230_v12 }
 0x381   :  { %13212 = vmatpush3.bf16.msra.mxu1 %v13209_v32  ;;  %11626 = vmatprep.mubr.f32.mxu1 %v4977_v10  ;;  %v20231_v7 = vand.u32 4294901760, %v16494_v0  ;;  %v19841_v16 = vand.u32 4294901760, %v16522_v26  ;;  %v5007_v32 = vand.u32 4294901760, %v5006_v52  ;;  %v5026_v25 = vsub.f32 %v16501_v44, %v19840_v23 }
 0x382   :  { %13214 = vmatprep.subr.bf16.mxu1 %v13213_v20  ;;  %v19845_v28 = vand.u32 4294901760, %v16537_v18  ;;  %v16558_v47 = vsub.f32 %v104_v21, %v16539_v24  ;;  %v5017_v12 = vand.u32 4294901760, %v5016_v58  ;;  %v13221_v31 = vpack.c.bf16 %v5155_v37, %v5148_v53 }
 0x383   :  { %v5168_v38 = vsub.f32 %v16494_v0, %v20231_v7  ;;  %v5036_v7 = vsub.f32 %v16513_v34, %v19842_v63  ;;  %v5162_v52 = vand.u32 4294901760, %v5161_v29  ;;  %v5175_v23 = vsub.f32 %v16522_v26, %v19841_v16 }
 0x384   :  { %11627 = vmatmul.mubr.f32.gmra.mrb[22].mxu1 %v4987_v57  ;;  %v19844_v57 = vand.u32 4294901760, %v16543_v59  ;;  %v20232_v21 = vand.u32 4294901760, %v16527_v6  ;;  %v5046_v58 = vsub.f32 %v16537_v18, %v19845_v28  ;;  %v19843_v53 = vand.u32 4294901760, %v16558_v47 }
 0x385   :  { %13216 = vmatpush3.bf16.msra.mxu1 %v13213_v20  ;;  %11629 = vmatprep.mubr.f32.mxu1 %v4997_v8  ;;  %v5169_v10 = vand.u32 4294901760, %v5168_v38  ;;  %v5027_v8 = vand.u32 4294901760, %v5026_v25  ;;  %v5037_v37 = vand.u32 4294901760, %v5036_v7  ;;  %v5176_v16 = vand.u32 4294901760, %v5175_v23 }
 0x386   :  { %13218 = vmatprep.subr.bf16.mxu1 %v13217_v4  ;;  %v5182_v20 = vsub.f32 %v16527_v6, %v20232_v21  ;;  %v5056_v29 = vsub.f32 %v16543_v59, %v19844_v57  ;;  %v5066_v25 = vsub.f32 %v16558_v47, %v19843_v53  ;;  %v13233_v23 = vpack.c.bf16 %v16244_v3, %v16233_v61 }
 0x387   :  { %v13225_v38 = vpack.c.bf16 %v5169_v10, %v5162_v52  ;;  %v13249_v10 = vpack.c.bf16 %v16407_v2, %v16402_v19  ;;  %v13253_v7 = vpack.c.bf16 %v16457_v30, %v16452_v45  ;;  %v13257_v52 = vpack.c.bf16 %v16494_v0, %v16489_v27 }
 0x388   :  { %11630 = vmatmul.mubr.f32.gmra.mrb[24].mxu1 %v5007_v32  ;;  %v5183_v63 = vand.u32 4294901760, %v5182_v20  ;;  %v5047_v32 = vand.u32 4294901760, %v5046_v58  ;;  %v5057_v21 = vand.u32 4294901760, %v5056_v29  ;;  %v13261_v20 = vpack.c.bf16 %v16527_v6, %v16522_v26  ;;  %v20234_v58 = vld [vmem:[#allocation16_spill] sm:$0xff]  ;;  %v20236_v29 = vld [vmem:[#allocation15_spill] sm:$0xff] }
 0x389   :  { %13220 = vmatpush3.bf16.msra.mxu1 %v13217_v4  ;;  %11632 = vmatprep.mubr.f32.mxu1 %v5017_v12  ;;  %v5067_v12 = vand.u32 4294901760, %v5066_v25  ;;  %v20239_v25 = vld [vmem:[#allocation20_spill] sm:$0xff]  ;;  %v20250_v53 = vand.u32 4294901760, %v16272_v62  ;;  %v20251_v28 = vand.u32 4294901760, %v16242_v46 }
 0x38a   :  { %13222 = vmatprep.subr.bf16.mxu1 %v13221_v31  ;;  %v13229_v4 = vpack.c.bf16 %v5183_v63, %v5176_v16  ;;  %v13241_v63 = vpack.c.bf16 %v16336_v36, %v16331_v55  ;;  %v13245_v16 = vpack.c.bf16 %v16364_v56, %v16353_v14 }
 0x38c   :  { %11633 = vmatmul.mubr.f32.gmra.mrb[26].mxu1 %v5027_v8  ;;  %v20233_v8 = vld [vmem:[#allocation18_spill] sm:$0xff] }
 0x38d   :  { %13224 = vmatpush3.bf16.msra.mxu1 %v13221_v31  ;;  %11635 = vmatprep.mubr.f32.mxu1 %v5037_v37  ;;  %v13237_v31 = vpack.c.bf16 %v16272_v62, %v16269_v48  ;;  %v20235_v37 = vld [vmem:[#allocation26_spill] sm:$0xff]  ;;  %v20258_v62 = vand.u32 4294901760, %v16364_v56  ;;  %v20265_v56 = vand.u32 4294901760, %v16452_v45  ;;  %v20273_v45 = vand.u32 4294901760, %v16522_v26 }
 0x38e   :  { %13226 = vmatprep.subr.bf16.mxu1 %v13225_v38 }
 0x390   :  { %11636 = vmatmul.mubr.f32.gmra.mrb[28].mxu1 %v5047_v32  ;;  %v20238_v32 = vld [vmem:[#allocation19_spill] sm:$0xff] }
 0x391   :  { %13228 = vmatpush3.bf16.msra.mxu1 %v13225_v38  ;;  %11638 = vmatprep.mubr.f32.mxu1 %v5057_v21  ;;  %v20237_v38 = vld [vmem:[#allocation29_spill] sm:$0xff]  ;;  %v20240_v21 = vld [vmem:[#allocation30_spill] sm:$0xff] }
 0x392   :  { %13230 = vmatprep.subr.bf16.mxu1 %v13229_v4 }
 0x394   :  { %11639 = vmatmul.mubr.f32.gmra.mrb[30].mxu1 %v5067_v12  ;;  %v20242_v12 = vld [vmem:[#allocation22_spill] sm:$0xff] }
 0x395   :  { %13232 = vmatpush3.bf16.msra.mxu1 %v13229_v4  ;;  %11673 = vmatprep.mubr.f32.mxu1 %v16212_v49  ;;  %v20241_v4 = vld [vmem:[#allocation31_spill] sm:$0xff] }
 0x396   :  { %13234 = vmatprep.subr.bf16.mxu1 %v13233_v23 }
 0x398   :  { %11674 = vmatmul.mubr.f32.vlgmr.msra.gmra.mrb[16].mxu1 %v16214_v35 }
 0x399   :  { %13236 = vmatpush3.bf16.msra.mxu1 %v13233_v23  ;;  %11676 = vmatprep.mubr.f32.mxu1 %v16248_v5  ;;  %v20243_v23 = vld [vmem:[#allocation23_spill] sm:$0xff] }
 0x39a   :  { %13238 = vmatprep.subr.bf16.mxu1 %v13237_v31 }
 0x39c   :  { %11677 = vmatmul.mubr.f32.gmra.mrb[18].mxu1 %v16250_v33 }
 0x39d   :  { %13240 = vmatpush3.bf16.msra.mxu1 %v13237_v31  ;;  %11679 = vmatprep.mubr.f32.mxu1 %v16295_v43  ;;  %v20244_v31 = vld [vmem:[#allocation25_spill] sm:$0xff] }
 0x39e   :  { %13242 = vmatprep.subr.bf16.mxu1 %v13241_v63 }
 0x3a0   :  { %11680 = vmatmul.mubr.f32.gmra.mrb[20].mxu1 %v16322_v42 }
 0x3a1   :  { %13244 = vmatpush3.bf16.msra.mxu1 %v13241_v63  ;;  %11682 = vmatprep.mubr.f32.mxu1 %v16348_v50  ;;  %v20245_v63 = vld [vmem:[#allocation17_spill] sm:$0xff] }
 0x3a2   :  { %13246 = vmatprep.subr.bf16.mxu1 %v13245_v16 }
 0x3a4   :  { %11683 = vmatmul.mubr.f32.gmra.mrb[22].mxu1 %v16391_v51 }
 0x3a5   :  { %13248 = vmatpush3.bf16.msra.mxu1 %v13245_v16  ;;  %11685 = vmatprep.mubr.f32.mxu1 %v16395_v60  ;;  %v20246_v16 = vand.u32 4294901760, %v16233_v61  ;;  %v20252_v61 = vand.u32 4294901760, %v16281_v40 }
 0x3a6   :  { %13250 = vmatprep.subr.bf16.mxu1 %v13249_v10 }
 0x3a8   :  { %11686 = vmatmul.mubr.f32.gmra.mrb[24].mxu1 %v16436_v17 }
 0x3a9   :  { %13252 = vmatpush3.bf16.msra.mxu1 %v13249_v10  ;;  %11688 = vmatprep.mubr.f32.mxu1 %v16446_v9  ;;  %v20247_v10 = vand.u32 4294901760, %v16244_v3  ;;  %v20253_v3 = vand.u32 4294901760, %v16331_v55  ;;  %v20260_v55 = vand.u32 4294901760, %v20238_v32 }
 0x3aa   :  { %13254 = vmatprep.subr.bf16.mxu1 %v13253_v7 }
 0x3ac   :  { %11689 = vmatmul.mubr.f32.gmra.mrb[26].mxu1 %v16467_v1 }
 0x3ad   :  { %13256 = vmatpush3.bf16.msra.mxu1 %v13253_v7  ;;  %11691 = vmatprep.mubr.f32.mxu1 %v16481_v54  ;;  %v13297_v7 = vpack.c.bf16 %v20247_v10, %v20246_v16  ;;  %v20254_v16 = vand.u32 4294901760, %v16336_v36  ;;  %v20255_v10 = vand.u32 4294901760, %v20234_v58  ;;  %v20261_v36 = vand.u32 4294901760, %v16402_v19 }
 0x3ae   :  { %13258 = vmatprep.subr.bf16.mxu1 %v13257_v52  ;;  %v20268_v19 = vand.u32 4294901760, %v16477_v11 }
 0x3b0   :  { %11692 = vmatmul.mubr.f32.gmra.mrb[28].mxu1 %v16504_v22 }
 0x3b1   :  { %13260 = vmatpush3.bf16.msra.mxu1 %v13257_v52  ;;  %11694 = vmatprep.mubr.f32.mxu1 %v16515_v13  ;;  %v20248_v52 = vand.u32 4294901760, %v16239_v41 }
 0x3b2   :  { %13262 = vmatprep.subr.bf16.mxu1 %v13261_v20 }
 0x3b4   :  { %11695 = vmatmul.mubr.f32.gmra.mrb[30].mxu1 %v16539_v24 }
 0x3b5   :  { %13264 = vmatpush3.bf16.msra.mxu1 %v13261_v20  ;;  %11729 = vmatprep.mubr.f32.mxu1 %v16239_v41  ;;  %v20249_v20 = vand.u32 4294901760, %v16269_v48  ;;  %v13305_v41 = vpack.c.bf16 %v20254_v16, %v20253_v3  ;;  %v20256_v48 = vand.u32 4294901760, %v20235_v37 }
 0x3b6   :  { %13266 = vmatprep.subr.bf16.mxu1 %v16175_v39 }
 0x3b7   :  { %v13301_v57 = vpack.c.bf16 %v20250_v53, %v20249_v20 }
 0x3b8   :  { %11730 = vmatmul.mubr.f32.vlgmr.msra.gmra.mrb[16].mxu1 %v16242_v46  ;;  %v20257_v46 = vand.u32 4294901760, %v16353_v14  ;;  %v20264_v14 = vand.u32 4294901760, %v20241_v4 }
 0x3b9   :  { %13268 = vmatpush3.bf16.msra.mxu1 %v16175_v39  ;;  %11732 = vmatprep.mubr.f32.mxu1 %v16281_v40 }
 0x3ba   :  { %13270 = vmatprep.subr.bf16.mxu1 %v20233_v8  ;;  %v13309_v40 = vpack.c.bf16 %v20258_v62, %v20257_v46 }
 0x3bc   :  { %11733 = vmatmul.mubr.f32.gmra.mrb[18].mxu1 %v20234_v58  ;;  %v20263_v58 = vand.u32 4294901760, %v20240_v21 }
 0x3bd   :  { %13272 = vmatpush3.bf16.msra.mxu1 %v20233_v8  ;;  %11735 = vmatprep.mubr.f32.mxu1 %v20235_v37  ;;  %v20266_v37 = vand.u32 4294901760, %v16457_v30  ;;  %v20272_v30 = vand.u32 4294901760, %v16513_v34 }
 0x3be   :  { %13274 = vmatprep.subr.bf16.mxu1 %v20236_v29 }
 0x3c0   :  { %11736 = vmatmul.mubr.f32.gmra.mrb[20].mxu1 %v20237_v38 }
 0x3c1   :  { %13276 = vmatpush3.bf16.msra.mxu1 %v20236_v29  ;;  %11738 = vmatprep.mubr.f32.mxu1 %v20238_v32  ;;  %v20267_v32 = vand.u32 4294901760, %v16465_v15 }
 0x3c2   :  { %13278 = vmatprep.subr.bf16.mxu1 %v20239_v25 }
 0x3c4   :  { %11739 = vmatmul.mubr.f32.gmra.mrb[22].mxu1 %v20240_v21  ;;  %v20270_v21 = vand.u32 4294901760, %v16494_v0  ;;  %v20277_v0 = vand.u32 4294901760, %v16558_v47 }
 0x3c5   :  { %13280 = vmatpush3.bf16.msra.mxu1 %v20239_v25  ;;  %11741 = vmatprep.mubr.f32.mxu1 %v20241_v4 }
 0x3c6   :  { %13282 = vmatprep.subr.bf16.mxu1 %v20242_v12 }
 0x3c8   :  { %11742 = vmatmul.mubr.f32.gmra.mrb[24].mxu1 %v16465_v15  ;;  %v20274_v15 = vand.u32 4294901760, %v16527_v6 }
 0x3c9   :  { %13284 = vmatpush3.bf16.msra.mxu1 %v20242_v12  ;;  %11744 = vmatprep.mubr.f32.mxu1 %v16477_v11 }
 0x3ca   :  { %13286 = vmatprep.subr.bf16.mxu1 %v20243_v23  ;;  %v13325_v11 = vpack.c.bf16 %v20274_v15, %v20273_v45  ;;  %v16882_v45 = vld [vmem:[#allocation7 + $0x148] sm:$0xff] }
 0x3cc   :  { %11745 = vmatmul.mubr.f32.gmra.mrb[26].mxu1 %v16501_v44 }
 0x3cd   :  { %13288 = vmatpush3.bf16.msra.mxu1 %v20243_v23  ;;  %11747 = vmatprep.mubr.f32.mxu1 %v16513_v34 }
 0x3ce   :  { %13290 = vmatprep.subr.bf16.mxu1 %v20244_v31 }
 0x3d0   :  { %11748 = vmatmul.mubr.f32.gmra.mrb[28].mxu1 %v16537_v18 }
 0x3d1   :  { %13292 = vmatpush3.bf16.msra.mxu1 %v20244_v31  ;;  %11750 = vmatprep.mubr.f32.mxu1 %v16543_v59 }
 0x3d2   :  { %13294 = vmatprep.subr.bf16.mxu1 %v20245_v63 }
 0x3d4   :  { %11751 = vmatmul.mubr.f32.gmra.mrb[30].mxu1 %v16558_v47 }
 0x3d5   :  { %13296 = vmatpush3.bf16.msra.mxu1 %v20245_v63  ;;  %11785 = vmatprep.mubr.f32.mxu1 %v20248_v52  ;;  %v20275_v52 = vand.u32 4294901760, %v16537_v18 }
 0x3d6   :  { %13298 = vmatprep.subr.bf16.mxu1 %v13297_v7 }
 0x3d8   :  { %11786 = vmatmul.mubr.f32.vlgmr.msra.gmra.mrb[16].mxu1 %v20251_v28  ;;  %v20259_v28 = vand.u32 4294901760, %v20237_v38  ;;  %v13317_v38 = vpack.c.bf16 %v20266_v37, %v20265_v56 }
 0x3d9   :  { %13300 = vmatpush3.bf16.msra.mxu1 %v13297_v7  ;;  %11788 = vmatprep.mubr.f32.mxu1 %v20252_v61  ;;  %v20271_v7 = vand.u32 4294901760, %v16501_v44 }
 0x3da   :  { %13302 = vmatprep.subr.bf16.mxu1 %v13301_v57 }
 0x3dc   :  { %11789 = vmatmul.mubr.f32.gmra.mrb[18].mxu1 %v20255_v10  ;;  %v16822_v10 = vld [vmem:[#allocation7 + $0x118] sm:$0xff] }
 0x3dd   :  { %13304 = vmatpush3.bf16.msra.mxu1 %v13301_v57  ;;  %11791 = vmatprep.mubr.f32.mxu1 %v20256_v48  ;;  %v20262_v57 = vand.u32 4294901760, %v16407_v2  ;;  %v20269_v2 = vand.u32 4294901760, %v16489_v27  ;;  %v20276_v27 = vand.u32 4294901760, %v16543_v59 }
 0x3de   :  { %13306 = vmatprep.subr.bf16.mxu1 %v13305_v41 }
 0x3df   :  { %v13313_v53 = vpack.c.bf16 %v20262_v57, %v20261_v36  ;;  %v13321_v4 = vpack.c.bf16 %v20270_v21, %v20269_v2  ;;  %v16840_v36 = vld [vmem:[#allocation7 + $0x120] sm:$0xff]  ;;  %v16842_v57 = vld [vmem:[#allocation7 + $0x128] sm:$0xff] }
 0x3e0   :  { %11792 = vmatmul.mubr.f32.gmra.mrb[20].mxu1 %v20259_v28 }
 0x3e1   :  { %13308 = vmatpush3.bf16.msra.mxu1 %v13305_v41  ;;  %11794 = vmatprep.mubr.f32.mxu1 %v20260_v55  ;;  %v16820_v41 = vld [vmem:[#allocation7 + $0x110] sm:$0xff] }
 0x3e2   :  { %13310 = vmatprep.subr.bf16.mxu1 %v13309_v40  ;;  %v3281_v62 = vand.u32 4294901760, %v16820_v41 }
 0x3e4   :  { %11795 = vmatmul.mubr.f32.gmra.mrb[22].mxu1 %v20263_v58  ;;  %v3287_v58 = vand.u32 4294901760, %v16840_v36 }
 0x3e5   :  { %13312 = vmatpush3.bf16.msra.mxu1 %v13309_v40  ;;  %11797 = vmatprep.mubr.f32.mxu1 %v20264_v14  ;;  %v3284_v40 = vand.u32 4294901760, %v16822_v10  ;;  %v3290_v14 = vand.u32 4294901760, %v16842_v57 }
 0x3e6   :  { %13314 = vmatprep.subr.bf16.mxu1 %v13313_v53 }
 0x3e7   :  { %v16838_v55 = vpack.c.bf16 %v3284_v40, %v3281_v62  ;;  %v16859_v37 = vpack.c.bf16 %v3290_v14, %v3287_v58 }
 0x3e8   :  { %11798 = vmatmul.mubr.f32.gmra.mrb[24].mxu1 %v20267_v32  ;;  %v16864_v32 = vld [vmem:[#allocation7 + $0x138] sm:$0xff] }
 0x3e9   :  { %13316 = vmatpush3.bf16.msra.mxu1 %v13313_v53  ;;  %11800 = vmatprep.mubr.f32.mxu1 %v20268_v19  ;;  %20278 = vst [vmem:[#allocation21_spill] sm:$0xff] %v16838_v55  ;;  %20279 = vst [vmem:[#allocation32_spill] sm:$0xff] %v16859_v37  ;;  %v3296_v21 = vand.u32 4294901760, %v16864_v32 }
 0x3ea   :  { %13318 = vmatprep.subr.bf16.mxu1 %v13317_v38 }
 0x3ec   :  { %11801 = vmatmul.mubr.f32.gmra.mrb[26].mxu1 %v20271_v7 }
 0x3ed   :  { %13320 = vmatpush3.bf16.msra.mxu1 %v13317_v38  ;;  %11803 = vmatprep.mubr.f32.mxu1 %v20272_v30  ;;  %v16862_v38 = vld [vmem:[#allocation7 + $0x130] sm:$0xff]  ;;  %v16880_v30 = vld [vmem:[#allocation7 + $0x140] sm:$0xff] }
 0x3ee   :  { %13322 = vmatprep.subr.bf16.mxu1 %v13321_v4  ;;  %v3293_v2 = vand.u32 4294901760, %v16862_v38 }
 0x3f0   :  { %11804 = vmatmul.mubr.f32.gmra.mrb[28].mxu1 %v20275_v52  ;;  %v16878_v7 = vpack.c.bf16 %v3296_v21, %v3293_v2  ;;  %v3302_v52 = vand.u32 4294901760, %v16882_v45 }
 0x3f1   :  { %13324 = vmatpush3.bf16.msra.mxu1 %v13321_v4  ;;  %11806 = vmatprep.mubr.f32.mxu1 %v20276_v27 }
 0x3f2   :  { %13326 = vmatprep.subr.bf16.mxu1 %v13325_v11  ;;  %20280 = vst [vmem:[#allocation33_spill] sm:$0xff] %v16878_v7 }
 0x3f4   :  { %11807 = vmatmul.mubr.f32.gmra.mrb[30].mxu1 %v20277_v0 }
 0x3f5   :  { %13328 = vmatpush3.bf16.msra.mxu1 %v13325_v11  ;;  %11841 = vmatprep.mubr.f32.mxu1 %v16212_v49  ;;  %v3299_v11 = vand.u32 4294901760, %v16880_v30 }
 0x3f6   :  { %13330 = vmatprep.subr.bf16.mxu1 %v16175_v39 }
 0x3f7   :  { %v16899_v0 = vpack.c.bf16 %v3302_v52, %v3299_v11 }
 0x3f8   :  { %11842 = vmatmul.mubr.f32.vlgmr.msra.gmra.mrb[16].mxu1 %v16214_v35 }
 0x3f9   :  { %13332 = vmatpush3.bf16.msra.mxu1 %v16175_v39  ;;  %11844 = vmatprep.mubr.f32.mxu1 %v16248_v5  ;;  %v16750_v39 = vld [vmem:[#allocation8 + $0x1] ss:$0 sm:$0xff]  ;;  %20281 = vst [vmem:[#allocation24_spill] sm:$0xff] %v16899_v0 }
 0x3fa   :  { %13334 = vmatprep.subr.bf16.mxu1 %v20233_v8 }
 0x3fc   :  { %11845 = vmatmul.mubr.f32.gmra.mrb[18].mxu1 %v16250_v33 }
 0x3fd   :  { %13336 = vmatpush3.bf16.msra.mxu1 %v20233_v8  ;;  %11847 = vmatprep.mubr.f32.mxu1 %v16295_v43 }
 0x3fe   :  { %13338 = vmatprep.subr.bf16.mxu1 %v20236_v29 }
 0x400   :  { %11848 = vmatmul.mubr.f32.gmra.mrb[20].mxu1 %v16322_v42 }
 0x401   :  { %13340 = vmatpush3.bf16.msra.mxu1 %v20236_v29  ;;  %11850 = vmatprep.mubr.f32.mxu1 %v16348_v50 }
 0x402   :  { %13342 = vmatprep.subr.bf16.mxu1 %v20239_v25 }
 0x404   :  { %11851 = vmatmul.mubr.f32.gmra.mrb[22].mxu1 %v16391_v51 }
 0x405   :  { %13344 = vmatpush3.bf16.msra.mxu1 %v20239_v25  ;;  %11853 = vmatprep.mubr.f32.mxu1 %v16395_v60  ;;  %v16796_v25 = vld [vmem:[#allocation7 + $0x100] sm:$0xff] }
 0x406   :  { %13346 = vmatprep.subr.bf16.mxu1 %v20242_v12 }
 0x408   :  { %11854 = vmatmul.mubr.f32.gmra.mrb[24].mxu1 %v16436_v17 }
 0x409   :  { %13348 = vmatpush3.bf16.msra.mxu1 %v20242_v12  ;;  %11856 = vmatprep.mubr.f32.mxu1 %v16446_v9  ;;  %v16798_v12 = vld [vmem:[#allocation7 + $0x108] sm:$0xff] }
 0x40a   :  { %13350 = vmatprep.subr.bf16.mxu1 %v20243_v23  ;;  %v3278_v20 = vand.u32 4294901760, %v16798_v12 }
 0x40c   :  { %11857 = vmatmul.mubr.f32.gmra.mrb[26].mxu1 %v16467_v1 }
 0x40d   :  { %13352 = vmatpush3.bf16.msra.mxu1 %v20243_v23  ;;  %11859 = vmatprep.mubr.f32.mxu1 %v16481_v54 }
 0x40e   :  { %13354 = vmatprep.subr.bf16.mxu1 %v20244_v31 }
 0x410   :  { %11860 = vmatmul.mubr.f32.gmra.mrb[28].mxu1 %v16504_v22 }
 0x411   :  { %13356 = vmatpush3.bf16.msra.mxu1 %v20244_v31  ;;  %11862 = vmatprep.mubr.f32.mxu1 %v16515_v13 }
 0x412   :  { %13358 = vmatprep.subr.bf16.mxu1 %v20245_v63 }
 0x414   :  { %11863 = vmatmul.mubr.f32.gmra.mrb[30].mxu1 %v16539_v24 }
 0x415   :  { %13360 = vmatpush3.bf16.msra.mxu1 %v20245_v63  ;;  %11897 = vmatprep.mubr.f32.mxu1 %v16212_v49  ;;  %v3275_v63 = vand.u32 4294901760, %v16796_v25 }
 0x417   :  { %v16815_v3 = vpack.c.bf16 %v3278_v20, %v3275_v63 }
 0x418   :  { %11898 = vmatmul.mubr.f32.vlgmr.msra.gmra.mrb[16].mxu1 %v16214_v35 }
 0x419   :  { %11900 = vmatprep.mubr.f32.mxu1 %v16248_v5  ;;  %12978 = vmatprep.subr.bf16.mxu0 %v16815_v3 }
 0x41a   :  { %12980 = vmatpush3.bf16.msra.mxu0 %v16815_v3 }
 0x41b   :  { %12982 = vmatprep.subr.bf16.mxu0 %v16838_v55 }
 0x41c   :  { %11901 = vmatmul.mubr.f32.gmra.mrb[18].mxu1 %v16250_v33 }
 0x41d   :  { %11903 = vmatprep.mubr.f32.mxu1 %v16295_v43 }
 0x41e   :  { %12984 = vmatpush3.bf16.msra.mxu0 %v16838_v55 }
 0x41f   :  { %12986 = vmatprep.subr.bf16.mxu0 %v16859_v37 }
 0x420   :  { %11904 = vmatmul.mubr.f32.gmra.mrb[20].mxu1 %v16322_v42 }
 0x421   :  { %11906 = vmatprep.mubr.f32.mxu1 %v16348_v50 }
 0x422   :  { %12988 = vmatpush3.bf16.msra.mxu0 %v16859_v37 }
 0x423   :  { %12990 = vmatprep.subr.bf16.mxu0 %v16878_v7 }
 0x424   :  { %11907 = vmatmul.mubr.f32.gmra.mrb[22].mxu1 %v16391_v51 }
 0x425   :  { %11909 = vmatprep.mubr.f32.mxu1 %v16395_v60 }
 0x426   :  { %12992 = vmatpush3.bf16.msra.mxu0 %v16878_v7 }
 0x427   :  { %12994 = vmatprep.subr.bf16.mxu0 %v16899_v0 }
 0x428   :  { %11910 = vmatmul.mubr.f32.gmra.mrb[24].mxu1 %v16436_v17 }
 0x429   :  { %11912 = vmatprep.mubr.f32.mxu1 %v16446_v9 }
 0x42a   :  { %12996 = vmatpush3.bf16.msra.mxu0 %v16899_v0 }
 0x42b   :  { %v11227_v49 = vpop.f32.mrb[0].mxu1 }
 0x42c   :  { %v16754_v35 = vadd.f32 %v11227_v49, %v16750_v39  ;;  %v2892_v5 = vpop.f32.mrb[1].mxu1  ;;  %11913 = vmatmul.mubr.f32.gmra.mrb[26].mxu1 %v16467_v1  ;;  %v16902_v49 = vld [vmem:[#allocation7 + $0x150] sm:$0xff] }
 0x42d   :  { %v16758_v33 = vadd.f32 %v16750_v39, %v2892_v5  ;;  %11915 = vmatprep.mubr.f32.mxu1 %v16481_v54  ;;  %v16904_v5 = vld [vmem:[#allocation7 + $0x158] sm:$0xff] }
 0x42e   :  { %2988 = vadd.xlane.f32.xlu1 %v16754_v35  ;;  %v3019_v42 = vmul.f32 %v16754_v35, %v16754_v35 }
 0x42f   :  { %v11230_v60 = vpop.f32.mrb[2].mxu1  ;;  %2986 = vadd.xlane.f32.xlu0 %v16758_v33  ;;  %v3018_v43 = vmul.f32 %v16758_v33, %v16758_v33 }
 0x430   :  { %v2904_v50 = vpop.f32.mrb[3].mxu1  ;;  %11916 = vmatmul.mubr.f32.gmra.mrb[28].mxu1 %v16504_v22  ;;  %v16770_v51 = vadd.f32 %v11230_v60, %v16750_v39 }
 0x431   :  { %11918 = vmatprep.mubr.f32.mxu1 %v16515_v13  ;;  %v16774_v54 = vadd.f32 %v16750_v39, %v2904_v50  ;;  %v3305_v50 = vand.u32 4294901760, %v16902_v49 }
 0x432   :  { %3036 = vadd.xlane.f32.xlu1 %v3019_v42  ;;  %v3021_v44 = vmul.f32 %v16770_v51, %v16770_v51  ;;  %v3308_v42 = vand.u32 4294901760, %v16904_v5 }
 0x433   :  { %v11233_v17 = vpop.f32.mrb[4].mxu1  ;;  %3034 = vadd.xlane.f32.xlu0 %v3018_v43  ;;  %v3020_v34 = vmul.f32 %v16774_v54, %v16774_v54 }
 0x434   :  { %v2916_v9 = vpop.f32.mrb[5].mxu1  ;;  %11919 = vmatmul.mubr.f32.gmra.mrb[30].mxu1 %v16539_v24  ;;  %v16783_v24 = vadd.f32 %v11233_v17, %v16750_v39  ;;  %v16918_v17 = vpack.c.bf16 %v3308_v42, %v3305_v50 }
 0x435   :  { %v16786_v6 = vadd.f32 %v16750_v39, %v2916_v9  ;;  %v16920_v9 = vld [vmem:[#allocation7 + $0x160] sm:$0xff] }
 0x436   :  { %2992 = vadd.xlane.f32.xlu1 %v16770_v51  ;;  %v3023_v47 = vmul.f32 %v16783_v24, %v16783_v24  ;;  %20282 = vst [vmem:[#allocation27_spill] sm:$0xff] %v16918_v17  ;;  %12998 = vmatprep.subr.bf16.mxu0 %v16918_v17 }
 0x437   :  { %v11236_v22 = vpop.f32.mrb[6].mxu1  ;;  %2990 = vadd.xlane.f32.xlu0 %v16774_v54  ;;  %v3022_v8 = vmul.f32 %v16786_v6, %v16786_v6  ;;  %13000 = vmatpush3.bf16.msra.mxu0 %v16918_v17 }
 0x438   :  { %v2928_v1 = vpop.f32.mrb[7].mxu1  ;;  %v16801_v23 = vadd.f32 %v11236_v22, %v16750_v39  ;;  %v16922_v22 = vld [vmem:[#allocation7 + $0x168] sm:$0xff] }
 0x439   :  { %v16808_v61 = vadd.f32 %v16750_v39, %v2928_v1 }
 0x43a   :  { %3040 = vadd.xlane.f32.xlu1 %v3021_v44  ;;  %v3025_v46 = vmul.f32 %v16801_v23, %v16801_v23  ;;  %v3311_v44 = vand.u32 4294901760, %v16920_v9 }
 0x43b   :  { %v11239_v13 = vpop.f32.mrb[8].mxu1  ;;  %3038 = vadd.xlane.f32.xlu0 %v3020_v34  ;;  %v3024_v28 = vmul.f32 %v16808_v61, %v16808_v61  ;;  %v3314_v34 = vand.u32 4294901760, %v16922_v22 }
 0x43c   :  { %v2940_v26 = vpop.f32.mrb[9].mxu1  ;;  %v16845_v53 = vadd.f32 %v11239_v13, %v16750_v39 }
 0x43d   :  { %v16851_v56 = vadd.f32 %v16750_v39, %v2940_v26  ;;  %v16941_v26 = vpack.c.bf16 %v3314_v34, %v3311_v44 }
 0x43e   :  { %2996 = vadd.xlane.f32.xlu1 %v16783_v24  ;;  %v3027_v19 = vmul.f32 %v16845_v53, %v16845_v53 }
 0x43f   :  { %v11242_v18 = vpop.f32.mrb[10].mxu1  ;;  %2994 = vadd.xlane.f32.xlu0 %v16786_v6  ;;  %v3026_v4 = vmul.f32 %v16851_v56, %v16851_v56  ;;  %20283 = vst [vmem:[#allocation28_spill] sm:$0xff] %v16941_v26  ;;  %13002 = vmatprep.subr.bf16.mxu0 %v16941_v26 }
 0x440   :  { %v2952_v59 = vpop.f32.mrb[11].mxu1  ;;  %v16885_v15 = vadd.f32 %v11242_v18, %v16750_v39  ;;  %v16944_v18 = vld [vmem:[#allocation7 + $0x170] sm:$0xff]  ;;  %13004 = vmatpush3.bf16.msra.mxu0 %v16941_v26 }
 0x441   :  { %v16891_v27 = vadd.f32 %v16750_v39, %v2952_v59  ;;  %v16946_v59 = vld [vmem:[#allocation7 + $0x178] sm:$0xff] }
 0x442   :  { %3044 = vadd.xlane.f32.xlu1 %v3023_v47  ;;  %v3029_v60 = vmul.f32 %v16885_v15, %v16885_v15 }
 0x443   :  { %v16794_v29 = vpop.f32.mrb[12].mxu1  ;;  %3042 = vadd.xlane.f32.xlu0 %v3022_v8  ;;  %v3028_v43 = vmul.f32 %v16891_v27, %v16891_v27  ;;  %v3317_v8 = vand.u32 4294901760, %v16944_v18 }
 0x444   :  { %v16803_v31 = vpop.f32.mrb[13].mxu1  ;;  %v16926_v1 = vadd.f32 %v16794_v29, %v16750_v39  ;;  %v3320_v29 = vand.u32 4294901760, %v16946_v59 }
 0x445   :  { %v16933_v13 = vadd.f32 %v16750_v39, %v16803_v31 }
 0x446   :  { %3000 = vadd.xlane.f32.xlu1 %v16801_v23  ;;  %v3031_v47 = vmul.f32 %v16926_v1, %v16926_v1 }
 0x447   :  { %v16817_v16 = vpop.f32.mrb[14].mxu1  ;;  %2998 = vadd.xlane.f32.xlu0 %v16808_v61  ;;  %v3030_v31 = vmul.f32 %v16933_v13, %v16933_v13 }
 0x448   :  { %v16824_v48 = vpop.f32.mrb[15].mxu1 }
 0x44a   :  { %3048 = vadd.xlane.f32.xlu1 %v3025_v46  ;;  %v16960_v46 = vpack.c.bf16 %v3320_v29, %v3317_v8 }
 0x44b   :  { %3046 = vadd.xlane.f32.xlu0 %v3024_v28  ;;  %v16964_v28 = vadd.f32 %v16817_v16, %v16750_v39  ;;  %v16981_v16 = vsub.f32 %v16796_v25, %v3275_v63  ;;  %v16999_v63 = vsub.f32 %v16820_v41, %v3281_v62  ;;  %v17025_v62 = vsub.f32 %v16842_v57, %v3290_v14 }
 0x44c   :  { %20284 = vst [vmem:[#allocation34_spill] sm:$0xff] %v16960_v46  ;;  %13006 = vmatprep.subr.bf16.mxu0 %v16960_v46  ;;  %v17040_v57 = vsub.f32 %v16862_v38, %v3293_v2  ;;  %v17057_v38 = vsub.f32 %v16880_v30, %v3299_v11 }
 0x44d   :  { %13008 = vmatpush3.bf16.msra.mxu0 %v16960_v46  ;;  %20285 = vst [vmem:[#allocation35_spill] sm:$0xff] %v16981_v16  ;;  %20287 = vst [vmem:[#allocation37_spill] sm:$0xff] %v16999_v63 }
 0x44e   :  { %3004 = vadd.xlane.f32.xlu1 %v16845_v53  ;;  %20290 = vst [vmem:[#allocation26_spill] sm:$0xff] %v17025_v62  ;;  %20291 = vst [vmem:[#allocation15_spill] sm:$0xff] %v17040_v57 }
 0x44f   :  { %3002 = vadd.xlane.f32.xlu0 %v16851_v56  ;;  %20293 = vst [vmem:[#allocation19_spill] sm:$0xff] %v17057_v38 }
 0x452   :  { %3052 = vadd.xlane.f32.xlu1 %v3027_v19  ;;  %v16969_v19 = vadd.f32 %v16750_v39, %v16824_v48  ;;  %v16986_v39 = vsub.f32 %v16798_v12, %v3278_v20  ;;  %v19846_v48 = vand.u32 4294901760, %v16981_v16  ;;  %v17004_v12 = vsub.f32 %v16822_v10, %v3284_v40 }
 0x453   :  { %3050 = vadd.xlane.f32.xlu0 %v3026_v4  ;;  %v3033_v4 = vmul.f32 %v16964_v28, %v16964_v28  ;;  %v17020_v10 = vsub.f32 %v16840_v36, %v3287_v58  ;;  %v17045_v58 = vsub.f32 %v16864_v32, %v3296_v21  ;;  %v17062_v32 = vsub.f32 %v16882_v45, %v3302_v52 }
 0x454   :  { %20286 = vst [vmem:[#allocation36_spill] sm:$0xff] %v16986_v39  ;;  %20288 = vst [vmem:[#allocation18_spill] sm:$0xff] %v17004_v12  ;;  %v17078_v45 = vsub.f32 %v16902_v49, %v3305_v50  ;;  %v17083_v52 = vsub.f32 %v16904_v5, %v3308_v42  ;;  %v17097_v49 = vsub.f32 %v16922_v22, %v3314_v34 }
 0x455   :  { %20289 = vst [vmem:[#allocation16_spill] sm:$0xff] %v17020_v10  ;;  %20292 = vst [vmem:[#allocation29_spill] sm:$0xff] %v17045_v58 }
 0x456   :  { %3008 = vadd.xlane.f32.xlu1 %v16885_v15  ;;  %20294 = vst [vmem:[#allocation20_spill] sm:$0xff] %v17062_v32  ;;  %20295 = vst [vmem:[#allocation30_spill] sm:$0xff] %v17078_v45 }
 0x457   :  { %3006 = vadd.xlane.f32.xlu0 %v16891_v27  ;;  %20296 = vst [vmem:[#allocation31_spill] sm:$0xff] %v17083_v52  ;;  %20298 = vst [vmem:[#allocation23_spill] sm:$0xff] %v17097_v49 }
 0x45a   :  { %3056 = vadd.xlane.f32.xlu1 %v3029_v60  ;;  %v3032_v60 = vmul.f32 %v16969_v19, %v16969_v19 }
 0x45b   :  { %3054 = vadd.xlane.f32.xlu0 %v3028_v43  ;;  %v19861_v43 = vand.u32 4294901760, %v16986_v39 }
 0x45e   :  { %3012 = vadd.xlane.f32.xlu1 %v16926_v1 }
 0x45f   :  { %3010 = vadd.xlane.f32.xlu0 %v16933_v13 }
 0x462   :  { %3060 = vadd.xlane.f32.xlu1 %v3031_v47  ;;  %v3519_v47 = vsub.f32 %v16981_v16, %v19846_v48  ;;  %v19848_v48 = vand.u32 4294901760, %v17004_v12 }
 0x463   :  { %3058 = vadd.xlane.f32.xlu0 %v3030_v31  ;;  %v3526_v31 = vsub.f32 %v16986_v39, %v19861_v43 }
 0x464   :  { %v3540_v41 = vsub.f32 %v17004_v12, %v19848_v48 }
 0x465   :  { %v3527_v25 = vand.u32 4294901760, %v3526_v31 }
 0x466   :  { %3016 = vadd.xlane.f32.xlu1 %v16964_v28  ;;  %v3541_v31 = vand.u32 4294901760, %v3540_v41  ;;  %v19859_v41 = vand.u32 4294901760, %v17040_v57 }
 0x467   :  { %3014 = vadd.xlane.f32.xlu0 %v16969_v19 }
 0x46a   :  { %3064 = vadd.xlane.f32.xlu1 %v3033_v4  ;;  %v3520_v4 = vand.u32 4294901760, %v3519_v47 }
 0x46b   :  { %3062 = vadd.xlane.f32.xlu0 %v3032_v60  ;;  %v19847_v60 = vand.u32 4294901760, %v16999_v63 }
 0x46c   :  { %v17006_v20 = vpack.c.bf16 %v3527_v25, %v3520_v4  ;;  %v19860_v4 = vand.u32 4294901760, %v17020_v10  ;;  %v19849_v25 = vand.u32 4294901760, %v17025_v62 }
 0x46d   :  { %v3533_v47 = vsub.f32 %v16999_v63, %v19847_v60 }
 0x46e   :  { %13010 = vmatprep.subr.bf16.mxu0 %v17006_v20  ;;  %v3547_v48 = vsub.f32 %v17020_v10, %v19860_v4  ;;  %v3554_v36 = vsub.f32 %v17025_v62, %v19849_v25  ;;  %v3561_v25 = vsub.f32 %v17040_v57, %v19859_v41 }
 0x46f   :  { %v3534_v40 = vand.u32 4294901760, %v3533_v47 }
 0x470   :  { %v3548_v14 = vand.u32 4294901760, %v3547_v48  ;;  %v3555_v47 = vand.u32 4294901760, %v3554_v36  ;;  %v3562_v21 = vand.u32 4294901760, %v3561_v25  ;;  %v19850_v48 = vand.u32 4294901760, %v17057_v38 }
 0x471   :  { %v17029_v60 = vpack.c.bf16 %v3541_v31, %v3534_v40  ;;  %v19851_v40 = vand.u32 4294901760, %v17045_v58  ;;  %v19852_v36 = vand.u32 4294901760, %v17062_v32 }
 0x472   :  { %v17049_v31 = vpack.c.bf16 %v3555_v47, %v3548_v14  ;;  %v3575_v30 = vsub.f32 %v17057_v38, %v19850_v48  ;;  %v19858_v48 = vand.u32 4294901760, %v17078_v45 }
 0x473   :  { %v3568_v2 = vsub.f32 %v17045_v58, %v19851_v40  ;;  %v3582_v11 = vsub.f32 %v17062_v32, %v19852_v36  ;;  %v19854_v40 = vand.u32 4294901760, %v17083_v52  ;;  %v17092_v36 = vsub.f32 %v16920_v9, %v3311_v44 }
 0x474   :  { %v3576_v47 = vand.u32 4294901760, %v3575_v30  ;;  %v3589_v50 = vsub.f32 %v17078_v45, %v19858_v48  ;;  %v19857_v9 = vand.u32 4294901760, %v17097_v49 }
 0x475   :  { %v3569_v14 = vand.u32 4294901760, %v3568_v2  ;;  %v3583_v2 = vand.u32 4294901760, %v3582_v11  ;;  %20297 = vst [vmem:[#allocation22_spill] sm:$0xff] %v17092_v36  ;;  %v3596_v42 = vsub.f32 %v17083_v52, %v19854_v40  ;;  %v17120_v11 = vsub.f32 %v16944_v18, %v3317_v8 }
 0x476   :  { %v3590_v44 = vand.u32 4294901760, %v3589_v50  ;;  %v3610_v34 = vsub.f32 %v17097_v49, %v19857_v9 }
 0x477   :  { %v17085_v25 = vpack.c.bf16 %v3569_v14, %v3562_v21  ;;  %v17099_v5 = vpack.c.bf16 %v3583_v2, %v3576_v47  ;;  %v19853_v21 = vand.u32 4294901760, %v17092_v36  ;;  %v3597_v14 = vand.u32 4294901760, %v3596_v42  ;;  %20299 = vst [vmem:[#allocation25_spill] sm:$0xff] %v17120_v11 }
 0x478   :  { %v17125_v47 = vsub.f32 %v16946_v59, %v3320_v29  ;;  %v3611_v50 = vand.u32 4294901760, %v3610_v34  ;;  %v19856_v42 = vand.u32 4294901760, %v17120_v11  ;;  %v17139_v59 = vpack.c.bf16 %v16986_v39, %v16981_v16 }
 0x479   :  { %v3603_v22 = vsub.f32 %v17092_v36, %v19853_v21  ;;  %v17115_v30 = vpack.c.bf16 %v3597_v14, %v3590_v44  ;;  %v17149_v34 = vpack.c.bf16 %v17025_v62, %v17020_v10 }
 0x47a   :  { %20300 = vst [vmem:[#allocation17_spill] sm:$0xff] %v17125_v47  ;;  %v19855_v21 = vand.u32 4294901760, %v17125_v47  ;;  %v3617_v44 = vsub.f32 %v17120_v11, %v19856_v42  ;;  %v17169_v9 = vpack.c.bf16 %v17125_v47, %v17120_v11 }
 0x47b   :  { %v3604_v2 = vand.u32 4294901760, %v3603_v22  ;;  %v17145_v22 = vpack.c.bf16 %v17004_v12, %v16999_v63  ;;  %v17185_v63 = vld [vmem:[#allocation8 + $0x8] ss:$0 sm:$0xff] }
 0x47c   :  { %v3624_v18 = vsub.f32 %v17125_v47, %v19855_v21  ;;  %v3618_v8 = vand.u32 4294901760, %v3617_v44  ;;  %v17161_v44 = vpack.c.bf16 %v17083_v52, %v17078_v45 }
 0x47d   :  { %v17129_v40 = vpack.c.bf16 %v3611_v50, %v3604_v2  ;;  %v17153_v2 = vpack.c.bf16 %v17045_v58, %v17040_v57  ;;  %v17157_v50 = vpack.c.bf16 %v17062_v32, %v17057_v38 }
 0x47e   :  { %v3625_v29 = vand.u32 4294901760, %v3624_v18  ;;  %v17165_v18 = vpack.c.bf16 %v17097_v49, %v17092_v36 }
 0x480   :  { %v17141_v14 = vpack.c.bf16 %v3625_v29, %v3618_v8 }
 0x4bb   :  { %v2989_v8 = vpop.xlane.xlu1 %2988 }
 0x4bc   :  { %v3067_v29 = vmul.f32 0.015625, %v2989_v8  ;;  %v2987_v21 = vpop.xlane.xlu0 %2986 }
 0x4bd   :  { %v3066_v42 = vmul.f32 0.015625, %v2987_v21 }
 0x4be   :  { %v3099_v41 = vmul.f32 %v3067_v29, %v3067_v29 }
 0x4bf   :  { %v3037_v48 = vpop.xlane.xlu1 %3036  ;;  %v3098_v32 = vmul.f32 %v3066_v42, %v3066_v42  ;;  %v3130_v12 = vsub.f32 %v16758_v33, %v3066_v42 }
 0x4c0   :  { %v3083_v4 = vmul.f32 0.015625, %v3037_v48  ;;  %v3035_v43 = vpop.xlane.xlu0 %3034 }
 0x4c1   :  { %v3082_v38 = vmul.f32 0.015625, %v3035_v43 }
 0x4c2   :  { %v3115_v52 = vsub.f32 %v3083_v4, %v3099_v41 }
 0x4c3   :  { %v3114_v45 = vsub.f32 %v3082_v38, %v3098_v32  ;;  %v2993_v58 = vpop.xlane.xlu1 %2992 }
 0x4c4   :  { %v3147_v57 = vadd.f32 1e-05, %v3115_v52  ;;  %v17171_v49 = vmul.f32 0.015625, %v2993_v58  ;;  %v2991_v36 = vpop.xlane.xlu0 %2990 }
 0x4c5   :  { %v3146_v8 = vadd.f32 1e-05, %v3114_v45  ;;  %v17173_v62 = vmul.f32 0.015625, %v2991_v36 }
 0x4c6   :  { %14360 = vrsqrt.f32 %v3147_v57  ;;  %v3101_v47 = vmul.f32 %v17171_v49, %v17171_v49 }
 0x4c7   :  { %14362 = vrsqrt.f32 %v3146_v8  ;;  %v3041_v21 = vpop.xlane.xlu1 %3040  ;;  %v3100_v43 = vmul.f32 %v17173_v62, %v17173_v62  ;;  %v3131_v8 = vsub.f32 %v16754_v35, %v3067_v29  ;;  %v17191_v29 = vld [vmem:[#allocation8 + $0x9] ss:$0 sm:$0xff] }
 0x4c8   :  { %v3085_v48 = vmul.f32 0.015625, %v3041_v21  ;;  %v3039_v11 = vpop.xlane.xlu0 %3038 }
 0x4c9   :  { %v3084_v4 = vmul.f32 0.015625, %v3039_v11 }
 0x4ca   :  { %v3117_v41 = vsub.f32 %v3085_v48, %v3101_v47 }
 0x4cb   :  { %v3116_v38 = vsub.f32 %v3084_v4, %v3100_v43  ;;  %v2997_v58 = vpop.xlane.xlu1 %2996 }
 0x4cc   :  { %v3149_v32 = vadd.f32 1e-05, %v3117_v41  ;;  %v17179_v52 = vmul.f32 0.015625, %v2997_v58  ;;  %v2995_v36 = vpop.xlane.xlu0 %2994 }
 0x4cd   :  { %v3148_v45 = vadd.f32 1e-05, %v3116_v38  ;;  %v17181_v57 = vmul.f32 0.015625, %v2995_v36 }
 0x4ce   :  { %14364 = vrsqrt.f32 %v3149_v32  ;;  %v3103_v11 = vmul.f32 %v17179_v52, %v17179_v52 }
 0x4cf   :  { %14366 = vrsqrt.f32 %v3148_v45  ;;  %v3045_v21 = vpop.xlane.xlu1 %3044  ;;  %v3102_v41 = vmul.f32 %v17181_v57, %v17181_v57 }
 0x4d0   :  { %v14361_v10 = vpop.eup %14360  ;;  %v3087_v47 = vmul.f32 0.015625, %v3045_v21  ;;  %v3043_v48 = vpop.xlane.xlu0 %3042 }
 0x4d1   :  { %v14363_v43 = vpop.eup %14362  ;;  %v3179_v4 = vmul.f32 %v14361_v10, %v3131_v8  ;;  %v3086_v38 = vmul.f32 0.015625, %v3043_v48 }
 0x4d2   :  { %v3119_v58 = vsub.f32 %v3087_v47, %v3103_v11  ;;  %v3178_v35 = vmul.f32 %v14363_v43, %v3130_v12  ;;  %v3133_v11 = vsub.f32 %v16770_v51, %v17171_v49 }
 0x4d3   :  { %v3200_v32 = vmul.f32 %v17185_v63, %v3179_v4  ;;  %v3118_v33 = vsub.f32 %v3086_v38, %v3102_v41  ;;  %v3001_v42 = vpop.xlane.xlu1 %3000  ;;  %v3132_v4 = vsub.f32 %v16774_v54, %v17173_v62 }
 0x4d4   :  { %v3151_v36 = vadd.f32 1e-05, %v3119_v58  ;;  %v17194_v45 = vmul.f32 0.015625, %v3001_v42  ;;  %v2999_v39 = vpop.xlane.xlu0 %2998  ;;  %v3199_v21 = vmul.f32 %v17185_v63, %v3178_v35 }
 0x4d5   :  { %v3150_v16 = vadd.f32 1e-05, %v3118_v33  ;;  %v17197_v10 = vmul.f32 0.015625, %v2999_v39  ;;  %v3221_v8 = vadd.f32 %v17191_v29, %v3200_v32 }
 0x4d6   :  { %14368 = vrsqrt.f32 %v3151_v36  ;;  %v3220_v12 = vadd.f32 %v17191_v29, %v3199_v21  ;;  %v3105_v41 = vmul.f32 %v17194_v45, %v17194_v45 }
 0x4d7   :  { %14370 = vrsqrt.f32 %v3150_v16  ;;  %v3049_v47 = vpop.xlane.xlu1 %3048  ;;  %v3237_v48 = vmax.f32 %v3221_v8, 0.0  ;;  %v3104_v32 = vmul.f32 %v17197_v10, %v17197_v10 }
 0x4d8   :  { %v14365_v43 = vpop.eup %14364  ;;  %v3089_v39 = vmul.f32 0.015625, %v3049_v47  ;;  %v3047_v38 = vpop.xlane.xlu0 %3046  ;;  %v3236_v58 = vmax.f32 %v3220_v12, 0.0 }
 0x4d9   :  { %v14367_v35 = vpop.eup %14366  ;;  %v3088_v33 = vmul.f32 0.015625, %v3047_v38  ;;  %v17209_v42 = vand.u32 4294901760, %v3237_v48  ;;  %v3181_v51 = vmul.f32 %v14365_v43, %v3133_v11 }
 0x4da   :  { %v3121_v16 = vsub.f32 %v3089_v39, %v3105_v41  ;;  %v17211_v49 = vand.u32 4294901760, %v3236_v58  ;;  %v3180_v36 = vmul.f32 %v14367_v35, %v3132_v4  ;;  %v3135_v35 = vsub.f32 %v16783_v24, %v17179_v52 }
 0x4db   :  { %v3120_v21 = vsub.f32 %v3088_v33, %v3104_v32  ;;  %v3005_v54 = vpop.xlane.xlu1 %3004  ;;  %v17214_v62 = vsub.f32 %v3237_v48, %v17209_v42  ;;  %v3202_v8 = vmul.f32 %v17185_v63, %v3181_v51  ;;  %v3134_v32 = vsub.f32 %v16786_v6, %v17181_v57 }
 0x4dc   :  { %v3153_v12 = vadd.f32 1e-05, %v3121_v16  ;;  %v17217_v47 = vmul.f32 0.015625, %v3005_v54  ;;  %v3003_v46 = vpop.xlane.xlu0 %3002  ;;  %v17220_v38 = vsub.f32 %v3236_v58, %v17211_v49  ;;  %v3201_v11 = vmul.f32 %v17185_v63, %v3180_v36 }
 0x4dd   :  { %v3152_v43 = vadd.f32 1e-05, %v3120_v21  ;;  %v17223_v41 = vmul.f32 0.015625, %v3003_v46  ;;  %v19880_v4 = vand.u32 4294901760, %v17214_v62  ;;  %v3223_v39 = vadd.f32 %v17191_v29, %v3202_v8 }
 0x4de   :  { %14372 = vrsqrt.f32 %v3153_v12  ;;  %v19885_v48 = vand.u32 4294901760, %v17220_v38  ;;  %v3222_v21 = vadd.f32 %v17191_v29, %v3201_v11  ;;  %v3107_v6 = vmul.f32 %v17217_v47, %v17217_v47 }
 0x4df   :  { %14374 = vrsqrt.f32 %v3152_v43  ;;  %v3053_v58 = vpop.xlane.xlu1 %3052  ;;  %v3368_v46 = vsub.f32 %v17214_v62, %v19880_v4  ;;  %v3239_v54 = vmax.f32 %v3223_v39, 0.0  ;;  %v3106_v52 = vmul.f32 %v17223_v41, %v17223_v41 }
 0x4e0   :  { %v14369_v33 = vpop.eup %14368  ;;  %v3091_v51 = vmul.f32 0.015625, %v3053_v58  ;;  %v3051_v16 = vpop.xlane.xlu0 %3050  ;;  %v3358_v36 = vsub.f32 %v17220_v38, %v19885_v48  ;;  %v3238_v58 = vmax.f32 %v3222_v21, 0.0 }
 0x4e1   :  { %v14371_v24 = vpop.eup %14370  ;;  %v3090_v57 = vmul.f32 0.015625, %v3051_v16  ;;  %v3183_v8 = vmul.f32 %v14369_v33, %v3135_v35  ;;  %v3369_v43 = vand.u32 4294901760, %v3368_v46  ;;  %v17243_v4 = vand.u32 4294901760, %v3239_v54 }
 0x4e2   :  { %v3359_v12 = vand.u32 4294901760, %v3358_v36  ;;  %v3123_v26 = vsub.f32 %v3091_v51, %v3107_v6  ;;  %v3182_v0 = vmul.f32 %v14371_v24, %v3134_v32  ;;  %v17248_v37 = vand.u32 4294901760, %v3238_v58 }
 0x4e3   :  { %v3122_v17 = vsub.f32 %v3090_v57, %v3106_v52  ;;  %v3009_v48 = vpop.xlane.xlu1 %3008  ;;  %v3204_v11 = vmul.f32 %v17185_v63, %v3183_v8  ;;  %v17251_v16 = vsub.f32 %v3239_v54, %v17243_v4  ;;  %v3137_v32 = vsub.f32 %v16801_v23, %v17194_v45 }
 0x4e4   :  { %v17246_v39 = vmul.f32 0.015625, %v3009_v48  ;;  %11281 = vmatprep.mubr.f32.mxu0 %v3359_v12  ;;  %v3007_v7 = vpop.xlane.xlu0 %3006  ;;  %v3203_v46 = vmul.f32 %v17185_v63, %v3182_v0  ;;  %v17260_v48 = vsub.f32 %v3238_v58, %v17248_v37  ;;  %v3136_v36 = vsub.f32 %v16808_v61, %v17197_v10  ;;  %v17273_v10 = vld [vmem:[#allocation8 + $0x3] ss:$0 sm:$0xff] }
 0x4e5   :  { %20301 = vst [vmem:[#allocation38_spill] sm:$0xff] %v17251_v16  ;;  %v17253_v35 = vmul.f32 0.015625, %v3007_v7  ;;  %11282 = vmatmul.mubr.f32.vlgmr.msra.gmra.mrb[16].mxu0 %v3369_v43  ;;  %v3225_v33 = vadd.f32 %v17191_v29, %v3204_v11  ;;  %v3154_v51 = vadd.f32 1e-05, %v3122_v17  ;;  %v3155_v21 = vadd.f32 1e-05, %v3123_v26 }
 0x4e6   :  { %13012 = vmatpush3.bf16.msra.mxu0 %v17006_v20  ;;  %v3109_v7 = vmul.f32 %v17246_v39, %v17246_v39  ;;  %v19894_v0 = vand.u32 4294901760, %v17251_v16  ;;  %v19895_v45 = vand.u32 4294901760, %v17260_v48  ;;  %v3224_v6 = vadd.f32 %v17191_v29, %v3203_v46 }
 0x4e7   :  { %v3057_v54 = vpop.xlane.xlu1 %3056  ;;  %13014 = vmatprep.subr.bf16.mxu0 %v17029_v60  ;;  %v3241_v20 = vmax.f32 %v3225_v33, 0.0  ;;  %v3108_v61 = vmul.f32 %v17253_v35, %v17253_v35  ;;  %14376 = vrsqrt.f32 %v3154_v51 }
 0x4e8   :  { %v14373_v24 = vpop.eup %14372  ;;  %v3093_v23 = vmul.f32 0.015625, %v3057_v54  ;;  %v3055_v17 = vpop.xlane.xlu0 %3054  ;;  %v3388_v57 = vsub.f32 %v17251_v16, %v19894_v0  ;;  %v3378_v43 = vsub.f32 %v17260_v48, %v19895_v45  ;;  %v3240_v58 = vmax.f32 %v3224_v6, 0.0 }
 0x4e9   :  { %v14375_v52 = vpop.eup %14374  ;;  %v3092_v26 = vmul.f32 0.015625, %v3055_v17  ;;  %v3185_v8 = vmul.f32 %v14373_v24, %v3137_v32  ;;  %v17282_v17 = vand.u32 4294901760, %v3241_v20  ;;  %14378 = vrsqrt.f32 %v3155_v21 }
 0x4ea   :  { %v3125_v12 = vsub.f32 %v3093_v23, %v3109_v7  ;;  %13016 = vmatpush3.bf16.msra.mxu0 %v17029_v60  ;;  %v3389_v54 = vand.u32 4294901760, %v3388_v57  ;;  %v3184_v55 = vmul.f32 %v14375_v52, %v3136_v36  ;;  %v3379_v51 = vand.u32 4294901760, %v3378_v43 }
 0x4eb   :  { %v3124_v11 = vsub.f32 %v3092_v26, %v3108_v61  ;;  %v3013_v46 = vpop.xlane.xlu1 %3012  ;;  %v11899_v33 = vpop.f32.mrb[16].mxu1  ;;  %13018 = vmatprep.subr.bf16.mxu0 %v17049_v31  ;;  %v3206_v23 = vmul.f32 %v17185_v63, %v3185_v8  ;;  %v17296_v26 = vand.u32 4294901760, %v3240_v58 }
 0x4ec   :  { %v17285_v0 = vmul.f32 0.015625, %v3013_v46  ;;  %v17288_v32 = vadd.f32 %v11899_v33, %v17273_v10  ;;  %v6024_v7 = vpop.f32.mrb[17].mxu1  ;;  %v3011_v24 = vpop.xlane.xlu0 %3010  ;;  %v3157_v36 = vadd.f32 1e-05, %v3125_v12  ;;  %11284 = vmatprep.mubr.f32.mxu0 %v3379_v51  ;;  %v17310_v51 = vsub.f32 %v3241_v20, %v17282_v17 }
 0x4ed   :  { %v3156_v60 = vadd.f32 1e-05, %v3124_v11  ;;  %v17292_v6 = vadd.f32 %v17273_v10, %v6024_v7  ;;  %v17294_v61 = vmul.f32 0.015625, %v3011_v24  ;;  %11285 = vmatmul.mubr.f32.gmra.mrb[18].mxu0 %v3389_v54  ;;  %v17307_v33 = vsub.f32 %v3240_v58, %v17296_v26 }
 0x4ee   :  { %20302 = vst [vmem:[#allocation39_spill] sm:$0xff] %v17288_v32  ;;  %6120 = vadd.xlane.f32.xlu1 %v17288_v32  ;;  %v3111_v52 = vmul.f32 %v17285_v0, %v17285_v0  ;;  %v6151_v43 = vmul.f32 %v17288_v32, %v17288_v32  ;;  %20304 = vst [vmem:[#allocation41_spill] sm:$0xff] %v17310_v51  ;;  %13020 = vmatpush3.bf16.msra.mxu0 %v17049_v31  ;;  %v19900_v20 = vand.u32 4294901760, %v17310_v51 }
 0x4ef   :  { %20303 = vst [vmem:[#allocation40_spill] sm:$0xff] %v17292_v6  ;;  %14380 = vrsqrt.f32 %v3156_v60  ;;  %v3061_v57 = vpop.xlane.xlu1 %3060  ;;  %v11902_v8 = vpop.f32.mrb[18].mxu1  ;;  %6118 = vadd.xlane.f32.xlu0 %v17292_v6  ;;  %v3110_v11 = vmul.f32 %v17294_v61, %v17294_v61  ;;  %v6150_v7 = vmul.f32 %v17292_v6, %v17292_v6  ;;  %v3205_v24 = vmul.f32 %v17185_v63, %v3184_v55 }
 0x4f0   :  { %v3095_v21 = vmul.f32 0.015625, %v3061_v57  ;;  %v6036_v12 = vpop.f32.mrb[19].mxu1  ;;  %v3059_v46 = vpop.xlane.xlu0 %3058  ;;  %v3227_v60 = vadd.f32 %v17191_v29, %v3206_v23  ;;  %13022 = vmatprep.subr.bf16.mxu0 %v17085_v25  ;;  %14382 = vrsqrt.f32 %v3157_v36  ;;  %v19901_v58 = vand.u32 4294901760, %v17307_v33 }
 0x4f1   :  { %v3094_v54 = vmul.f32 0.015625, %v3059_v46  ;;  %v17321_v45 = vadd.f32 %v11902_v8, %v17273_v10  ;;  %v3226_v55 = vadd.f32 %v17191_v29, %v3205_v24  ;;  %v14377_v6 = vpop.eup %14376  ;;  %v17331_v8 = vadd.f32 %v17273_v10, %v6036_v12 }
 0x4f2   :  { %v3127_v57 = vsub.f32 %v3095_v21, %v3111_v52  ;;  %6168 = vadd.xlane.f32.xlu1 %v6151_v43  ;;  %v3398_v36 = vsub.f32 %v17307_v33, %v19901_v58  ;;  %v3243_v21 = vmax.f32 %v3227_v60, 0.0  ;;  %13024 = vmatpush3.bf16.msra.mxu0 %v17085_v25  ;;  %v3139_v24 = vsub.f32 %v16845_v53, %v17217_v47 }
 0x4f3   :  { %20305 = vst [vmem:[#allocation42_spill] sm:$0xff] %v17321_v45  ;;  %v3126_v31 = vsub.f32 %v3094_v54, %v3110_v11  ;;  %v3017_v46 = vpop.xlane.xlu1 %3016  ;;  %v11905_v32 = vpop.f32.mrb[20].mxu1  ;;  %6166 = vadd.xlane.f32.xlu0 %v6150_v7  ;;  %20306 = vst [vmem:[#allocation43_spill] sm:$0xff] %v17331_v8  ;;  %v3408_v7 = vsub.f32 %v17310_v51, %v19900_v20  ;;  %13026 = vmatprep.subr.bf16.mxu0 %v17099_v5 }
 0x4f4   :  { %v3159_v23 = vadd.f32 1e-05, %v3127_v57  ;;  %v17324_v16 = vmul.f32 0.015625, %v3017_v46  ;;  %v6048_v52 = vpop.f32.mrb[21].mxu1  ;;  %v3015_v43 = vpop.xlane.xlu0 %3014  ;;  %v3399_v57 = vand.u32 4294901760, %v3398_v36  ;;  %v3138_v25 = vsub.f32 %v16851_v56, %v17223_v41 }
 0x4f5   :  { %v3158_v11 = vadd.f32 1e-05, %v3126_v31  ;;  %v17333_v54 = vmul.f32 0.015625, %v3015_v43  ;;  %v3409_v12 = vand.u32 4294901760, %v3408_v7  ;;  %v6153_v46 = vmul.f32 %v17321_v45, %v17321_v45  ;;  %v14379_v43 = vpop.eup %14378 }
 0x4f6   :  { %14384 = vrsqrt.f32 %v3159_v23  ;;  %6124 = vadd.xlane.f32.xlu1 %v17321_v45  ;;  %v3113_v53 = vmul.f32 %v17324_v16, %v17324_v16  ;;  %11287 = vmatprep.mubr.f32.mxu0 %v3399_v57  ;;  %v3242_v56 = vmax.f32 %v3226_v55, 0.0  ;;  %v17353_v41 = vand.u32 4294901760, %v3243_v21 }
 0x4f7   :  { %14386 = vrsqrt.f32 %v3158_v11  ;;  %v3065_v60 = vpop.xlane.xlu1 %3064  ;;  %v17344_v31 = vpop.f32.mrb[22].mxu1  ;;  %6122 = vadd.xlane.f32.xlu0 %v17331_v8  ;;  %13028 = vmatpush3.bf16.msra.mxu0 %v17099_v5  ;;  %v3141_v7 = vsub.f32 %v16885_v15, %v17246_v39  ;;  %v3112_v20 = vmul.f32 %v17333_v54, %v17333_v54  ;;  %v6152_v57 = vmul.f32 %v17331_v8, %v17331_v8 }
 0x4f8   :  { %v3097_v47 = vmul.f32 0.015625, %v3065_v60  ;;  %v17351_v23 = vpop.f32.mrb[23].mxu1  ;;  %v3063_v36 = vpop.xlane.xlu0 %3062  ;;  %11288 = vmatmul.mubr.f32.gmra.mrb[20].mxu0 %v3409_v12  ;;  %13030 = vmatprep.subr.bf16.mxu0 %v17115_v30  ;;  %v17363_v55 = vand.u32 4294901760, %v3242_v56  ;;  %v17366_v5 = vsub.f32 %v3243_v21, %v17353_v41  ;;  %v3186_v45 = vmul.f32 %v14377_v6, %v3138_v25 }
 0x4f9   :  { %v14381_v11 = vpop.eup %14380  ;;  %v3096_v58 = vmul.f32 0.015625, %v3063_v36  ;;  %v3140_v15 = vsub.f32 %v16891_v27, %v17253_v35  ;;  %v3143_v39 = vsub.f32 %v16926_v1, %v17285_v0  ;;  %v3187_v8 = vmul.f32 %v14379_v43, %v3139_v24 }
 0x4fa   :  { %v3129_v60 = vsub.f32 %v3097_v47, %v3113_v53  ;;  %6172 = vadd.xlane.f32.xlu1 %v6153_v46  ;;  %v14383_v51 = vpop.eup %14382  ;;  %v17375_v46 = vadd.f32 %v11905_v32, %v17273_v10  ;;  %v17378_v21 = vsub.f32 %v3242_v56, %v17363_v55  ;;  %v19906_v27 = vand.u32 4294901760, %v17366_v5 }
 0x4fb   :  { %v3128_v12 = vsub.f32 %v3096_v58, %v3112_v20  ;;  %v17372_v36 = vpop.f32.mrb[24].mxu1  ;;  %6170 = vadd.xlane.f32.xlu0 %v6152_v57  ;;  %13032 = vmatpush3.bf16.msra.mxu0 %v17115_v30  ;;  %v17385_v1 = vadd.f32 %v17273_v10, %v6048_v52  ;;  %v3207_v0 = vmul.f32 %v17185_v63, %v3186_v45 }
 0x4fc   :  { %20307 = vst [vmem:[#allocation44_spill] sm:$0xff] %v17375_v46  ;;  %v3161_v53 = vadd.f32 1e-05, %v3129_v60  ;;  %v17380_v6 = vpop.f32.mrb[25].mxu1  ;;  %v3208_v58 = vmul.f32 %v17185_v63, %v3187_v8  ;;  %13034 = vmatprep.subr.bf16.mxu0 %v17129_v40  ;;  %v19907_v32 = vand.u32 4294901760, %v17378_v21  ;;  %v3428_v20 = vsub.f32 %v17366_v5, %v19906_v27 }
 0x4fd   :  { %v3160_v35 = vadd.f32 1e-05, %v3128_v12  ;;  %v3188_v30 = vmul.f32 %v14381_v11, %v3140_v15  ;;  %v3228_v45 = vadd.f32 %v17191_v29, %v3207_v0  ;;  %v3189_v24 = vmul.f32 %v14383_v51, %v3141_v7 }
 0x4fe   :  { %14388 = vrsqrt.f32 %v3161_v53  ;;  %6128 = vadd.xlane.f32.xlu1 %v17375_v46  ;;  %v3229_v8 = vadd.f32 %v17191_v29, %v3208_v58  ;;  %v3142_v43 = vsub.f32 %v16933_v13, %v17294_v61  ;;  %v3418_v47 = vsub.f32 %v17378_v21, %v19907_v32 }
 0x4ff   :  { %14390 = vrsqrt.f32 %v3160_v35  ;;  %v17395_v52 = vpop.f32.mrb[26].mxu1  ;;  %6126 = vadd.xlane.f32.xlu0 %v17385_v1  ;;  %v6155_v11 = vmul.f32 %v17375_v46, %v17375_v46  ;;  %v3209_v57 = vmul.f32 %v17185_v63, %v3188_v30  ;;  %13036 = vmatpush3.bf16.msra.mxu0 %v17129_v40  ;;  %v6154_v51 = vmul.f32 %v17385_v1, %v17385_v1 }
 0x500   :  { %v14385_v25 = vpop.eup %14384  ;;  %v17405_v56 = vpop.f32.mrb[27].mxu1  ;;  %v3244_v7 = vmax.f32 %v3228_v45, 0.0  ;;  %v3245_v15 = vmax.f32 %v3229_v8, 0.0  ;;  %v3210_v13 = vmul.f32 %v17185_v63, %v3189_v24  ;;  %13038 = vmatprep.subr.bf16.mxu0 %v17141_v14  ;;  %v17417_v61 = vadd.f32 %v17344_v31, %v17273_v10 }
 0x501   :  { %v14387_v60 = vpop.eup %14386  ;;  %v3419_v12 = vand.u32 4294901760, %v3418_v47  ;;  %v3429_v53 = vand.u32 4294901760, %v3428_v20  ;;  %v3230_v35 = vadd.f32 %v17191_v29, %v3209_v57  ;;  %v17429_v8 = vadd.f32 %v17273_v10, %v17351_v23 }
 0x502   :  { %20308 = vst [vmem:[#allocation45_spill] sm:$0xff] %v17417_v61  ;;  %6176 = vadd.xlane.f32.xlu1 %v6155_v11  ;;  %v17422_v0 = vand.u32 4294901760, %v3244_v7  ;;  %v17424_v58 = vand.u32 4294901760, %v3245_v15  ;;  %v3231_v30 = vadd.f32 %v17191_v29, %v3210_v13  ;;  %v3190_v45 = vmul.f32 %v14387_v60, %v3142_v43 }
 0x503   :  { %v17420_v40 = vpop.f32.mrb[28].mxu1  ;;  %6174 = vadd.xlane.f32.xlu0 %v6154_v51  ;;  %20309 = vst [vmem:[#allocation46_spill] sm:$0xff] %v17429_v8  ;;  %11290 = vmatprep.mubr.f32.mxu0 %v3419_v12  ;;  %v3246_v20 = vmax.f32 %v3230_v35, 0.0  ;;  %v3191_v24 = vmul.f32 %v14385_v25, %v3143_v39  ;;  %v3145_v47 = vsub.f32 %v16964_v28, %v17324_v16 }
 0x504   :  { %v17431_v31 = vpop.f32.mrb[29].mxu1  ;;  %13040 = vmatpush3.bf16.msra.mxu0 %v17141_v14  ;;  %v17437_v11 = vsub.f32 %v3244_v7, %v17422_v0  ;;  %v17440_v43 = vsub.f32 %v3245_v15, %v17424_v58  ;;  %v3247_v57 = vmax.f32 %v3231_v30, 0.0  ;;  %v3144_v23 = vsub.f32 %v16969_v19, %v17333_v54 }
 0x505   :  { %11291 = vmatmul.mubr.f32.gmra.mrb[22].mxu0 %v3429_v53  ;;  %13042 = vmatprep.subr.bf16.mxu0 %v17139_v59  ;;  %v17446_v39 = vand.u32 4294901760, %v3246_v20  ;;  %v3211_v14 = vmul.f32 %v17185_v63, %v3190_v45  ;;  %v3212_v28 = vmul.f32 %v17185_v63, %v3191_v24  ;;  %v6157_v51 = vmul.f32 %v17417_v61, %v17417_v61 }
 0x506   :  { %6132 = vadd.xlane.f32.xlu1 %v17417_v61  ;;  %v19911_v16 = vand.u32 4294901760, %v17437_v11  ;;  %v19912_v25 = vand.u32 4294901760, %v17440_v43  ;;  %v17457_v19 = vand.u32 4294901760, %v3247_v57  ;;  %v6156_v15 = vmul.f32 %v17429_v8, %v17429_v8 }
 0x507   :  { %v17452_v60 = vpop.f32.mrb[30].mxu1  ;;  %6130 = vadd.xlane.f32.xlu0 %v17429_v8  ;;  %v17464_v13 = vsub.f32 %v3246_v20, %v17446_v39  ;;  %v3232_v12 = vadd.f32 %v17191_v29, %v3211_v14  ;;  %v3233_v53 = vadd.f32 %v17191_v29, %v3212_v28  ;;  %v17470_v30 = vadd.f32 %v17372_v36, %v17273_v10 }
 0x508   :  { %v14389_v54 = vpop.eup %14388  ;;  %v17459_v7 = vpop.f32.mrb[31].mxu1  ;;  %v3438_v45 = vsub.f32 %v17437_v11, %v19911_v16  ;;  %v3448_v24 = vsub.f32 %v17440_v43, %v19912_v25  ;;  %v17479_v20 = vsub.f32 %v3247_v57, %v17457_v19 }
 0x509   :  { %v14391_v35 = vpop.eup %14390  ;;  %v3457_v14 = vand.u32 4294901760, %v17464_v13  ;;  %v3248_v28 = vmax.f32 %v3232_v12, 0.0  ;;  %v3249_v27 = vmax.f32 %v3233_v53, 0.0  ;;  %v3193_v46 = vmul.f32 %v14389_v54, %v3145_v47 }
 0x50a   :  { %6180 = vadd.xlane.f32.xlu1 %v6157_v51  ;;  %v3192_v32 = vmul.f32 %v14391_v35, %v3144_v23  ;;  %v3439_v61 = vand.u32 4294901760, %v3438_v45  ;;  %v3449_v36 = vand.u32 4294901760, %v3448_v24  ;;  %v3467_v8 = vand.u32 4294901760, %v17479_v20 }
 0x50b   :  { %6178 = vadd.xlane.f32.xlu0 %v6156_v15  ;;  %v3458_v16 = vsub.f32 %v17464_v13, %v3457_v14  ;;  %v17486_v25 = vand.u32 4294901760, %v3248_v28  ;;  %v17488_v57 = vand.u32 4294901760, %v3249_v27  ;;  %v17493_v12 = vadd.f32 %v17273_v10, %v17380_v6 }
 0x50c   :  { %v3213_v51 = vmul.f32 %v17185_v63, %v3192_v32  ;;  %11293 = vmatprep.mubr.f32.mxu0 %v3439_v61  ;;  %v3468_v23 = vsub.f32 %v17479_v20, %v3467_v8  ;;  %v3214_v47 = vmul.f32 %v17185_v63, %v3193_v46  ;;  %v6159_v61 = vmul.f32 %v17470_v30, %v17470_v30 }
 0x50d   :  { %11294 = vmatmul.mubr.f32.gmra.mrb[24].mxu0 %v3449_v36  ;;  %v3459_v54 = vand.u32 4294901760, %v3458_v16  ;;  %v17501_v15 = vsub.f32 %v3248_v28, %v17486_v25  ;;  %v17504_v32 = vsub.f32 %v3249_v27, %v17488_v57  ;;  %v6158_v27 = vmul.f32 %v17493_v12, %v17493_v12 }
 0x50e   :  { %6136 = vadd.xlane.f32.xlu1 %v17470_v30  ;;  %v3234_v6 = vadd.f32 %v17191_v29, %v3213_v51  ;;  %v3235_v53 = vadd.f32 %v17191_v29, %v3214_v47  ;;  %v3469_v63 = vand.u32 4294901760, %v3468_v23  ;;  %v17527_v51 = vadd.f32 %v17395_v52, %v17273_v10 }
 0x50f   :  { %6134 = vadd.xlane.f32.xlu0 %v17493_v12  ;;  %11296 = vmatprep.mubr.f32.mxu0 %v3459_v54  ;;  %v19916_v46 = vand.u32 4294901760, %v17501_v15  ;;  %v19915_v16 = vand.u32 4294901760, %v17504_v32  ;;  %v17534_v54 = vadd.f32 %v17273_v10, %v17405_v56 }
 0x510   :  { %v3250_v35 = vmax.f32 %v3234_v6, 0.0  ;;  %v3251_v45 = vmax.f32 %v3235_v53, 0.0  ;;  %20310 = vst [vmem:[#allocation47_spill] sm:$0xff] %v17527_v51 }
 0x511   :  { %11297 = vmatmul.mubr.f32.gmra.mrb[26].mxu0 %v3469_v63  ;;  %v3478_v24 = vsub.f32 %v17501_v15, %v19916_v46  ;;  %v3488_v29 = vsub.f32 %v17504_v32, %v19915_v16  ;;  %20311 = vst [vmem:[#allocation48_spill] sm:$0xff] %v17534_v54  ;;  %v6161_v63 = vmul.f32 %v17527_v51, %v17527_v51  ;;  %v20334_v16 = vand.u32 4294901760, %v17214_v62 }
 0x512   :  { %6184 = vadd.xlane.f32.xlu1 %v6159_v61  ;;  %v17521_v28 = vand.u32 4294901760, %v3250_v35  ;;  %v17523_v36 = vand.u32 4294901760, %v3251_v45 }
 0x513   :  { %6182 = vadd.xlane.f32.xlu0 %v6158_v27  ;;  %v3479_v23 = vand.u32 4294901760, %v3478_v24  ;;  %v3489_v6 = vand.u32 4294901760, %v3488_v29  ;;  %v17555_v29 = vadd.f32 %v17420_v40, %v17273_v10 }
 0x514   :  { %v17530_v47 = vsub.f32 %v3250_v35, %v17521_v28  ;;  %v17537_v61 = vsub.f32 %v3251_v45, %v17523_v36  ;;  %v6160_v35 = vmul.f32 %v17534_v54, %v17534_v54 }
 0x515   :  { %11299 = vmatprep.mubr.f32.mxu0 %v3479_v23  ;;  %20312 = vst [vmem:[#allocation49_spill] sm:$0xff] %v17555_v29  ;;  %v17559_v23 = vadd.f32 %v17273_v10, %v17431_v31  ;;  %v17573_v31 = vadd.f32 %v17452_v60, %v17273_v10  ;;  %v20323_v60 = vld [vmem:[#allocation28_spill] sm:$0xff] }
 0x516   :  { %6140 = vadd.xlane.f32.xlu1 %v17527_v51  ;;  %v19914_v53 = vand.u32 4294901760, %v17530_v47  ;;  %11300 = vmatmul.mubr.f32.gmra.mrb[28].mxu0 %v3489_v6  ;;  %v19913_v52 = vand.u32 4294901760, %v17537_v61  ;;  %v6163_v6 = vmul.f32 %v17555_v29, %v17555_v29 }
 0x517   :  { %6138 = vadd.xlane.f32.xlu0 %v17534_v54  ;;  %20313 = vst [vmem:[#allocation50_spill] sm:$0xff] %v17559_v23  ;;  %v6162_v40 = vmul.f32 %v17559_v23, %v17559_v23  ;;  %20314 = vst [vmem:[#allocation51_spill] sm:$0xff] %v17573_v31 }
 0x518   :  { %v3498_v56 = vsub.f32 %v17530_v47, %v19914_v53  ;;  %v3508_v27 = vsub.f32 %v17537_v61, %v19913_v52 }
 0x51a   :  { %6188 = vadd.xlane.f32.xlu1 %v6161_v63  ;;  %v3499_v45 = vand.u32 4294901760, %v3498_v56  ;;  %v3509_v24 = vand.u32 4294901760, %v3508_v27  ;;  %v17578_v63 = vadd.f32 %v17273_v10, %v17459_v7  ;;  %v20324_v7 = vld [vmem:[#allocation34_spill] sm:$0xff]  ;;  %v20325_v56 = vld [vmem:[#allocation35_spill] sm:$0xff]  ;;  %v20327_v27 = vld [vmem:[#allocation36_spill] sm:$0xff] }
 0x51b   :  { %6186 = vadd.xlane.f32.xlu0 %v6160_v35  ;;  %v20326_v35 = vand.u32 4294901760, %v20325_v56  ;;  %v20335_v56 = vand.u32 4294901760, %v17260_v48 }
 0x51c   :  { %11302 = vmatprep.mubr.f32.mxu0 %v3499_v45  ;;  %20315 = vst [vmem:[#allocation52_spill] sm:$0xff] %v17578_v63  ;;  %v6164_v10 = vmul.f32 %v17578_v63, %v17578_v63  ;;  %v20328_v45 = vand.u32 4294901760, %v20327_v27 }
 0x51d   :  { %11303 = vmatmul.mubr.f32.gmra.mrb[30].mxu0 %v3509_v24 }
 0x51e   :  { %6144 = vadd.xlane.f32.xlu1 %v17555_v29  ;;  %11337 = vmatprep.mubr.f32.mxu0 %v17211_v49  ;;  %v13105_v24 = vpack.c.bf16 %v20328_v45, %v20326_v35  ;;  %v20336_v35 = vld [vmem:[#allocation16_spill] sm:$0xff]  ;;  %v20338_v45 = vld [vmem:[#allocation26_spill] sm:$0xff] }
 0x51f   :  { %6142 = vadd.xlane.f32.xlu0 %v17559_v23  ;;  %v20337_v27 = vand.u32 4294901760, %v20336_v35  ;;  %v20339_v46 = vand.u32 4294901760, %v20338_v45 }
 0x521   :  { %11338 = vmatmul.mubr.f32.vlgmr.msra.gmra.mrb[16].mxu0 %v17209_v42 }
 0x522   :  { %6192 = vadd.xlane.f32.xlu1 %v6163_v6  ;;  %11340 = vmatprep.mubr.f32.mxu0 %v17248_v37  ;;  %v20329_v6 = vand.u32 4294901760, %v17220_v38 }
 0x523   :  { %13044 = vmatpush3.bf16.msra.mxu0 %v17139_v59  ;;  %6190 = vadd.xlane.f32.xlu0 %v6162_v40  ;;  %v6165_v59 = vmul.f32 %v17573_v31, %v17573_v31  ;;  %v20330_v40 = vld [vmem:[#allocation37_spill] sm:$0xff] }
 0x524   :  { %13046 = vmatprep.subr.bf16.mxu0 %v17145_v22 }
 0x525   :  { %11341 = vmatmul.mubr.f32.gmra.mrb[18].mxu0 %v17243_v4 }
 0x526   :  { %6148 = vadd.xlane.f32.xlu1 %v17573_v31  ;;  %11343 = vmatprep.mubr.f32.mxu0 %v17296_v26 }
 0x527   :  { %13048 = vmatpush3.bf16.msra.mxu0 %v17145_v22  ;;  %6146 = vadd.xlane.f32.xlu0 %v17578_v63  ;;  %v20316_v22 = vld [vmem:[#allocation21_spill] sm:$0xff] }
 0x528   :  { %13050 = vmatprep.subr.bf16.mxu0 %v17149_v34 }
 0x529   :  { %11344 = vmatmul.mubr.f32.gmra.mrb[20].mxu0 %v17282_v17 }
 0x52a   :  { %6196 = vadd.xlane.f32.xlu1 %v6165_v59  ;;  %11346 = vmatprep.mubr.f32.mxu0 %v17363_v55  ;;  %v20331_v59 = vand.u32 4294901760, %v20330_v40  ;;  %v20341_v40 = vand.u32 4294901760, %v17307_v33 }
 0x52b   :  { %13052 = vmatpush3.bf16.msra.mxu0 %v17149_v34  ;;  %6194 = vadd.xlane.f32.xlu0 %v6164_v10  ;;  %v20317_v34 = vld [vmem:[#allocation38_spill] sm:$0xff] }
 0x52c   :  { %13054 = vmatprep.subr.bf16.mxu0 %v17153_v2  ;;  %v20332_v10 = vld [vmem:[#allocation18_spill] sm:$0xff] }
 0x52d   :  { %11347 = vmatmul.mubr.f32.gmra.mrb[22].mxu0 %v17353_v41  ;;  %v20333_v52 = vand.u32 4294901760, %v20332_v10  ;;  %v20347_v10 = vand.u32 4294901760, %v17378_v21 }
 0x52e   :  { %11349 = vmatprep.mubr.f32.mxu0 %v17422_v0 }
 0x52f   :  { %13056 = vmatpush3.bf16.msra.mxu0 %v17153_v2  ;;  %v20318_v2 = vld [vmem:[#allocation32_spill] sm:$0xff]  ;;  %v13109_v53 = vpack.c.bf16 %v20333_v52, %v20331_v59  ;;  %v20344_v52 = vld [vmem:[#allocation29_spill] sm:$0xff] }
 0x530   :  { %13058 = vmatprep.subr.bf16.mxu0 %v17157_v50 }
 0x531   :  { %11350 = vmatmul.mubr.f32.gmra.mrb[24].mxu0 %v17424_v58 }
 0x532   :  { %11352 = vmatprep.mubr.f32.mxu0 %v17446_v39 }
 0x533   :  { %13060 = vmatpush3.bf16.msra.mxu0 %v17157_v50  ;;  %v20319_v50 = vld [vmem:[#allocation41_spill] sm:$0xff] }
 0x534   :  { %13062 = vmatprep.subr.bf16.mxu0 %v17161_v44 }
 0x535   :  { %11353 = vmatmul.mubr.f32.gmra.mrb[26].mxu0 %v17457_v19 }
 0x536   :  { %11355 = vmatprep.mubr.f32.mxu0 %v17486_v25 }
 0x537   :  { %13064 = vmatpush3.bf16.msra.mxu0 %v17161_v44  ;;  %v20321_v44 = vld [vmem:[#allocation24_spill] sm:$0xff] }
 0x538   :  { %13066 = vmatprep.subr.bf16.mxu0 %v17165_v18 }
 0x539   :  { %11356 = vmatmul.mubr.f32.gmra.mrb[28].mxu0 %v17488_v57 }
 0x53a   :  { %11358 = vmatprep.mubr.f32.mxu0 %v17521_v28 }
 0x53b   :  { %13068 = vmatpush3.bf16.msra.mxu0 %v17165_v18  ;;  %v20322_v18 = vld [vmem:[#allocation27_spill] sm:$0xff] }
 0x53c   :  { %13070 = vmatprep.subr.bf16.mxu0 %v17169_v9 }
 0x53d   :  { %11359 = vmatmul.mubr.f32.gmra.mrb[30].mxu0 %v17523_v36 }
 0x53e   :  { %11393 = vmatprep.mubr.f32.mxu0 %v17220_v38  ;;  %v13113_v38 = vpack.c.bf16 %v20339_v46, %v20337_v27  ;;  %v20348_v46 = vld [vmem:[#allocation19_spill] sm:$0xff]  ;;  %v20353_v27 = vand.u32 4294901760, %v17437_v11 }
 0x53f   :  { %13072 = vmatpush3.bf16.msra.mxu0 %v17169_v9  ;;  %v20320_v9 = vld [vmem:[#allocation33_spill] sm:$0xff] }
 0x540   :  { %13074 = vmatprep.subr.bf16.mxu0 %v16815_v3 }
 0x542   :  { %11394 = vmatmul.mubr.f32.vlgmr.msra.gmra.mrb[16].mxu0 %v17214_v62  ;;  %v20342_v62 = vld [vmem:[#allocation15_spill] sm:$0xff] }
 0x543   :  { %11396 = vmatprep.mubr.f32.mxu0 %v17260_v48  ;;  %13076 = vmatpush3.bf16.msra.mxu0 %v16815_v3  ;;  %v20345_v48 = vand.u32 4294901760, %v20344_v52 }
 0x544   :  { %13078 = vmatprep.subr.bf16.mxu0 %v20316_v22 }
 0x546   :  { %11397 = vmatmul.mubr.f32.gmra.mrb[18].mxu0 %v20317_v34 }
 0x547   :  { %11399 = vmatprep.mubr.f32.mxu0 %v17307_v33  ;;  %13080 = vmatpush3.bf16.msra.mxu0 %v20316_v22 }
 0x548   :  { %13082 = vmatprep.subr.bf16.mxu0 %v20318_v2 }
 0x54a   :  { %11400 = vmatmul.mubr.f32.gmra.mrb[20].mxu0 %v20319_v50 }
 0x54b   :  { %11402 = vmatprep.mubr.f32.mxu0 %v17378_v21  ;;  %13084 = vmatpush3.bf16.msra.mxu0 %v20318_v2 }
 0x54c   :  { %13086 = vmatprep.subr.bf16.mxu0 %v20320_v9 }
 0x54e   :  { %11403 = vmatmul.mubr.f32.gmra.mrb[22].mxu0 %v17366_v5 }
 0x54f   :  { %11405 = vmatprep.mubr.f32.mxu0 %v17437_v11  ;;  %13088 = vmatpush3.bf16.msra.mxu0 %v20320_v9 }
 0x550   :  { %13090 = vmatprep.subr.bf16.mxu0 %v20321_v44 }
 0x552   :  { %11406 = vmatmul.mubr.f32.gmra.mrb[24].mxu0 %v17440_v43 }
 0x553   :  { %11408 = vmatprep.mubr.f32.mxu0 %v17464_v13  ;;  %13092 = vmatpush3.bf16.msra.mxu0 %v20321_v44 }
 0x554   :  { %13094 = vmatprep.subr.bf16.mxu0 %v20322_v18 }
 0x556   :  { %11409 = vmatmul.mubr.f32.gmra.mrb[26].mxu0 %v17479_v20  ;;  %v20369_v20 = vand.u32 4294901760, %v17530_v47 }
 0x557   :  { %11411 = vmatprep.mubr.f32.mxu0 %v17501_v15  ;;  %13096 = vmatpush3.bf16.msra.mxu0 %v20322_v18 }
 0x558   :  { %13098 = vmatprep.subr.bf16.mxu0 %v20323_v60 }
 0x55a   :  { %11412 = vmatmul.mubr.f32.gmra.mrb[28].mxu0 %v17504_v32 }
 0x55b   :  { %11414 = vmatprep.mubr.f32.mxu0 %v17530_v47  ;;  %13100 = vmatpush3.bf16.msra.mxu0 %v20323_v60  ;;  %v17718_v47 = vld [vmem:[#allocation7 + $0x240] sm:$0xff] }
 0x55c   :  { %13102 = vmatprep.subr.bf16.mxu0 %v20324_v7 }
 0x55e   :  { %11415 = vmatmul.mubr.f32.gmra.mrb[30].mxu0 %v17537_v61 }
 0x55f   :  { %13104 = vmatpush3.bf16.msra.mxu0 %v20324_v7  ;;  %11449 = vmatprep.mubr.f32.mxu0 %v20329_v6  ;;  %v20340_v6 = vand.u32 4294901760, %v20317_v34  ;;  %v20349_v34 = vand.u32 4294901760, %v20348_v46 }
 0x560   :  { %13106 = vmatprep.subr.bf16.mxu0 %v13105_v24 }
 0x562   :  { %11450 = vmatmul.mubr.f32.vlgmr.msra.gmra.mrb[16].mxu0 %v20334_v16  ;;  %v20343_v16 = vand.u32 4294901760, %v20342_v62 }
 0x563   :  { %11452 = vmatprep.mubr.f32.mxu0 %v20335_v56  ;;  %13108 = vmatpush3.bf16.msra.mxu0 %v13105_v24  ;;  %v20346_v24 = vand.u32 4294901760, %v20319_v50  ;;  %v20350_v56 = vld [vmem:[#allocation20_spill] sm:$0xff]  ;;  %v20354_v50 = vld [vmem:[#allocation30_spill] sm:$0xff] }
 0x564   :  { %13110 = vmatprep.subr.bf16.mxu0 %v13109_v53  ;;  %v13117_v59 = vpack.c.bf16 %v20345_v48, %v20343_v16  ;;  %v20351_v33 = vand.u32 4294901760, %v20350_v56  ;;  %v20355_v45 = vand.u32 4294901760, %v20354_v50  ;;  %v20361_v16 = vld [vmem:[#allocation23_spill] sm:$0xff]  ;;  %v20363_v48 = vand.u32 4294901760, %v17501_v15  ;;  %v6387_v15 = vld [vmem:[#allocation7 + $0x210] sm:$0xff] }
 0x565   :  { %v20362_v11 = vand.u32 4294901760, %v20361_v16 }
 0x566   :  { %11453 = vmatmul.mubr.f32.gmra.mrb[18].mxu0 %v20340_v6  ;;  %v13121_v35 = vpack.c.bf16 %v20351_v33, %v20349_v34  ;;  %v20356_v6 = vld [vmem:[#allocation31_spill] sm:$0xff]  ;;  %v20368_v34 = vand.u32 4294901760, %v17504_v32 }
 0x567   :  { %11455 = vmatprep.mubr.f32.mxu0 %v20341_v40  ;;  %13112 = vmatpush3.bf16.msra.mxu0 %v13109_v53  ;;  %v20352_v53 = vand.u32 4294901760, %v17366_v5  ;;  %v20357_v21 = vand.u32 4294901760, %v20356_v6  ;;  %v20359_v5 = vld [vmem:[#allocation22_spill] sm:$0xff]  ;;  %v17714_v32 = vld [vmem:[#allocation7 + $0x238] sm:$0xff] }
 0x568   :  { %13114 = vmatprep.subr.bf16.mxu0 %v13113_v38  ;;  %v20360_v62 = vand.u32 4294901760, %v20359_v5  ;;  %v17712_v6 = vld [vmem:[#allocation7 + $0x230] sm:$0xff] }
 0x569   :  { %v13125_v40 = vpack.c.bf16 %v20357_v21, %v20355_v45  ;;  %v17710_v45 = vld [vmem:[#allocation7 + $0x228] sm:$0xff] }
 0x56a   :  { %11456 = vmatmul.mubr.f32.gmra.mrb[20].mxu0 %v20346_v24  ;;  %v13129_v52 = vpack.c.bf16 %v20362_v11, %v20360_v62  ;;  %v20364_v24 = vld [vmem:[#allocation25_spill] sm:$0xff]  ;;  %v6413_v62 = vand.u32 4294901760, %v6387_v15 }
 0x56b   :  { %11458 = vmatprep.mubr.f32.mxu0 %v20347_v10  ;;  %13116 = vmatpush3.bf16.msra.mxu0 %v13113_v38  ;;  %v20358_v38 = vand.u32 4294901760, %v17440_v43  ;;  %v6386_v43 = vld [vmem:[#allocation7 + $0x208] sm:$0xff]  ;;  %v20365_v13 = vand.u32 4294901760, %v20364_v24 }
 0x56c   :  { %13118 = vmatprep.subr.bf16.mxu0 %v13117_v59  ;;  %v6410_v33 = vand.u32 4294901760, %v6386_v43 }
 0x56e   :  { %11459 = vmatmul.mubr.f32.gmra.mrb[22].mxu0 %v20352_v53  ;;  %v17706_v53 = vld [vmem:[#allocation7 + $0x220] sm:$0xff]  ;;  %v17744_v24 = vsub.f32 %v6386_v43, %v6410_v33 }
 0x56f   :  { %11461 = vmatprep.mubr.f32.mxu0 %v20353_v27  ;;  %13120 = vmatpush3.bf16.msra.mxu0 %v13117_v59  ;;  %v6385_v59 = vld [vmem:[#allocation7 + $0x200] sm:$0xff] }
 0x570   :  { %13122 = vmatprep.subr.bf16.mxu0 %v13121_v35  ;;  %v6407_v56 = vand.u32 4294901760, %v6385_v59  ;;  %20372 = vst [vmem:[#allocation38_spill] sm:$0xff] %v17744_v24 }
 0x572   :  { %11462 = vmatmul.mubr.f32.gmra.mrb[24].mxu0 %v20358_v38  ;;  %v20370_v38 = vand.u32 4294901760, %v17537_v61  ;;  %v17724_v5 = vpack.c.bf16 %v6410_v33, %v6407_v56 }
 0x573   :  { %11464 = vmatprep.mubr.f32.mxu0 %v3457_v14  ;;  %13124 = vmatpush3.bf16.msra.mxu0 %v13121_v35  ;;  %v20366_v14 = vld [vmem:[#allocation17_spill] sm:$0xff]  ;;  %v6388_v35 = vld [vmem:[#allocation7 + $0x218] sm:$0xff] }
 0x574   :  { %13126 = vmatprep.subr.bf16.mxu0 %v13125_v40  ;;  %v20367_v10 = vand.u32 4294901760, %v20366_v14  ;;  %v6416_v16 = vand.u32 4294901760, %v6388_v35 }
 0x576   :  { %11465 = vmatmul.mubr.f32.gmra.mrb[26].mxu0 %v3467_v8  ;;  %v13133_v46 = vpack.c.bf16 %v20367_v10, %v20365_v13  ;;  %v17742_v13 = vsub.f32 %v6385_v59, %v6407_v56  ;;  %v17747_v63 = vpack.c.bf16 %v6416_v16, %v6413_v62  ;;  %v17782_v59 = vld [vmem:[#allocation7 + $0x278] sm:$0xff] }
 0x577   :  { %11467 = vmatprep.mubr.f32.mxu0 %v20363_v48  ;;  %13128 = vmatpush3.bf16.msra.mxu0 %v13125_v40  ;;  %v17720_v40 = vld [vmem:[#allocation7 + $0x248] sm:$0xff]  ;;  %v6422_v48 = vand.u32 4294901760, %v17710_v45  ;;  %20381 = vst [vmem:[#allocation27_spill] sm:$0xff] %v17782_v59 }
 0x578   :  { %13130 = vmatprep.subr.bf16.mxu0 %v13129_v52  ;;  %20371 = vst [vmem:[#allocation21_spill] sm:$0xff] %v17742_v13 }
 0x57a   :  { %11468 = vmatmul.mubr.f32.gmra.mrb[28].mxu0 %v20368_v34  ;;  %v17751_v34 = vsub.f32 %v6388_v35, %v6416_v16  ;;  %v20376_v35 = vand.u32 4294901760, %v17714_v32  ;;  %v20378_v16 = vand.u32 4294901760, %v17720_v40 }
 0x57b   :  { %11470 = vmatprep.mubr.f32.mxu0 %v20369_v20  ;;  %13132 = vmatpush3.bf16.msra.mxu0 %v13129_v52  ;;  %v6121_v8 = vpop.xlane.xlu1 %6120  ;;  %v6419_v52 = vand.u32 4294901760, %v17706_v53  ;;  %v17736_v20 = vld [vmem:[#allocation7 + $0x250] sm:$0xff] }
 0x57c   :  { %v17708_v27 = vmul.f32 0.015625, %v6121_v8  ;;  %v6119_v50 = vpop.xlane.xlu0 %6118  ;;  %13134 = vmatprep.subr.bf16.mxu0 %v13133_v46  ;;  %v17738_v8 = vld [vmem:[#allocation7 + $0x258] sm:$0xff]  ;;  %20374 = vst [vmem:[#allocation41_spill] sm:$0xff] %v17751_v34 }
 0x57d   :  { %v17716_v21 = vmul.f32 0.015625, %v6119_v50  ;;  %v17790_v29 = vsub.f32 %v17706_v53, %v6419_v52 }
 0x57e   :  { %11471 = vmatmul.mubr.f32.gmra.mrb[30].mxu0 %v20370_v38  ;;  %v6231_v61 = vmul.f32 %v17708_v27, %v17708_v27 }
 0x57f   :  { %13136 = vmatpush3.bf16.msra.mxu0 %v13133_v46  ;;  %11505 = vmatprep.mubr.f32.mxu0 %v17211_v49  ;;  %v6169_v11 = vpop.xlane.xlu1 %6168  ;;  %v6230_v50 = vmul.f32 %v17716_v21, %v17716_v21  ;;  %v17749_v46 = vsub.f32 %v6387_v15, %v6413_v62  ;;  %v20375_v15 = vand.u32 4294901760, %v17712_v6  ;;  %20382 = vst [vmem:[#allocation28_spill] sm:$0xff] %v17790_v29 }
 0x580   :  { %v6215_v14 = vmul.f32 0.015625, %v6169_v11  ;;  %v6167_v10 = vpop.xlane.xlu0 %6166  ;;  %13138 = vmatprep.subr.bf16.mxu0 %v16815_v3 }
 0x581   :  { %v6214_v38 = vmul.f32 0.015625, %v6167_v10  ;;  %20373 = vst [vmem:[#allocation32_spill] sm:$0xff] %v17749_v46  ;;  %v17755_v10 = vpack.c.bf16 %v6422_v48, %v6419_v52  ;;  %v17766_v62 = vpack.c.bf16 %v20376_v35, %v20375_v15  ;;  %v20384_v35 = vand.u32 4294901760, %v17742_v13 }
 0x582   :  { %v6247_v11 = vsub.f32 %v6215_v14, %v6231_v61  ;;  %11506 = vmatmul.mubr.f32.vlgmr.msra.gmra.mrb[16].mxu0 %v17209_v42  ;;  %v20386_v53 = vand.u32 4294901760, %v17749_v46 }
 0x583   :  { %v6246_v31 = vsub.f32 %v6214_v38, %v6230_v50  ;;  %11508 = vmatprep.mubr.f32.mxu0 %v17248_v37  ;;  %13140 = vmatpush3.bf16.msra.mxu0 %v16815_v3  ;;  %v6125_v23 = vpop.xlane.xlu1 %6124  ;;  %v20377_v3 = vand.u32 4294901760, %v17718_v47  ;;  %v17774_v50 = vld [vmem:[#allocation7 + $0x260] sm:$0xff]  ;;  %v17776_v38 = vld [vmem:[#allocation7 + $0x268] sm:$0xff] }
 0x584   :  { %v6279_v56 = vadd.f32 1e-05, %v6247_v11  ;;  %v17759_v33 = vmul.f32 0.015625, %v6125_v23  ;;  %v6123_v61 = vpop.xlane.xlu0 %6122  ;;  %13142 = vmatprep.subr.bf16.mxu0 %v20316_v22  ;;  %v17778_v23 = vld [vmem:[#allocation7 + $0x270] sm:$0xff]  ;;  %v17820_v52 = vsub.f32 %v17749_v46, %v20386_v53  ;;  %v20389_v53 = vand.u32 4294901760, %v17714_v32 }
 0x585   :  { %v17772_v14 = vpack.c.bf16 %v20378_v16, %v20377_v3  ;;  %20380 = vst [vmem:[#allocation24_spill] sm:$0xff] %v17778_v23  ;;  %v6278_v11 = vadd.f32 1e-05, %v6246_v31  ;;  %v17780_v43 = vmul.f32 0.015625, %v6123_v61 }
 0x586   :  { %14392 = vrsqrt.f32 %v6279_v56  ;;  %11509 = vmatmul.mubr.f32.gmra.mrb[18].mxu0 %v17243_v4  ;;  %v17797_v56 = vsub.f32 %v17710_v45, %v6422_v48  ;;  %v6233_v3 = vmul.f32 %v17759_v33, %v17759_v33  ;;  %v17809_v45 = vsub.f32 %v17742_v13, %v20384_v35 }
 0x587   :  { %20379 = vst [vmem:[#allocation33_spill] sm:$0xff] %v17772_v14  ;;  %14394 = vrsqrt.f32 %v6278_v11  ;;  %11511 = vmatprep.mubr.f32.mxu0 %v17296_v26  ;;  %13144 = vmatpush3.bf16.msra.mxu0 %v20316_v22  ;;  %v6173_v31 = vpop.xlane.xlu1 %6172  ;;  %v6232_v22 = vmul.f32 %v17780_v43, %v17780_v43  ;;  %v20385_v48 = vand.u32 4294901760, %v17744_v24  ;;  %v17837_v46 = vsub.f32 %v17714_v32, %v20389_v53 }
 0x588   :  { %20383 = vst [vmem:[#allocation34_spill] sm:$0xff] %v17797_v56  ;;  %v6217_v16 = vmul.f32 0.015625, %v6173_v31  ;;  %v6171_v15 = vpop.xlane.xlu0 %6170  ;;  %13146 = vmatprep.subr.bf16.mxu0 %v20318_v2  ;;  %v20393_v35 = vand.u32 4294901760, %v17774_v50  ;;  %v20396_v32 = vand.u32 4294901760, %v17778_v23  ;;  %v6652_v14 = vand.u32 4294901760, %v17809_v45 }
 0x589   :  { %v6216_v11 = vmul.f32 0.015625, %v6171_v15  ;;  %v17814_v31 = vsub.f32 %v17744_v24, %v20385_v48  ;;  %v20387_v15 = vand.u32 4294901760, %v17751_v34 }
 0x58a   :  { %v6249_v61 = vsub.f32 %v6217_v16, %v6233_v3  ;;  %11512 = vmatmul.mubr.f32.gmra.mrb[20].mxu0 %v17282_v17  ;;  %v20388_v16 = vand.u32 4294901760, %v17712_v6 }
 0x58b   :  { %v6672_v54 = vsub.f32 %v17751_v34, %v20387_v15  ;;  %v6248_v13 = vsub.f32 %v6216_v11, %v6232_v22  ;;  %11514 = vmatprep.mubr.f32.mxu0 %v17363_v55  ;;  %13148 = vmatpush3.bf16.msra.mxu0 %v20318_v2  ;;  %v6129_v48 = vpop.xlane.xlu1 %6128  ;;  %v20390_v2 = vand.u32 4294901760, %v17736_v20  ;;  %v20391_v11 = vand.u32 4294901760, %v17738_v8 }
 0x58c   :  { %v17832_v24 = vsub.f32 %v17712_v6, %v20388_v16  ;;  %v17839_v15 = vmul.f32 0.015625, %v6129_v48  ;;  %v6127_v22 = vpop.xlane.xlu0 %6126  ;;  %13150 = vmatprep.subr.bf16.mxu0 %v20320_v9  ;;  %v20394_v6 = vand.u32 4294901760, %v17776_v38  ;;  %v20397_v48 = vand.u32 4294901760, %v17782_v59 }
 0x58d   :  { %v17846_v3 = vpack.c.bf16 %v20391_v11, %v20390_v2  ;;  %v6281_v34 = vadd.f32 1e-05, %v6249_v61  ;;  %v17860_v51 = vmul.f32 0.015625, %v6127_v22  ;;  %v6659_v2 = vand.u32 4294901760, %v17814_v31 }
 0x58e   :  { %v17852_v16 = vpack.c.bf16 %v20394_v6, %v20393_v35  ;;  %v17858_v53 = vpack.c.bf16 %v20397_v48, %v20396_v32  ;;  %v6280_v11 = vadd.f32 1e-05, %v6248_v13  ;;  %11515 = vmatmul.mubr.f32.gmra.mrb[22].mxu0 %v17353_v41  ;;  %v6673_v35 = vand.u32 4294901760, %v6672_v54  ;;  %v20400_v32 = vld [vmem:[#allocation39_spill] sm:$0xff]  ;;  %v20402_v48 = vld [vmem:[#allocation40_spill] sm:$0xff] }
 0x58f   :  { %20392 = vst [vmem:[#allocation35_spill] sm:$0xff] %v17846_v3  ;;  %v6666_v3 = vand.u32 4294901760, %v17820_v52  ;;  %v20399_v6 = vand.u32 4294901760, %v17790_v29  ;;  %v6263_v61 = vsub.f32 %v20400_v32, %v17708_v27  ;;  %11517 = vmatprep.mubr.f32.mxu0 %v17422_v0  ;;  %13152 = vmatpush3.bf16.msra.mxu0 %v20320_v9  ;;  %v6177_v45 = vpop.xlane.xlu1 %6176  ;;  %v20401_v13 = vand.u32 4294901760, %v17797_v56 }
 0x590   :  { %20395 = vst [vmem:[#allocation36_spill] sm:$0xff] %v17852_v16  ;;  %20398 = vst [vmem:[#allocation37_spill] sm:$0xff] %v17858_v53  ;;  %v14393_v22 = vpop.eup %14392  ;;  %v6235_v27 = vmul.f32 %v17839_v15, %v17839_v15  ;;  %v6219_v9 = vmul.f32 0.015625, %v6177_v45  ;;  %v6175_v32 = vpop.xlane.xlu0 %6174  ;;  %13154 = vmatprep.subr.bf16.mxu0 %v20321_v44  ;;  %14396 = vrsqrt.f32 %v6281_v34  ;;  %v20405_v53 = vand.u32 4294901760, %v17720_v40 }
 0x591   :  { %v17869_v23 = vsub.f32 %v17790_v29, %v20399_v6  ;;  %v17878_v31 = vsub.f32 %v17797_v56, %v20401_v13  ;;  %v6262_v6 = vsub.f32 %v20402_v48, %v17716_v21  ;;  %v17884_v29 = vld [vmem:[#allocation8 + $0xc] ss:$0 sm:$0xff]  ;;  %v20403_v13 = vand.u32 4294901760, %v17718_v47  ;;  %v14395_v54 = vpop.eup %14394 }
 0x592   :  { %v6311_v52 = vmul.f32 %v14393_v22, %v6263_v61  ;;  %v6234_v21 = vmul.f32 %v17860_v51, %v17860_v51  ;;  %v6218_v48 = vmul.f32 0.015625, %v6175_v32  ;;  %14398 = vrsqrt.f32 %v6280_v11  ;;  %11518 = vmatmul.mubr.f32.gmra.mrb[24].mxu0 %v17424_v58 }
 0x593   :  { %v17892_v56 = vsub.f32 %v17718_v47, %v20403_v13  ;;  %v6251_v59 = vsub.f32 %v6219_v9, %v6235_v27  ;;  %v6310_v45 = vmul.f32 %v14395_v54, %v6262_v6  ;;  %v17900_v16 = vsub.f32 %v17720_v40, %v20405_v53  ;;  %11520 = vmatprep.mubr.f32.mxu0 %v17446_v39  ;;  %v6133_v34 = vpop.xlane.xlu1 %6132  ;;  %v17912_v53 = vld [vmem:[#allocation8 + $0xd] ss:$0 sm:$0xff] }
 0x594   :  { %v6332_v47 = vmul.f32 %v17884_v29, %v6311_v52  ;;  %v6250_v13 = vsub.f32 %v6218_v48, %v6234_v21  ;;  %13156 = vmatpush3.bf16.msra.mxu0 %v20321_v44  ;;  %v20407_v61 = vand.u32 4294901760, %v17832_v24  ;;  %v17908_v22 = vmul.f32 0.015625, %v6133_v34  ;;  %v6131_v54 = vpop.xlane.xlu0 %6130 }
 0x595   :  { %20404 = vst [vmem:[#allocation18_spill] sm:$0xff] %v17892_v56  ;;  %20406 = vst [vmem:[#allocation16_spill] sm:$0xff] %v17900_v16  ;;  %13158 = vmatprep.subr.bf16.mxu0 %v20322_v18  ;;  %v6331_v40 = vmul.f32 %v17884_v29, %v6310_v45  ;;  %v17914_v52 = vpack.c.bf16 %v6659_v2, %v6652_v14  ;;  %v17916_v6 = vpack.c.bf16 %v6673_v35, %v6666_v3 }
 0x596   :  { %v6693_v11 = vsub.f32 %v17832_v24, %v20407_v61  ;;  %v6283_v27 = vadd.f32 1e-05, %v6251_v59  ;;  %v6282_v44 = vadd.f32 1e-05, %v6250_v13  ;;  %v17918_v9 = vmul.f32 0.015625, %v6131_v54  ;;  %11521 = vmatmul.mubr.f32.gmra.mrb[26].mxu0 %v17457_v19 }
 0x597   :  { %v20408_v32 = vand.u32 4294901760, %v17837_v46  ;;  %v6680_v48 = vand.u32 4294901760, %v17869_v23  ;;  %v6687_v45 = vand.u32 4294901760, %v17878_v31  ;;  %v19943_v34 = vand.u32 4294901760, %v17892_v56  ;;  %11523 = vmatprep.mubr.f32.mxu0 %v17486_v25  ;;  %v6181_v59 = vpop.xlane.xlu1 %6180 }
 0x598   :  { %v19946_v14 = vand.u32 4294901760, %v17900_v16  ;;  %13160 = vmatpush3.bf16.msra.mxu0 %v20322_v18  ;;  %v17931_v3 = vadd.f32 %v17912_v53, %v6332_v47  ;;  %v6694_v2 = vand.u32 4294901760, %v6693_v11  ;;  %v20409_v35 = vand.u32 4294901760, %v17736_v20  ;;  %v6179_v54 = vpop.xlane.xlu0 %6178 }
 0x599   :  { %v6700_v21 = vsub.f32 %v17837_v46, %v20408_v32  ;;  %v20410_v23 = vand.u32 4294901760, %v17738_v8  ;;  %14400 = vrsqrt.f32 %v6282_v44  ;;  %v6237_v61 = vmul.f32 %v17908_v22, %v17908_v22  ;;  %13162 = vmatprep.subr.bf16.mxu0 %v20323_v60 }
 0x59a   :  { %v17936_v13 = vsub.f32 %v17736_v20, %v20409_v35  ;;  %v6221_v18 = vmul.f32 0.015625, %v6181_v59  ;;  %v17947_v47 = vadd.f32 %v17912_v53, %v6331_v40  ;;  %14402 = vrsqrt.f32 %v6283_v27  ;;  %11524 = vmatmul.mubr.f32.gmra.mrb[28].mxu0 %v17488_v57  ;;  %v14397_v59 = vpop.eup %14396 }
 0x59b   :  { %v17941_v31 = vsub.f32 %v17738_v8, %v20410_v23  ;;  %v6236_v20 = vmul.f32 %v17918_v9, %v17918_v9  ;;  %v6220_v11 = vmul.f32 0.015625, %v6179_v54  ;;  %v6701_v32 = vand.u32 4294901760, %v6700_v21  ;;  %11526 = vmatprep.mubr.f32.mxu0 %v17521_v28  ;;  %v6137_v21 = vpop.xlane.xlu1 %6136 }
 0x59c   :  { %v6253_v35 = vsub.f32 %v6221_v18, %v6237_v61  ;;  %v17952_v8 = vpack.c.bf16 %v6687_v45, %v6680_v48  ;;  %v6707_v44 = vsub.f32 %v17892_v56, %v19943_v34  ;;  %v6714_v40 = vsub.f32 %v17900_v16, %v19946_v14  ;;  %13164 = vmatpush3.bf16.msra.mxu0 %v20323_v60  ;;  %v14399_v61 = vpop.eup %14398  ;;  %v20412_v18 = vld [vmem:[#allocation42_spill] sm:$0xff]  ;;  %v6135_v14 = vpop.xlane.xlu0 %6134  ;;  %v20413_v60 = vld [vmem:[#allocation43_spill] sm:$0xff] }
 0x59d   :  { %20411 = vst [vmem:[#allocation26_spill] sm:$0xff] %v17941_v31  ;;  %v6252_v27 = vsub.f32 %v6220_v11, %v6236_v20  ;;  %v6369_v23 = vmax.f32 %v17931_v3, 0.0  ;;  %v19949_v45 = vand.u32 4294901760, %v17941_v31  ;;  %v6265_v54 = vsub.f32 %v20412_v18, %v17759_v33  ;;  %13166 = vmatprep.subr.bf16.mxu0 %v20324_v7 }
 0x59e   :  { %v6285_v34 = vadd.f32 1e-05, %v6253_v35  ;;  %v17967_v56 = vmul.f32 0.015625, %v6137_v21  ;;  %v6368_v20 = vmax.f32 %v17947_v47, 0.0  ;;  %v6264_v11 = vsub.f32 %v20413_v60, %v17780_v43  ;;  %11527 = vmatmul.mubr.f32.gmra.mrb[30].mxu0 %v17523_v36 }
 0x59f   :  { %v6284_v3 = vadd.f32 1e-05, %v6252_v27  ;;  %v17973_v16 = vmul.f32 0.015625, %v6135_v14  ;;  %v17975_v48 = vpack.c.bf16 %v6701_v32, %v6694_v2  ;;  %v6313_v33 = vmul.f32 %v14397_v59, %v6265_v54  ;;  %11561 = vmatprep.mubr.f32.mxu0 %v17211_v49  ;;  %v6185_v47 = vpop.xlane.xlu1 %6184 }
 0x5a0   :  { %14404 = vrsqrt.f32 %v6285_v34  ;;  %v6708_v35 = vand.u32 4294901760, %v6707_v44  ;;  %v6715_v21 = vand.u32 4294901760, %v6714_v40  ;;  %13168 = vmatpush3.bf16.msra.mxu0 %v20324_v7  ;;  %v17980_v18 = vand.u32 4294901760, %v6369_v23  ;;  %v6183_v44 = vpop.xlane.xlu0 %6182 }
 0x5a1   :  { %14406 = vrsqrt.f32 %v6284_v3  ;;  %v6312_v43 = vmul.f32 %v14399_v61, %v6264_v11  ;;  %v20414_v14 = vand.u32 4294901760, %v17936_v13  ;;  %v6239_v34 = vmul.f32 %v17967_v56, %v17967_v56  ;;  %13362 = vmatprep.subr.bf16.mxu0 %v17724_v5 }
 0x5a2   :  { %v6223_v32 = vmul.f32 0.015625, %v6185_v47  ;;  %v17990_v40 = vand.u32 4294901760, %v6368_v20  ;;  %v17995_v49 = vsub.f32 %v17941_v31, %v19949_v45  ;;  %v6238_v7 = vmul.f32 %v17973_v16, %v17973_v16 }
 0x5a3   :  { %v17985_v2 = vsub.f32 %v17936_v13, %v20414_v14  ;;  %v6222_v59 = vmul.f32 0.015625, %v6183_v44  ;;  %v20415_v27 = vand.u32 4294901760, %v17774_v50  ;;  %v20416_v54 = vand.u32 4294901760, %v17776_v38  ;;  %v14401_v11 = vpop.eup %14400  ;;  %11562 = vmatmul.mubr.f32.vlgmr.msra.gmra.mrb[16].mxu0 %v17209_v42 }
 0x5a4   :  { %v6266_v3 = vsub.f32 %v17385_v1, %v17860_v51  ;;  %v6255_v47 = vsub.f32 %v6223_v32, %v6239_v34  ;;  %v6334_v14 = vmul.f32 %v17884_v29, %v6313_v33  ;;  %v18013_v44 = vpack.c.bf16 %v6715_v21, %v6708_v35  ;;  %v14403_v45 = vpop.eup %14402  ;;  %11564 = vmatprep.mubr.f32.mxu0 %v17248_v37  ;;  %v20417_v1 = vld [vmem:[#allocation44_spill] sm:$0xff]  ;;  %v6139_v33 = vpop.xlane.xlu0 %6138 }
 0x5a5   :  { %v18002_v61 = vsub.f32 %v17774_v50, %v20415_v27  ;;  %v18007_v60 = vsub.f32 %v17776_v38, %v20416_v54  ;;  %v6254_v31 = vsub.f32 %v6222_v59, %v6238_v7  ;;  %13364 = vmatpush3.bf16.msra.mxu0 %v17724_v5  ;;  %v6141_v50 = vpop.xlane.xlu1 %6140  ;;  %v18018_v38 = vsub.f32 %v6369_v23, %v17980_v18 }
 0x5a6   :  { %v6333_v27 = vmul.f32 %v17884_v29, %v6312_v43  ;;  %v6267_v51 = vsub.f32 %v20417_v1, %v17839_v15  ;;  %v6287_v42 = vadd.f32 1e-05, %v6255_v47  ;;  %v18023_v34 = vmul.f32 0.015625, %v6141_v50  ;;  %13366 = vmatprep.subr.bf16.mxu0 %v17747_v63  ;;  %v20419_v1 = vld [vmem:[#allocation45_spill] sm:$0xff] }
 0x5a7   :  { %v18027_v35 = vsub.f32 %v6368_v20, %v17990_v40  ;;  %v6286_v37 = vadd.f32 1e-05, %v6254_v31  ;;  %v18029_v21 = vmul.f32 0.015625, %v6139_v33  ;;  %v6314_v32 = vmul.f32 %v14401_v11, %v6266_v3  ;;  %11565 = vmatmul.mubr.f32.gmra.mrb[18].mxu0 %v17243_v4  ;;  %v20418_v11 = vld [vmem:[#allocation46_spill] sm:$0xff] }
 0x5a8   :  { %14408 = vrsqrt.f32 %v6287_v42  ;;  %v18034_v15 = vadd.f32 %v17912_v53, %v6334_v14  ;;  %v6315_v43 = vmul.f32 %v14403_v45, %v6267_v51  ;;  %11567 = vmatprep.mubr.f32.mxu0 %v17296_v26  ;;  %v19952_v20 = vand.u32 4294901760, %v18018_v38  ;;  %v6187_v14 = vpop.xlane.xlu0 %6186 }
 0x5a9   :  { %14410 = vrsqrt.f32 %v6286_v37  ;;  %13368 = vmatpush3.bf16.msra.mxu0 %v17747_v63  ;;  %v6189_v31 = vpop.xlane.xlu1 %6188  ;;  %v18041_v59 = vadd.f32 %v17912_v53, %v6333_v27  ;;  %v6268_v3 = vsub.f32 %v20418_v11, %v17918_v9  ;;  %v6241_v45 = vmul.f32 %v18023_v34, %v18023_v34 }
 0x5aa   :  { %v14405_v4 = vpop.eup %14404  ;;  %v6225_v47 = vmul.f32 0.015625, %v6189_v31  ;;  %13370 = vmatprep.subr.bf16.mxu0 %v17755_v10  ;;  %v19953_v26 = vand.u32 4294901760, %v18027_v35  ;;  %v6269_v27 = vsub.f32 %v20419_v1, %v17908_v22  ;;  %v6240_v51 = vmul.f32 %v18029_v21, %v18029_v21 }
 0x5ab   :  { %v14407_v50 = vpop.eup %14406  ;;  %v6224_v42 = vmul.f32 0.015625, %v6187_v14  ;;  %v6335_v33 = vmul.f32 %v17884_v29, %v6314_v32  ;;  %11568 = vmatmul.mubr.f32.gmra.mrb[20].mxu0 %v17282_v17  ;;  %v6371_v31 = vmax.f32 %v18034_v15, 0.0  ;;  %v6336_v11 = vmul.f32 %v17884_v29, %v6315_v43 }
 0x5ac   :  { %v6316_v9 = vmul.f32 %v14407_v50, %v6268_v3  ;;  %v6257_v37 = vsub.f32 %v6225_v47, %v6241_v45  ;;  %v6317_v7 = vmul.f32 %v14405_v4, %v6269_v27  ;;  %11570 = vmatprep.mubr.f32.mxu0 %v17363_v55  ;;  %v18063_v14 = vsub.f32 %v18018_v38, %v19952_v20  ;;  %v6143_v43 = vpop.xlane.xlu0 %6142 }
 0x5ad   :  { %v6256_v23 = vsub.f32 %v6224_v42, %v6240_v51  ;;  %13372 = vmatpush3.bf16.msra.mxu0 %v17755_v10  ;;  %v6145_v22 = vpop.xlane.xlu1 %6144  ;;  %v6370_v32 = vmax.f32 %v18041_v59, 0.0  ;;  %v6271_v17 = vsub.f32 %v17470_v30, %v17967_v56  ;;  %v18074_v55 = vsub.f32 %v18027_v35, %v19953_v26 }
 0x5ae   :  { %v6289_v15 = vadd.f32 1e-05, %v6257_v37  ;;  %v18068_v3 = vmul.f32 0.015625, %v6145_v22  ;;  %13374 = vmatprep.subr.bf16.mxu0 %v17766_v62  ;;  %v18076_v45 = vmul.f32 0.015625, %v6143_v43  ;;  %v18079_v47 = vadd.f32 %v17912_v53, %v6335_v33  ;;  %v20420_v33 = vld [vmem:[#allocation33_spill] sm:$0xff] }
 0x5af   :  { %v6288_v4 = vadd.f32 1e-05, %v6256_v23  ;;  %v6337_v59 = vmul.f32 %v17884_v29, %v6316_v9  ;;  %v6270_v30 = vsub.f32 %v17493_v12, %v17973_v16  ;;  %11571 = vmatmul.mubr.f32.gmra.mrb[22].mxu0 %v17353_v41  ;;  %v18085_v56 = vand.u32 4294901760, %v6371_v31 }
 0x5b0   :  { %14412 = vrsqrt.f32 %v6289_v15  ;;  %v18088_v50 = vadd.f32 %v17912_v53, %v6336_v11  ;;  %11573 = vmatprep.mubr.f32.mxu0 %v17422_v0  ;;  %v18093_v27 = vand.u32 4294901760, %v6370_v32  ;;  %v6338_v12 = vmul.f32 %v17884_v29, %v6317_v7  ;;  %v6191_v42 = vpop.xlane.xlu0 %6190 }
 0x5b1   :  { %14414 = vrsqrt.f32 %v6288_v4  ;;  %13376 = vmatpush3.bf16.msra.mxu0 %v17766_v62  ;;  %v6193_v23 = vpop.xlane.xlu1 %6192  ;;  %v6243_v41 = vmul.f32 %v18068_v3, %v18068_v3  ;;  %v18101_v0 = vadd.f32 %v17912_v53, %v6337_v59  ;;  %v6242_v22 = vmul.f32 %v18076_v45, %v18076_v45 }
 0x5b2   :  { %v14409_v16 = vpop.eup %14408  ;;  %v6227_v51 = vmul.f32 0.015625, %v6193_v23  ;;  %13378 = vmatprep.subr.bf16.mxu0 %v20420_v33  ;;  %v6226_v15 = vmul.f32 0.015625, %v6191_v42  ;;  %v6372_v7 = vmax.f32 %v18079_v47, 0.0  ;;  %v18108_v23 = vsub.f32 %v6371_v31, %v18085_v56 }
 0x5b3   :  { %v14411_v37 = vpop.eup %14410  ;;  %v6319_v11 = vmul.f32 %v14409_v16, %v6271_v17  ;;  %11574 = vmatmul.mubr.f32.gmra.mrb[24].mxu0 %v17424_v58  ;;  %v6373_v20 = vmax.f32 %v18088_v50, 0.0  ;;  %v18114_v59 = vsub.f32 %v6370_v32, %v18093_v27  ;;  %v6374_v47 = vmax.f32 %v18101_v0, 0.0  ;;  %v20421_v58 = vld [vmem:[#allocation47_spill] sm:$0xff] }
 0x5b4   :  { %v6318_v43 = vmul.f32 %v14411_v37, %v6270_v30  ;;  %v6259_v4 = vsub.f32 %v6227_v51, %v6243_v41  ;;  %v6258_v26 = vsub.f32 %v6226_v15, %v6242_v22  ;;  %11576 = vmatprep.mubr.f32.mxu0 %v17446_v39  ;;  %v18118_v30 = vadd.f32 %v17912_v53, %v6338_v12  ;;  %v6147_v50 = vpop.xlane.xlu0 %6146  ;;  %v20422_v51 = vld [vmem:[#allocation35_spill] sm:$0xff]  ;;  %v20423_v12 = vld [vmem:[#allocation48_spill] sm:$0xff] }
 0x5b5   :  { %13380 = vmatpush3.bf16.msra.mxu0 %v20420_v33  ;;  %v6149_v17 = vpop.xlane.xlu1 %6148  ;;  %v6273_v31 = vsub.f32 %v20421_v58, %v18023_v34  ;;  %v6340_v39 = vmul.f32 %v17884_v29, %v6319_v11  ;;  %v18126_v37 = vmul.f32 0.015625, %v6147_v50  ;;  %v18128_v32 = vand.u32 4294901760, %v6372_v7 }
 0x5b6   :  { %v6291_v16 = vadd.f32 1e-05, %v6259_v4  ;;  %v18122_v41 = vmul.f32 0.015625, %v6149_v17  ;;  %13382 = vmatprep.subr.bf16.mxu0 %v20422_v51  ;;  %v6290_v42 = vadd.f32 1e-05, %v6258_v26  ;;  %v6339_v0 = vmul.f32 %v17884_v29, %v6318_v43 }
 0x5b7   :  { %v6272_v22 = vsub.f32 %v20423_v12, %v18029_v21  ;;  %11577 = vmatmul.mubr.f32.gmra.mrb[26].mxu0 %v17457_v19  ;;  %v18135_v15 = vand.u32 4294901760, %v6373_v20  ;;  %v18140_v4 = vand.u32 4294901760, %v6374_v47  ;;  %v6375_v43 = vmax.f32 %v18118_v30, 0.0 }
 0x5b8   :  { %14416 = vrsqrt.f32 %v6291_v16  ;;  %11579 = vmatprep.mubr.f32.mxu0 %v17486_v25  ;;  %v6245_v19 = vmul.f32 %v18122_v41, %v18122_v41  ;;  %v6195_v58 = vpop.xlane.xlu0 %6194  ;;  %v20424_v16 = vld [vmem:[#allocation36_spill] sm:$0xff]  ;;  %v6360_v50 = vadd.f32 %v17912_v53, %v6339_v0  ;;  %v6361_v25 = vadd.f32 %v17912_v53, %v6340_v39 }
 0x5b9   :  { %14418 = vrsqrt.f32 %v6290_v42  ;;  %13384 = vmatpush3.bf16.msra.mxu0 %v20422_v51  ;;  %v6197_v26 = vpop.xlane.xlu1 %6196  ;;  %v6244_v54 = vmul.f32 %v18126_v37, %v18126_v37  ;;  %v6228_v1 = vmul.f32 0.015625, %v6195_v58  ;;  %v18151_v30 = vsub.f32 %v6372_v7, %v18128_v32  ;;  %v20425_v58 = vld [vmem:[#allocation37_spill] sm:$0xff] }
 0x5ba   :  { %v14413_v21 = vpop.eup %14412  ;;  %v6229_v17 = vmul.f32 0.015625, %v6197_v26  ;;  %13386 = vmatprep.subr.bf16.mxu0 %v20424_v16  ;;  %v18155_v26 = vsub.f32 %v6373_v20, %v18135_v15  ;;  %v6376_v11 = vmax.f32 %v6360_v50, 0.0  ;;  %v6377_v39 = vmax.f32 %v6361_v25, 0.0 }
 0x5bb   :  { %v14415_v42 = vpop.eup %14414  ;;  %v6321_v12 = vmul.f32 %v14413_v21, %v6273_v31  ;;  %11580 = vmatmul.mubr.f32.gmra.mrb[28].mxu0 %v17488_v57  ;;  %v6260_v0 = vsub.f32 %v6228_v1, %v6244_v54  ;;  %v18159_v31 = vand.u32 4294901760, %v6375_v43  ;;  %v18167_v20 = vsub.f32 %v6374_v47, %v18140_v4 }
 0x5bc   :  { %v6320_v9 = vmul.f32 %v14415_v42, %v6272_v22  ;;  %v6261_v34 = vsub.f32 %v6229_v17, %v6245_v19  ;;  %11582 = vmatprep.mubr.f32.mxu0 %v17521_v28  ;;  %v20426_v22 = vand.u32 4294901760, %v18114_v59  ;;  %v19955_v1 = vand.u32 4294901760, %v18151_v30 }
 0x5bd   :  { %13388 = vmatpush3.bf16.msra.mxu0 %v20424_v16  ;;  %v6342_v21 = vmul.f32 %v17884_v29, %v6321_v12  ;;  %v6292_v28 = vadd.f32 1e-05, %v6260_v0  ;;  %v18171_v19 = vand.u32 4294901760, %v6376_v11  ;;  %v20429_v12 = vand.u32 4294901760, %v18074_v55 }
 0x5be   :  { %v6293_v7 = vadd.f32 1e-05, %v6261_v34  ;;  %13390 = vmatprep.subr.bf16.mxu0 %v20425_v58  ;;  %v6510_v57 = vsub.f32 %v18114_v59, %v20426_v22  ;;  %v6341_v54 = vmul.f32 %v17884_v29, %v6320_v9  ;;  %v20427_v34 = vand.u32 4294901760, %v18108_v23  ;;  %v20428_v9 = vld [vmem:[#allocation49_spill] sm:$0xff] }
 0x5bf   :  { %v6363_v17 = vadd.f32 %v17912_v53, %v6342_v21  ;;  %11583 = vmatmul.mubr.f32.gmra.mrb[30].mxu0 %v17523_v36  ;;  %v6275_v42 = vsub.f32 %v20428_v9, %v18068_v3  ;;  %v18186_v0 = vsub.f32 %v6375_v43, %v18159_v31  ;;  %v18188_v36 = vand.u32 4294901760, %v6377_v39 }
 0x5c0   :  { %14420 = vrsqrt.f32 %v6293_v7  ;;  %v6520_v50 = vsub.f32 %v18108_v23, %v20427_v34  ;;  %v6362_v47 = vadd.f32 %v17912_v53, %v6341_v54  ;;  %11953 = vmatprep.mubr.f32.mxu0 %v20429_v12  ;;  %v20430_v7 = vld [vmem:[#allocation50_spill] sm:$0xff]  ;;  %v19956_v54 = vand.u32 4294901760, %v18167_v20 }
 0x5c1   :  { %14422 = vrsqrt.f32 %v6292_v28  ;;  %13392 = vmatpush3.bf16.msra.mxu0 %v20425_v58  ;;  %v6274_v22 = vsub.f32 %v20430_v7, %v18076_v45  ;;  %v6379_v28 = vmax.f32 %v6363_v17, 0.0  ;;  %v6511_v25 = vand.u32 4294901760, %v6510_v57  ;;  %v20436_v57 = vld [vmem:[#allocation27_spill] sm:$0xff] }
 0x5c2   :  { %v14417_v21 = vpop.eup %14416  ;;  %13394 = vmatprep.subr.bf16.mxu0 %v17914_v52  ;;  %v6378_v3 = vmax.f32 %v6362_v47, 0.0  ;;  %v6530_v55 = vsub.f32 %v18151_v30, %v19955_v1  ;;  %v18198_v43 = vsub.f32 %v6376_v11, %v18171_v19  ;;  %v20431_v58 = vand.u32 4294901760, %v18063_v14  ;;  %v20434_v1 = vld [vmem:[#allocation24_spill] sm:$0xff] }
 0x5c3   :  { %v14419_v34 = vpop.eup %14418  ;;  %v6323_v9 = vmul.f32 %v14417_v21, %v6275_v42  ;;  %v20432_v45 = vand.u32 4294901760, %v18155_v26  ;;  %v18211_v11 = vsub.f32 %v6377_v39, %v18188_v36  ;;  %v20433_v14 = vand.u32 4294901760, %v18002_v61 }
 0x5c4   :  { %v6322_v12 = vmul.f32 %v14419_v34, %v6274_v22  ;;  %11954 = vmatmul.mubr.f32.vlgmr.msra.gmra.mrb[32].mxu0 %v20431_v58  ;;  %v18205_v47 = vand.u32 4294901760, %v6378_v3  ;;  %v6521_v21 = vand.u32 4294901760, %v6520_v50  ;;  %v6531_v39 = vand.u32 4294901760, %v6530_v55 }
 0x5c5   :  { %v6540_v7 = vsub.f32 %v18155_v26, %v20432_v45  ;;  %11956 = vmatprep.mubr.f32.mxu0 %v6511_v25  ;;  %13396 = vmatpush3.bf16.msra.mxu0 %v17914_v52  ;;  %v6344_v42 = vmul.f32 %v17884_v29, %v6323_v9  ;;  %v18217_v58 = vsub.f32 %v18002_v61, %v20433_v14  ;;  %v18223_v52 = vand.u32 4294901760, %v6379_v28 }
 0x5c6   :  { %13398 = vmatprep.subr.bf16.mxu0 %v17916_v6  ;;  %v6550_v25 = vsub.f32 %v18167_v20, %v19956_v54  ;;  %v6343_v22 = vmul.f32 %v17884_v29, %v6322_v12  ;;  %v18228_v9 = vsub.f32 %v6378_v3, %v18205_v47  ;;  %v20435_v17 = vand.u32 4294901760, %v20434_v1  ;;  %v20438_v12 = vld [vmem:[#allocation51_spill] sm:$0xff] }
 0x5c7   :  { %v6365_v45 = vadd.f32 %v17912_v53, %v6344_v42  ;;  %v6541_v50 = vand.u32 4294901760, %v6540_v7  ;;  %v20437_v16 = vand.u32 4294901760, %v20436_v57  ;;  %v6277_v3 = vsub.f32 %v20438_v12, %v18122_v41 }
 0x5c8   :  { %11957 = vmatmul.mubr.f32.gmra.mrb[34].mxu0 %v6521_v21  ;;  %v6364_v14 = vadd.f32 %v17912_v53, %v6343_v22  ;;  %v18235_v54 = vsub.f32 %v20434_v1, %v20435_v17  ;;  %v20439_v7 = vand.u32 4294901760, %v18186_v0  ;;  %v20440_v17 = vld [vmem:[#allocation52_spill] sm:$0xff]  ;;  %v20441_v12 = vand.u32 4294901760, %v18198_v43 }
 0x5c9   :  { %v18240_v55 = vsub.f32 %v20436_v57, %v20437_v16  ;;  %11959 = vmatprep.mubr.f32.mxu0 %v6531_v39  ;;  %13400 = vmatpush3.bf16.msra.mxu0 %v17916_v6  ;;  %v6381_v22 = vmax.f32 %v6365_v45, 0.0  ;;  %v6276_v34 = vsub.f32 %v20440_v17, %v18126_v37  ;;  %v6551_v16 = vand.u32 4294901760, %v6550_v25 }
 0x5ca   :  { %v6560_v42 = vsub.f32 %v18186_v0, %v20439_v7  ;;  %v14421_v1 = vpop.eup %14420  ;;  %13402 = vmatprep.subr.bf16.mxu0 %v17952_v8  ;;  %v18253_v57 = vsub.f32 %v6379_v28, %v18223_v52  ;;  %v6380_v41 = vmax.f32 %v6364_v14, 0.0  ;;  %v6570_v7 = vsub.f32 %v18198_v43, %v20441_v12 }
 0x5cb   :  { %v14423_v39 = vpop.eup %14422  ;;  %v6325_v6 = vmul.f32 %v14421_v1, %v6277_v3  ;;  %v19963_v21 = vand.u32 4294901760, %v18228_v9  ;;  %v18259_v45 = vand.u32 4294901760, %v6381_v22  ;;  %v20442_v25 = vand.u32 4294901760, %v18007_v60 }
 0x5cc   :  { %v6324_v51 = vmul.f32 %v14423_v39, %v6276_v34  ;;  %11960 = vmatmul.mubr.f32.gmra.mrb[36].mxu0 %v6541_v50  ;;  %v18261_v37 = vand.u32 4294901760, %v6380_v41  ;;  %v6561_v3 = vand.u32 4294901760, %v6560_v42  ;;  %v20443_v1 = vand.u32 4294901760, %v18211_v11 }
 0x5cd   :  { %v6742_v28 = vsub.f32 %v18007_v60, %v20442_v25  ;;  %11962 = vmatprep.mubr.f32.mxu0 %v6551_v16  ;;  %13404 = vmatpush3.bf16.msra.mxu0 %v17952_v8  ;;  %v6346_v12 = vmul.f32 %v17884_v29, %v6325_v6  ;;  %v18279_v16 = vsub.f32 %v6381_v22, %v18259_v45  ;;  %v6571_v42 = vand.u32 4294901760, %v6570_v7 }
 0x5ce   :  { %v6580_v17 = vsub.f32 %v18211_v11, %v20443_v1  ;;  %13406 = vmatprep.subr.bf16.mxu0 %v17975_v48  ;;  %v18276_v39 = vsub.f32 %v6380_v41, %v18261_v37  ;;  %v6345_v8 = vmul.f32 %v17884_v29, %v6324_v51  ;;  %v6590_v25 = vsub.f32 %v18228_v9, %v19963_v21 }
 0x5cf   :  { %v6367_v6 = vadd.f32 %v17912_v53, %v6346_v12  ;;  %v20444_v1 = vand.u32 4294901760, %v17985_v2  ;;  %v20445_v50 = vand.u32 4294901760, %v17995_v49  ;;  %v6736_v22 = vand.u32 4294901760, %v18217_v58 }
 0x5d0   :  { %11963 = vmatmul.mubr.f32.gmra.mrb[38].mxu0 %v6561_v3  ;;  %v19962_v41 = vand.u32 4294901760, %v18276_v39  ;;  %v6366_v14 = vadd.f32 %v17912_v53, %v6345_v8  ;;  %v6743_v29 = vand.u32 4294901760, %v6742_v28  ;;  %v20446_v7 = vand.u32 4294901760, %v18235_v54 }
 0x5d1   :  { %v13413_v34 = vpack.c.bf16 %v20445_v50, %v20444_v1  ;;  %11965 = vmatprep.mubr.f32.mxu0 %v6571_v42  ;;  %13408 = vmatpush3.bf16.msra.mxu0 %v17975_v48  ;;  %v6383_v51 = vmax.f32 %v6367_v6, 0.0  ;;  %v20447_v2 = vand.u32 4294901760, %v18240_v55  ;;  %v6581_v12 = vand.u32 4294901760, %v6580_v17 }
 0x5d2   :  { %v6749_v3 = vsub.f32 %v18235_v54, %v20446_v7  ;;  %13410 = vmatprep.subr.bf16.mxu0 %v18013_v44  ;;  %v20448_v58 = vand.u32 4294901760, %v18253_v57  ;;  %v19961_v50 = vand.u32 4294901760, %v18279_v16  ;;  %v6382_v48 = vmax.f32 %v6366_v14, 0.0 }
 0x5d3   :  { %v6756_v49 = vsub.f32 %v18240_v55, %v20447_v2  ;;  %v6591_v28 = vand.u32 4294901760, %v6590_v25  ;;  %v6610_v8 = vsub.f32 %v18276_v39, %v19962_v41  ;;  %v18308_v42 = vand.u32 4294901760, %v6383_v51 }
 0x5d4   :  { %v6600_v53 = vsub.f32 %v18253_v57, %v20448_v58  ;;  %11966 = vmatmul.mubr.f32.gmra.mrb[40].mxu0 %v6581_v12  ;;  %v18310_v6 = vand.u32 4294901760, %v6382_v48  ;;  %v13417_v17 = vpack.c.bf16 %v6743_v29, %v6736_v22  ;;  %v6750_v7 = vand.u32 4294901760, %v6749_v3 }
 0x5d5   :  { %11968 = vmatprep.mubr.f32.mxu0 %v6591_v28  ;;  %13412 = vmatpush3.bf16.msra.mxu0 %v18013_v44  ;;  %v18314_v1 = vsub.f32 %v6383_v51, %v18308_v42  ;;  %v6620_v14 = vsub.f32 %v18279_v16, %v19961_v50  ;;  %v6757_v12 = vand.u32 4294901760, %v6756_v49  ;;  %v6611_v58 = vand.u32 4294901760, %v6610_v8  ;;  %v20450_v8 = vld [vmem:[#allocation38_spill] sm:$0xff] }
 0x5d6   :  { %v6601_v2 = vand.u32 4294901760, %v6600_v53  ;;  %13414 = vmatprep.subr.bf16.mxu0 %v13413_v34  ;;  %v18320_v25 = vsub.f32 %v6382_v48, %v18310_v6  ;;  %v20449_v48 = vld [vmem:[#allocation21_spill] sm:$0xff]  ;;  %v20466_v21 = vand.u32 4294901760, %v18018_v38 }
 0x5d7   :  { %v19959_v28 = vand.u32 4294901760, %v18314_v1  ;;  %v6621_v22 = vand.u32 4294901760, %v6620_v14  ;;  %v13421_v3 = vpack.c.bf16 %v6757_v12, %v6750_v7  ;;  %v20452_v14 = vld [vmem:[#allocation41_spill] sm:$0xff]  ;;  %v20454_v7 = vld [vmem:[#allocation34_spill] sm:$0xff] }
 0x5d8   :  { %11969 = vmatmul.mubr.f32.gmra.mrb[42].mxu0 %v6601_v2  ;;  %v19960_v44 = vand.u32 4294901760, %v18320_v25  ;;  %v20451_v2 = vld [vmem:[#allocation32_spill] sm:$0xff]  ;;  %v20465_v50 = vand.u32 4294901760, %v20452_v14 }
 0x5d9   :  { %11971 = vmatprep.mubr.f32.mxu0 %v6611_v58  ;;  %13416 = vmatpush3.bf16.msra.mxu0 %v13413_v34  ;;  %v6640_v51 = vsub.f32 %v18314_v1, %v19959_v28  ;;  %v13425_v34 = vpack.c.bf16 %v20450_v8, %v20449_v48  ;;  %v13429_v58 = vpack.c.bf16 %v20452_v14, %v20451_v2  ;;  %v20463_v28 = vand.u32 4294901760, %v18027_v35 }
 0x5da   :  { %13418 = vmatprep.subr.bf16.mxu0 %v13417_v17  ;;  %v6630_v29 = vsub.f32 %v18320_v25, %v19960_v44  ;;  %v20464_v44 = vand.u32 4294901760, %v20451_v2  ;;  %v20471_v2 = vand.u32 4294901760, %v18151_v30 }
 0x5db   :  { %v6641_v53 = vand.u32 4294901760, %v6640_v51  ;;  %v20456_v51 = vld [vmem:[#allocation16_spill] sm:$0xff] }
 0x5dc   :  { %11972 = vmatmul.mubr.f32.gmra.mrb[44].mxu0 %v6621_v22  ;;  %v6631_v49 = vand.u32 4294901760, %v6630_v29  ;;  %v13437_v22 = vpack.c.bf16 %v17837_v46, %v17832_v24  ;;  %v20455_v29 = vld [vmem:[#allocation18_spill] sm:$0xff]  ;;  %v13493_v41 = vpack.c.bf16 %v20465_v50, %v20464_v44  ;;  %v20474_v50 = vand.u32 4294901760, %v18155_v26 }
 0x5dd   :  { %13420 = vmatpush3.bf16.msra.mxu0 %v13417_v17  ;;  %v20453_v17 = vld [vmem:[#allocation28_spill] sm:$0xff]  ;;  %v20475_v44 = vand.u32 4294901760, %v18167_v20 }
 0x5de   :  { %11974 = vmatprep.mubr.f32.mxu0 %v6631_v49  ;;  %13422 = vmatprep.subr.bf16.mxu0 %v13421_v3  ;;  %v13433_v12 = vpack.c.bf16 %v20454_v7, %v20453_v17  ;;  %v20457_v49 = vld [vmem:[#allocation26_spill] sm:$0xff] }
 0x5e0   :  { %11975 = vmatmul.mubr.f32.gmra.mrb[46].mxu0 %v6641_v53  ;;  %v13445_v53 = vpack.c.bf16 %v20457_v49, %v17936_v13 }
 0x5e1   :  { %13424 = vmatpush3.bf16.msra.mxu0 %v13421_v3  ;;  %12009 = vmatprep.mubr.f32.mxu0 %v17990_v40  ;;  %v13441_v3 = vpack.c.bf16 %v20456_v51, %v20455_v29 }
 0x5e2   :  { %13426 = vmatprep.subr.bf16.mxu0 %v13425_v34 }
 0x5e4   :  { %12010 = vmatmul.mubr.f32.vlgmr.msra.gmra.mrb[32].mxu0 %v17980_v18 }
 0x5e5   :  { %12012 = vmatprep.mubr.f32.mxu0 %v18093_v27  ;;  %13428 = vmatpush3.bf16.msra.mxu0 %v13425_v34  ;;  %v13449_v34 = vpack.c.bf16 %v18007_v60, %v18002_v61 }
 0x5e6   :  { %13430 = vmatprep.subr.bf16.mxu0 %v13429_v58 }
 0x5e8   :  { %12013 = vmatmul.mubr.f32.gmra.mrb[34].mxu0 %v18085_v56 }
 0x5e9   :  { %12015 = vmatprep.mubr.f32.mxu0 %v18128_v32  ;;  %13432 = vmatpush3.bf16.msra.mxu0 %v13429_v58  ;;  %v13453_v58 = vpack.c.bf16 %v18240_v55, %v18235_v54 }
 0x5ea   :  { %13434 = vmatprep.subr.bf16.mxu0 %v13433_v12 }
 0x5ec   :  { %12016 = vmatmul.mubr.f32.gmra.mrb[36].mxu0 %v18135_v15 }
 0x5ed   :  { %12018 = vmatprep.mubr.f32.mxu0 %v18140_v4  ;;  %13436 = vmatpush3.bf16.msra.mxu0 %v13433_v12  ;;  %v20458_v12 = vld [vmem:[#allocation35_spill] sm:$0xff] }
 0x5ee   :  { %13438 = vmatprep.subr.bf16.mxu0 %v13437_v22 }
 0x5f0   :  { %12019 = vmatmul.mubr.f32.gmra.mrb[38].mxu0 %v18159_v31 }
 0x5f1   :  { %12021 = vmatprep.mubr.f32.mxu0 %v18171_v19  ;;  %13440 = vmatpush3.bf16.msra.mxu0 %v13437_v22  ;;  %v20459_v22 = vld [vmem:[#allocation36_spill] sm:$0xff] }
 0x5f2   :  { %13442 = vmatprep.subr.bf16.mxu0 %v13441_v3 }
 0x5f4   :  { %12022 = vmatmul.mubr.f32.gmra.mrb[40].mxu0 %v18188_v36 }
 0x5f5   :  { %12024 = vmatprep.mubr.f32.mxu0 %v18205_v47  ;;  %13444 = vmatpush3.bf16.msra.mxu0 %v13441_v3  ;;  %v20460_v3 = vld [vmem:[#allocation37_spill] sm:$0xff] }
 0x5f6   :  { %13446 = vmatprep.subr.bf16.mxu0 %v13445_v53 }
 0x5f8   :  { %12025 = vmatmul.mubr.f32.gmra.mrb[42].mxu0 %v18223_v52 }
 0x5f9   :  { %12027 = vmatprep.mubr.f32.mxu0 %v18261_v37  ;;  %13448 = vmatpush3.bf16.msra.mxu0 %v13445_v53  ;;  %v20461_v53 = vand.u32 4294901760, %v20449_v48  ;;  %v20467_v48 = vand.u32 4294901760, %v18114_v59 }
 0x5fa   :  { %13450 = vmatprep.subr.bf16.mxu0 %v13449_v34 }
 0x5fc   :  { %12028 = vmatmul.mubr.f32.gmra.mrb[44].mxu0 %v18259_v45 }
 0x5fd   :  { %12030 = vmatprep.mubr.f32.mxu0 %v18310_v6  ;;  %13452 = vmatpush3.bf16.msra.mxu0 %v13449_v34  ;;  %v20462_v34 = vand.u32 4294901760, %v20450_v8  ;;  %v20468_v8 = vand.u32 4294901760, %v20453_v17  ;;  %v20482_v17 = vand.u32 4294901760, %v18211_v11 }
 0x5fe   :  { %13454 = vmatprep.subr.bf16.mxu0 %v13453_v58 }
 0x600   :  { %12031 = vmatmul.mubr.f32.gmra.mrb[46].mxu0 %v18308_v42 }
 0x601   :  { %13456 = vmatpush3.bf16.msra.mxu0 %v13453_v58  ;;  %12065 = vmatprep.mubr.f32.mxu0 %v18027_v35  ;;  %v13489_v58 = vpack.c.bf16 %v20462_v34, %v20461_v53  ;;  %v20469_v53 = vand.u32 4294901760, %v20454_v7  ;;  %v20483_v7 = vand.u32 4294901760, %v18228_v9  ;;  %v20490_v34 = vand.u32 4294901760, %v18279_v16 }
 0x602   :  { %13458 = vmatprep.subr.bf16.mxu0 %v17724_v5 }
 0x603   :  { %v13497_v35 = vpack.c.bf16 %v20469_v53, %v20468_v8 }
 0x604   :  { %12066 = vmatmul.mubr.f32.vlgmr.msra.gmra.mrb[32].mxu0 %v18018_v38  ;;  %v20472_v38 = vand.u32 4294901760, %v17832_v24  ;;  %v20479_v24 = vand.u32 4294901760, %v18198_v43 }
 0x605   :  { %12068 = vmatprep.mubr.f32.mxu0 %v18114_v59  ;;  %13460 = vmatpush3.bf16.msra.mxu0 %v17724_v5  ;;  %v20473_v59 = vand.u32 4294901760, %v17837_v46  ;;  %v20480_v46 = vand.u32 4294901760, %v17936_v13  ;;  %v20487_v13 = vand.u32 4294901760, %v18276_v39 }
 0x606   :  { %13462 = vmatprep.subr.bf16.mxu0 %v17747_v63 }
 0x608   :  { %12069 = vmatmul.mubr.f32.gmra.mrb[34].mxu0 %v18108_v23 }
 0x609   :  { %12071 = vmatprep.mubr.f32.mxu0 %v18151_v30  ;;  %13464 = vmatpush3.bf16.msra.mxu0 %v17747_v63  ;;  %v20477_v30 = vand.u32 4294901760, %v20456_v51  ;;  %v20486_v51 = vand.u32 4294901760, %v18253_v57 }
 0x60a   :  { %13466 = vmatprep.subr.bf16.mxu0 %v17755_v10 }
 0x60c   :  { %12072 = vmatmul.mubr.f32.gmra.mrb[36].mxu0 %v18155_v26  ;;  %v20481_v26 = vand.u32 4294901760, %v20457_v49 }
 0x60d   :  { %12074 = vmatprep.mubr.f32.mxu0 %v18167_v20  ;;  %13468 = vmatpush3.bf16.msra.mxu0 %v17755_v10 }
 0x60e   :  { %13470 = vmatprep.subr.bf16.mxu0 %v17766_v62  ;;  %v13509_v20 = vpack.c.bf16 %v20481_v26, %v20480_v46  ;;  %v18586_v26 = vld [vmem:[#allocation8 + $0x4] ss:$0 sm:$0xff] }
 0x610   :  { %12075 = vmatmul.mubr.f32.gmra.mrb[38].mxu0 %v18186_v0 }
 0x611   :  { %12077 = vmatprep.mubr.f32.mxu0 %v18198_v43  ;;  %13472 = vmatpush3.bf16.msra.mxu0 %v17766_v62  ;;  %v20485_v43 = vand.u32 4294901760, %v18007_v60  ;;  %v20492_v60 = vand.u32 4294901760, %v18314_v1 }
 0x612   :  { %13474 = vmatprep.subr.bf16.mxu0 %v20420_v33 }
 0x614   :  { %12078 = vmatmul.mubr.f32.gmra.mrb[40].mxu0 %v18211_v11  ;;  %v20488_v11 = vand.u32 4294901760, %v18235_v54 }
 0x615   :  { %12080 = vmatprep.mubr.f32.mxu0 %v18228_v9  ;;  %13476 = vmatpush3.bf16.msra.mxu0 %v20420_v33  ;;  %v20489_v9 = vand.u32 4294901760, %v18240_v55 }
 0x616   :  { %13478 = vmatprep.subr.bf16.mxu0 %v20458_v12 }
 0x617   :  { %v13517_v49 = vpack.c.bf16 %v20489_v9, %v20488_v11 }
 0x618   :  { %12081 = vmatmul.mubr.f32.gmra.mrb[42].mxu0 %v18253_v57 }
 0x619   :  { %12083 = vmatprep.mubr.f32.mxu0 %v18276_v39  ;;  %13480 = vmatpush3.bf16.msra.mxu0 %v20458_v12 }
 0x61a   :  { %13482 = vmatprep.subr.bf16.mxu0 %v20459_v22 }
 0x61c   :  { %12084 = vmatmul.mubr.f32.gmra.mrb[44].mxu0 %v18279_v16 }
 0x61d   :  { %12086 = vmatprep.mubr.f32.mxu0 %v18320_v25  ;;  %13484 = vmatpush3.bf16.msra.mxu0 %v20459_v22 }
 0x61e   :  { %13486 = vmatprep.subr.bf16.mxu0 %v20460_v3 }
 0x620   :  { %12087 = vmatmul.mubr.f32.gmra.mrb[46].mxu0 %v18314_v1 }
 0x621   :  { %13488 = vmatpush3.bf16.msra.mxu0 %v20460_v3  ;;  %12121 = vmatprep.mubr.f32.mxu0 %v20463_v28  ;;  %v20470_v28 = vand.u32 4294901760, %v18108_v23  ;;  %v20476_v23 = vand.u32 4294901760, %v20455_v29 }
 0x622   :  { %13490 = vmatprep.subr.bf16.mxu0 %v13489_v58 }
 0x623   :  { %v13505_v14 = vpack.c.bf16 %v20477_v30, %v20476_v23 }
 0x624   :  { %12122 = vmatmul.mubr.f32.vlgmr.msra.gmra.mrb[32].mxu0 %v20466_v21  ;;  %v13501_v21 = vpack.c.bf16 %v20473_v59, %v20472_v38 }
 0x625   :  { %12124 = vmatprep.mubr.f32.mxu0 %v20467_v48  ;;  %13492 = vmatpush3.bf16.msra.mxu0 %v13489_v58 }
 0x626   :  { %13494 = vmatprep.subr.bf16.mxu0 %v13493_v41 }
 0x628   :  { %12125 = vmatmul.mubr.f32.gmra.mrb[34].mxu0 %v20470_v28 }
 0x629   :  { %12127 = vmatprep.mubr.f32.mxu0 %v20471_v2  ;;  %13496 = vmatpush3.bf16.msra.mxu0 %v13493_v41  ;;  %v20478_v41 = vand.u32 4294901760, %v18186_v0  ;;  %v20484_v0 = vand.u32 4294901760, %v18002_v61  ;;  %v20491_v61 = vand.u32 4294901760, %v18320_v25 }
 0x62a   :  { %13498 = vmatprep.subr.bf16.mxu0 %v13497_v35 }
 0x62b   :  { %v13513_v29 = vpack.c.bf16 %v20485_v43, %v20484_v0 }
 0x62c   :  { %12128 = vmatmul.mubr.f32.gmra.mrb[36].mxu0 %v20474_v50 }
 0x62d   :  { %12130 = vmatprep.mubr.f32.mxu0 %v20475_v44  ;;  %13500 = vmatpush3.bf16.msra.mxu0 %v13497_v35 }
 0x62e   :  { %13502 = vmatprep.subr.bf16.mxu0 %v13501_v21 }
 0x630   :  { %12131 = vmatmul.mubr.f32.gmra.mrb[38].mxu0 %v20478_v41 }
 0x631   :  { %12133 = vmatprep.mubr.f32.mxu0 %v20479_v24  ;;  %13504 = vmatpush3.bf16.msra.mxu0 %v13501_v21 }
 0x632   :  { %13506 = vmatprep.subr.bf16.mxu0 %v13505_v14 }
 0x634   :  { %12134 = vmatmul.mubr.f32.gmra.mrb[40].mxu0 %v20482_v17 }
 0x635   :  { %12136 = vmatprep.mubr.f32.mxu0 %v20483_v7  ;;  %13508 = vmatpush3.bf16.msra.mxu0 %v13505_v14 }
 0x636   :  { %13510 = vmatprep.subr.bf16.mxu0 %v13509_v20 }
 0x638   :  { %12137 = vmatmul.mubr.f32.gmra.mrb[42].mxu0 %v20486_v51 }
 0x639   :  { %12139 = vmatprep.mubr.f32.mxu0 %v20487_v13  ;;  %13512 = vmatpush3.bf16.msra.mxu0 %v13509_v20 }
 0x63a   :  { %13514 = vmatprep.subr.bf16.mxu0 %v13513_v29 }
 0x63c   :  { %12140 = vmatmul.mubr.f32.gmra.mrb[44].mxu0 %v20490_v34 }
 0x63d   :  { %12142 = vmatprep.mubr.f32.mxu0 %v20491_v61  ;;  %13516 = vmatpush3.bf16.msra.mxu0 %v13513_v29 }
 0x63e   :  { %13518 = vmatprep.subr.bf16.mxu0 %v13517_v49 }
 0x640   :  { %12143 = vmatmul.mubr.f32.gmra.mrb[46].mxu0 %v20492_v60 }
 0x641   :  { %13520 = vmatpush3.bf16.msra.mxu0 %v13517_v49  ;;  %12177 = vmatprep.mubr.f32.mxu0 %v17990_v40 }
 0x642   :  { %13522 = vmatprep.subr.bf16.mxu0 %v17724_v5 }
 0x644   :  { %12178 = vmatmul.mubr.f32.vlgmr.msra.gmra.mrb[32].mxu0 %v17980_v18 }
 0x645   :  { %12180 = vmatprep.mubr.f32.mxu0 %v18093_v27  ;;  %13524 = vmatpush3.bf16.msra.mxu0 %v17724_v5 }
 0x646   :  { %13526 = vmatprep.subr.bf16.mxu0 %v17747_v63 }
 0x648   :  { %12181 = vmatmul.mubr.f32.gmra.mrb[34].mxu0 %v18085_v56 }
 0x649   :  { %12183 = vmatprep.mubr.f32.mxu0 %v18128_v32  ;;  %13528 = vmatpush3.bf16.msra.mxu0 %v17747_v63  ;;  %v9413_v63 = vld [vmem:[#allocation8 + $0x2] ss:$0 sm:$0xff] }
 0x64a   :  { %13530 = vmatprep.subr.bf16.mxu0 %v17755_v10 }
 0x64c   :  { %12184 = vmatmul.mubr.f32.gmra.mrb[36].mxu0 %v18135_v15 }
 0x64d   :  { %12186 = vmatprep.mubr.f32.mxu0 %v18140_v4  ;;  %13532 = vmatpush3.bf16.msra.mxu0 %v17755_v10 }
 0x64e   :  { %13534 = vmatprep.subr.bf16.mxu0 %v17766_v62 }
 0x650   :  { %12187 = vmatmul.mubr.f32.gmra.mrb[38].mxu0 %v18159_v31 }
 0x651   :  { %12189 = vmatprep.mubr.f32.mxu0 %v18171_v19  ;;  %13536 = vmatpush3.bf16.msra.mxu0 %v17766_v62 }
 0x652   :  { %13538 = vmatprep.subr.bf16.mxu0 %v20420_v33 }
 0x654   :  { %12190 = vmatmul.mubr.f32.gmra.mrb[40].mxu0 %v18188_v36 }
 0x655   :  { %12192 = vmatprep.mubr.f32.mxu0 %v18205_v47  ;;  %13540 = vmatpush3.bf16.msra.mxu0 %v20420_v33 }
 0x656   :  { %13542 = vmatprep.subr.bf16.mxu0 %v20458_v12 }
 0x658   :  { %12193 = vmatmul.mubr.f32.gmra.mrb[42].mxu0 %v18223_v52 }
 0x659   :  { %12195 = vmatprep.mubr.f32.mxu0 %v18261_v37  ;;  %13544 = vmatpush3.bf16.msra.mxu0 %v20458_v12 }
 0x65a   :  { %13546 = vmatprep.subr.bf16.mxu0 %v20459_v22 }
 0x65c   :  { %12196 = vmatmul.mubr.f32.gmra.mrb[44].mxu0 %v18259_v45 }
 0x65d   :  { %12198 = vmatprep.mubr.f32.mxu0 %v18310_v6  ;;  %13548 = vmatpush3.bf16.msra.mxu0 %v20459_v22 }
 0x65e   :  { %13550 = vmatprep.subr.bf16.mxu0 %v20460_v3 }
 0x660   :  { %12199 = vmatmul.mubr.f32.gmra.mrb[46].mxu0 %v18308_v42 }
 0x661   :  { %13552 = vmatpush3.bf16.msra.mxu0 %v20460_v3  ;;  %12233 = vmatprep.mubr.f32.mxu0 %v17990_v40 }
 0x664   :  { %12234 = vmatmul.mubr.f32.vlgmr.msra.gmra.mrb[32].mxu0 %v17980_v18 }
 0x665   :  { %12236 = vmatprep.mubr.f32.mxu0 %v18093_v27 }
 0x668   :  { %12237 = vmatmul.mubr.f32.gmra.mrb[34].mxu0 %v18085_v56 }
 0x669   :  { %12239 = vmatprep.mubr.f32.mxu0 %v18128_v32 }
 0x66c   :  { %12240 = vmatmul.mubr.f32.gmra.mrb[36].mxu0 %v18135_v15 }
 0x66d   :  { %12242 = vmatprep.mubr.f32.mxu0 %v18140_v4 }
 0x670   :  { %12243 = vmatmul.mubr.f32.gmra.mrb[38].mxu0 %v18159_v31 }
 0x671   :  { %12245 = vmatprep.mubr.f32.mxu0 %v18171_v19 }
 0x674   :  { %12246 = vmatmul.mubr.f32.gmra.mrb[40].mxu0 %v18188_v36 }
 0x675   :  { %12248 = vmatprep.mubr.f32.mxu0 %v18205_v47 }
 0x676   :  { %v11563_v5 = vpop.f32.mrb[16].mxu0 }
 0x677   :  { %v18501_v10 = vadd.f32 %v11563_v5, %v9413_v63  ;;  %v4466_v62 = vpop.f32.mrb[17].mxu0 }
 0x678   :  { %12249 = vmatmul.mubr.f32.gmra.mrb[42].mxu0 %v18223_v52  ;;  %v18506_v40 = vadd.f32 %v9413_v63, %v4466_v62 }
 0x679   :  { %12251 = vmatprep.mubr.f32.mxu0 %v18261_v37  ;;  %4562 = vadd.xlane.f32.xlu0 %v18501_v10  ;;  %v4593_v32 = vmul.f32 %v18501_v10, %v18501_v10 }
 0x67a   :  { %v11566_v18 = vpop.f32.mrb[18].mxu0  ;;  %v4592_v31 = vmul.f32 %v18506_v40, %v18506_v40 }
 0x67b   :  { %v4478_v56 = vpop.f32.mrb[19].mxu0  ;;  %v18516_v36 = vadd.f32 %v11566_v18, %v9413_v63 }
 0x67c   :  { %12252 = vmatmul.mubr.f32.gmra.mrb[44].mxu0 %v18259_v45  ;;  %v18523_v57 = vadd.f32 %v9413_v63, %v4478_v56 }
 0x67d   :  { %12254 = vmatprep.mubr.f32.mxu0 %v18310_v6  ;;  %4560 = vadd.xlane.f32.xlu0 %v18506_v40  ;;  %v4595_v1 = vmul.f32 %v18516_v36, %v18516_v36 }
 0x67e   :  { %v11569_v27 = vpop.f32.mrb[20].mxu0  ;;  %v4594_v58 = vmul.f32 %v18523_v57, %v18523_v57 }
 0x67f   :  { %v4490_v33 = vpop.f32.mrb[21].mxu0  ;;  %v18542_v8 = vadd.f32 %v11569_v27, %v9413_v63 }
 0x680   :  { %12255 = vmatmul.mubr.f32.gmra.mrb[46].mxu0 %v18308_v42  ;;  %v18545_v53 = vadd.f32 %v9413_v63, %v4490_v33 }
 0x681   :  { %4610 = vadd.xlane.f32.xlu0 %v4593_v32  ;;  %v4597_v35 = vmul.f32 %v18542_v8, %v18542_v8 }
 0x682   :  { %v11572_v15 = vpop.f32.mrb[22].mxu0  ;;  %v4596_v28 = vmul.f32 %v18545_v53, %v18545_v53 }
 0x683   :  { %v4502_v4 = vpop.f32.mrb[23].mxu0  ;;  %v18552_v2 = vadd.f32 %v11572_v15, %v9413_v63 }
 0x684   :  { %v18555_v38 = vadd.f32 %v9413_v63, %v4502_v4 }
 0x685   :  { %4608 = vadd.xlane.f32.xlu0 %v4592_v31  ;;  %v4599_v59 = vmul.f32 %v18552_v2, %v18552_v2 }
 0x686   :  { %v11575_v19 = vpop.f32.mrb[24].mxu0  ;;  %v4598_v21 = vmul.f32 %v18555_v38, %v18555_v38 }
 0x687   :  { %v18518_v54 = vadd.f32 %v11575_v19, %v9413_v63  ;;  %v4514_v47 = vpop.f32.mrb[25].mxu0 }
 0x688   :  { %v18520_v52 = vadd.f32 %v9413_v63, %v4514_v47 }
 0x689   :  { %4566 = vadd.xlane.f32.xlu0 %v18516_v36  ;;  %v4601_v50 = vmul.f32 %v18518_v54, %v18518_v54 }
 0x68a   :  { %20493 = vst [vmem:[#allocation15_spill] sm:$0xff] %v18520_v52  ;;  %v11578_v55 = vpop.f32.mrb[26].mxu0  ;;  %v4600_v44 = vmul.f32 %v18520_v52, %v18520_v52 }
 0x68b   :  { %v18525_v45 = vadd.f32 %v11578_v55, %v9413_v63  ;;  %v4526_v37 = vpop.f32.mrb[27].mxu0 }
 0x68c   :  { %v18527_v39 = vadd.f32 %v9413_v63, %v4526_v37 }
 0x68d   :  { %20494 = vst [vmem:[#allocation29_spill] sm:$0xff] %v18525_v45  ;;  %4564 = vadd.xlane.f32.xlu0 %v18523_v57  ;;  %v4603_v23 = vmul.f32 %v18525_v45, %v18525_v45 }
 0x68e   :  { %20495 = vst [vmem:[#allocation19_spill] sm:$0xff] %v18527_v39  ;;  %v11581_v16 = vpop.f32.mrb[28].mxu0  ;;  %v4602_v30 = vmul.f32 %v18527_v39, %v18527_v39 }
 0x68f   :  { %v18530_v42 = vadd.f32 %v11581_v16, %v9413_v63  ;;  %v4538_v6 = vpop.f32.mrb[29].mxu0 }
 0x690   :  { %v18534_v25 = vadd.f32 %v9413_v63, %v4538_v6 }
 0x691   :  { %20496 = vst [vmem:[#allocation20_spill] sm:$0xff] %v18530_v42  ;;  %4614 = vadd.xlane.f32.xlu0 %v4595_v1  ;;  %v4605_v14 = vmul.f32 %v18530_v42, %v18530_v42 }
 0x692   :  { %20497 = vst [vmem:[#allocation30_spill] sm:$0xff] %v18534_v25  ;;  %v11584_v12 = vpop.f32.mrb[30].mxu0  ;;  %v4604_v41 = vmul.f32 %v18534_v25, %v18534_v25 }
 0x693   :  { %v18536_v22 = vadd.f32 %v11584_v12, %v9413_v63  ;;  %v4550_v3 = vpop.f32.mrb[31].mxu0 }
 0x694   :  { %v18540_v48 = vadd.f32 %v9413_v63, %v4550_v3 }
 0x695   :  { %20498 = vst [vmem:[#allocation31_spill] sm:$0xff] %v18536_v22  ;;  %4612 = vadd.xlane.f32.xlu0 %v4594_v58  ;;  %v4607_v46 = vmul.f32 %v18536_v22, %v18536_v22  ;;  %v18644_v58 = vld [vmem:[#allocation7 + $0x280] sm:$0xff] }
 0x696   :  { %20499 = vst [vmem:[#allocation22_spill] sm:$0xff] %v18540_v48  ;;  %v4606_v24 = vmul.f32 %v18540_v48, %v18540_v48 }
 0x699   :  { %4570 = vadd.xlane.f32.xlu0 %v18542_v8 }
 0x69d   :  { %4568 = vadd.xlane.f32.xlu0 %v18545_v53 }
 0x6a1   :  { %4618 = vadd.xlane.f32.xlu0 %v4597_v35  ;;  %v18646_v35 = vld [vmem:[#allocation7 + $0x288] sm:$0xff] }
 0x6a5   :  { %4616 = vadd.xlane.f32.xlu0 %v4596_v28  ;;  %v19977_v28 = vand.u32 4294901760, %v18644_v58 }
 0x6a9   :  { %4574 = vadd.xlane.f32.xlu0 %v18552_v2 }
 0x6ad   :  { %4572 = vadd.xlane.f32.xlu0 %v18555_v38 }
 0x6b1   :  { %4622 = vadd.xlane.f32.xlu0 %v4599_v59  ;;  %v19976_v59 = vand.u32 4294901760, %v18646_v35 }
 0x6b5   :  { %4620 = vadd.xlane.f32.xlu0 %v4598_v21 }
 0x6b9   :  { %4578 = vadd.xlane.f32.xlu0 %v18518_v54 }
 0x6bd   :  { %4576 = vadd.xlane.f32.xlu0 %v18520_v52 }
 0x6c1   :  { %4626 = vadd.xlane.f32.xlu0 %v4601_v50  ;;  %v18656_v50 = vpack.c.bf16 %v19976_v59, %v19977_v28 }
 0x6c3   :  { %20508 = vst [vmem:[#allocation46_spill] sm:$0xff] %v18656_v50  ;;  %13554 = vmatprep.subr.bf16.mxu1 %v18656_v50 }
 0x6c4   :  { %13556 = vmatpush3.bf16.msra.mxu1 %v18656_v50 }
 0x6c5   :  { %4624 = vadd.xlane.f32.xlu0 %v4600_v44  ;;  %v18658_v44 = vld [vmem:[#allocation7 + $0x290] sm:$0xff] }
 0x6c9   :  { %4582 = vadd.xlane.f32.xlu0 %v18525_v45 }
 0x6cd   :  { %4580 = vadd.xlane.f32.xlu0 %v18527_v39 }
 0x6d1   :  { %4630 = vadd.xlane.f32.xlu0 %v4603_v23  ;;  %v18660_v23 = vld [vmem:[#allocation7 + $0x298] sm:$0xff] }
 0x6d5   :  { %4628 = vadd.xlane.f32.xlu0 %v4602_v30  ;;  %v19975_v30 = vand.u32 4294901760, %v18658_v44 }
 0x6d9   :  { %4586 = vadd.xlane.f32.xlu0 %v18530_v42 }
 0x6dd   :  { %4584 = vadd.xlane.f32.xlu0 %v18534_v25 }
 0x6e1   :  { %4634 = vadd.xlane.f32.xlu0 %v4605_v14  ;;  %v19972_v14 = vand.u32 4294901760, %v18660_v23 }
 0x6e5   :  { %4632 = vadd.xlane.f32.xlu0 %v4604_v41 }
 0x6e9   :  { %4590 = vadd.xlane.f32.xlu0 %v18536_v22 }
 0x6ed   :  { %4588 = vadd.xlane.f32.xlu0 %v18540_v48 }
 0x6f1   :  { %4636 = vadd.xlane.f32.xlu0 %v4606_v24  ;;  %v18672_v24 = vpack.c.bf16 %v19972_v14, %v19975_v30 }
 0x6f3   :  { %20509 = vst [vmem:[#allocation45_spill] sm:$0xff] %v18672_v24  ;;  %13558 = vmatprep.subr.bf16.mxu1 %v18672_v24 }
 0x6f4   :  { %13560 = vmatpush3.bf16.msra.mxu1 %v18672_v24 }
 0x6f5   :  { %4638 = vadd.xlane.f32.xlu0 %v4607_v46  ;;  %v18674_v46 = vld [vmem:[#allocation7 + $0x2a0] sm:$0xff] }
 0x737   :  { %v12235_v20 = vpop.f32.mrb[32].mxu0 }
 0x738   :  { %v18589_v17 = vadd.f32 %v12235_v20, %v18586_v26  ;;  %v7598_v7 = vpop.f32.mrb[33].mxu0  ;;  %v18676_v20 = vld [vmem:[#allocation7 + $0x2a8] sm:$0xff] }
 0x739   :  { %v18593_v43 = vadd.f32 %v18586_v26, %v7598_v7  ;;  %v19971_v7 = vand.u32 4294901760, %v18674_v46 }
 0x73a   :  { %7694 = vadd.xlane.f32.xlu1 %v18589_v17  ;;  %v7725_v11 = vmul.f32 %v18589_v17, %v18589_v17 }
 0x73b   :  { %v12238_v0 = vpop.f32.mrb[34].mxu0  ;;  %v7724_v34 = vmul.f32 %v18593_v43, %v18593_v43 }
 0x73c   :  { %v7610_v29 = vpop.f32.mrb[35].mxu0  ;;  %v18601_v60 = vadd.f32 %v12238_v0, %v18586_v26  ;;  %v19968_v0 = vand.u32 4294901760, %v18676_v20 }
 0x73d   :  { %v18611_v56 = vadd.f32 %v18586_v26, %v7610_v29 }
 0x73e   :  { %7692 = vadd.xlane.f32.xlu1 %v18593_v43  ;;  %v7727_v19 = vmul.f32 %v18601_v60, %v18601_v60 }
 0x73f   :  { %v12241_v51 = vpop.f32.mrb[36].mxu0  ;;  %v7726_v6 = vmul.f32 %v18611_v56, %v18611_v56 }
 0x740   :  { %v7622_v13 = vpop.f32.mrb[37].mxu0  ;;  %v18637_v12 = vadd.f32 %v12241_v51, %v18586_v26  ;;  %v18689_v51 = vpack.c.bf16 %v19968_v0, %v19971_v7 }
 0x741   :  { %v18641_v3 = vadd.f32 %v18586_v26, %v7622_v13  ;;  %v18692_v13 = vld [vmem:[#allocation7 + $0x2b0] sm:$0xff] }
 0x742   :  { %7742 = vadd.xlane.f32.xlu1 %v7725_v11  ;;  %v7729_v21 = vmul.f32 %v18637_v12, %v18637_v12  ;;  %20510 = vst [vmem:[#allocation33_spill] sm:$0xff] %v18689_v51  ;;  %v18694_v11 = vld [vmem:[#allocation7 + $0x2b8] sm:$0xff]  ;;  %13562 = vmatprep.subr.bf16.mxu1 %v18689_v51 }
 0x743   :  { %v12244_v9 = vpop.f32.mrb[38].mxu0  ;;  %v7728_v41 = vmul.f32 %v18641_v3, %v18641_v3  ;;  %13564 = vmatpush3.bf16.msra.mxu1 %v18689_v51 }
 0x744   :  { %v7634_v49 = vpop.f32.mrb[39].mxu0  ;;  %v18682_v29 = vadd.f32 %v12244_v9, %v18586_v26  ;;  %v19966_v9 = vand.u32 4294901760, %v18694_v11 }
 0x746   :  { %7740 = vadd.xlane.f32.xlu1 %v7724_v34  ;;  %v19967_v34 = vand.u32 4294901760, %v18692_v13 }
 0x747   :  { %v12247_v61 = vpop.f32.mrb[40].mxu0 }
 0x748   :  { %v18604_v63 = vadd.f32 %v12247_v61, %v18586_v26  ;;  %v7646_v5 = vpop.f32.mrb[41].mxu0  ;;  %v18700_v61 = vadd.f32 %v18586_v26, %v7634_v49  ;;  %v7731_v49 = vmul.f32 %v18682_v29, %v18682_v29 }
 0x749   :  { %v18607_v62 = vadd.f32 %v18586_v26, %v7646_v5  ;;  %v18707_v5 = vpack.c.bf16 %v19966_v9, %v19967_v34 }
 0x74a   :  { %20500 = vst [vmem:[#allocation23_spill] sm:$0xff] %v18604_v63  ;;  %7698 = vadd.xlane.f32.xlu1 %v18601_v60 }
 0x74b   :  { %20501 = vst [vmem:[#allocation25_spill] sm:$0xff] %v18607_v62  ;;  %v12250_v18 = vpop.f32.mrb[42].mxu0  ;;  %20511 = vst [vmem:[#allocation47_spill] sm:$0xff] %v18707_v5  ;;  %13566 = vmatprep.subr.bf16.mxu1 %v18707_v5  ;;  %v7732_v59 = vmul.f32 %v18607_v62, %v18607_v62 }
 0x74c   :  { %v18614_v27 = vadd.f32 %v12250_v18, %v18586_v26  ;;  %v7658_v33 = vpop.f32.mrb[43].mxu0  ;;  %v18710_v18 = vld [vmem:[#allocation7 + $0x2c0] sm:$0xff]  ;;  %13568 = vmatpush3.bf16.msra.mxu1 %v18707_v5 }
 0x74d   :  { %v18617_v32 = vadd.f32 %v18586_v26, %v7658_v33  ;;  %v18712_v33 = vld [vmem:[#allocation7 + $0x2c8] sm:$0xff] }
 0x74e   :  { %20502 = vst [vmem:[#allocation17_spill] sm:$0xff] %v18614_v27  ;;  %7696 = vadd.xlane.f32.xlu1 %v18611_v56 }
 0x74f   :  { %20503 = vst [vmem:[#allocation39_spill] sm:$0xff] %v18617_v32  ;;  %v12253_v15 = vpop.f32.mrb[44].mxu0 }
 0x750   :  { %v18621_v4 = vadd.f32 %v12253_v15, %v18586_v26  ;;  %v7670_v31 = vpop.f32.mrb[45].mxu0  ;;  %v19965_v15 = vand.u32 4294901760, %v18710_v18 }
 0x751   :  { %v18626_v47 = vadd.f32 %v18586_v26, %v7670_v31 }
 0x752   :  { %20504 = vst [vmem:[#allocation40_spill] sm:$0xff] %v18621_v4  ;;  %7746 = vadd.xlane.f32.xlu1 %v7727_v19  ;;  %v18726_v19 = vld [vmem:[#allocation7 + $0x2d0] sm:$0xff] }
 0x753   :  { %20505 = vst [vmem:[#allocation42_spill] sm:$0xff] %v18626_v47  ;;  %v12256_v55 = vpop.f32.mrb[46].mxu0 }
 0x754   :  { %v18629_v37 = vadd.f32 %v12256_v55, %v18586_v26  ;;  %v7682_v16 = vpop.f32.mrb[47].mxu0  ;;  %v18728_v55 = vld [vmem:[#allocation7 + $0x2d8] sm:$0xff] }
 0x755   :  { %v18634_v1 = vadd.f32 %v18586_v26, %v7682_v16  ;;  %v19964_v26 = vand.u32 4294901760, %v18712_v33  ;;  %v19970_v16 = vand.u32 4294901760, %v18726_v19 }
 0x756   :  { %20506 = vst [vmem:[#allocation43_spill] sm:$0xff] %v18629_v37  ;;  %7744 = vadd.xlane.f32.xlu1 %v7726_v6  ;;  %v19969_v6 = vand.u32 4294901760, %v18728_v55  ;;  %v7739_v24 = vmul.f32 %v18629_v37, %v18629_v37 }
 0x757   :  { %20507 = vst [vmem:[#allocation44_spill] sm:$0xff] %v18634_v1  ;;  %v18724_v31 = vpack.c.bf16 %v19964_v26, %v19965_v15  ;;  %v18742_v26 = vld [vmem:[#allocation7 + $0x2e0] sm:$0xff]  ;;  %v18744_v15 = vld [vmem:[#allocation7 + $0x2e8] sm:$0xff] }
 0x758   :  { %v19974_v9 = vand.u32 4294901760, %v18742_v26  ;;  %v19973_v34 = vand.u32 4294901760, %v18744_v15 }
 0x759   :  { %20512 = vst [vmem:[#allocation48_spill] sm:$0xff] %v18724_v31  ;;  %13570 = vmatprep.subr.bf16.mxu1 %v18724_v31 }
 0x75a   :  { %7702 = vadd.xlane.f32.xlu1 %v18637_v12  ;;  %13572 = vmatpush3.bf16.msra.mxu1 %v18724_v31  ;;  %v18754_v0 = vpack.c.bf16 %v19973_v34, %v19974_v9  ;;  %v7733_v9 = vmul.f32 %v18604_v63, %v18604_v63  ;;  %v7736_v31 = vmul.f32 %v18626_v47, %v18626_v47 }
 0x75c   :  { %20514 = vst [vmem:[#allocation50_spill] sm:$0xff] %v18754_v0 }
 0x75e   :  { %7700 = vadd.xlane.f32.xlu1 %v18641_v3 }
 0x762   :  { %7750 = vadd.xlane.f32.xlu1 %v7729_v21  ;;  %v7730_v21 = vmul.f32 %v18700_v61, %v18700_v61 }
 0x766   :  { %7748 = vadd.xlane.f32.xlu1 %v7728_v41  ;;  %v4563_v41 = vpop.xlane.xlu0 %4562 }
 0x767   :  { %v18796_v50 = vmul.f32 0.015625, %v4563_v41 }
 0x76a   :  { %7706 = vadd.xlane.f32.xlu1 %v18682_v29 }
 0x76e   :  { %7704 = vadd.xlane.f32.xlu1 %v18700_v61 }
 0x772   :  { %7754 = vadd.xlane.f32.xlu1 %v7731_v49  ;;  %v18740_v49 = vpack.c.bf16 %v19969_v6, %v19970_v16  ;;  %v18759_v6 = vld [vmem:[#allocation7 + $0x2f8] sm:$0xff]  ;;  %v4561_v16 = vpop.xlane.xlu0 %4560 }
 0x773   :  { %v19978_v14 = vand.u32 4294901760, %v18759_v6  ;;  %v18798_v22 = vmul.f32 0.015625, %v4561_v16 }
 0x774   :  { %20513 = vst [vmem:[#allocation49_spill] sm:$0xff] %v18740_v49  ;;  %13574 = vmatprep.subr.bf16.mxu1 %v18740_v49 }
 0x775   :  { %13576 = vmatpush3.bf16.msra.mxu1 %v18740_v49  ;;  %v7737_v49 = vmul.f32 %v18621_v4, %v18621_v4 }
 0x776   :  { %7752 = vadd.xlane.f32.xlu1 %v7730_v21  ;;  %v18757_v21 = vld [vmem:[#allocation7 + $0x2f0] sm:$0xff]  ;;  %13578 = vmatprep.subr.bf16.mxu1 %v18754_v0  ;;  %v4611_v30 = vpop.xlane.xlu0 %4610 }
 0x777   :  { %v19979_v7 = vand.u32 4294901760, %v18757_v21 }
 0x779   :  { %13580 = vmatpush3.bf16.msra.mxu1 %v18754_v0  ;;  %v18769_v34 = vpack.c.bf16 %v19978_v14, %v19979_v7  ;;  %v7735_v7 = vmul.f32 %v18614_v27, %v18614_v27 }
 0x77a   :  { %7710 = vadd.xlane.f32.xlu1 %v18604_v63  ;;  %v4609_v28 = vpop.xlane.xlu0 %4608 }
 0x77b   :  { %20515 = vst [vmem:[#allocation24_spill] sm:$0xff] %v18769_v34  ;;  %13582 = vmatprep.subr.bf16.mxu1 %v18769_v34 }
 0x77d   :  { %13584 = vmatpush3.bf16.msra.mxu1 %v18769_v34  ;;  %v7734_v34 = vmul.f32 %v18617_v32, %v18617_v32 }
 0x77e   :  { %7708 = vadd.xlane.f32.xlu1 %v18607_v62  ;;  %v4567_v14 = vpop.xlane.xlu0 %4566 }
 0x77f   :  { %v18800_v48 = vmul.f32 0.015625, %v4567_v14 }
 0x782   :  { %7758 = vadd.xlane.f32.xlu1 %v7733_v9  ;;  %v4565_v0 = vpop.xlane.xlu0 %4564 }
 0x786   :  { %7756 = vadd.xlane.f32.xlu1 %v7732_v59  ;;  %v4615_v9 = vpop.xlane.xlu0 %4614 }
 0x787   :  { %v4659_v25 = vmul.f32 0.015625, %v4615_v9 }
 0x78a   :  { %7714 = vadd.xlane.f32.xlu1 %v18614_v27  ;;  %v4613_v59 = vpop.xlane.xlu0 %4612 }
 0x78e   :  { %7712 = vadd.xlane.f32.xlu1 %v18617_v32  ;;  %v4571_v5 = vpop.xlane.xlu0 %4570 }
 0x792   :  { %7762 = vadd.xlane.f32.xlu1 %v7735_v7  ;;  %v4569_v7 = vpop.xlane.xlu0 %4568 }
 0x796   :  { %7760 = vadd.xlane.f32.xlu1 %v7734_v34  ;;  %v7738_v34 = vmul.f32 %v18634_v1, %v18634_v1  ;;  %v4619_v51 = vpop.xlane.xlu0 %4618 }
 0x79a   :  { %7718 = vadd.xlane.f32.xlu1 %v18621_v4  ;;  %v18802_v4 = vmul.f32 0.015625, %v4565_v0  ;;  %v4661_v0 = vmul.f32 0.015625, %v4619_v51 }
 0x79e   :  { %7716 = vadd.xlane.f32.xlu1 %v18626_v47  ;;  %v4656_v47 = vmul.f32 0.015625, %v4609_v28  ;;  %v4674_v28 = vmul.f32 %v18802_v4, %v18802_v4 }
 0x7a2   :  { %7766 = vadd.xlane.f32.xlu1 %v7737_v49  ;;  %v4617_v49 = vpop.xlane.xlu0 %4616 }
 0x7a6   :  { %7764 = vadd.xlane.f32.xlu1 %v7736_v31  ;;  %v4657_v31 = vmul.f32 0.015625, %v4611_v30  ;;  %v4575_v41 = vpop.xlane.xlu0 %4574  ;;  %v4675_v30 = vmul.f32 %v18800_v48, %v18800_v48 }
 0x7a7   :  { %v18854_v63 = vmul.f32 0.015625, %v4575_v41 }
 0x7a8   :  { %v4691_v16 = vsub.f32 %v4659_v25, %v4675_v30 }
 0x7aa   :  { %7722 = vadd.xlane.f32.xlu1 %v18629_v37  ;;  %v4658_v37 = vmul.f32 0.015625, %v4613_v59  ;;  %v4723_v45 = vadd.f32 1e-05, %v4691_v16 }
 0x7ac   :  { %v4690_v32 = vsub.f32 %v4658_v37, %v4674_v28 }
 0x7ae   :  { %7720 = vadd.xlane.f32.xlu1 %v18634_v1  ;;  %v4673_v1 = vmul.f32 %v18796_v50, %v18796_v50 }
 0x7b0   :  { %v4689_v42 = vsub.f32 %v4657_v31, %v4673_v1  ;;  %v18818_v1 = vmul.f32 0.015625, %v4569_v7  ;;  %v4722_v31 = vadd.f32 1e-05, %v4690_v32  ;;  %v20516_v7 = vand.u32 4294901760, %v18644_v58 }
 0x7b2   :  { %7768 = vadd.xlane.f32.xlu1 %v7738_v34  ;;  %v4672_v34 = vmul.f32 %v18798_v22, %v18798_v22  ;;  %v4721_v27 = vadd.f32 1e-05, %v4689_v42  ;;  %v4676_v25 = vmul.f32 %v18818_v1, %v18818_v1  ;;  %v18827_v32 = vsub.f32 %v18644_v58, %v20516_v7 }
 0x7b4   :  { %v4688_v14 = vsub.f32 %v4656_v47, %v4672_v34  ;;  %14424 = vrsqrt.f32 %v4721_v27  ;;  %v4660_v47 = vmul.f32 0.015625, %v4617_v49  ;;  %20517 = vst [vmem:[#allocation27_spill] sm:$0xff] %v18827_v32  ;;  %v20009_v49 = vand.u32 4294901760, %v18827_v32 }
 0x7b6   :  { %7770 = vadd.xlane.f32.xlu1 %v7739_v24  ;;  %v18808_v24 = vmul.f32 0.015625, %v4571_v5  ;;  %v4720_v39 = vadd.f32 1e-05, %v4688_v14  ;;  %v18816_v5 = vpop.xlane.xlu0 %4572  ;;  %v4692_v42 = vsub.f32 %v4660_v47, %v4676_v25  ;;  %v4705_v47 = vsub.f32 %v18501_v10, %v18796_v50 }
 0x7b8   :  { %v4677_v9 = vmul.f32 %v18808_v24, %v18808_v24  ;;  %14426 = vrsqrt.f32 %v4720_v39  ;;  %v20518_v39 = vand.u32 4294901760, %v18646_v35 }
 0x7b9   :  { %14428 = vrsqrt.f32 %v4723_v45  ;;  %v4724_v45 = vadd.f32 1e-05, %v4692_v42 }
 0x7ba   :  { %v4693_v59 = vsub.f32 %v4661_v0, %v4677_v9  ;;  %14430 = vrsqrt.f32 %v4722_v31  ;;  %v4623_v37 = vpop.xlane.xlu0 %4622  ;;  %v18832_v27 = vsub.f32 %v18646_v35, %v20518_v39 }
 0x7bc   :  { %v4725_v34 = vadd.f32 1e-05, %v4693_v59  ;;  %20519 = vst [vmem:[#allocation51_spill] sm:$0xff] %v18832_v27  ;;  %v20010_v14 = vand.u32 4294901760, %v18832_v27  ;;  %v8241_v59 = vsub.f32 %v18827_v32, %v20009_v49  ;;  %v4707_v49 = vsub.f32 %v18516_v36, %v18800_v48 }
 0x7bd   :  { %v4709_v36 = vsub.f32 %v18542_v8, %v18808_v24  ;;  %v4663_v48 = vmul.f32 0.015625, %v4623_v37 }
 0x7be   :  { %14432 = vrsqrt.f32 %v4725_v34  ;;  %v4621_v28 = vpop.xlane.xlu0 %4620  ;;  %v14425_v16 = vpop.eup %14424  ;;  %v8248_v35 = vsub.f32 %v18832_v27, %v20010_v14  ;;  %v4704_v34 = vsub.f32 %v18506_v40, %v18798_v22  ;;  %v4706_v14 = vsub.f32 %v18523_v57, %v18802_v4 }
 0x7bf   :  { %14434 = vrsqrt.f32 %v4724_v45 }
 0x7c0   :  { %v8249_v7 = vand.u32 4294901760, %v8248_v35 }
 0x7c2   :  { %v14427_v31 = vpop.eup %14426 }
 0x7c3   :  { %v14429_v25 = vpop.eup %14428 }
 0x7c4   :  { %v14431_v39 = vpop.eup %14430  ;;  %v4755_v57 = vmul.f32 %v14429_v25, %v4707_v49  ;;  %v18874_v49 = vmul.f32 0.015625, %v18816_v5  ;;  %v20522_v5 = vand.u32 4294901760, %v18660_v23 }
 0x7c5   :  { %v4754_v4 = vmul.f32 %v14431_v39, %v4706_v14 }
 0x7c7   :  { %v7695_v62 = vpop.xlane.xlu1 %7694 }
 0x7c8   :  { %v18822_v51 = vmul.f32 0.015625, %v7695_v62  ;;  %v14433_v45 = vpop.eup %14432 }
 0x7ca   :  { %v7805_v62 = vmul.f32 %v18822_v51, %v18822_v51 }
 0x7cb   :  { %v7693_v30 = vpop.xlane.xlu1 %7692 }
 0x7cc   :  { %v18838_v9 = vmul.f32 0.015625, %v7693_v30  ;;  %v8242_v30 = vand.u32 4294901760, %v8241_v59 }
 0x7ce   :  { %v7804_v10 = vmul.f32 %v18838_v9, %v18838_v9  ;;  %v18858_v50 = vpack.c.bf16 %v8249_v7, %v8242_v30  ;;  %v14435_v30 = vpop.eup %14434 }
 0x7cf   :  { %v7743_v0 = vpop.xlane.xlu1 %7742 }
 0x7d0   :  { %v7789_v58 = vmul.f32 0.015625, %v7743_v0  ;;  %v4753_v0 = vmul.f32 %v14425_v16, %v4705_v47  ;;  %v4752_v16 = vmul.f32 %v14427_v31, %v4704_v34  ;;  %13586 = vmatprep.subr.bf16.mxu1 %v18858_v50  ;;  %v4757_v47 = vmul.f32 %v14433_v45, %v4709_v36  ;;  %v18868_v31 = vld [vmem:[#allocation8 + $0xb] ss:$0 sm:$0xff] }
 0x7d1   :  { %v4662_v36 = vmul.f32 0.015625, %v4621_v28 }
 0x7d2   :  { %v7821_v42 = vsub.f32 %v7789_v58, %v7805_v62  ;;  %v18860_v62 = vld [vmem:[#allocation8 + $0xa] ss:$0 sm:$0xff]  ;;  %v4579_v58 = vpop.xlane.xlu0 %4578 }
 0x7d3   :  { %v7741_v52 = vpop.xlane.xlu1 %7740  ;;  %v4774_v35 = vmul.f32 %v18860_v62, %v4753_v0  ;;  %v4773_v8 = vmul.f32 %v18860_v62, %v4752_v16  ;;  %v4775_v24 = vmul.f32 %v18860_v62, %v4754_v4  ;;  %v4776_v37 = vmul.f32 %v18860_v62, %v4755_v57 }
 0x7d4   :  { %v7853_v40 = vadd.f32 1e-05, %v7821_v42  ;;  %v7788_v22 = vmul.f32 0.015625, %v7741_v52  ;;  %v4679_v52 = vmul.f32 %v18854_v63, %v18854_v63  ;;  %v4778_v0 = vmul.f32 %v18860_v62, %v4757_v47 }
 0x7d5   :  { %v4795_v7 = vadd.f32 %v18868_v31, %v4774_v35  ;;  %v18890_v16 = vsub.f32 %v18660_v23, %v20522_v5  ;;  %v18894_v57 = vadd.f32 %v18868_v31, %v4775_v24  ;;  %v18897_v4 = vadd.f32 %v18868_v31, %v4776_v37 }
 0x7d6   :  { %14436 = vrsqrt.f32 %v7853_v40  ;;  %v7820_v41 = vsub.f32 %v7788_v22, %v7804_v10  ;;  %v4695_v34 = vsub.f32 %v4663_v48, %v4679_v52  ;;  %v4577_v14 = vpop.xlane.xlu0 %4576  ;;  %v4708_v10 = vsub.f32 %v18545_v53, %v18818_v1  ;;  %v18905_v52 = vld [vmem:[#allocation8 + $0xe] ss:$0 sm:$0xff] }
 0x7d7   :  { %v7699_v59 = vpop.xlane.xlu1 %7698  ;;  %v20520_v22 = vand.u32 4294901760, %v18658_v44  ;;  %20523 = vst [vmem:[#allocation21_spill] sm:$0xff] %v18890_v16  ;;  %v4794_v48 = vadd.f32 %v18868_v31, %v4773_v8  ;;  %v7837_v23 = vsub.f32 %v18589_v17, %v18822_v51  ;;  %v20013_v17 = vand.u32 4294901760, %v18890_v16 }
 0x7d8   :  { %v7852_v42 = vadd.f32 1e-05, %v7820_v41  ;;  %v18877_v39 = vmul.f32 0.015625, %v7699_v59  ;;  %v4727_v40 = vadd.f32 1e-05, %v4695_v34  ;;  %v4756_v53 = vmul.f32 %v14435_v30, %v4708_v10 }
 0x7d9   :  { %v18885_v45 = vsub.f32 %v18658_v44, %v20520_v22  ;;  %v4678_v44 = vmul.f32 %v18874_v49, %v18874_v49  ;;  %v18916_v37 = vmul.f32 0.015625, %v4579_v58  ;;  %v18918_v30 = vld [vmem:[#allocation8 + $0xf] ss:$0 sm:$0xff] }
 0x7da   :  { %14438 = vrsqrt.f32 %v7852_v42  ;;  %v7807_v59 = vmul.f32 %v18877_v39, %v18877_v39  ;;  %v18912_v42 = vadd.f32 %v18868_v31, %v4778_v0  ;;  %v4627_v34 = vpop.xlane.xlu0 %4626  ;;  %v7836_v0 = vsub.f32 %v18593_v43, %v18838_v9 }
 0x7db   :  { %v7697_v25 = vpop.xlane.xlu1 %7696  ;;  %20521 = vst [vmem:[#allocation52_spill] sm:$0xff] %v18885_v45  ;;  %14440 = vrsqrt.f32 %v4727_v40  ;;  %v20014_v24 = vand.u32 4294901760, %v18885_v45  ;;  %v4694_v51 = vsub.f32 %v4662_v36, %v4678_v44  ;;  %v20526_v36 = vand.u32 4294901760, %v18676_v20 }
 0x7dc   :  { %v18909_v35 = vmul.f32 0.015625, %v7697_v25  ;;  %v20524_v25 = vand.u32 4294901760, %v18674_v46 }
 0x7dd   :  { %v18932_v58 = vsub.f32 %v18676_v20, %v20526_v36  ;;  %v8255_v9 = vsub.f32 %v18885_v45, %v20014_v24  ;;  %v4681_v20 = vmul.f32 %v18916_v37, %v18916_v37 }
 0x7de   :  { %v18923_v22 = vsub.f32 %v18674_v46, %v20524_v25 }
 0x7df   :  { %v7747_v41 = vpop.xlane.xlu1 %7746  ;;  %20527 = vst [vmem:[#allocation32_spill] sm:$0xff] %v18932_v58 }
 0x7e0   :  { %v14437_v28 = vpop.eup %14436  ;;  %v7791_v47 = vmul.f32 0.015625, %v7747_v41  ;;  %20525 = vst [vmem:[#allocation38_spill] sm:$0xff] %v18923_v22  ;;  %v4665_v41 = vmul.f32 0.015625, %v4627_v34 }
 0x7e1   :  { %v7885_v8 = vmul.f32 %v14437_v28, %v7837_v23  ;;  %v4777_v23 = vmul.f32 %v18860_v62, %v4756_v53  ;;  %v7806_v28 = vmul.f32 %v18909_v35, %v18909_v35  ;;  %v8262_v53 = vsub.f32 %v18890_v16, %v20013_v17 }
 0x7e2   :  { %v7823_v10 = vsub.f32 %v7791_v47, %v7807_v59  ;;  %v18953_v17 = vmul.f32 0.015625, %v4577_v14  ;;  %v4697_v24 = vsub.f32 %v4665_v41, %v4681_v20 }
 0x7e3   :  { %v7906_v40 = vmul.f32 %v18905_v52, %v7885_v8  ;;  %v7745_v5 = vpop.xlane.xlu1 %7744  ;;  %v8263_v8 = vand.u32 4294901760, %v8262_v53 }
 0x7e4   :  { %v14439_v44 = vpop.eup %14438  ;;  %v7855_v46 = vadd.f32 1e-05, %v7823_v10  ;;  %v7790_v59 = vmul.f32 0.015625, %v7745_v5  ;;  %v20528_v5 = vand.u32 4294901760, %v18692_v13  ;;  %v18981_v53 = vmul.f32 %v18953_v17, %v18953_v17 }
 0x7e5   :  { %v7927_v47 = vadd.f32 %v18918_v30, %v7906_v40  ;;  %v7884_v43 = vmul.f32 %v14439_v44, %v7836_v0  ;;  %v20015_v0 = vand.u32 4294901760, %v18932_v58  ;;  %v4726_v44 = vadd.f32 1e-05, %v4694_v51  ;;  %v18969_v51 = vpop.eup %14440 }
 0x7e6   :  { %14442 = vrsqrt.f32 %v7855_v46  ;;  %v7822_v34 = vsub.f32 %v7790_v59, %v7806_v28  ;;  %v18951_v36 = vsub.f32 %v18692_v13, %v20528_v5  ;;  %v8256_v59 = vand.u32 4294901760, %v8255_v9 }
 0x7e7   :  { %v7703_v10 = vpop.xlane.xlu1 %7702  ;;  %v7905_v25 = vmul.f32 %v18905_v52, %v7884_v43  ;;  %v7943_v40 = vadd.f32 %v7927_v47, %v4795_v7  ;;  %v18957_v7 = vadd.f32 %v18868_v31, %v4777_v23  ;;  %v20529_v47 = vand.u32 4294901760, %v18923_v22 }
 0x7e8   :  { %v7854_v1 = vadd.f32 1e-05, %v7822_v34  ;;  %v20530_v13 = vand.u32 4294901760, %v18694_v11  ;;  %v20017_v23 = vand.u32 4294901760, %v18951_v36  ;;  %v18985_v34 = vpop.xlane.xlu0 %4624  ;;  %v18992_v5 = vpack.c.bf16 %v8263_v8, %v8256_v59 }
 0x7e9   :  { %v7926_v28 = vadd.f32 %v18918_v30, %v7905_v25  ;;  %v7959_v46 = vmax.f32 %v7943_v40, 0.0  ;;  %v18962_v43 = vsub.f32 %v18923_v22, %v20529_v47  ;;  %v18987_v25 = vmul.f32 0.015625, %v7703_v10 }
 0x7ea   :  { %14444 = vrsqrt.f32 %v7854_v1  ;;  %v18967_v14 = vsub.f32 %v18694_v11, %v20530_v13  ;;  %v18976_v1 = vsub.f32 %v18932_v58, %v20015_v0  ;;  %v18983_v11 = vadd.f32 1e-05, %v4697_v24 }
 0x7eb   :  { %v7701_v41 = vpop.xlane.xlu1 %7700  ;;  %v7942_v20 = vadd.f32 %v7926_v28, %v4794_v48  ;;  %v18971_v9 = vand.u32 4294901760, %v7959_v46  ;;  %14446 = vrsqrt.f32 %v4726_v44  ;;  %v18996_v28 = vpack.c.bf16 %v18832_v27, %v18827_v32 }
 0x7ec   :  { %20531 = vst [vmem:[#allocation41_spill] sm:$0xff] %v18967_v14  ;;  %v7839_v44 = vsub.f32 %v18601_v60, %v18877_v39  ;;  %v20534_v10 = vand.u32 4294901760, %v18710_v18  ;;  %v19013_v59 = vsub.f32 %v18951_v36, %v20017_v23  ;;  %v20537_v60 = vand.u32 4294901760, %v18712_v33 }
 0x7ed   :  { %20532 = vst [vmem:[#allocation28_spill] sm:$0xff] %v18971_v9  ;;  %v7958_v48 = vmax.f32 %v7942_v20, 0.0  ;;  %v18990_v40 = vsub.f32 %v7959_v46, %v18971_v9  ;;  %v20540_v23 = vand.u32 4294901760, %v18726_v19 }
 0x7ee   :  { %v19005_v13 = vsub.f32 %v18710_v18, %v20534_v10  ;;  %v19018_v39 = vsub.f32 %v18712_v33, %v20537_v60  ;;  %v7809_v18 = vmul.f32 %v18987_v25, %v18987_v25  ;;  %v19022_v10 = vmul.f32 0.015625, %v7701_v41  ;;  %v19037_v60 = vpop.xlane.xlu0 %4582 }
 0x7ef   :  { %20533 = vst [vmem:[#allocation34_spill] sm:$0xff] %v18990_v40  ;;  %v7751_v46 = vpop.xlane.xlu1 %7750  ;;  %v19007_v20 = vand.u32 4294901760, %v7958_v48  ;;  %v19031_v32 = vsub.f32 %v18726_v19, %v20540_v23  ;;  %v19035_v33 = vpack.c.bf16 %v18890_v16, %v18885_v45  ;;  %v7838_v19 = vsub.f32 %v18611_v56, %v18909_v35 }
 0x7f0   :  { %20535 = vst [vmem:[#allocation18_spill] sm:$0xff] %v19005_v13  ;;  %20538 = vst [vmem:[#allocation26_spill] sm:$0xff] %v19018_v39  ;;  %v14443_v0 = vpop.eup %14442  ;;  %v7793_v24 = vmul.f32 0.015625, %v7751_v46  ;;  %v20543_v46 = vand.u32 4294901760, %v18967_v14  ;;  %v20546_v9 = vand.u32 4294901760, %v18990_v40 }
 0x7f1   :  { %20536 = vst [vmem:[#allocation16_spill] sm:$0xff] %v19007_v20  ;;  %v7887_v8 = vmul.f32 %v14443_v0, %v7839_v44  ;;  %v19026_v27 = vsub.f32 %v7958_v48, %v19007_v20  ;;  %20541 = vst [vmem:[#allocation36_spill] sm:$0xff] %v19031_v32  ;;  %v20544_v48 = vand.u32 4294901760, %v18728_v55 }
 0x7f2   :  { %20542 = vst [vmem:[#allocation37_spill] sm:$0xff] %v19035_v33  ;;  %v7825_v41 = vsub.f32 %v7793_v24, %v7809_v18  ;;  %v8290_v47 = vsub.f32 %v18967_v14, %v20543_v46  ;;  %v7808_v46 = vmul.f32 %v19022_v10, %v19022_v10 }
 0x7f3   :  { %20539 = vst [vmem:[#allocation35_spill] sm:$0xff] %v19026_v27  ;;  %v19046_v44 = vsub.f32 %v18728_v55, %v20544_v48  ;;  %v7749_v23 = vpop.xlane.xlu1 %7748  ;;  %v20026_v16 = vand.u32 4294901760, %v19026_v27  ;;  %v7908_v45 = vmul.f32 %v18905_v52, %v7887_v8  ;;  %v8090_v55 = vsub.f32 %v18990_v40, %v20546_v9 }
 0x7f4   :  { %v14445_v18 = vpop.eup %14444  ;;  %v7857_v0 = vadd.f32 1e-05, %v7825_v41  ;;  %v7792_v33 = vmul.f32 0.015625, %v7749_v23  ;;  %v19064_v8 = vpack.c.bf16 %v18932_v58, %v18923_v22  ;;  %v20547_v23 = vand.u32 4294901760, %v19005_v13  ;;  %v19077_v22 = vpop.xlane.xlu0 %4580 }
 0x7f5   :  { %20545 = vst [vmem:[#allocation53_spill] sm:$0xff] %v19046_v44  ;;  %v7886_v48 = vmul.f32 %v14445_v18, %v7838_v19  ;;  %v8080_v56 = vsub.f32 %v19026_v27, %v20026_v16  ;;  %v7929_v35 = vadd.f32 %v18918_v30, %v7908_v45  ;;  %v19066_v24 = vpop.eup %14446  ;;  %v20548_v40 = vand.u32 4294901760, %v19018_v39 }
 0x7f6   :  { %14448 = vrsqrt.f32 %v7857_v0  ;;  %v7824_v41 = vsub.f32 %v7792_v33, %v7808_v46  ;;  %v8297_v20 = vsub.f32 %v19005_v13, %v20547_v23  ;;  %v8091_v33 = vand.u32 4294901760, %v8090_v55 }
 0x7f7   :  { %v7707_v19 = vpop.xlane.xlu1 %7706  ;;  %v8081_v18 = vand.u32 4294901760, %v8080_v56  ;;  %v7907_v16 = vmul.f32 %v18905_v52, %v7886_v48  ;;  %v7945_v45 = vadd.f32 %v7929_v35, %v18897_v4  ;;  %v8304_v58 = vsub.f32 %v19018_v39, %v20548_v40 }
 0x7f8   :  { %v7856_v0 = vadd.f32 1e-05, %v7824_v41  ;;  %v8284_v46 = vand.u32 4294901760, %v19013_v59  ;;  %v8291_v27 = vand.u32 4294901760, %v8290_v47  ;;  %v20033_v56 = vand.u32 4294901760, %v19046_v44 }
 0x7f9   :  { %12289 = vmatprep.mubr.f32.mxu1 %v8081_v18  ;;  %v7928_v23 = vadd.f32 %v18918_v30, %v7907_v16  ;;  %v7961_v9 = vmax.f32 %v7945_v45, 0.0  ;;  %v19084_v4 = vpack.c.bf16 %v18967_v14, %v18951_v36  ;;  %v20549_v40 = vand.u32 4294901760, %v19031_v32 }
 0x7fa   :  { %14450 = vrsqrt.f32 %v7856_v0  ;;  %12290 = vmatmul.mubr.f32.vlgmr.msra.gmra.mrb[32].mxu1 %v8091_v33  ;;  %v20550_v59 = vand.u32 4294901760, %v18742_v26  ;;  %v20552_v16 = vand.u32 4294901760, %v18744_v15  ;;  %v8298_v45 = vand.u32 4294901760, %v8297_v20 }
 0x7fb   :  { %v19089_v48 = vsub.f32 %v19031_v32, %v20549_v40  ;;  %v7705_v35 = vpop.xlane.xlu1 %7704  ;;  %v7944_v41 = vadd.f32 %v7928_v23, %v18894_v57  ;;  %v19102_v18 = vand.u32 4294901760, %v7961_v9  ;;  %13588 = vmatpush3.bf16.msra.mxu1 %v18858_v50  ;;  %v8305_v0 = vand.u32 4294901760, %v8304_v58 }
 0x7fc   :  { %v19094_v47 = vsub.f32 %v18742_v26, %v20550_v59  ;;  %v19099_v55 = vsub.f32 %v18744_v15, %v20552_v16  ;;  %v19106_v33 = vmul.f32 0.015625, %v18985_v34  ;;  %v19108_v40 = vmul.f32 0.015625, %v7707_v19  ;;  %13590 = vmatprep.subr.bf16.mxu1 %v18992_v5  ;;  %v19125_v34 = vpop.xlane.xlu0 %4630 }
 0x7fd   :  { %v20554_v26 = vand.u32 4294901760, %v18962_v43  ;;  %v20555_v15 = vand.u32 4294901760, %v18976_v1  ;;  %v13597_v16 = vpack.c.bf16 %v8291_v27, %v8284_v46  ;;  %v7960_v57 = vmax.f32 %v7944_v41, 0.0 }
 0x7fe   :  { %20551 = vst [vmem:[#allocation54_spill] sm:$0xff] %v19094_v47  ;;  %20553 = vst [vmem:[#allocation55_spill] sm:$0xff] %v19099_v55  ;;  %v19116_v23 = vsub.f32 %v7961_v9, %v19102_v18  ;;  %v8318_v50 = vsub.f32 %v19046_v44, %v20033_v56  ;;  %v19123_v58 = vpack.c.bf16 %v19018_v39, %v19005_v13  ;;  %v8312_v43 = vand.u32 4294901760, %v19089_v48 }
 0x7ff   :  { %v13593_v59 = vpack.c.bf16 %v20555_v15, %v20554_v26  ;;  %v20556_v20 = vand.u32 4294901760, %v18757_v21  ;;  %v7841_v19 = vsub.f32 %v18637_v12, %v18987_v25  ;;  %v7755_v46 = vpop.xlane.xlu1 %7754  ;;  %v19137_v41 = vand.u32 4294901760, %v7960_v57  ;;  %13592 = vmatpush3.bf16.msra.mxu1 %v18992_v5 }
 0x800   :  { %v13601_v26 = vpack.c.bf16 %v8305_v0, %v8298_v45  ;;  %v20557_v48 = vand.u32 4294901760, %v18759_v6  ;;  %v14449_v56 = vpop.eup %14448  ;;  %v7811_v27 = vmul.f32 %v19108_v40, %v19108_v40  ;;  %v8319_v5 = vand.u32 4294901760, %v8318_v50 }
 0x801   :  { %v19133_v9 = vsub.f32 %v18757_v21, %v20556_v20  ;;  %v19147_v21 = vmul.f32 0.015625, %v7705_v35  ;;  %v7795_v20 = vmul.f32 0.015625, %v7755_v46  ;;  %13594 = vmatprep.subr.bf16.mxu1 %v13593_v59  ;;  %v7889_v25 = vmul.f32 %v14449_v56, %v7841_v19 }
 0x802   :  { %v19143_v15 = vsub.f32 %v18759_v6, %v20557_v48  ;;  %v19151_v1 = vsub.f32 %v7960_v57, %v19137_v41  ;;  %v19155_v45 = vpack.c.bf16 %v19046_v44, %v19031_v32  ;;  %v20558_v0 = vand.u32 4294901760, %v19094_v47  ;;  %v19169_v44 = vpop.xlane.xlu0 %4628 }
 0x803   :  { %v7827_v6 = vsub.f32 %v7795_v20, %v7811_v27  ;;  %v20559_v35 = vand.u32 4294901760, %v19099_v55  ;;  %v7840_v56 = vsub.f32 %v18641_v3, %v19022_v10  ;;  %v7753_v57 = vpop.xlane.xlu1 %7752  ;;  %v7910_v19 = vmul.f32 %v18905_v52, %v7889_v25  ;;  %13596 = vmatpush3.bf16.msra.mxu1 %v13593_v59 }
 0x804   :  { %v8325_v48 = vsub.f32 %v19094_v47, %v20558_v0  ;;  %v20039_v50 = vand.u32 4294901760, %v19151_v1  ;;  %v14451_v20 = vpop.eup %14450  ;;  %v7810_v0 = vmul.f32 %v19147_v21, %v19147_v21  ;;  %v7794_v32 = vmul.f32 0.015625, %v7753_v57  ;;  %13598 = vmatprep.subr.bf16.mxu1 %v13597_v16 }
 0x805   :  { %v8332_v46 = vsub.f32 %v19099_v55, %v20559_v35  ;;  %v7859_v35 = vadd.f32 1e-05, %v7827_v6  ;;  %v20560_v12 = vand.u32 4294901760, %v19116_v23  ;;  %v7888_v10 = vmul.f32 %v14451_v20, %v7840_v56 }
 0x806   :  { %v8100_v59 = vsub.f32 %v19151_v1, %v20039_v50  ;;  %v7931_v25 = vadd.f32 %v18918_v30, %v7910_v19  ;;  %v19182_v27 = vpack.c.bf16 %v19099_v55, %v19094_v47  ;;  %v7826_v39 = vsub.f32 %v7794_v32, %v7810_v0 }
 0x807   :  { %v8110_v3 = vsub.f32 %v19116_v23, %v20560_v12  ;;  %14452 = vrsqrt.f32 %v7859_v35  ;;  %v13605_v6 = vpack.c.bf16 %v8319_v5, %v8312_v43  ;;  %v20561_v57 = vand.u32 4294901760, %v19133_v9  ;;  %v7711_v12 = vpop.xlane.xlu1 %7710  ;;  %13600 = vmatpush3.bf16.msra.mxu1 %v13597_v16 }
 0x808   :  { %v8101_v14 = vand.u32 4294901760, %v8100_v59  ;;  %v7909_v56 = vmul.f32 %v18905_v52, %v7888_v10  ;;  %v7947_v20 = vadd.f32 %v7931_v25, %v18912_v42  ;;  %v20562_v19 = vand.u32 4294901760, %v19143_v15  ;;  %13602 = vmatprep.subr.bf16.mxu1 %v13601_v26 }
 0x809   :  { %v8339_v13 = vsub.f32 %v19133_v9, %v20561_v57  ;;  %v7858_v55 = vadd.f32 1e-05, %v7826_v39  ;;  %v8111_v47 = vand.u32 4294901760, %v8110_v3  ;;  %v8326_v32 = vand.u32 4294901760, %v8325_v48  ;;  %v19203_v3 = vpop.xlane.xlu0 %4586 }
 0x80a   :  { %v8346_v50 = vsub.f32 %v19143_v15, %v20562_v19  ;;  %v8333_v43 = vand.u32 4294901760, %v8332_v46  ;;  %v4696_v5 = vsub.f32 %v19106_v33, %v18981_v53  ;;  %12292 = vmatprep.mubr.f32.mxu1 %v8101_v14  ;;  %v7930_v0 = vadd.f32 %v18918_v30, %v7909_v56 }
 0x80b   :  { %v7963_v35 = vmax.f32 %v7947_v20, 0.0  ;;  %v19197_v42 = vpack.c.bf16 %v19143_v15, %v19133_v9  ;;  %v20563_v16 = vsub.f32 %v18552_v2, %v18854_v63  ;;  %14454 = vrsqrt.f32 %v7858_v55  ;;  %12293 = vmatmul.mubr.f32.gmra.mrb[34].mxu1 %v8111_v47  ;;  %v7709_v48 = vpop.xlane.xlu1 %7708 }
 0x80c   :  { %v7946_v53 = vadd.f32 %v7930_v0, %v18957_v7  ;;  %13604 = vmatpush3.bf16.msra.mxu1 %v13601_v26  ;;  %v8340_v33 = vand.u32 4294901760, %v8339_v13  ;;  %v8347_v46 = vand.u32 4294901760, %v8346_v50  ;;  %v4710_v10 = vsub.f32 %v18555_v38, %v18874_v49 }
 0x80d   :  { %v4759_v39 = vmul.f32 %v18969_v51, %v20563_v16  ;;  %v19206_v14 = vand.u32 4294901760, %v7963_v35  ;;  %14456 = vrsqrt.f32 %v18983_v11  ;;  %v19211_v2 = vmul.f32 0.015625, %v7711_v12  ;;  %13606 = vmatprep.subr.bf16.mxu1 %v13605_v6  ;;  %v19226_v25 = vpop.xlane.xlu0 %4584 }
 0x80e   :  { %v13609_v63 = vpack.c.bf16 %v8333_v43, %v8326_v32  ;;  %v4728_v51 = vadd.f32 1e-05, %v4696_v5  ;;  %v19214_v47 = vmul.f32 0.015625, %v19037_v60  ;;  %v7962_v55 = vmax.f32 %v7946_v53, 0.0 }
 0x80f   :  { %v19217_v7 = vsub.f32 %v7963_v35, %v19206_v14  ;;  %v4758_v13 = vmul.f32 %v19066_v24, %v4710_v10  ;;  %v4780_v26 = vmul.f32 %v18860_v62, %v4759_v39  ;;  %v4667_v38 = vmul.f32 0.015625, %v19125_v34  ;;  %v7759_v11 = vpop.xlane.xlu1 %7758 }
 0x810   :  { %v7843_v49 = vsub.f32 %v18682_v29, %v19108_v40  ;;  %v19224_v50 = vand.u32 4294901760, %v7962_v55  ;;  %13608 = vmatpush3.bf16.msra.mxu1 %v13605_v6  ;;  %v13613_v59 = vpack.c.bf16 %v8347_v46, %v8340_v33  ;;  %v7813_v57 = vmul.f32 %v19211_v2, %v19211_v2 }
 0x811   :  { %v14453_v60 = vpop.eup %14452  ;;  %v19230_v12 = vmul.f32 0.015625, %v7709_v48  ;;  %v7797_v24 = vmul.f32 0.015625, %v7759_v11  ;;  %v8129_v56 = vand.u32 4294901760, %v19217_v7  ;;  %13610 = vmatprep.subr.bf16.mxu1 %v13609_v63  ;;  %14458 = vrsqrt.f32 %v4728_v51  ;;  %v4635_v51 = vpop.xlane.xlu0 %4634 }
 0x812   :  { %v4683_v29 = vmul.f32 %v19214_v47, %v19214_v47  ;;  %v7891_v40 = vmul.f32 %v14453_v60, %v7843_v49  ;;  %v19236_v34 = vsub.f32 %v7962_v55, %v19224_v50  ;;  %v19239_v6 = vmul.f32 0.015625, %v19077_v22 }
 0x813   :  { %v7829_v20 = vsub.f32 %v7797_v24, %v7813_v57  ;;  %v4779_v19 = vmul.f32 %v18860_v62, %v4758_v13  ;;  %v4801_v32 = vadd.f32 %v18868_v31, %v4780_v26  ;;  %v7842_v5 = vsub.f32 %v18700_v61, %v19147_v21  ;;  %v7757_v0 = vpop.xlane.xlu1 %7756 }
 0x814   :  { %v4699_v43 = vsub.f32 %v4667_v38, %v4683_v29  ;;  %v8119_v35 = vand.u32 4294901760, %v19236_v34  ;;  %v7912_v16 = vmul.f32 %v18905_v52, %v7891_v40  ;;  %13612 = vmatpush3.bf16.msra.mxu1 %v13609_v63  ;;  %v7812_v22 = vmul.f32 %v19230_v12, %v19230_v12 }
 0x815   :  { %v14455_v39 = vpop.eup %14454  ;;  %v7861_v48 = vadd.f32 1e-05, %v7829_v20  ;;  %v7796_v53 = vmul.f32 0.015625, %v7757_v0  ;;  %v8130_v33 = vsub.f32 %v19217_v7, %v8129_v56  ;;  %13614 = vmatprep.subr.bf16.mxu1 %v13613_v59  ;;  %v4666_v46 = vmul.f32 0.015625, %v19169_v44 }
 0x816   :  { %v7890_v61 = vmul.f32 %v14455_v39, %v7842_v5  ;;  %v8120_v21 = vsub.f32 %v19236_v34, %v8119_v35  ;;  %v7933_v10 = vadd.f32 %v18918_v30, %v7912_v16  ;;  %v4682_v13 = vmul.f32 %v19239_v6, %v19239_v6 }
 0x817   :  { %v14457_v63 = vpop.eup %14456  ;;  %14460 = vrsqrt.f32 %v7861_v48  ;;  %v7828_v55 = vsub.f32 %v7796_v53, %v7812_v22  ;;  %v7715_v26 = vpop.xlane.xlu1 %7714  ;;  %v4713_v44 = vsub.f32 %v18518_v54, %v18916_v37  ;;  %v4731_v60 = vadd.f32 1e-05, %v4699_v43  ;;  %v20564_v54 = vld [vmem:[#allocation15_spill] sm:$0xff] }
 0x818   :  { %v8121_v38 = vand.u32 4294901760, %v8120_v21  ;;  %v7911_v49 = vmul.f32 %v18905_v52, %v7890_v61  ;;  %v7949_v11 = vadd.f32 %v7933_v10, %v4801_v32  ;;  %13616 = vmatpush3.bf16.msra.mxu1 %v13613_v59  ;;  %v8131_v24 = vand.u32 4294901760, %v8130_v33  ;;  %v4633_v43 = vpop.xlane.xlu0 %4632  ;;  %v20565_v21 = vld [vmem:[#allocation23_spill] sm:$0xff] }
 0x819   :  { %v7860_v57 = vadd.f32 1e-05, %v7828_v55  ;;  %13618 = vmatprep.subr.bf16.mxu1 %v18996_v28  ;;  %v4698_v29 = vsub.f32 %v4666_v46, %v4682_v13  ;;  %v4800_v40 = vadd.f32 %v18868_v31, %v4779_v19  ;;  %v4761_v0 = vmul.f32 %v14457_v63, %v4713_v44 }
 0x81a   :  { %12295 = vmatprep.mubr.f32.mxu1 %v8121_v38  ;;  %v7932_v20 = vadd.f32 %v18918_v30, %v7911_v49  ;;  %v7965_v5 = vmax.f32 %v7949_v11, 0.0  ;;  %v4712_v37 = vsub.f32 %v20564_v54, %v18953_v17  ;;  %v19269_v22 = vmul.f32 0.015625, %v7715_v26 }
 0x81b   :  { %14462 = vrsqrt.f32 %v7860_v57  ;;  %12296 = vmatmul.mubr.f32.gmra.mrb[36].mxu1 %v8131_v24  ;;  %v14459_v32 = vpop.eup %14458  ;;  %v7713_v59 = vpop.xlane.xlu1 %7712  ;;  %v4730_v48 = vadd.f32 1e-05, %v4698_v29  ;;  %v19275_v46 = vmul.f32 0.015625, %v19203_v3  ;;  %v4782_v61 = vmul.f32 %v18860_v62, %v4761_v0 }
 0x81c   :  { %v7948_v16 = vadd.f32 %v7932_v20, %v4800_v40  ;;  %v19265_v39 = vand.u32 4294901760, %v7965_v5  ;;  %14464 = vrsqrt.f32 %v4731_v60  ;;  %v4760_v33 = vmul.f32 %v14459_v32, %v4712_v37  ;;  %v19292_v60 = vpop.xlane.xlu0 %4590  ;;  %v20566_v20 = vld [vmem:[#allocation25_spill] sm:$0xff] }
 0x81d   :  { %v7845_v10 = vsub.f32 %v20565_v21, %v19211_v2  ;;  %v7815_v13 = vmul.f32 %v19269_v22, %v19269_v22  ;;  %v19284_v26 = vmul.f32 0.015625, %v7713_v59  ;;  %14466 = vrsqrt.f32 %v4730_v48 }
 0x81e   :  { %v7964_v19 = vmax.f32 %v7948_v16, 0.0  ;;  %v19272_v53 = vsub.f32 %v7965_v5, %v19265_v39  ;;  %v4669_v3 = vmul.f32 0.015625, %v4635_v51  ;;  %v4685_v2 = vmul.f32 %v19275_v46, %v19275_v46 }
 0x81f   :  { %v7763_v63 = vpop.xlane.xlu1 %7762  ;;  %v4781_v24 = vmul.f32 %v18860_v62, %v4760_v33  ;;  %v4803_v29 = vadd.f32 %v18868_v31, %v4782_v61  ;;  %v19297_v40 = vmul.f32 0.015625, %v19226_v25  ;;  %v7844_v51 = vsub.f32 %v20566_v20, %v19230_v12 }
 0x820   :  { %v19280_v17 = vand.u32 4294901760, %v7964_v19  ;;  %v7799_v38 = vmul.f32 0.015625, %v7763_v63  ;;  %v20042_v49 = vand.u32 4294901760, %v19272_v53  ;;  %v7814_v16 = vmul.f32 %v19284_v26, %v19284_v26  ;;  %v20567_v63 = vld [vmem:[#allocation29_spill] sm:$0xff] }
 0x821   :  { %v14461_v55 = vpop.eup %14460  ;;  %v4701_v25 = vsub.f32 %v4669_v3, %v4685_v2  ;;  %v4668_v21 = vmul.f32 0.015625, %v4633_v43  ;;  %v4684_v3 = vmul.f32 %v19297_v40, %v19297_v40  ;;  %v4589_v2 = vpop.xlane.xlu0 %4588 }
 0x822   :  { %v7893_v11 = vmul.f32 %v14461_v55, %v7845_v10  ;;  %v19288_v44 = vsub.f32 %v7964_v19, %v19280_v17  ;;  %v7831_v57 = vsub.f32 %v7799_v38, %v7815_v13  ;;  %v8150_v48 = vsub.f32 %v19272_v53, %v20042_v49 }
 0x823   :  { %v7761_v5 = vpop.xlane.xlu1 %7760  ;;  %v4715_v55 = vsub.f32 %v20567_v63, %v19214_v47  ;;  %v4733_v43 = vadd.f32 1e-05, %v4701_v25  ;;  %v4700_v47 = vsub.f32 %v4668_v21, %v4684_v3 }
 0x824   :  { %v20044_v0 = vand.u32 4294901760, %v19288_v44  ;;  %v7914_v32 = vmul.f32 %v18905_v52, %v7893_v11  ;;  %v7863_v54 = vadd.f32 1e-05, %v7831_v57  ;;  %v7798_v37 = vmul.f32 0.015625, %v7761_v5 }
 0x825   :  { %v14463_v59 = vpop.eup %14462  ;;  %v4802_v5 = vadd.f32 %v18868_v31, %v4781_v24  ;;  %v4637_v63 = vpop.xlane.xlu0 %4636 }
 0x826   :  { %v7892_v19 = vmul.f32 %v14463_v59, %v7844_v51  ;;  %v8140_v12 = vsub.f32 %v19288_v44, %v20044_v0  ;;  %v7935_v33 = vadd.f32 %v18918_v30, %v7914_v32  ;;  %v14465_v61 = vpop.eup %14464  ;;  %14468 = vrsqrt.f32 %v7863_v54 }
 0x827   :  { %v7830_v10 = vsub.f32 %v7798_v37, %v7814_v16  ;;  %v7719_v13 = vpop.xlane.xlu1 %7718  ;;  %v8151_v51 = vand.u32 4294901760, %v8150_v48  ;;  %v4763_v32 = vmul.f32 %v14465_v61, %v4715_v55  ;;  %v14467_v54 = vpop.eup %14466  ;;  %v19329_v55 = vmul.f32 0.015625, %v4589_v2 }
 0x828   :  { %v8141_v38 = vand.u32 4294901760, %v8140_v12  ;;  %v7913_v11 = vmul.f32 %v18905_v52, %v7892_v19  ;;  %v7951_v57 = vadd.f32 %v7935_v33, %v4803_v29  ;;  %v20568_v12 = vld [vmem:[#allocation19_spill] sm:$0xff]  ;;  %v19323_v48 = vmul.f32 0.015625, %v7719_v13 }
 0x829   :  { %v7862_v20 = vadd.f32 1e-05, %v7830_v10  ;;  %v4714_v33 = vsub.f32 %v20568_v12, %v19239_v6  ;;  %v4784_v61 = vmul.f32 %v18860_v62, %v4763_v32  ;;  %v4732_v10 = vadd.f32 1e-05, %v4700_v47 }
 0x82a   :  { %12298 = vmatprep.mubr.f32.mxu1 %v8141_v38  ;;  %v7934_v59 = vadd.f32 %v18918_v30, %v7913_v11  ;;  %v7967_v16 = vmax.f32 %v7951_v57, 0.0  ;;  %v20569_v38 = vld [vmem:[#allocation17_spill] sm:$0xff]  ;;  %v7817_v13 = vmul.f32 %v19323_v48, %v19323_v48  ;;  %v4686_v47 = vmul.f32 %v19329_v55, %v19329_v55 }
 0x82b   :  { %14470 = vrsqrt.f32 %v7862_v20  ;;  %12299 = vmatmul.mubr.f32.gmra.mrb[38].mxu1 %v8151_v51  ;;  %v7717_v37 = vpop.xlane.xlu1 %7716  ;;  %v4762_v21 = vmul.f32 %v14467_v54, %v4714_v33  ;;  %v7847_v11 = vsub.f32 %v20569_v38, %v19269_v22  ;;  %v4805_v2 = vadd.f32 %v18868_v31, %v4784_v61  ;;  %v20570_v54 = vld [vmem:[#allocation39_spill] sm:$0xff]  ;;  %v4639_v38 = vpop.xlane.xlu0 %4638 }
 0x82c   :  { %v7950_v29 = vadd.f32 %v7934_v59, %v4802_v5  ;;  %v19319_v19 = vand.u32 4294901760, %v7967_v16  ;;  %14472 = vrsqrt.f32 %v4733_v43  ;;  %v19337_v20 = vmul.f32 0.015625, %v7717_v37 }
 0x82d   :  { %14474 = vrsqrt.f32 %v4732_v10  ;;  %v4670_v22 = vmul.f32 0.015625, %v4637_v63  ;;  %v7846_v37 = vsub.f32 %v20570_v54, %v19284_v26 }
 0x82e   :  { %v7966_v24 = vmax.f32 %v7950_v29, 0.0  ;;  %v19326_v25 = vsub.f32 %v7967_v16, %v19319_v19  ;;  %v4783_v16 = vmul.f32 %v18860_v62, %v4762_v21  ;;  %v7816_v61 = vmul.f32 %v19337_v20, %v19337_v20 }
 0x82f   :  { %v7767_v57 = vpop.xlane.xlu1 %7766 }
 0x830   :  { %v19333_v3 = vand.u32 4294901760, %v7966_v24  ;;  %v14469_v6 = vpop.eup %14468  ;;  %v7801_v51 = vmul.f32 0.015625, %v7767_v57  ;;  %v20043_v5 = vand.u32 4294901760, %v19326_v25 }
 0x831   :  { %v7895_v32 = vmul.f32 %v14469_v6, %v7847_v11  ;;  %v19357_v11 = vmul.f32 0.015625, %v19292_v60  ;;  %v20571_v60 = vld [vmem:[#allocation20_spill] sm:$0xff] }
 0x832   :  { %v19341_v43 = vsub.f32 %v7966_v24, %v19333_v3  ;;  %v7833_v59 = vsub.f32 %v7801_v51, %v7817_v13  ;;  %v8170_v21 = vsub.f32 %v19326_v25, %v20043_v5  ;;  %v4702_v13 = vsub.f32 %v4670_v22, %v4686_v47 }
 0x833   :  { %v7765_v29 = vpop.xlane.xlu1 %7764  ;;  %v7916_v33 = vmul.f32 %v18905_v52, %v7895_v32  ;;  %v4717_v0 = vsub.f32 %v20571_v60, %v19275_v46  ;;  %v4804_v22 = vadd.f32 %v18868_v31, %v4783_v16  ;;  %v20572_v16 = vld [vmem:[#allocation30_spill] sm:$0xff] }
 0x834   :  { %v20045_v12 = vand.u32 4294901760, %v19341_v43  ;;  %v7865_v10 = vadd.f32 1e-05, %v7833_v59  ;;  %v7800_v63 = vmul.f32 0.015625, %v7765_v29  ;;  %v4671_v59 = vmul.f32 0.015625, %v4639_v38 }
 0x835   :  { %v14471_v24 = vpop.eup %14470  ;;  %v7937_v6 = vadd.f32 %v18918_v30, %v7916_v33 }
 0x836   :  { %v7894_v26 = vmul.f32 %v14471_v24, %v7846_v37  ;;  %v8160_v57 = vsub.f32 %v19341_v43, %v20045_v12  ;;  %14476 = vrsqrt.f32 %v7865_v10  ;;  %v7832_v51 = vsub.f32 %v7800_v63, %v7816_v61  ;;  %v14473_v32 = vpop.eup %14472 }
 0x837   :  { %v7723_v54 = vpop.xlane.xlu1 %7722  ;;  %v7953_v5 = vadd.f32 %v7937_v6, %v4805_v2  ;;  %v8171_v24 = vand.u32 4294901760, %v8170_v21  ;;  %v4687_v12 = vmul.f32 %v19357_v11, %v19357_v11  ;;  %v4765_v38 = vmul.f32 %v14473_v32, %v4717_v0  ;;  %v14475_v46 = vpop.eup %14474 }
 0x838   :  { %v8161_v29 = vand.u32 4294901760, %v8160_v57  ;;  %v7915_v49 = vmul.f32 %v18905_v52, %v7894_v26  ;;  %v7864_v37 = vadd.f32 1e-05, %v7832_v51  ;;  %v4734_v61 = vadd.f32 1e-05, %v4702_v13 }
 0x839   :  { %v7969_v33 = vmax.f32 %v7953_v5, 0.0  ;;  %v4703_v10 = vsub.f32 %v4671_v59, %v4687_v12  ;;  %v4786_v0 = vmul.f32 %v18860_v62, %v4765_v38  ;;  %v20573_v12 = vld [vmem:[#allocation40_spill] sm:$0xff] }
 0x83a   :  { %12301 = vmatprep.mubr.f32.mxu1 %v8161_v29  ;;  %v7936_v47 = vadd.f32 %v18918_v30, %v7915_v49  ;;  %14478 = vrsqrt.f32 %v7864_v37  ;;  %v4716_v49 = vsub.f32 %v20572_v16, %v19297_v40  ;;  %v7849_v13 = vsub.f32 %v20573_v12, %v19323_v48  ;;  %v20574_v48 = vld [vmem:[#allocation42_spill] sm:$0xff] }
 0x83b   :  { %12302 = vmatmul.mubr.f32.gmra.mrb[40].mxu1 %v8171_v24  ;;  %v7721_v2 = vpop.xlane.xlu1 %7720  ;;  %v19370_v26 = vand.u32 4294901760, %v7969_v33  ;;  %14480 = vrsqrt.f32 %v4734_v61  ;;  %v4735_v5 = vadd.f32 1e-05, %v4703_v10  ;;  %v7787_v29 = vmul.f32 0.015625, %v7723_v54 }
 0x83c   :  { %v7952_v63 = vadd.f32 %v7936_v47, %v4804_v22  ;;  %v19372_v21 = vmul.f32 0.015625, %v7721_v2  ;;  %v4764_v22 = vmul.f32 %v14475_v46, %v4716_v49  ;;  %v4807_v38 = vadd.f32 %v18868_v31, %v4786_v0 }
 0x83d   :  { %v19375_v6 = vsub.f32 %v7969_v33, %v19370_v26  ;;  %14482 = vrsqrt.f32 %v4735_v5  ;;  %v7848_v61 = vsub.f32 %v20574_v48, %v19337_v20  ;;  %v7819_v16 = vmul.f32 %v7787_v29, %v7787_v29 }
 0x83e   :  { %v7968_v57 = vmax.f32 %v7952_v63, 0.0  ;;  %v7818_v60 = vmul.f32 %v19372_v21, %v19372_v21  ;;  %v4785_v20 = vmul.f32 %v18860_v62, %v4764_v22 }
 0x83f   :  { %v7769_v51 = vpop.xlane.xlu1 %7768  ;;  %v8189_v24 = vand.u32 4294901760, %v19375_v6 }
 0x840   :  { %v19382_v32 = vand.u32 4294901760, %v7968_v57  ;;  %v14477_v59 = vpop.eup %14476  ;;  %v7802_v37 = vmul.f32 0.015625, %v7769_v51  ;;  %v4806_v48 = vadd.f32 %v18868_v31, %v4785_v20 }
 0x841   :  { %v7897_v40 = vmul.f32 %v14477_v59, %v7849_v13 }
 0x842   :  { %v19388_v47 = vsub.f32 %v7968_v57, %v19382_v32  ;;  %v7834_v33 = vsub.f32 %v7802_v37, %v7818_v60  ;;  %v8190_v57 = vsub.f32 %v19375_v6, %v8189_v24 }
 0x843   :  { %v7771_v10 = vpop.xlane.xlu1 %7770  ;;  %v7918_v2 = vmul.f32 %v18905_v52, %v7897_v40 }
 0x844   :  { %v8179_v54 = vand.u32 4294901760, %v19388_v47  ;;  %v14479_v63 = vpop.eup %14478  ;;  %v7866_v12 = vadd.f32 1e-05, %v7834_v33  ;;  %v7803_v46 = vmul.f32 0.015625, %v7771_v10  ;;  %v8191_v40 = vand.u32 4294901760, %v8190_v57  ;;  %v20576_v57 = vld [vmem:[#allocation31_spill] sm:$0xff] }
 0x845   :  { %v7896_v49 = vmul.f32 %v14479_v63, %v7848_v61  ;;  %v7939_v5 = vadd.f32 %v18918_v30, %v7918_v2  ;;  %v14481_v33 = vpop.eup %14480  ;;  %v20575_v63 = vld [vmem:[#allocation22_spill] sm:$0xff]  ;;  %v4719_v31 = vsub.f32 %v20576_v57, %v19357_v11 }
 0x846   :  { %v8180_v0 = vsub.f32 %v19388_v47, %v8179_v54  ;;  %14484 = vrsqrt.f32 %v7866_v12  ;;  %v7835_v13 = vsub.f32 %v7803_v46, %v7819_v16  ;;  %v4718_v62 = vsub.f32 %v20575_v63, %v19329_v55 }
 0x847   :  { %v7917_v59 = vmul.f32 %v18905_v52, %v7896_v49  ;;  %v7955_v60 = vadd.f32 %v7939_v5, %v4807_v38  ;;  %v14483_v12 = vpop.eup %14482  ;;  %v20577_v49 = vld [vmem:[#allocation44_spill] sm:$0xff] }
 0x848   :  { %v8181_v51 = vand.u32 4294901760, %v8180_v0  ;;  %v7867_v37 = vadd.f32 1e-05, %v7835_v13  ;;  %v4766_v16 = vmul.f32 %v14481_v33, %v4718_v62  ;;  %v7850_v0 = vsub.f32 %v20577_v49, %v19372_v21  ;;  %v14520_v13 = vld [vmem:[#allocation8 + $0xa] ss:$0 sm:$0xff] }
 0x849   :  { %v7938_v61 = vadd.f32 %v18918_v30, %v7917_v59  ;;  %v7971_v10 = vmax.f32 %v7955_v60, 0.0  ;;  %v4767_v59 = vmul.f32 %v14483_v12, %v4719_v31 }
 0x84a   :  { %12304 = vmatprep.mubr.f32.mxu1 %v8181_v51  ;;  %14486 = vrsqrt.f32 %v7867_v37  ;;  %v4787_v51 = vmul.f32 %v14520_v13, %v4766_v16 }
 0x84b   :  { %12305 = vmatmul.mubr.f32.gmra.mrb[42].mxu1 %v8191_v40  ;;  %v7954_v22 = vadd.f32 %v7938_v61, %v4806_v48  ;;  %v19408_v2 = vand.u32 4294901760, %v7971_v10  ;;  %v20578_v40 = vld [vmem:[#allocation43_spill] sm:$0xff]  ;;  %v4788_v12 = vmul.f32 %v14520_v13, %v4767_v59 }
 0x84c   :  { %v7851_v33 = vsub.f32 %v20578_v40, %v7787_v29 }
 0x84d   :  { %v7970_v38 = vmax.f32 %v7954_v22, 0.0  ;;  %v19411_v46 = vsub.f32 %v7971_v10, %v19408_v2  ;;  %v14521_v10 = vld [vmem:[#allocation8 + $0xb] ss:$0 sm:$0xff] }
 0x84e   :  { %v4808_v63 = vadd.f32 %v14521_v10, %v4787_v51 }
 0x84f   :  { %v19417_v20 = vand.u32 4294901760, %v7970_v38  ;;  %v8209_v5 = vand.u32 4294901760, %v19411_v46 }
 0x850   :  { %v14485_v55 = vpop.eup %14484 }
 0x851   :  { %v7898_v60 = vmul.f32 %v14485_v55, %v7850_v0  ;;  %v19421_v37 = vsub.f32 %v7970_v38, %v19417_v20  ;;  %v8210_v21 = vsub.f32 %v19411_v46, %v8209_v5  ;;  %v4809_v0 = vadd.f32 %v14521_v10, %v4788_v12  ;;  %v20590_v12 = vld [vmem:[#allocation50_spill] sm:$0xff] }
 0x853   :  { %v8199_v48 = vand.u32 4294901760, %v19421_v37  ;;  %v7919_v11 = vmul.f32 %v18905_v52, %v7898_v60  ;;  %v8211_v31 = vand.u32 4294901760, %v8210_v21 }
 0x854   :  { %v14487_v61 = vpop.eup %14486 }
 0x855   :  { %v7899_v62 = vmul.f32 %v14487_v61, %v7851_v33  ;;  %v8200_v22 = vsub.f32 %v19421_v37, %v8199_v48  ;;  %v7940_v16 = vadd.f32 %v18918_v30, %v7919_v11 }
 0x857   :  { %v8201_v29 = vand.u32 4294901760, %v8200_v22  ;;  %v7956_v38 = vadd.f32 %v7940_v16, %v4808_v63  ;;  %v7920_v57 = vmul.f32 %v18905_v52, %v7899_v62  ;;  %v20579_v63 = vld [vmem:[#allocation16_spill] sm:$0xff]  ;;  %v20581_v22 = vld [vmem:[#allocation37_spill] sm:$0xff] }
 0x858   :  { %v20580_v62 = vld [vmem:[#allocation28_spill] sm:$0xff]  ;;  %v20589_v16 = vld [vmem:[#allocation49_spill] sm:$0xff] }
 0x859   :  { %12307 = vmatprep.mubr.f32.mxu1 %v8201_v29  ;;  %v7972_v49 = vmax.f32 %v7956_v38, 0.0  ;;  %v7941_v55 = vadd.f32 %v18918_v30, %v7920_v57  ;;  %v20591_v29 = vld [vmem:[#allocation24_spill] sm:$0xff]  ;;  %v20592_v38 = vld [vmem:[#allocation27_spill] sm:$0xff] }
 0x85a   :  { %12308 = vmatmul.mubr.f32.gmra.mrb[44].mxu1 %v8211_v31  ;;  %v20593_v57 = vand.u32 4294901760, %v20592_v38  ;;  %v20594_v31 = vld [vmem:[#allocation51_spill] sm:$0xff]  ;;  %v20603_v38 = vld [vmem:[#allocation38_spill] sm:$0xff] }
 0x85b   :  { %v19435_v51 = vand.u32 4294901760, %v7972_v49  ;;  %v7957_v60 = vadd.f32 %v7941_v55, %v4809_v0 }
 0x85d   :  { %v19438_v40 = vsub.f32 %v7972_v49, %v19435_v51  ;;  %v7973_v33 = vmax.f32 %v7957_v60, 0.0  ;;  %v20595_v49 = vand.u32 4294901760, %v20594_v31  ;;  %v20597_v60 = vld [vmem:[#allocation52_spill] sm:$0xff] }
 0x85e   :  { %v20605_v31 = vld [vmem:[#allocation32_spill] sm:$0xff] }
 0x85f   :  { %v8219_v13 = vand.u32 4294901760, %v19438_v40  ;;  %v19441_v59 = vand.u32 4294901760, %v7973_v33  ;;  %v13681_v0 = vpack.c.bf16 %v20595_v49, %v20593_v57  ;;  %v20604_v57 = vand.u32 4294901760, %v20603_v38 }
 0x860   :  { %v20606_v49 = vand.u32 4294901760, %v20605_v31  ;;  %v20622_v38 = vand.u32 4294901760, %v19326_v25  ;;  %v20625_v31 = vld [vmem:[#allocation55_spill] sm:$0xff] }
 0x861   :  { %v8220_v52 = vsub.f32 %v19438_v40, %v8219_v13  ;;  %v19447_v11 = vsub.f32 %v7973_v33, %v19441_v59  ;;  %v20598_v33 = vand.u32 4294901760, %v20597_v60  ;;  %v20609_v60 = vld [vmem:[#allocation41_spill] sm:$0xff] }
 0x863   :  { %v8221_v30 = vand.u32 4294901760, %v8220_v52  ;;  %v8229_v61 = vand.u32 4294901760, %v19447_v11  ;;  %v20599_v52 = vld [vmem:[#allocation21_spill] sm:$0xff] }
 0x865   :  { %12310 = vmatprep.mubr.f32.mxu1 %v8221_v30  ;;  %v8230_v21 = vsub.f32 %v19447_v11, %v8229_v61  ;;  %v20600_v30 = vand.u32 4294901760, %v20599_v52 }
 0x867   :  { %v8231_v10 = vand.u32 4294901760, %v8230_v21  ;;  %v13685_v21 = vpack.c.bf16 %v20600_v30, %v20598_v33  ;;  %v20614_v30 = vld [vmem:[#allocation26_spill] sm:$0xff] }
 0x869   :  { %12311 = vmatmul.mubr.f32.gmra.mrb[46].mxu1 %v8231_v10 }
 0x86a   :  { %12345 = vmatprep.mubr.f32.mxu1 %v20579_v63 }
 0x86d   :  { %12346 = vmatmul.mubr.f32.vlgmr.msra.gmra.mrb[32].mxu1 %v20580_v62 }
 0x86e   :  { %12348 = vmatprep.mubr.f32.mxu1 %v19137_v41  ;;  %13620 = vmatpush3.bf16.msra.mxu1 %v18996_v28  ;;  %v20582_v28 = vld [vmem:[#allocation35_spill] sm:$0xff] }
 0x86f   :  { %13622 = vmatprep.subr.bf16.mxu1 %v20581_v22  ;;  %v20596_v55 = vand.u32 4294901760, %v20582_v28 }
 0x871   :  { %12349 = vmatmul.mubr.f32.gmra.mrb[34].mxu1 %v19102_v18 }
 0x872   :  { %12351 = vmatprep.mubr.f32.mxu1 %v19224_v50  ;;  %13624 = vmatpush3.bf16.msra.mxu1 %v20581_v22  ;;  %v20602_v22 = vand.u32 4294901760, %v19151_v1 }
 0x873   :  { %13626 = vmatprep.subr.bf16.mxu1 %v19064_v8 }
 0x875   :  { %12352 = vmatmul.mubr.f32.gmra.mrb[36].mxu1 %v19206_v14 }
 0x876   :  { %12354 = vmatprep.mubr.f32.mxu1 %v19280_v17  ;;  %13628 = vmatpush3.bf16.msra.mxu1 %v19064_v8  ;;  %v20583_v8 = vld [vmem:[#allocation46_spill] sm:$0xff] }
 0x877   :  { %13630 = vmatprep.subr.bf16.mxu1 %v19084_v4 }
 0x879   :  { %12355 = vmatmul.mubr.f32.gmra.mrb[38].mxu1 %v19265_v39 }
 0x87a   :  { %12357 = vmatprep.mubr.f32.mxu1 %v19333_v3  ;;  %13632 = vmatpush3.bf16.msra.mxu1 %v19084_v4  ;;  %v20584_v4 = vld [vmem:[#allocation34_spill] sm:$0xff] }
 0x87b   :  { %13634 = vmatprep.subr.bf16.mxu1 %v19123_v58  ;;  %v20601_v10 = vand.u32 4294901760, %v20584_v4 }
 0x87d   :  { %12358 = vmatmul.mubr.f32.gmra.mrb[40].mxu1 %v19319_v19 }
 0x87e   :  { %12360 = vmatprep.mubr.f32.mxu1 %v19382_v32  ;;  %13636 = vmatpush3.bf16.msra.mxu1 %v19123_v58  ;;  %v20585_v58 = vld [vmem:[#allocation45_spill] sm:$0xff] }
 0x87f   :  { %13638 = vmatprep.subr.bf16.mxu1 %v19155_v45 }
 0x881   :  { %12361 = vmatmul.mubr.f32.gmra.mrb[42].mxu1 %v19370_v26 }
 0x882   :  { %12363 = vmatprep.mubr.f32.mxu1 %v19417_v20  ;;  %13640 = vmatpush3.bf16.msra.mxu1 %v19155_v45  ;;  %v20586_v45 = vld [vmem:[#allocation33_spill] sm:$0xff] }
 0x883   :  { %13642 = vmatprep.subr.bf16.mxu1 %v19182_v27 }
 0x885   :  { %12364 = vmatmul.mubr.f32.gmra.mrb[44].mxu1 %v19408_v2 }
 0x886   :  { %12366 = vmatprep.mubr.f32.mxu1 %v19435_v51  ;;  %13644 = vmatpush3.bf16.msra.mxu1 %v19182_v27  ;;  %v20587_v27 = vld [vmem:[#allocation47_spill] sm:$0xff] }
 0x887   :  { %13646 = vmatprep.subr.bf16.mxu1 %v19197_v42 }
 0x889   :  { %12367 = vmatmul.mubr.f32.gmra.mrb[46].mxu1 %v19441_v59 }
 0x88a   :  { %13648 = vmatpush3.bf16.msra.mxu1 %v19197_v42  ;;  %12401 = vmatprep.mubr.f32.mxu1 %v20582_v28  ;;  %v20588_v42 = vld [vmem:[#allocation48_spill] sm:$0xff]  ;;  %v13689_v28 = vpack.c.bf16 %v20606_v49, %v20604_v57 }
 0x88b   :  { %13650 = vmatprep.subr.bf16.mxu1 %v20583_v8 }
 0x88d   :  { %12402 = vmatmul.mubr.f32.vlgmr.msra.gmra.mrb[32].mxu1 %v20584_v4  ;;  %v20608_v4 = vand.u32 4294901760, %v18951_v36  ;;  %v20617_v36 = vand.u32 4294901760, %v19341_v43 }
 0x88e   :  { %12404 = vmatprep.mubr.f32.mxu1 %v19151_v1  ;;  %13652 = vmatpush3.bf16.msra.mxu1 %v20583_v8  ;;  %v20610_v1 = vand.u32 4294901760, %v20609_v60 }
 0x88f   :  { %13654 = vmatprep.subr.bf16.mxu1 %v20585_v58 }
 0x890   :  { %v13693_v33 = vpack.c.bf16 %v20610_v1, %v20608_v4 }
 0x891   :  { %12405 = vmatmul.mubr.f32.gmra.mrb[34].mxu1 %v19116_v23 }
 0x892   :  { %12407 = vmatprep.mubr.f32.mxu1 %v19236_v34  ;;  %13656 = vmatpush3.bf16.msra.mxu1 %v20585_v58  ;;  %v20615_v34 = vand.u32 4294901760, %v20614_v30 }
 0x893   :  { %13658 = vmatprep.subr.bf16.mxu1 %v20586_v45 }
 0x895   :  { %12408 = vmatmul.mubr.f32.gmra.mrb[36].mxu1 %v19217_v7  ;;  %v20618_v7 = vld [vmem:[#allocation36_spill] sm:$0xff] }
 0x896   :  { %12410 = vmatprep.mubr.f32.mxu1 %v19288_v44  ;;  %13660 = vmatpush3.bf16.msra.mxu1 %v20586_v45 }
 0x897   :  { %13662 = vmatprep.subr.bf16.mxu1 %v20587_v27 }
 0x899   :  { %12411 = vmatmul.mubr.f32.gmra.mrb[38].mxu1 %v19272_v53 }
 0x89a   :  { %12413 = vmatprep.mubr.f32.mxu1 %v19341_v43  ;;  %13664 = vmatpush3.bf16.msra.mxu1 %v20587_v27  ;;  %v20626_v43 = vand.u32 4294901760, %v20625_v31 }
 0x89b   :  { %13666 = vmatprep.subr.bf16.mxu1 %v20588_v42 }
 0x89d   :  { %12414 = vmatmul.mubr.f32.gmra.mrb[40].mxu1 %v19326_v25  ;;  %v20627_v25 = vand.u32 4294901760, %v19133_v9 }
 0x89e   :  { %12416 = vmatprep.mubr.f32.mxu1 %v19388_v47  ;;  %13668 = vmatpush3.bf16.msra.mxu1 %v20588_v42  ;;  %v20628_v47 = vand.u32 4294901760, %v19143_v15 }
 0x89f   :  { %13670 = vmatprep.subr.bf16.mxu1 %v20589_v16 }
 0x8a1   :  { %12417 = vmatmul.mubr.f32.gmra.mrb[42].mxu1 %v19375_v6 }
 0x8a2   :  { %12419 = vmatprep.mubr.f32.mxu1 %v19421_v37  ;;  %13672 = vmatpush3.bf16.msra.mxu1 %v20589_v16 }
 0x8a3   :  { %13674 = vmatprep.subr.bf16.mxu1 %v20590_v12 }
 0x8a5   :  { %12420 = vmatmul.mubr.f32.gmra.mrb[44].mxu1 %v19411_v46 }
 0x8a6   :  { %12422 = vmatprep.mubr.f32.mxu1 %v19438_v40  ;;  %13676 = vmatpush3.bf16.msra.mxu1 %v20590_v12 }
 0x8a7   :  { %13678 = vmatprep.subr.bf16.mxu1 %v20591_v29 }
 0x8a9   :  { %12423 = vmatmul.mubr.f32.gmra.mrb[46].mxu1 %v19447_v11 }
 0x8aa   :  { %13680 = vmatpush3.bf16.msra.mxu1 %v20591_v29  ;;  %12457 = vmatprep.mubr.f32.mxu1 %v20596_v55  ;;  %v20607_v55 = vand.u32 4294901760, %v19116_v23  ;;  %v20612_v23 = vld [vmem:[#allocation18_spill] sm:$0xff] }
 0x8ab   :  { %13682 = vmatprep.subr.bf16.mxu1 %v13681_v0  ;;  %v20613_v52 = vand.u32 4294901760, %v20612_v23 }
 0x8ad   :  { %12458 = vmatmul.mubr.f32.vlgmr.msra.gmra.mrb[32].mxu1 %v20601_v10  ;;  %v20620_v10 = vld [vmem:[#allocation53_spill] sm:$0xff] }
 0x8ae   :  { %12460 = vmatprep.mubr.f32.mxu1 %v20602_v22  ;;  %13684 = vmatpush3.bf16.msra.mxu1 %v13681_v0  ;;  %v20611_v0 = vand.u32 4294901760, %v19288_v44  ;;  %v20621_v44 = vand.u32 4294901760, %v20620_v10 }
 0x8af   :  { %13686 = vmatprep.subr.bf16.mxu1 %v13685_v21 }
 0x8b1   :  { %12461 = vmatmul.mubr.f32.gmra.mrb[34].mxu1 %v20607_v55 }
 0x8b2   :  { %12463 = vmatprep.mubr.f32.mxu1 %v8119_v35  ;;  %13688 = vmatpush3.bf16.msra.mxu1 %v13685_v21  ;;  %v13697_v35 = vpack.c.bf16 %v20615_v34, %v20613_v52  ;;  %v20616_v21 = vand.u32 4294901760, %v19272_v53  ;;  %v20623_v53 = vld [vmem:[#allocation54_spill] sm:$0xff] }
 0x8b3   :  { %13690 = vmatprep.subr.bf16.mxu1 %v13689_v28  ;;  %v20624_v57 = vand.u32 4294901760, %v20623_v53 }
 0x8b5   :  { %12464 = vmatmul.mubr.f32.gmra.mrb[36].mxu1 %v8129_v56  ;;  %v20619_v56 = vand.u32 4294901760, %v20618_v7  ;;  %v13705_v49 = vpack.c.bf16 %v20626_v43, %v20624_v57 }
 0x8b6   :  { %12466 = vmatprep.mubr.f32.mxu1 %v20611_v0  ;;  %13692 = vmatpush3.bf16.msra.mxu1 %v13689_v28 }
 0x8b7   :  { %13694 = vmatprep.subr.bf16.mxu1 %v13693_v33  ;;  %v13701_v22 = vpack.c.bf16 %v20621_v44, %v20619_v56 }
 0x8b9   :  { %12467 = vmatmul.mubr.f32.gmra.mrb[38].mxu1 %v20616_v21 }
 0x8ba   :  { %12469 = vmatprep.mubr.f32.mxu1 %v20617_v36  ;;  %13696 = vmatpush3.bf16.msra.mxu1 %v13693_v33 }
 0x8bb   :  { %13698 = vmatprep.subr.bf16.mxu1 %v13697_v35 }
 0x8bd   :  { %12470 = vmatmul.mubr.f32.gmra.mrb[40].mxu1 %v20622_v38 }
 0x8be   :  { %12472 = vmatprep.mubr.f32.mxu1 %v8179_v54  ;;  %13700 = vmatpush3.bf16.msra.mxu1 %v13697_v35  ;;  %v13709_v54 = vpack.c.bf16 %v20628_v47, %v20627_v25 }
 0x8bf   :  { %13702 = vmatprep.subr.bf16.mxu1 %v13701_v22 }
 0x8c1   :  { %12473 = vmatmul.mubr.f32.gmra.mrb[42].mxu1 %v8189_v24  ;;  %v19636_v24 = vld [vmem:[#allocation8 + $0x10] ss:$0 sm:$0xff] }
 0x8c2   :  { %12475 = vmatprep.mubr.f32.mxu1 %v8199_v48  ;;  %13704 = vmatpush3.bf16.msra.mxu1 %v13701_v22 }
 0x8c3   :  { %13706 = vmatprep.subr.bf16.mxu1 %v13705_v49 }
 0x8c5   :  { %12476 = vmatmul.mubr.f32.gmra.mrb[44].mxu1 %v8209_v5 }
 0x8c6   :  { %12478 = vmatprep.mubr.f32.mxu1 %v8219_v13  ;;  %13708 = vmatpush3.bf16.msra.mxu1 %v13705_v49 }
 0x8c7   :  { %13710 = vmatprep.subr.bf16.mxu1 %v13709_v54 }
 0x8c9   :  { %12479 = vmatmul.mubr.f32.gmra.mrb[46].mxu1 %v8229_v61 }
 0x8ca   :  { %13712 = vmatpush3.bf16.msra.mxu1 %v13709_v54  ;;  %12513 = vmatprep.mubr.f32.mxu1 %v20579_v63 }
 0x8cb   :  { %13714 = vmatprep.subr.bf16.mxu1 %v20583_v8 }
 0x8cd   :  { %12514 = vmatmul.mubr.f32.vlgmr.msra.gmra.mrb[32].mxu1 %v20580_v62 }
 0x8ce   :  { %12516 = vmatprep.mubr.f32.mxu1 %v19137_v41  ;;  %13716 = vmatpush3.bf16.msra.mxu1 %v20583_v8 }
 0x8cf   :  { %13718 = vmatprep.subr.bf16.mxu1 %v20585_v58 }
 0x8d1   :  { %12517 = vmatmul.mubr.f32.gmra.mrb[34].mxu1 %v19102_v18 }
 0x8d2   :  { %12519 = vmatprep.mubr.f32.mxu1 %v19224_v50  ;;  %13720 = vmatpush3.bf16.msra.mxu1 %v20585_v58 }
 0x8d3   :  { %13722 = vmatprep.subr.bf16.mxu1 %v20586_v45 }
 0x8d5   :  { %12520 = vmatmul.mubr.f32.gmra.mrb[36].mxu1 %v19206_v14 }
 0x8d6   :  { %12522 = vmatprep.mubr.f32.mxu1 %v19280_v17  ;;  %13724 = vmatpush3.bf16.msra.mxu1 %v20586_v45 }
 0x8d7   :  { %13726 = vmatprep.subr.bf16.mxu1 %v20587_v27 }
 0x8d9   :  { %12523 = vmatmul.mubr.f32.gmra.mrb[38].mxu1 %v19265_v39 }
 0x8da   :  { %12525 = vmatprep.mubr.f32.mxu1 %v19333_v3  ;;  %13728 = vmatpush3.bf16.msra.mxu1 %v20587_v27 }
 0x8db   :  { %13730 = vmatprep.subr.bf16.mxu1 %v20588_v42 }
 0x8dd   :  { %12526 = vmatmul.mubr.f32.gmra.mrb[40].mxu1 %v19319_v19 }
 0x8de   :  { %12528 = vmatprep.mubr.f32.mxu1 %v19382_v32  ;;  %13732 = vmatpush3.bf16.msra.mxu1 %v20588_v42 }
 0x8df   :  { %13734 = vmatprep.subr.bf16.mxu1 %v20589_v16 }
 0x8e1   :  { %12529 = vmatmul.mubr.f32.gmra.mrb[42].mxu1 %v19370_v26 }
 0x8e2   :  { %12531 = vmatprep.mubr.f32.mxu1 %v19417_v20  ;;  %13736 = vmatpush3.bf16.msra.mxu1 %v20589_v16 }
 0x8e3   :  { %13738 = vmatprep.subr.bf16.mxu1 %v20590_v12 }
 0x8e5   :  { %12532 = vmatmul.mubr.f32.gmra.mrb[44].mxu1 %v19408_v2 }
 0x8e6   :  { %12534 = vmatprep.mubr.f32.mxu1 %v19435_v51  ;;  %13740 = vmatpush3.bf16.msra.mxu1 %v20590_v12 }
 0x8e7   :  { %13742 = vmatprep.subr.bf16.mxu1 %v20591_v29 }
 0x8e9   :  { %12535 = vmatmul.mubr.f32.gmra.mrb[46].mxu1 %v19441_v59 }
 0x8ea   :  { %13744 = vmatpush3.bf16.msra.mxu1 %v20591_v29  ;;  %12569 = vmatprep.mubr.f32.mxu1 %v20579_v63 }
 0x8ed   :  { %12570 = vmatmul.mubr.f32.vlgmr.msra.gmra.mrb[32].mxu1 %v20580_v62 }
 0x8ee   :  { %12572 = vmatprep.mubr.f32.mxu1 %v19137_v41 }
 0x8f1   :  { %12573 = vmatmul.mubr.f32.gmra.mrb[34].mxu1 %v19102_v18  ;;  %v19628_v18 = vld [vmem:[#allocation8 + $0x5] ss:$0 sm:$0xff] }
 0x8f2   :  { %12575 = vmatprep.mubr.f32.mxu1 %v19224_v50 }
 0x8f5   :  { %12576 = vmatmul.mubr.f32.gmra.mrb[36].mxu1 %v19206_v14 }
 0x8f6   :  { %12578 = vmatprep.mubr.f32.mxu1 %v19280_v17 }
 0x8f9   :  { %12579 = vmatmul.mubr.f32.gmra.mrb[38].mxu1 %v19265_v39 }
 0x8fa   :  { %12581 = vmatprep.mubr.f32.mxu1 %v19333_v3 }
 0x8fd   :  { %12582 = vmatmul.mubr.f32.gmra.mrb[40].mxu1 %v19319_v19 }
 0x8fe   :  { %12584 = vmatprep.mubr.f32.mxu1 %v19382_v32 }
 0x901   :  { %12585 = vmatmul.mubr.f32.gmra.mrb[42].mxu1 %v19370_v26 }
 0x902   :  { %12587 = vmatprep.mubr.f32.mxu1 %v19417_v20 }
 0x905   :  { %12588 = vmatmul.mubr.f32.gmra.mrb[44].mxu1 %v19408_v2 }
 0x906   :  { %12590 = vmatprep.mubr.f32.mxu1 %v19435_v51 }
 0x909   :  { %12591 = vmatmul.mubr.f32.gmra.mrb[46].mxu1 %v19441_v59 }
 0x9c0   :  { %v12571_v9 = vpop.f32.mrb[32].mxu1 }
 0x9c1   :  { %v13825_v41 = vadd.f32 %v12571_v9, %v19628_v18  ;;  %v9188_v15 = vpop.f32.mrb[33].mxu1 }
 0x9c2   :  { %v13826_v14 = vadd.f32 %v19628_v18, %v9188_v15 }
 0x9c3   :  { %14488 = vtanh.f32 %v13825_v41  ;;  %v9424_v41 = vld [vmem:[#allocation8 + $0x11] ss:$0 sm:$0xff] }
 0x9c4   :  { %14490 = vtanh.f32 %v13826_v14  ;;  %v12574_v50 = vpop.f32.mrb[34].mxu1 }
 0x9c5   :  { %v13827_v39 = vadd.f32 %v12574_v50, %v19628_v18  ;;  %v9200_v17 = vpop.f32.mrb[35].mxu1 }
 0x9c6   :  { %v13828_v19 = vadd.f32 %v19628_v18, %v9200_v17 }
 0x9c7   :  { %14492 = vtanh.f32 %v13827_v39 }
 0x9c8   :  { %14494 = vtanh.f32 %v13828_v19  ;;  %v12577_v3 = vpop.f32.mrb[36].mxu1 }
 0x9c9   :  { %v13829_v26 = vadd.f32 %v12577_v3, %v19628_v18  ;;  %v9212_v6 = vpop.f32.mrb[37].mxu1 }
 0x9ca   :  { %v13830_v32 = vadd.f32 %v19628_v18, %v9212_v6 }
 0x9cb   :  { %14496 = vtanh.f32 %v13829_v26 }
 0x9cc   :  { %14498 = vtanh.f32 %v13830_v32  ;;  %v12580_v2 = vpop.f32.mrb[38].mxu1 }
 0x9cd   :  { %v14489_v46 = vpop.eup %14488  ;;  %v13831_v20 = vadd.f32 %v12580_v2, %v19628_v18  ;;  %v9224_v5 = vpop.f32.mrb[39].mxu1 }
 0x9ce   :  { %v14491_v37 = vpop.eup %14490  ;;  %v13832_v48 = vadd.f32 %v19628_v18, %v9224_v5  ;;  %v9304_v51 = vmul.f32 %v14489_v46, %v19636_v24 }
 0x9cf   :  { %14500 = vtanh.f32 %v13831_v20  ;;  %v9303_v40 = vmul.f32 %v14491_v37, %v19636_v24 }
 0x9d0   :  { %14502 = vtanh.f32 %v13832_v48  ;;  %9321 = vadd.xlane.f32.xlu1 %v9304_v51  ;;  %v12583_v13 = vpop.f32.mrb[40].mxu1 }
 0x9d1   :  { %v14493_v59 = vpop.eup %14492  ;;  %v13833_v11 = vadd.f32 %v12583_v13, %v19628_v18  ;;  %v9236_v61 = vpop.f32.mrb[41].mxu1  ;;  %9319 = vadd.xlane.f32.xlu0 %v9303_v40 }
 0x9d2   :  { %v14495_v63 = vpop.eup %14494  ;;  %v13834_v62 = vadd.f32 %v19628_v18, %v9236_v61  ;;  %v9306_v8 = vmul.f32 %v14493_v59, %v19636_v24 }
 0x9d3   :  { %14504 = vtanh.f32 %v13833_v11  ;;  %v9305_v58 = vmul.f32 %v14495_v63, %v19636_v24 }
 0x9d4   :  { %14506 = vtanh.f32 %v13834_v62  ;;  %9325 = vadd.xlane.f32.xlu1 %v9306_v8  ;;  %v12586_v45 = vpop.f32.mrb[42].mxu1 }
 0x9d5   :  { %v14497_v27 = vpop.eup %14496  ;;  %v13835_v42 = vadd.f32 %v12586_v45, %v19628_v18  ;;  %v9248_v16 = vpop.f32.mrb[43].mxu1  ;;  %9323 = vadd.xlane.f32.xlu0 %v9305_v58 }
 0x9d6   :  { %v14499_v12 = vpop.eup %14498  ;;  %v13836_v29 = vadd.f32 %v19628_v18, %v9248_v16  ;;  %v9308_v28 = vmul.f32 %v14497_v27, %v19636_v24 }
 0x9d7   :  { %14508 = vtanh.f32 %v13835_v42  ;;  %v9307_v55 = vmul.f32 %v14499_v12, %v19636_v24 }
 0x9d8   :  { %14510 = vtanh.f32 %v13836_v29  ;;  %9329 = vadd.xlane.f32.xlu1 %v9308_v28  ;;  %v12589_v4 = vpop.f32.mrb[44].mxu1 }
 0x9d9   :  { %v14501_v60 = vpop.eup %14500  ;;  %v13837_v1 = vadd.f32 %v12589_v4, %v19628_v18  ;;  %v9260_v33 = vpop.f32.mrb[45].mxu1  ;;  %9327 = vadd.xlane.f32.xlu0 %v9307_v55 }
 0x9da   :  { %v14503_v0 = vpop.eup %14502  ;;  %v13838_v23 = vadd.f32 %v19628_v18, %v9260_v33  ;;  %v9310_v52 = vmul.f32 %v14501_v60, %v19636_v24 }
 0x9db   :  { %14512 = vtanh.f32 %v13837_v1  ;;  %v9309_v30 = vmul.f32 %v14503_v0, %v19636_v24 }
 0x9dc   :  { %14514 = vtanh.f32 %v13838_v23  ;;  %9333 = vadd.xlane.f32.xlu1 %v9310_v52  ;;  %v12592_v34 = vpop.f32.mrb[46].mxu1 }
 0x9dd   :  { %v14505_v35 = vpop.eup %14504  ;;  %v13839_v21 = vadd.f32 %v12592_v34, %v19628_v18  ;;  %v9272_v36 = vpop.f32.mrb[47].mxu1  ;;  %9331 = vadd.xlane.f32.xlu0 %v9309_v30 }
 0x9de   :  { %v14507_v7 = vpop.eup %14506  ;;  %v13840_v56 = vadd.f32 %v19628_v18, %v9272_v36  ;;  %v9312_v10 = vmul.f32 %v14505_v35, %v19636_v24 }
 0x9df   :  { %14516 = vtanh.f32 %v13839_v21  ;;  %v9311_v44 = vmul.f32 %v14507_v7, %v19636_v24 }
 0x9e0   :  { %14518 = vtanh.f32 %v13840_v56  ;;  %9337 = vadd.xlane.f32.xlu1 %v9312_v10 }
 0x9e1   :  { %v14509_v22 = vpop.eup %14508  ;;  %9335 = vadd.xlane.f32.xlu0 %v9311_v44 }
 0x9e2   :  { %v14511_v38 = vpop.eup %14510  ;;  %v9314_v53 = vmul.f32 %v14509_v22, %v19636_v24 }
 0x9e3   :  { %v9313_v57 = vmul.f32 %v14511_v38, %v19636_v24 }
 0x9e4   :  { %9341 = vadd.xlane.f32.xlu1 %v9314_v53 }
 0x9e5   :  { %v14513_v31 = vpop.eup %14512  ;;  %9339 = vadd.xlane.f32.xlu0 %v9313_v57 }
 0x9e6   :  { %v14515_v43 = vpop.eup %14514  ;;  %v9316_v49 = vmul.f32 %v14513_v31, %v19636_v24 }
 0x9e7   :  { %v9315_v25 = vmul.f32 %v14515_v43, %v19636_v24 }
 0x9e8   :  { %9345 = vadd.xlane.f32.xlu1 %v9316_v49 }
 0x9e9   :  { %v14517_v47 = vpop.eup %14516  ;;  %9343 = vadd.xlane.f32.xlu0 %v9315_v25 }
 0x9ea   :  { %v14519_v54 = vpop.eup %14518  ;;  %v9318_v18 = vmul.f32 %v14517_v47, %v19636_v24 }
 0x9eb   :  { %v9317_v9 = vmul.f32 %v14519_v54, %v19636_v24 }
 0x9ec   :  { %9349 = vadd.xlane.f32.xlu1 %v9318_v18 }
 0x9ed   :  { %9347 = vadd.xlane.f32.xlu0 %v9317_v9 }
 0xa5d   :  { %v9322_v15 = vpop.xlane.xlu1 %9321 }
 0xa5e   :  { %v9357_v14 = vadd.f32 %v9424_v41, %v9322_v15  ;;  %v9320_v50 = vpop.xlane.xlu0 %9319 }
 0xa5f   :  { %v9356_v39 = vadd.f32 %v9424_v41, %v9320_v50 }
 0xa60   :  { %9373 = vst [vmem:[#allocation10 + $0x8] sm:$0xff] %v9357_v14 }
 0xa61   :  { %9372 = vst [vmem:[#allocation10] sm:$0xff] %v9356_v39  ;;  %v9326_v17 = vpop.xlane.xlu1 %9325 }
 0xa62   :  { %v9359_v19 = vadd.f32 %v9424_v41, %v9326_v17  ;;  %v9324_v3 = vpop.xlane.xlu0 %9323 }
 0xa63   :  { %v9358_v26 = vadd.f32 %v9424_v41, %v9324_v3 }
 0xa64   :  { %9375 = vst [vmem:[#allocation10 + $0x18] sm:$0xff] %v9359_v19 }
 0xa65   :  { %9374 = vst [vmem:[#allocation10 + $0x10] sm:$0xff] %v9358_v26  ;;  %v9330_v6 = vpop.xlane.xlu1 %9329 }
 0xa66   :  { %v9361_v32 = vadd.f32 %v9424_v41, %v9330_v6  ;;  %v9328_v2 = vpop.xlane.xlu0 %9327 }
 0xa67   :  { %v9360_v46 = vadd.f32 %v9424_v41, %v9328_v2 }
 0xa68   :  { %9377 = vst [vmem:[#allocation10 + $0x28] sm:$0xff] %v9361_v32 }
 0xa69   :  { %9376 = vst [vmem:[#allocation10 + $0x20] sm:$0xff] %v9360_v46  ;;  %v9334_v24 = vpop.xlane.xlu1 %9333 }
 0xa6a   :  { %v9363_v20 = vadd.f32 %v9424_v41, %v9334_v24  ;;  %v9332_v5 = vpop.xlane.xlu0 %9331 }
 0xa6b   :  { %v9362_v37 = vadd.f32 %v9424_v41, %v9332_v5 }
 0xa6c   :  { %9379 = vst [vmem:[#allocation10 + $0x38] sm:$0xff] %v9363_v20 }
 0xa6d   :  { %9378 = vst [vmem:[#allocation10 + $0x30] sm:$0xff] %v9362_v37  ;;  %v9338_v48 = vpop.xlane.xlu1 %9337 }
 0xa6e   :  { %v9365_v51 = vadd.f32 %v9424_v41, %v9338_v48  ;;  %v9336_v40 = vpop.xlane.xlu0 %9335 }
 0xa6f   :  { %v9364_v13 = vadd.f32 %v9424_v41, %v9336_v40 }
 0xa70   :  { %9381 = vst [vmem:[#allocation10 + $0x48] sm:$0xff] %v9365_v51 }
 0xa71   :  { %9380 = vst [vmem:[#allocation10 + $0x40] sm:$0xff] %v9364_v13  ;;  %v9342_v59 = vpop.xlane.xlu1 %9341 }
 0xa72   :  { %v9367_v11 = vadd.f32 %v9424_v41, %v9342_v59  ;;  %v9340_v61 = vpop.xlane.xlu0 %9339 }
 0xa73   :  { %v9366_v63 = vadd.f32 %v9424_v41, %v9340_v61 }
 0xa74   :  { %9383 = vst [vmem:[#allocation10 + $0x58] sm:$0xff] %v9367_v11 }
 0xa75   :  { %9382 = vst [vmem:[#allocation10 + $0x50] sm:$0xff] %v9366_v63  ;;  %v9346_v62 = vpop.xlane.xlu1 %9345 }
 0xa76   :  { %v9369_v8 = vadd.f32 %v9424_v41, %v9346_v62  ;;  %v9344_v58 = vpop.xlane.xlu0 %9343 }
 0xa77   :  { %v9368_v45 = vadd.f32 %v9424_v41, %v9344_v58 }
 0xa78   :  { %9385 = vst [vmem:[#allocation10 + $0x68] sm:$0xff] %v9369_v8 }
 0xa79   :  { %9384 = vst [vmem:[#allocation10 + $0x60] sm:$0xff] %v9368_v45  ;;  %v9350_v27 = vpop.xlane.xlu1 %9349 }
 0xa7a   :  { %v9371_v42 = vadd.f32 %v9424_v41, %v9350_v27  ;;  %v9348_v16 = vpop.xlane.xlu0 %9347 }
 0xa7b   :  { %v9370_v12 = vadd.f32 %v9424_v41, %v9348_v16 }
 0xa7c   :  { %9387 = vst [vmem:[#allocation10 + $0x78] sm:$0xff] %v9371_v42 }
 0xa7d   :  { %9386 = vst [vmem:[#allocation10 + $0x70] sm:$0xff] %v9370_v12 }
 0xa7e   :  { %14621 = shalt.err (!%p14618_p8)
}
 0xa7f   :  { %s14622_s15 = scalar_lea.hbm %s19683_s4, 2048 }
 0xa80   :  { %p14623_p9 = scmp.ne.s32.totalorder %s19683_s4, %s14622_s15  ;;  %p14626_p10 = scmp.lt.u32.totalorder %s14622_s15, %s19683_s4 }
 0xa82   :  { %p14628_p11 = pnand %p14626_p10, %p14623_p9 }
 0xa84   :  { %14631 = shalt.err (!%p14628_p11)
}
 0xa85   :  { %9399 = dma.vmem_to_hbm [thread:$0]  %s9394_s12, 2048, %s19683_s4, [#allocation4], %s14642_s27, %s14642_s27, %s14643_s28  }
 0xa86   :  { %14638 = dma.done.wait [#allocation4], 2048  }
 0xa87   :  { %14639 = vsyncadd [#allocation4], 4294965248 }
 0xa88   :  { %9403 = vsyncpa [#allocation3], 1 }
 0xa89   :  { %9404 = vsyncpa [#allocation6], 1 }
 0xa8a   :  { %9405 = vsyncpa [#allocation9], 1 }
 0xa8b   :  { %9406 = vsyncpa [#allocation4], 1 }

</bundles_post_ra>
